<compile_context>
chip_gen: v5e
topology: v5e:2x2
jax: 0.10.0
libtpu: 0.0.40
codegen_flags: <defaults>
</compile_context>

<pallas_src>
import functools

import numpy as np

import jax
import jax.numpy as jnp
from jax.experimental import pallas as pl
from jax.experimental.pallas import tpu as pltpu

EPS = 1e-5
NEG_SLOPE = 0.2


# ----------------------------------------------------------------------------
# Trace-time constant "structure" matrices (numpy). All are 0/1 -> exact bf16.
# Zero padding of the convs is folded in (out-of-range taps simply omitted).
# ----------------------------------------------------------------------------
def _sel_rows(n_batch, s_out, s_in):
    """(4, N*So, N*Si): for kernel row kh, output row (n,ho) reads input row
    (n, 2*ho + kh - 1); the H zero-padding taps are omitted."""
    m = np.zeros((4, n_batch * s_out, n_batch * s_in), np.float32)
    for kh in range(4):
        for n in range(n_batch):
            for ho in range(s_out):
                hi = 2 * ho + kh - 1
                if 0 <= hi < s_in:
                    m[kh, n * s_out + ho, n * s_in + hi] = 1.0
    return m


def _w_mask(s_in, s_out):
    """(4, Si, So): mask[kw, wi, wo] = 1 iff wi == 2*wo + kw - 1 (W padding folded)."""
    m = np.zeros((4, s_in, s_out), np.float32)
    for kw in range(4):
        for wo in range(s_out):
            wi = 2 * wo + kw - 1
            if 0 <= wi < s_in:
                m[kw, wi, wo] = 1.0
    return m


def _chan_fold(c, s_out):
    """(So*C, C): sums the (w, c) lane layout over w per channel.
    Its transpose is the per-channel broadcast (plain tile of the identity)."""
    return np.tile(np.eye(c, dtype=np.float32), (s_out, 1))


def _lin_mask(n_batch, s_f, latent):
    """(N*sf, sf*latent): 1 iff (row % sf) == (col // latent) — block-diagonal pick."""
    rowh = np.tile(np.arange(s_f), n_batch)
    colh = np.repeat(np.arange(s_f), latent)
    return (rowh[:, None] == colh[None, :]).astype(np.float32)


def _lin_fold(s_f, latent):
    """(sf*latent, latent): sums the ho lane blocks back onto the latent lanes."""
    return np.tile(np.eye(latent, dtype=np.float32), (s_f, 1))


def _batch_sum(n_batch, s_f):
    """(N, N*sf): sums the sf rows belonging to each batch element."""
    return np.kron(np.eye(n_batch, dtype=np.float32),
                   np.ones((1, s_f), np.float32))


# ----------------------------------------------------------------------------
# The single fused kernel: 4x (conv -> BN -> act) + Linear, all in VMEM.
# ----------------------------------------------------------------------------
def _encoder_kernel(*refs, meta):
    n_batch, s_outs, c_outs = meta
    num_layers = len(s_outs)

    cur = refs[0][...]                                   # f32 (N*H, W*C0)
    off = 1
    for i in range(num_layers):
        sel, wcat, bct, bc, g, b = refs[off:off + 6]
        off += 6
        s_out, c_out = s_outs[i], c_outs[i]
        lw = s_out * c_out
        count = float(n_batch * s_out * s_out)

        # --- Conv 4x4 / stride 2 / pad 1 (bias=False) ------------------------
        # One wide bf16 matmul folds kw shift + stride-2 W subsample + channel
        # contraction for all four kh blocks at once (1024-lane RHS); four
        # small row-select matmuls do the stride-2 H part and the kh sum.
        t = jnp.dot(cur.astype(jnp.bfloat16), wcat[...],
                    preferred_element_type=jnp.float32)   # (N*Si, 4*lw)
        t16 = t.astype(jnp.bfloat16)
        y = None
        for kh in range(4):
            p = jnp.dot(sel[kh], t16[:, kh * lw:(kh + 1) * lw],
                        preferred_element_type=jnp.float32)   # (N*So, lw)
            y = p if y is None else y + p

        # --- BatchNorm2d, training-mode batch statistics (biased variance) ---
        rs = jnp.sum(y, axis=0, keepdims=True)            # (1, lw)
        rq = jnp.sum(y * y, axis=0, keepdims=True)        # (1, lw)
        stats = jnp.dot(jnp.concatenate([rs, rq], axis=0),
                        bct[...].astype(jnp.float32),
                        preferred_element_type=jnp.float32) / count   # (2, C)
        mean, ex2 = stats[0:1], stats[1:2]
        var = ex2 - mean * mean
        scale = g[...] * jax.lax.rsqrt(var + EPS)          # (1, C)
        shift = b[...] - mean * scale
        ssb = jnp.dot(jnp.concatenate([scale, shift], axis=0),
                      bc[...].astype(jnp.float32),
                      preferred_element_type=jnp.float32)  # (2, lw)
        z = y * ssb[0:1] + ssb[1:2]

        # --- Activation -------------------------------------------------------
        cur = jnp.tanh(z) if i == num_layers - 1 else \
            jnp.where(z >= 0.0, z, NEG_SLOPE * z)

    # --- Linear tail: 3 matmuls, consumes the (n,ho | wo,c) layout directly ---
    wlin, mmask, fold, gsum, lin_b, o_ref = refs[off:off + 6]
    zc = jnp.dot(cur.astype(jnp.bfloat16), wlin[...],
                 preferred_element_type=jnp.float32)       # (N*sf, sf*latent)
    d = zc * mmask[...]                                    # keep only hr == ho blocks
    per_batch = jnp.dot(gsum[...], d,
                        preferred_element_type=jnp.float32)    # (N, sf*latent)
    out = jnp.dot(per_batch, fold[...],
                  preferred_element_type=jnp.float32)      # (N, latent)
    o_ref[...] = out + lin_b[...]


# ----------------------------------------------------------------------------
# Wrapper: builds the constant operands and calls the single pallas_call.
# ----------------------------------------------------------------------------
def celeb_encoder_forward(x, params):
    n_batch, c0, h, w = x.shape
    assert h == w and h % 16 == 0, "four stride-2 convs need spatial % 16 == 0"
    latent = params["lin_b"].shape[0]

    # NCHW -> (N*H, W*C0) slab (rows = (n, h), lanes = (w, c)); no padding.
    a0 = jnp.transpose(x, (0, 2, 3, 1)).reshape(n_batch * h, w * c0)

    args = [a0]
    s_in, c_in = h, c0
    s_outs, c_outs = [], []
    for i in range(4):
        cw = params[f"conv{i}_w"]                          # (Cout, Cin, 4, 4)
        c_out = cw.shape[0]
        s_out = s_in // 2

        sel = jnp.asarray(_sel_rows(n_batch, s_out, s_in), dtype=jnp.bfloat16)
        mask = jnp.asarray(_w_mask(s_in, s_out))           # (4, Si, So)
        # wcat[(wi,ci), (kh,wo,co)] = sum_kw cw[co,ci,kh,kw] * mask[kw,wi,wo]
        wcat = jnp.einsum("kpn,oihk->pihno", mask, cw).reshape(
            s_in * c_in, 4 * s_out * c_out).astype(jnp.bfloat16)
        fold_np = _chan_fold(c_out, s_out)                 # (So*C, C)
        bct = jnp.asarray(fold_np, dtype=jnp.bfloat16)     # channel reduce
        bc = jnp.asarray(fold_np.T, dtype=jnp.bfloat16)    # channel broadcast
        g = params[f"bn{i}_g"].reshape(1, c_out)
        b = params[f"bn{i}_b"].reshape(1, c_out)
        args += [sel, wcat, bct, bc, g, b]

        s_outs.append(s_out)
        c_outs.append(c_out)
        s_in, c_in = s_out, c_out

    # Linear weight re-ordered so one matmul consumes the kernel layout and
    # emits per-ho lane blocks; mask/fold/batch-sum extract the block diagonal
    # and reduce -- exactly PyTorch's NCHW .view flatten + Linear.
    s_f, c_last = s_outs[-1], c_outs[-1]
    lin_w = params["lin_w"]                                # (latent, C*sf*sf)
    assert lin_w.shape[1] == c_last * s_f * s_f
    wlin_cat = jnp.transpose(lin_w.reshape(latent, c_last, s_f, s_f),
                             (3, 1, 2, 0)).reshape(
        s_f * c_last, s_f * latent).astype(jnp.bfloat16)
    args += [wlin_cat,
             jnp.asarray(_lin_mask(n_batch, s_f, latent)),
             jnp.asarray(_lin_fold(s_f, latent)),
             jnp.asarray(_batch_sum(n_batch, s_f)),
             params["lin_b"].reshape(1, latent)]

    vmem = pl.BlockSpec(memory_space=pltpu.MemorySpace.VMEM)
    meta = (n_batch, tuple(s_outs), tuple(c_outs))
    # No grid: training-mode BatchNorm statistics couple all batch elements,
    # so the whole (small) batch is processed resident in VMEM (~2.5 MiB of
    # operands, well inside every generation's scoped limit).
    return pl.pallas_call(
        functools.partial(_encoder_kernel, meta=meta),
        out_shape=jax.ShapeDtypeStruct((n_batch, latent), jnp.float32),
        in_specs=[vmem] * len(args),
        out_specs=vmem,
        compiler_params=pltpu.CompilerParams(
            vmem_limit_bytes=32 * 1024 * 1024),
        cost_estimate=pl.CostEstimate(flops=135_000_000,
                                      transcendentals=2_500,
                                      bytes_accessed=3_000_000),
    )(*args)


# ----------------------------------------------------------------------------
# Deterministic parameter init (shapes from CelebEncoder.__init__).
# ----------------------------------------------------------------------------
def init_params(key, input_channels, base_features, latent_size):
    keys = jax.random.split(key, 6)
    p = {}
    c_in = input_channels
    for i in range(4):
        c_out = base_features * (2 ** i)
        p[f"conv{i}_w"] = 0.05 * jax.random.normal(
            keys[i], (c_out, c_in, 4, 4), jnp.float32)
        p[f"bn{i}_g"] = jnp.ones((c_out,), jnp.float32)     # BatchNorm2d defaults
        p[f"bn{i}_b"] = jnp.zeros((c_out,), jnp.float32)
        c_in = c_out
    in_feat = base_features * 8 * 4 * 4
    p["lin_w"] = 0.05 * jax.random.normal(keys[4], (latent_size, in_feat),
                                          jnp.float32)
    p["lin_b"] = 0.05 * jax.random.normal(keys[5], (latent_size,), jnp.float32)
    return p


# ----------------------------------------------------------------------------
# Pure-JAX reference (float32, HIGHEST precision) for the correctness check.
# ----------------------------------------------------------------------------
def reference_forward(x, params):
    acts = ["leaky_relu", "leaky_relu", "leaky_relu", "tanh"]
    h = x
    for i in range(4):
        w = params[f"conv{i}_w"]
        y = jax.lax.conv_general_dilated(
            h, w, (2, 2), [(1, 1), (1, 1)],
            dimension_numbers=("NCHW", "OIHW", "NCHW"),
            precision=jax.lax.Precision.HIGHEST)
        mean = jnp.mean(y, axis=(0, 2, 3), keepdims=True)
        var = jnp.mean((y - mean) ** 2, axis=(0, 2, 3), keepdims=True)
        g = params[f"bn{i}_g"].reshape(1, -1, 1, 1)
        b = params[f"bn{i}_b"].reshape(1, -1, 1, 1)
        yn = (y - mean) * jax.lax.rsqrt(var + EPS) * g + b
        h = jnp.where(yn >= 0, yn, NEG_SLOPE * yn) if acts[i] == "leaky_relu" \
            else jnp.tanh(yn)
    flat = h.reshape(h.shape[0], -1)
    return jnp.dot(flat, params["lin_w"].T,
                   precision=jax.lax.Precision.HIGHEST) + params["lin_b"]


if __name__ == "__main__":
    key = jax.random.PRNGKey(0)
    k_x, k_p = jax.random.split(key)

    # Spatial must be 64x64: four stride-2 convs -> 4x4 before the Linear.
    input_channels, base_features, latent_size = 3, 8, 64
    x = jax.random.normal(k_x, (2, input_channels, 64, 64), jnp.float32)
    params = init_params(k_p, input_channels, base_features, latent_size)

    out = jax.jit(celeb_encoder_forward)(x, params)
    out = jax.block_until_ready(out)

    assert out.shape == (2, latent_size)
    ref = reference_forward(x, params)
    max_err = float(jnp.max(jnp.abs(out - ref)))
    # Kernel stores weights/activations in bf16 for the MXU (f32 accumulation);
    # tolerance is sized for bf16 operand rounding through 4 conv+BN layers
    # versus the float32 HIGHEST-precision reference.
    assert jnp.allclose(out, ref, atol=3e-2, rtol=3e-2), max_err

    print("KERNEL_OK")
</pallas_src>

<mosaic_0001>
module attributes {stable_mosaic.version = 11 : i64} {
  func.func @_encoder_kernel(%arg0: memref<128x192xf32, #tpu.memory_space<vmem>>, %arg1: memref<4x64x128xbf16, #tpu.memory_space<vmem>>, %arg2: memref<192x1024xbf16, #tpu.memory_space<vmem>>, %arg3: memref<256x8xbf16, #tpu.memory_space<vmem>>, %arg4: memref<8x256xbf16, #tpu.memory_space<vmem>>, %arg5: memref<1x8xf32, #tpu.memory_space<vmem>>, %arg6: memref<1x8xf32, #tpu.memory_space<vmem>>, %arg7: memref<4x32x64xbf16, #tpu.memory_space<vmem>>, %arg8: memref<256x1024xbf16, #tpu.memory_space<vmem>>, %arg9: memref<256x16xbf16, #tpu.memory_space<vmem>>, %arg10: memref<16x256xbf16, #tpu.memory_space<vmem>>, %arg11: memref<1x16xf32, #tpu.memory_space<vmem>>, %arg12: memref<1x16xf32, #tpu.memory_space<vmem>>, %arg13: memref<4x16x32xbf16, #tpu.memory_space<vmem>>, %arg14: memref<256x1024xbf16, #tpu.memory_space<vmem>>, %arg15: memref<256x32xbf16, #tpu.memory_space<vmem>>, %arg16: memref<32x256xbf16, #tpu.memory_space<vmem>>, %arg17: memref<1x32xf32, #tpu.memory_space<vmem>>, %arg18: memref<1x32xf32, #tpu.memory_space<vmem>>, %arg19: memref<4x8x16xbf16, #tpu.memory_space<vmem>>, %arg20: memref<256x1024xbf16, #tpu.memory_space<vmem>>, %arg21: memref<256x64xbf16, #tpu.memory_space<vmem>>, %arg22: memref<64x256xbf16, #tpu.memory_space<vmem>>, %arg23: memref<1x64xf32, #tpu.memory_space<vmem>>, %arg24: memref<1x64xf32, #tpu.memory_space<vmem>>, %arg25: memref<256x256xbf16, #tpu.memory_space<vmem>>, %arg26: memref<8x256xf32, #tpu.memory_space<vmem>>, %arg27: memref<256x64xf32, #tpu.memory_space<vmem>>, %arg28: memref<2x8xf32, #tpu.memory_space<vmem>>, %arg29: memref<1x64xf32, #tpu.memory_space<vmem>>, %arg30: memref<2x64xf32, #tpu.memory_space<vmem>>) attributes {dimension_semantics = [], scalar_prefetch = 0 : i64, scratch_operands = 0 : i64, tpu.core_type = #tpu.core_type<tc>} {
    %c0 = arith.constant 0 : index
    %c0_0 = arith.constant 0 : index
    %0 = vector.load %arg0[%c0, %c0_0] : memref<128x192xf32, #tpu.memory_space<vmem>>, vector<128x192xf32>
    %1 = arith.truncf %0 : vector<128x192xf32> to vector<128x192xbf16>
    %c0_1 = arith.constant 0 : index
    %c0_2 = arith.constant 0 : index
    %2 = vector.load %arg2[%c0_1, %c0_2] : memref<192x1024xbf16, #tpu.memory_space<vmem>>, vector<192x1024xbf16>
    %cst = arith.constant dense<0.000000e+00> : vector<128x1024xf32>
    %3 = tpu.matmul %1, %2, %cst {dimension_numbers = #tpu.dot_dimension_numbers<[1], [0], [0], [1], [0, 0, 1, 1], [], []>} : vector<128x192xbf16>, vector<192x1024xbf16>, vector<128x1024xf32> -> vector<128x1024xf32>
    %4 = arith.truncf %3 : vector<128x1024xf32> to vector<128x1024xbf16>
    %c0_3 = arith.constant 0 : index
    %c0_4 = arith.constant 0 : index
    %c0_5 = arith.constant 0 : index
    %5 = vector.load %arg1[%c0_3, %c0_4, %c0_5] : memref<4x64x128xbf16, #tpu.memory_space<vmem>>, vector<1x64x128xbf16>
    %6 = vector.shape_cast %5 : vector<1x64x128xbf16> to vector<64x128xbf16>
    %7 = vector.extract_strided_slice %4 {offsets = [0, 0], sizes = [128, 256], strides = [1, 1]} : vector<128x1024xbf16> to vector<128x256xbf16>
    %cst_6 = arith.constant dense<0.000000e+00> : vector<64x256xf32>
    %8 = tpu.matmul %6, %7, %cst_6 {dimension_numbers = #tpu.dot_dimension_numbers<[1], [0], [0], [1], [0, 0, 1, 1], [], []>} : vector<64x128xbf16>, vector<128x256xbf16>, vector<64x256xf32> -> vector<64x256xf32>
    %c1 = arith.constant 1 : index
    %c0_7 = arith.constant 0 : index
    %c0_8 = arith.constant 0 : index
    %9 = vector.load %arg1[%c1, %c0_7, %c0_8] : memref<4x64x128xbf16, #tpu.memory_space<vmem>>, vector<1x64x128xbf16>
    %10 = vector.shape_cast %9 : vector<1x64x128xbf16> to vector<64x128xbf16>
    %11 = vector.extract_strided_slice %4 {offsets = [0, 256], sizes = [128, 256], strides = [1, 1]} : vector<128x1024xbf16> to vector<128x256xbf16>
    %cst_9 = arith.constant dense<0.000000e+00> : vector<64x256xf32>
    %12 = tpu.matmul %10, %11, %cst_9 {dimension_numbers = #tpu.dot_dimension_numbers<[1], [0], [0], [1], [0, 0, 1, 1], [], []>} : vector<64x128xbf16>, vector<128x256xbf16>, vector<64x256xf32> -> vector<64x256xf32>
    %13 = arith.addf %8, %12 : vector<64x256xf32>
    %c2 = arith.constant 2 : index
    %c0_10 = arith.constant 0 : index
    %c0_11 = arith.constant 0 : index
    %14 = vector.load %arg1[%c2, %c0_10, %c0_11] : memref<4x64x128xbf16, #tpu.memory_space<vmem>>, vector<1x64x128xbf16>
    %15 = vector.shape_cast %14 : vector<1x64x128xbf16> to vector<64x128xbf16>
    %16 = vector.extract_strided_slice %4 {offsets = [0, 512], sizes = [128, 256], strides = [1, 1]} : vector<128x1024xbf16> to vector<128x256xbf16>
    %cst_12 = arith.constant dense<0.000000e+00> : vector<64x256xf32>
    %17 = tpu.matmul %15, %16, %cst_12 {dimension_numbers = #tpu.dot_dimension_numbers<[1], [0], [0], [1], [0, 0, 1, 1], [], []>} : vector<64x128xbf16>, vector<128x256xbf16>, vector<64x256xf32> -> vector<64x256xf32>
    %18 = arith.addf %13, %17 : vector<64x256xf32>
    %c3 = arith.constant 3 : index
    %c0_13 = arith.constant 0 : index
    %c0_14 = arith.constant 0 : index
    %19 = vector.load %arg1[%c3, %c0_13, %c0_14] : memref<4x64x128xbf16, #tpu.memory_space<vmem>>, vector<1x64x128xbf16>
    %20 = vector.shape_cast %19 : vector<1x64x128xbf16> to vector<64x128xbf16>
    %21 = vector.extract_strided_slice %4 {offsets = [0, 768], sizes = [128, 256], strides = [1, 1]} : vector<128x1024xbf16> to vector<128x256xbf16>
    %cst_15 = arith.constant dense<0.000000e+00> : vector<64x256xf32>
    %22 = tpu.matmul %20, %21, %cst_15 {dimension_numbers = #tpu.dot_dimension_numbers<[1], [0], [0], [1], [0, 0, 1, 1], [], []>} : vector<64x128xbf16>, vector<128x256xbf16>, vector<64x256xf32> -> vector<64x256xf32>
    %23 = arith.addf %18, %22 : vector<64x256xf32>
    %cst_16 = arith.constant dense<0.000000e+00> : vector<256xf32>
    %24 = vector.multi_reduction <add>, %23, %cst_16 [0] : vector<64x256xf32> to vector<256xf32>
    %25 = vector.shape_cast %24 : vector<256xf32> to vector<1x256xf32>
    %26 = arith.mulf %23, %23 : vector<64x256xf32>
    %cst_17 = arith.constant dense<0.000000e+00> : vector<256xf32>
    %27 = vector.multi_reduction <add>, %26, %cst_17 [0] : vector<64x256xf32> to vector<256xf32>
    %28 = vector.shape_cast %27 : vector<256xf32> to vector<1x256xf32>
    %29 = tpu.concatenate %25, %28 in 0 : vector<1x256xf32>, vector<1x256xf32> -> vector<2x256xf32>
    %c0_18 = arith.constant 0 : index
    %c0_19 = arith.constant 0 : index
    %30 = vector.load %arg3[%c0_18, %c0_19] : memref<256x8xbf16, #tpu.memory_space<vmem>>, vector<256x8xbf16>
    %31 = arith.extf %30 : vector<256x8xbf16> to vector<256x8xf32>
    %cst_20 = arith.constant dense<0.000000e+00> : vector<2x8xf32>
    %32 = tpu.matmul %29, %31, %cst_20 {dimension_numbers = #tpu.dot_dimension_numbers<[1], [0], [0], [1], [0, 0, 1, 1], [], []>} : vector<2x256xf32>, vector<256x8xf32>, vector<2x8xf32> -> vector<2x8xf32>
    %cst_21 = arith.constant 2.048000e+03 : f32
    %33 = vector.broadcast %cst_21 : f32 to vector<2x8xf32>
    %34 = arith.divf %32, %33 : vector<2x8xf32>
    %35 = vector.extract_strided_slice %34 {offsets = [0, 0], sizes = [1, 8], strides = [1, 1]} : vector<2x8xf32> to vector<1x8xf32>
    %36 = vector.extract_strided_slice %34 {offsets = [1, 0], sizes = [1, 8], strides = [1, 1]} : vector<2x8xf32> to vector<1x8xf32>
    %37 = arith.mulf %35, %35 : vector<1x8xf32>
    %38 = arith.subf %36, %37 : vector<1x8xf32>
    %c0_22 = arith.constant 0 : index
    %c0_23 = arith.constant 0 : index
    %39 = vector.load %arg5[%c0_22, %c0_23] : memref<1x8xf32, #tpu.memory_space<vmem>>, vector<1x8xf32>
    %cst_24 = arith.constant 9.99999974E-6 : f32
    %40 = vector.broadcast %cst_24 : f32 to vector<1x8xf32>
    %41 = arith.addf %38, %40 : vector<1x8xf32>
    %42 = math.rsqrt %41 : vector<1x8xf32>
    %43 = arith.mulf %39, %42 : vector<1x8xf32>
    %c0_25 = arith.constant 0 : index
    %c0_26 = arith.constant 0 : index
    %44 = vector.load %arg6[%c0_25, %c0_26] : memref<1x8xf32, #tpu.memory_space<vmem>>, vector<1x8xf32>
    %45 = arith.mulf %35, %43 : vector<1x8xf32>
    %46 = arith.subf %44, %45 : vector<1x8xf32>
    %47 = tpu.concatenate %43, %46 in 0 : vector<1x8xf32>, vector<1x8xf32> -> vector<2x8xf32>
    %c0_27 = arith.constant 0 : index
    %c0_28 = arith.constant 0 : index
    %48 = vector.load %arg4[%c0_27, %c0_28] : memref<8x256xbf16, #tpu.memory_space<vmem>>, vector<8x256xbf16>
    %49 = arith.extf %48 : vector<8x256xbf16> to vector<8x256xf32>
    %cst_29 = arith.constant dense<0.000000e+00> : vector<2x256xf32>
    %50 = tpu.matmul %47, %49, %cst_29 {dimension_numbers = #tpu.dot_dimension_numbers<[1], [0], [0], [1], [0, 0, 1, 1], [], []>} : vector<2x8xf32>, vector<8x256xf32>, vector<2x256xf32> -> vector<2x256xf32>
    %51 = vector.extract_strided_slice %50 {offsets = [0, 0], sizes = [1, 256], strides = [1, 1]} : vector<2x256xf32> to vector<1x256xf32>
    %52 = vector.broadcast %51 : vector<1x256xf32> to vector<64x256xf32>
    %53 = arith.mulf %23, %52 : vector<64x256xf32>
    %54 = vector.extract_strided_slice %50 {offsets = [1, 0], sizes = [1, 256], strides = [1, 1]} : vector<2x256xf32> to vector<1x256xf32>
    %55 = vector.broadcast %54 : vector<1x256xf32> to vector<64x256xf32>
    %56 = arith.addf %53, %55 : vector<64x256xf32>
    %cst_30 = arith.constant 0.000000e+00 : f32
    %57 = vector.broadcast %cst_30 : f32 to vector<64x256xf32>
    %58 = arith.cmpf oge, %56, %57 : vector<64x256xf32>
    %cst_31 = arith.constant 2.000000e-01 : f32
    %59 = vector.broadcast %cst_31 : f32 to vector<64x256xf32>
    %60 = arith.mulf %59, %56 : vector<64x256xf32>
    %61 = arith.select %58, %56, %60 : vector<64x256xi1>, vector<64x256xf32>
    %62 = arith.truncf %61 : vector<64x256xf32> to vector<64x256xbf16>
    %c0_32 = arith.constant 0 : index
    %c0_33 = arith.constant 0 : index
    %63 = vector.load %arg8[%c0_32, %c0_33] : memref<256x1024xbf16, #tpu.memory_space<vmem>>, vector<256x1024xbf16>
    %cst_34 = arith.constant dense<0.000000e+00> : vector<64x1024xf32>
    %64 = tpu.matmul %62, %63, %cst_34 {dimension_numbers = #tpu.dot_dimension_numbers<[1], [0], [0], [1], [0, 0, 1, 1], [], []>} : vector<64x256xbf16>, vector<256x1024xbf16>, vector<64x1024xf32> -> vector<64x1024xf32>
    %65 = arith.truncf %64 : vector<64x1024xf32> to vector<64x1024xbf16>
    %c0_35 = arith.constant 0 : index
    %c0_36 = arith.constant 0 : index
    %c0_37 = arith.constant 0 : index
    %66 = vector.load %arg7[%c0_35, %c0_36, %c0_37] : memref<4x32x64xbf16, #tpu.memory_space<vmem>>, vector<1x32x64xbf16>
    %67 = vector.shape_cast %66 : vector<1x32x64xbf16> to vector<32x64xbf16>
    %68 = vector.extract_strided_slice %65 {offsets = [0, 0], sizes = [64, 256], strides = [1, 1]} : vector<64x1024xbf16> to vector<64x256xbf16>
    %cst_38 = arith.constant dense<0.000000e+00> : vector<32x256xf32>
    %69 = tpu.matmul %67, %68, %cst_38 {dimension_numbers = #tpu.dot_dimension_numbers<[1], [0], [0], [1], [0, 0, 1, 1], [], []>} : vector<32x64xbf16>, vector<64x256xbf16>, vector<32x256xf32> -> vector<32x256xf32>
    %c1_39 = arith.constant 1 : index
    %c0_40 = arith.constant 0 : index
    %c0_41 = arith.constant 0 : index
    %70 = vector.load %arg7[%c1_39, %c0_40, %c0_41] : memref<4x32x64xbf16, #tpu.memory_space<vmem>>, vector<1x32x64xbf16>
    %71 = vector.shape_cast %70 : vector<1x32x64xbf16> to vector<32x64xbf16>
    %72 = vector.extract_strided_slice %65 {offsets = [0, 256], sizes = [64, 256], strides = [1, 1]} : vector<64x1024xbf16> to vector<64x256xbf16>
    %cst_42 = arith.constant dense<0.000000e+00> : vector<32x256xf32>
    %73 = tpu.matmul %71, %72, %cst_42 {dimension_numbers = #tpu.dot_dimension_numbers<[1], [0], [0], [1], [0, 0, 1, 1], [], []>} : vector<32x64xbf16>, vector<64x256xbf16>, vector<32x256xf32> -> vector<32x256xf32>
    %74 = arith.addf %69, %73 : vector<32x256xf32>
    %c2_43 = arith.constant 2 : index
    %c0_44 = arith.constant 0 : index
    %c0_45 = arith.constant 0 : index
    %75 = vector.load %arg7[%c2_43, %c0_44, %c0_45] : memref<4x32x64xbf16, #tpu.memory_space<vmem>>, vector<1x32x64xbf16>
    %76 = vector.shape_cast %75 : vector<1x32x64xbf16> to vector<32x64xbf16>
    %77 = vector.extract_strided_slice %65 {offsets = [0, 512], sizes = [64, 256], strides = [1, 1]} : vector<64x1024xbf16> to vector<64x256xbf16>
    %cst_46 = arith.constant dense<0.000000e+00> : vector<32x256xf32>
    %78 = tpu.matmul %76, %77, %cst_46 {dimension_numbers = #tpu.dot_dimension_numbers<[1], [0], [0], [1], [0, 0, 1, 1], [], []>} : vector<32x64xbf16>, vector<64x256xbf16>, vector<32x256xf32> -> vector<32x256xf32>
    %79 = arith.addf %74, %78 : vector<32x256xf32>
    %c3_47 = arith.constant 3 : index
    %c0_48 = arith.constant 0 : index
    %c0_49 = arith.constant 0 : index
    %80 = vector.load %arg7[%c3_47, %c0_48, %c0_49] : memref<4x32x64xbf16, #tpu.memory_space<vmem>>, vector<1x32x64xbf16>
    %81 = vector.shape_cast %80 : vector<1x32x64xbf16> to vector<32x64xbf16>
    %82 = vector.extract_strided_slice %65 {offsets = [0, 768], sizes = [64, 256], strides = [1, 1]} : vector<64x1024xbf16> to vector<64x256xbf16>
    %cst_50 = arith.constant dense<0.000000e+00> : vector<32x256xf32>
    %83 = tpu.matmul %81, %82, %cst_50 {dimension_numbers = #tpu.dot_dimension_numbers<[1], [0], [0], [1], [0, 0, 1, 1], [], []>} : vector<32x64xbf16>, vector<64x256xbf16>, vector<32x256xf32> -> vector<32x256xf32>
    %84 = arith.addf %79, %83 : vector<32x256xf32>
    %cst_51 = arith.constant dense<0.000000e+00> : vector<256xf32>
    %85 = vector.multi_reduction <add>, %84, %cst_51 [0] : vector<32x256xf32> to vector<256xf32>
    %86 = vector.shape_cast %85 : vector<256xf32> to vector<1x256xf32>
    %87 = arith.mulf %84, %84 : vector<32x256xf32>
    %cst_52 = arith.constant dense<0.000000e+00> : vector<256xf32>
    %88 = vector.multi_reduction <add>, %87, %cst_52 [0] : vector<32x256xf32> to vector<256xf32>
    %89 = vector.shape_cast %88 : vector<256xf32> to vector<1x256xf32>
    %90 = tpu.concatenate %86, %89 in 0 : vector<1x256xf32>, vector<1x256xf32> -> vector<2x256xf32>
    %c0_53 = arith.constant 0 : index
    %c0_54 = arith.constant 0 : index
    %91 = vector.load %arg9[%c0_53, %c0_54] : memref<256x16xbf16, #tpu.memory_space<vmem>>, vector<256x16xbf16>
    %92 = arith.extf %91 : vector<256x16xbf16> to vector<256x16xf32>
    %cst_55 = arith.constant dense<0.000000e+00> : vector<2x16xf32>
    %93 = tpu.matmul %90, %92, %cst_55 {dimension_numbers = #tpu.dot_dimension_numbers<[1], [0], [0], [1], [0, 0, 1, 1], [], []>} : vector<2x256xf32>, vector<256x16xf32>, vector<2x16xf32> -> vector<2x16xf32>
    %cst_56 = arith.constant 5.120000e+02 : f32
    %94 = vector.broadcast %cst_56 : f32 to vector<2x16xf32>
    %95 = arith.divf %93, %94 : vector<2x16xf32>
    %96 = vector.extract_strided_slice %95 {offsets = [0, 0], sizes = [1, 16], strides = [1, 1]} : vector<2x16xf32> to vector<1x16xf32>
    %97 = vector.extract_strided_slice %95 {offsets = [1, 0], sizes = [1, 16], strides = [1, 1]} : vector<2x16xf32> to vector<1x16xf32>
    %98 = arith.mulf %96, %96 : vector<1x16xf32>
    %99 = arith.subf %97, %98 : vector<1x16xf32>
    %c0_57 = arith.constant 0 : index
    %c0_58 = arith.constant 0 : index
    %100 = vector.load %arg11[%c0_57, %c0_58] : memref<1x16xf32, #tpu.memory_space<vmem>>, vector<1x16xf32>
    %cst_59 = arith.constant 9.99999974E-6 : f32
    %101 = vector.broadcast %cst_59 : f32 to vector<1x16xf32>
    %102 = arith.addf %99, %101 : vector<1x16xf32>
    %103 = math.rsqrt %102 : vector<1x16xf32>
    %104 = arith.mulf %100, %103 : vector<1x16xf32>
    %c0_60 = arith.constant 0 : index
    %c0_61 = arith.constant 0 : index
    %105 = vector.load %arg12[%c0_60, %c0_61] : memref<1x16xf32, #tpu.memory_space<vmem>>, vector<1x16xf32>
    %106 = arith.mulf %96, %104 : vector<1x16xf32>
    %107 = arith.subf %105, %106 : vector<1x16xf32>
    %108 = tpu.concatenate %104, %107 in 0 : vector<1x16xf32>, vector<1x16xf32> -> vector<2x16xf32>
    %c0_62 = arith.constant 0 : index
    %c0_63 = arith.constant 0 : index
    %109 = vector.load %arg10[%c0_62, %c0_63] : memref<16x256xbf16, #tpu.memory_space<vmem>>, vector<16x256xbf16>
    %110 = arith.extf %109 : vector<16x256xbf16> to vector<16x256xf32>
    %cst_64 = arith.constant dense<0.000000e+00> : vector<2x256xf32>
    %111 = tpu.matmul %108, %110, %cst_64 {dimension_numbers = #tpu.dot_dimension_numbers<[1], [0], [0], [1], [0, 0, 1, 1], [], []>} : vector<2x16xf32>, vector<16x256xf32>, vector<2x256xf32> -> vector<2x256xf32>
    %112 = vector.extract_strided_slice %111 {offsets = [0, 0], sizes = [1, 256], strides = [1, 1]} : vector<2x256xf32> to vector<1x256xf32>
    %113 = vector.broadcast %112 : vector<1x256xf32> to vector<32x256xf32>
    %114 = arith.mulf %84, %113 : vector<32x256xf32>
    %115 = vector.extract_strided_slice %111 {offsets = [1, 0], sizes = [1, 256], strides = [1, 1]} : vector<2x256xf32> to vector<1x256xf32>
    %116 = vector.broadcast %115 : vector<1x256xf32> to vector<32x256xf32>
    %117 = arith.addf %114, %116 : vector<32x256xf32>
    %cst_65 = arith.constant 0.000000e+00 : f32
    %118 = vector.broadcast %cst_65 : f32 to vector<32x256xf32>
    %119 = arith.cmpf oge, %117, %118 : vector<32x256xf32>
    %cst_66 = arith.constant 2.000000e-01 : f32
    %120 = vector.broadcast %cst_66 : f32 to vector<32x256xf32>
    %121 = arith.mulf %120, %117 : vector<32x256xf32>
    %122 = arith.select %119, %117, %121 : vector<32x256xi1>, vector<32x256xf32>
    %123 = arith.truncf %122 : vector<32x256xf32> to vector<32x256xbf16>
    %c0_67 = arith.constant 0 : index
    %c0_68 = arith.constant 0 : index
    %124 = vector.load %arg14[%c0_67, %c0_68] : memref<256x1024xbf16, #tpu.memory_space<vmem>>, vector<256x1024xbf16>
    %cst_69 = arith.constant dense<0.000000e+00> : vector<32x1024xf32>
    %125 = tpu.matmul %123, %124, %cst_69 {dimension_numbers = #tpu.dot_dimension_numbers<[1], [0], [0], [1], [0, 0, 1, 1], [], []>} : vector<32x256xbf16>, vector<256x1024xbf16>, vector<32x1024xf32> -> vector<32x1024xf32>
    %126 = arith.truncf %125 : vector<32x1024xf32> to vector<32x1024xbf16>
    %c0_70 = arith.constant 0 : index
    %c0_71 = arith.constant 0 : index
    %c0_72 = arith.constant 0 : index
    %127 = vector.load %arg13[%c0_70, %c0_71, %c0_72] : memref<4x16x32xbf16, #tpu.memory_space<vmem>>, vector<1x16x32xbf16>
    %128 = vector.shape_cast %127 : vector<1x16x32xbf16> to vector<16x32xbf16>
    %129 = vector.extract_strided_slice %126 {offsets = [0, 0], sizes = [32, 256], strides = [1, 1]} : vector<32x1024xbf16> to vector<32x256xbf16>
    %cst_73 = arith.constant dense<0.000000e+00> : vector<16x256xf32>
    %130 = tpu.matmul %128, %129, %cst_73 {dimension_numbers = #tpu.dot_dimension_numbers<[1], [0], [0], [1], [0, 0, 1, 1], [], []>} : vector<16x32xbf16>, vector<32x256xbf16>, vector<16x256xf32> -> vector<16x256xf32>
    %c1_74 = arith.constant 1 : index
    %c0_75 = arith.constant 0 : index
    %c0_76 = arith.constant 0 : index
    %131 = vector.load %arg13[%c1_74, %c0_75, %c0_76] : memref<4x16x32xbf16, #tpu.memory_space<vmem>>, vector<1x16x32xbf16>
    %132 = vector.shape_cast %131 : vector<1x16x32xbf16> to vector<16x32xbf16>
    %133 = vector.extract_strided_slice %126 {offsets = [0, 256], sizes = [32, 256], strides = [1, 1]} : vector<32x1024xbf16> to vector<32x256xbf16>
    %cst_77 = arith.constant dense<0.000000e+00> : vector<16x256xf32>
    %134 = tpu.matmul %132, %133, %cst_77 {dimension_numbers = #tpu.dot_dimension_numbers<[1], [0], [0], [1], [0, 0, 1, 1], [], []>} : vector<16x32xbf16>, vector<32x256xbf16>, vector<16x256xf32> -> vector<16x256xf32>
    %135 = arith.addf %130, %134 : vector<16x256xf32>
    %c2_78 = arith.constant 2 : index
    %c0_79 = arith.constant 0 : index
    %c0_80 = arith.constant 0 : index
    %136 = vector.load %arg13[%c2_78, %c0_79, %c0_80] : memref<4x16x32xbf16, #tpu.memory_space<vmem>>, vector<1x16x32xbf16>
    %137 = vector.shape_cast %136 : vector<1x16x32xbf16> to vector<16x32xbf16>
    %138 = vector.extract_strided_slice %126 {offsets = [0, 512], sizes = [32, 256], strides = [1, 1]} : vector<32x1024xbf16> to vector<32x256xbf16>
    %cst_81 = arith.constant dense<0.000000e+00> : vector<16x256xf32>
    %139 = tpu.matmul %137, %138, %cst_81 {dimension_numbers = #tpu.dot_dimension_numbers<[1], [0], [0], [1], [0, 0, 1, 1], [], []>} : vector<16x32xbf16>, vector<32x256xbf16>, vector<16x256xf32> -> vector<16x256xf32>
    %140 = arith.addf %135, %139 : vector<16x256xf32>
    %c3_82 = arith.constant 3 : index
    %c0_83 = arith.constant 0 : index
    %c0_84 = arith.constant 0 : index
    %141 = vector.load %arg13[%c3_82, %c0_83, %c0_84] : memref<4x16x32xbf16, #tpu.memory_space<vmem>>, vector<1x16x32xbf16>
    %142 = vector.shape_cast %141 : vector<1x16x32xbf16> to vector<16x32xbf16>
    %143 = vector.extract_strided_slice %126 {offsets = [0, 768], sizes = [32, 256], strides = [1, 1]} : vector<32x1024xbf16> to vector<32x256xbf16>
    %cst_85 = arith.constant dense<0.000000e+00> : vector<16x256xf32>
    %144 = tpu.matmul %142, %143, %cst_85 {dimension_numbers = #tpu.dot_dimension_numbers<[1], [0], [0], [1], [0, 0, 1, 1], [], []>} : vector<16x32xbf16>, vector<32x256xbf16>, vector<16x256xf32> -> vector<16x256xf32>
    %145 = arith.addf %140, %144 : vector<16x256xf32>
    %cst_86 = arith.constant dense<0.000000e+00> : vector<256xf32>
    %146 = vector.multi_reduction <add>, %145, %cst_86 [0] : vector<16x256xf32> to vector<256xf32>
    %147 = vector.shape_cast %146 : vector<256xf32> to vector<1x256xf32>
    %148 = arith.mulf %145, %145 : vector<16x256xf32>
    %cst_87 = arith.constant dense<0.000000e+00> : vector<256xf32>
    %149 = vector.multi_reduction <add>, %148, %cst_87 [0] : vector<16x256xf32> to vector<256xf32>
    %150 = vector.shape_cast %149 : vector<256xf32> to vector<1x256xf32>
    %151 = tpu.concatenate %147, %150 in 0 : vector<1x256xf32>, vector<1x256xf32> -> vector<2x256xf32>
    %c0_88 = arith.constant 0 : index
    %c0_89 = arith.constant 0 : index
    %152 = vector.load %arg15[%c0_88, %c0_89] : memref<256x32xbf16, #tpu.memory_space<vmem>>, vector<256x32xbf16>
    %153 = arith.extf %152 : vector<256x32xbf16> to vector<256x32xf32>
    %cst_90 = arith.constant dense<0.000000e+00> : vector<2x32xf32>
    %154 = tpu.matmul %151, %153, %cst_90 {dimension_numbers = #tpu.dot_dimension_numbers<[1], [0], [0], [1], [0, 0, 1, 1], [], []>} : vector<2x256xf32>, vector<256x32xf32>, vector<2x32xf32> -> vector<2x32xf32>
    %cst_91 = arith.constant 1.280000e+02 : f32
    %155 = vector.broadcast %cst_91 : f32 to vector<2x32xf32>
    %156 = arith.divf %154, %155 : vector<2x32xf32>
    %157 = vector.extract_strided_slice %156 {offsets = [0, 0], sizes = [1, 32], strides = [1, 1]} : vector<2x32xf32> to vector<1x32xf32>
    %158 = vector.extract_strided_slice %156 {offsets = [1, 0], sizes = [1, 32], strides = [1, 1]} : vector<2x32xf32> to vector<1x32xf32>
    %159 = arith.mulf %157, %157 : vector<1x32xf32>
    %160 = arith.subf %158, %159 : vector<1x32xf32>
    %c0_92 = arith.constant 0 : index
    %c0_93 = arith.constant 0 : index
    %161 = vector.load %arg17[%c0_92, %c0_93] : memref<1x32xf32, #tpu.memory_space<vmem>>, vector<1x32xf32>
    %cst_94 = arith.constant 9.99999974E-6 : f32
    %162 = vector.broadcast %cst_94 : f32 to vector<1x32xf32>
    %163 = arith.addf %160, %162 : vector<1x32xf32>
    %164 = math.rsqrt %163 : vector<1x32xf32>
    %165 = arith.mulf %161, %164 : vector<1x32xf32>
    %c0_95 = arith.constant 0 : index
    %c0_96 = arith.constant 0 : index
    %166 = vector.load %arg18[%c0_95, %c0_96] : memref<1x32xf32, #tpu.memory_space<vmem>>, vector<1x32xf32>
    %167 = arith.mulf %157, %165 : vector<1x32xf32>
    %168 = arith.subf %166, %167 : vector<1x32xf32>
    %169 = tpu.concatenate %165, %168 in 0 : vector<1x32xf32>, vector<1x32xf32> -> vector<2x32xf32>
    %c0_97 = arith.constant 0 : index
    %c0_98 = arith.constant 0 : index
    %170 = vector.load %arg16[%c0_97, %c0_98] : memref<32x256xbf16, #tpu.memory_space<vmem>>, vector<32x256xbf16>
    %171 = arith.extf %170 : vector<32x256xbf16> to vector<32x256xf32>
    %cst_99 = arith.constant dense<0.000000e+00> : vector<2x256xf32>
    %172 = tpu.matmul %169, %171, %cst_99 {dimension_numbers = #tpu.dot_dimension_numbers<[1], [0], [0], [1], [0, 0, 1, 1], [], []>} : vector<2x32xf32>, vector<32x256xf32>, vector<2x256xf32> -> vector<2x256xf32>
    %173 = vector.extract_strided_slice %172 {offsets = [0, 0], sizes = [1, 256], strides = [1, 1]} : vector<2x256xf32> to vector<1x256xf32>
    %174 = vector.broadcast %173 : vector<1x256xf32> to vector<16x256xf32>
    %175 = arith.mulf %145, %174 : vector<16x256xf32>
    %176 = vector.extract_strided_slice %172 {offsets = [1, 0], sizes = [1, 256], strides = [1, 1]} : vector<2x256xf32> to vector<1x256xf32>
    %177 = vector.broadcast %176 : vector<1x256xf32> to vector<16x256xf32>
    %178 = arith.addf %175, %177 : vector<16x256xf32>
    %cst_100 = arith.constant 0.000000e+00 : f32
    %179 = vector.broadcast %cst_100 : f32 to vector<16x256xf32>
    %180 = arith.cmpf oge, %178, %179 : vector<16x256xf32>
    %cst_101 = arith.constant 2.000000e-01 : f32
    %181 = vector.broadcast %cst_101 : f32 to vector<16x256xf32>
    %182 = arith.mulf %181, %178 : vector<16x256xf32>
    %183 = arith.select %180, %178, %182 : vector<16x256xi1>, vector<16x256xf32>
    %184 = arith.truncf %183 : vector<16x256xf32> to vector<16x256xbf16>
    %c0_102 = arith.constant 0 : index
    %c0_103 = arith.constant 0 : index
    %185 = vector.load %arg20[%c0_102, %c0_103] : memref<256x1024xbf16, #tpu.memory_space<vmem>>, vector<256x1024xbf16>
    %cst_104 = arith.constant dense<0.000000e+00> : vector<16x1024xf32>
    %186 = tpu.matmul %184, %185, %cst_104 {dimension_numbers = #tpu.dot_dimension_numbers<[1], [0], [0], [1], [0, 0, 1, 1], [], []>} : vector<16x256xbf16>, vector<256x1024xbf16>, vector<16x1024xf32> -> vector<16x1024xf32>
    %187 = arith.truncf %186 : vector<16x1024xf32> to vector<16x1024xbf16>
    %c0_105 = arith.constant 0 : index
    %c0_106 = arith.constant 0 : index
    %c0_107 = arith.constant 0 : index
    %188 = vector.load %arg19[%c0_105, %c0_106, %c0_107] : memref<4x8x16xbf16, #tpu.memory_space<vmem>>, vector<1x8x16xbf16>
    %189 = vector.shape_cast %188 : vector<1x8x16xbf16> to vector<8x16xbf16>
    %190 = vector.extract_strided_slice %187 {offsets = [0, 0], sizes = [16, 256], strides = [1, 1]} : vector<16x1024xbf16> to vector<16x256xbf16>
    %cst_108 = arith.constant dense<0.000000e+00> : vector<8x256xf32>
    %191 = tpu.matmul %189, %190, %cst_108 {dimension_numbers = #tpu.dot_dimension_numbers<[1], [0], [0], [1], [0, 0, 1, 1], [], []>} : vector<8x16xbf16>, vector<16x256xbf16>, vector<8x256xf32> -> vector<8x256xf32>
    %c1_109 = arith.constant 1 : index
    %c0_110 = arith.constant 0 : index
    %c0_111 = arith.constant 0 : index
    %192 = vector.load %arg19[%c1_109, %c0_110, %c0_111] : memref<4x8x16xbf16, #tpu.memory_space<vmem>>, vector<1x8x16xbf16>
    %193 = vector.shape_cast %192 : vector<1x8x16xbf16> to vector<8x16xbf16>
    %194 = vector.extract_strided_slice %187 {offsets = [0, 256], sizes = [16, 256], strides = [1, 1]} : vector<16x1024xbf16> to vector<16x256xbf16>
    %cst_112 = arith.constant dense<0.000000e+00> : vector<8x256xf32>
    %195 = tpu.matmul %193, %194, %cst_112 {dimension_numbers = #tpu.dot_dimension_numbers<[1], [0], [0], [1], [0, 0, 1, 1], [], []>} : vector<8x16xbf16>, vector<16x256xbf16>, vector<8x256xf32> -> vector<8x256xf32>
    %196 = arith.addf %191, %195 : vector<8x256xf32>
    %c2_113 = arith.constant 2 : index
    %c0_114 = arith.constant 0 : index
    %c0_115 = arith.constant 0 : index
    %197 = vector.load %arg19[%c2_113, %c0_114, %c0_115] : memref<4x8x16xbf16, #tpu.memory_space<vmem>>, vector<1x8x16xbf16>
    %198 = vector.shape_cast %197 : vector<1x8x16xbf16> to vector<8x16xbf16>
    %199 = vector.extract_strided_slice %187 {offsets = [0, 512], sizes = [16, 256], strides = [1, 1]} : vector<16x1024xbf16> to vector<16x256xbf16>
    %cst_116 = arith.constant dense<0.000000e+00> : vector<8x256xf32>
    %200 = tpu.matmul %198, %199, %cst_116 {dimension_numbers = #tpu.dot_dimension_numbers<[1], [0], [0], [1], [0, 0, 1, 1], [], []>} : vector<8x16xbf16>, vector<16x256xbf16>, vector<8x256xf32> -> vector<8x256xf32>
    %201 = arith.addf %196, %200 : vector<8x256xf32>
    %c3_117 = arith.constant 3 : index
    %c0_118 = arith.constant 0 : index
    %c0_119 = arith.constant 0 : index
    %202 = vector.load %arg19[%c3_117, %c0_118, %c0_119] : memref<4x8x16xbf16, #tpu.memory_space<vmem>>, vector<1x8x16xbf16>
    %203 = vector.shape_cast %202 : vector<1x8x16xbf16> to vector<8x16xbf16>
    %204 = vector.extract_strided_slice %187 {offsets = [0, 768], sizes = [16, 256], strides = [1, 1]} : vector<16x1024xbf16> to vector<16x256xbf16>
    %cst_120 = arith.constant dense<0.000000e+00> : vector<8x256xf32>
    %205 = tpu.matmul %203, %204, %cst_120 {dimension_numbers = #tpu.dot_dimension_numbers<[1], [0], [0], [1], [0, 0, 1, 1], [], []>} : vector<8x16xbf16>, vector<16x256xbf16>, vector<8x256xf32> -> vector<8x256xf32>
    %206 = arith.addf %201, %205 : vector<8x256xf32>
    %cst_121 = arith.constant dense<0.000000e+00> : vector<256xf32>
    %207 = vector.multi_reduction <add>, %206, %cst_121 [0] : vector<8x256xf32> to vector<256xf32>
    %208 = vector.shape_cast %207 : vector<256xf32> to vector<1x256xf32>
    %209 = arith.mulf %206, %206 : vector<8x256xf32>
    %cst_122 = arith.constant dense<0.000000e+00> : vector<256xf32>
    %210 = vector.multi_reduction <add>, %209, %cst_122 [0] : vector<8x256xf32> to vector<256xf32>
    %211 = vector.shape_cast %210 : vector<256xf32> to vector<1x256xf32>
    %212 = tpu.concatenate %208, %211 in 0 : vector<1x256xf32>, vector<1x256xf32> -> vector<2x256xf32>
    %c0_123 = arith.constant 0 : index
    %c0_124 = arith.constant 0 : index
    %213 = vector.load %arg21[%c0_123, %c0_124] : memref<256x64xbf16, #tpu.memory_space<vmem>>, vector<256x64xbf16>
    %214 = arith.extf %213 : vector<256x64xbf16> to vector<256x64xf32>
    %cst_125 = arith.constant dense<0.000000e+00> : vector<2x64xf32>
    %215 = tpu.matmul %212, %214, %cst_125 {dimension_numbers = #tpu.dot_dimension_numbers<[1], [0], [0], [1], [0, 0, 1, 1], [], []>} : vector<2x256xf32>, vector<256x64xf32>, vector<2x64xf32> -> vector<2x64xf32>
    %cst_126 = arith.constant 3.200000e+01 : f32
    %216 = vector.broadcast %cst_126 : f32 to vector<2x64xf32>
    %217 = arith.divf %215, %216 : vector<2x64xf32>
    %218 = vector.extract_strided_slice %217 {offsets = [0, 0], sizes = [1, 64], strides = [1, 1]} : vector<2x64xf32> to vector<1x64xf32>
    %219 = vector.extract_strided_slice %217 {offsets = [1, 0], sizes = [1, 64], strides = [1, 1]} : vector<2x64xf32> to vector<1x64xf32>
    %220 = arith.mulf %218, %218 : vector<1x64xf32>
    %221 = arith.subf %219, %220 : vector<1x64xf32>
    %c0_127 = arith.constant 0 : index
    %c0_128 = arith.constant 0 : index
    %222 = vector.load %arg23[%c0_127, %c0_128] : memref<1x64xf32, #tpu.memory_space<vmem>>, vector<1x64xf32>
    %cst_129 = arith.constant 9.99999974E-6 : f32
    %223 = vector.broadcast %cst_129 : f32 to vector<1x64xf32>
    %224 = arith.addf %221, %223 : vector<1x64xf32>
    %225 = math.rsqrt %224 : vector<1x64xf32>
    %226 = arith.mulf %222, %225 : vector<1x64xf32>
    %c0_130 = arith.constant 0 : index
    %c0_131 = arith.constant 0 : index
    %227 = vector.load %arg24[%c0_130, %c0_131] : memref<1x64xf32, #tpu.memory_space<vmem>>, vector<1x64xf32>
    %228 = arith.mulf %218, %226 : vector<1x64xf32>
    %229 = arith.subf %227, %228 : vector<1x64xf32>
    %230 = tpu.concatenate %226, %229 in 0 : vector<1x64xf32>, vector<1x64xf32> -> vector<2x64xf32>
    %c0_132 = arith.constant 0 : index
    %c0_133 = arith.constant 0 : index
    %231 = vector.load %arg22[%c0_132, %c0_133] : memref<64x256xbf16, #tpu.memory_space<vmem>>, vector<64x256xbf16>
    %232 = arith.extf %231 : vector<64x256xbf16> to vector<64x256xf32>
    %cst_134 = arith.constant dense<0.000000e+00> : vector<2x256xf32>
    %233 = tpu.matmul %230, %232, %cst_134 {dimension_numbers = #tpu.dot_dimension_numbers<[1], [0], [0], [1], [0, 0, 1, 1], [], []>} : vector<2x64xf32>, vector<64x256xf32>, vector<2x256xf32> -> vector<2x256xf32>
    %234 = vector.extract_strided_slice %233 {offsets = [0, 0], sizes = [1, 256], strides = [1, 1]} : vector<2x256xf32> to vector<1x256xf32>
    %235 = vector.broadcast %234 : vector<1x256xf32> to vector<8x256xf32>
    %236 = arith.mulf %206, %235 : vector<8x256xf32>
    %237 = vector.extract_strided_slice %233 {offsets = [1, 0], sizes = [1, 256], strides = [1, 1]} : vector<2x256xf32> to vector<1x256xf32>
    %238 = vector.broadcast %237 : vector<1x256xf32> to vector<8x256xf32>
    %239 = arith.addf %236, %238 : vector<8x256xf32>
    %240 = math.tanh %239 : vector<8x256xf32>
    %241 = arith.truncf %240 : vector<8x256xf32> to vector<8x256xbf16>
    %c0_135 = arith.constant 0 : index
    %c0_136 = arith.constant 0 : index
    %242 = vector.load %arg25[%c0_135, %c0_136] : memref<256x256xbf16, #tpu.memory_space<vmem>>, vector<256x256xbf16>
    %cst_137 = arith.constant dense<0.000000e+00> : vector<8x256xf32>
    %243 = tpu.matmul %241, %242, %cst_137 {dimension_numbers = #tpu.dot_dimension_numbers<[1], [0], [0], [1], [0, 0, 1, 1], [], []>} : vector<8x256xbf16>, vector<256x256xbf16>, vector<8x256xf32> -> vector<8x256xf32>
    %c0_138 = arith.constant 0 : index
    %c0_139 = arith.constant 0 : index
    %244 = vector.load %arg26[%c0_138, %c0_139] : memref<8x256xf32, #tpu.memory_space<vmem>>, vector<8x256xf32>
    %245 = arith.mulf %243, %244 : vector<8x256xf32>
    %c0_140 = arith.constant 0 : index
    %c0_141 = arith.constant 0 : index
    %246 = vector.load %arg28[%c0_140, %c0_141] : memref<2x8xf32, #tpu.memory_space<vmem>>, vector<2x8xf32>
    %cst_142 = arith.constant dense<0.000000e+00> : vector<2x256xf32>
    %247 = tpu.matmul %246, %245, %cst_142 {dimension_numbers = #tpu.dot_dimension_numbers<[1], [0], [0], [1], [0, 0, 1, 1], [], []>} : vector<2x8xf32>, vector<8x256xf32>, vector<2x256xf32> -> vector<2x256xf32>
    %c0_143 = arith.constant 0 : index
    %c0_144 = arith.constant 0 : index
    %248 = vector.load %arg27[%c0_143, %c0_144] : memref<256x64xf32, #tpu.memory_space<vmem>>, vector<256x64xf32>
    %cst_145 = arith.constant dense<0.000000e+00> : vector<2x64xf32>
    %249 = tpu.matmul %247, %248, %cst_145 {dimension_numbers = #tpu.dot_dimension_numbers<[1], [0], [0], [1], [0, 0, 1, 1], [], []>} : vector<2x256xf32>, vector<256x64xf32>, vector<2x64xf32> -> vector<2x64xf32>
    %c0_146 = arith.constant 0 : index
    %c0_147 = arith.constant 0 : index
    %250 = vector.load %arg29[%c0_146, %c0_147] : memref<1x64xf32, #tpu.memory_space<vmem>>, vector<1x64xf32>
    %251 = vector.broadcast %250 : vector<1x64xf32> to vector<2x64xf32>
    %252 = arith.addf %249, %251 : vector<2x64xf32>
    %c0_148 = arith.constant 0 : index
    %c0_149 = arith.constant 0 : index
    %253 = vector.load %arg30[%c0_148, %c0_149] : memref<2x64xf32, #tpu.memory_space<vmem>>, vector<2x64xf32>
    tpu.vector_store %arg30[%c0_148, %c0_149], %252 {strides = array<i32>} : memref<2x64xf32, #tpu.memory_space<vmem>>, vector<2x64xf32>,
    return
  }
}

</mosaic_0001>

<bundles_post_ra>
// kernel: celeb_encoder_forward.1
= control target key start
LH: loop header
LB: loop body
LE: loop exit
PB: predicated region body
PF: predicated region fallthrough
CT: control target
= control target key end

     0   :  { %s11335_s6 = smov 1   ;;  %s11336_s10 = smov 2   ;;  %s14114_s0 = inlined_call_operand.smem [shape: u32[31], index: -1, kind: input, shape index: {}] }
   0x1   :  { %s11378_s5 = sld [smem:[%s14114_s0]]   ;;  %s11337_s14 = smov 3  }
   0x2   :  { %s11383_s9 = sld [smem:[%s14114_s0 + %s11335_s6]]   ;;  %s11338_s18 = smov 4  }
   0x3   :  { %s11388_s13 = sld [smem:[%s14114_s0 + %s11336_s10]]   ;;  %s11339_s22 = smov 5  }
   0x4   :  { %s11393_s17 = sld [smem:[%s14114_s0 + %s11337_s14]]   ;;  %s11340_s26 = smov 6  }
   0x5   :  { %s11398_s21 = sld [smem:[%s14114_s0 + %s11338_s18]]   ;;  %s11341_s30 = smov 7  }
   0x6   :  { %s11403_s25 = sld [smem:[%s14114_s0 + %s11339_s22]]   ;;  %s11342_s4 = smov 8  }
   0x7   :  { %s11408_s29 = sld [smem:[%s14114_s0 + %s11340_s26]]   ;;  %s11343_s10 = smov 9  }
   0x8   :  { %s11413_s3 = sld [smem:[%s14114_s0 + %s11341_s30]]   ;;  %s11344_s15 = smov 10  }
   0x9   :  { %s11418_s8 = sld [smem:[%s14114_s0 + %s11342_s4]]   ;;  %s11345_s20 = smov 11  }
   0xa   :  { %s11423_s14 = sld [smem:[%s14114_s0 + %s11343_s10]]   ;;  %s11346_s26 = smov 12  }
   0xb   :  { %s11428_s19 = sld [smem:[%s14114_s0 + %s11344_s15]]   ;;  %s11347_s1 = smov 13  }
   0xc   :  { %s11433_s24 = sld [smem:[%s14114_s0 + %s11345_s20]]   ;;  %s11348_s7 = smov 14  }
   0xd   :  { %s11438_s30 = sld [smem:[%s14114_s0 + %s11346_s26]]   ;;  %s11349_s15 = smov 15  }
   0xe   :  { %s11443_s6 = sld [smem:[%s14114_s0 + %s11347_s1]]   ;;  %s11350_s22 = smov 16  }
   0xf   :  { %s11448_s12 = sld [smem:[%s14114_s0 + %s11348_s7]]   ;;  %s11351_s28 = smov 17  }
  0x10   :  { %s11453_s20 = sld [smem:[%s14114_s0 + %s11349_s15]]   ;;  %s11352_s7 = smov 18  }
  0x11   :  { %s11458_s27 = sld [smem:[%s14114_s0 + %s11350_s22]]   ;;  %s11353_s15 = smov 19  }
  0x12   :  { %s11463_s4 = sld [smem:[%s14114_s0 + %s11351_s28]]   ;;  %s11354_s22 = smov 20  }
  0x13   :  { %s11355_s28 = smov 21  }
  0x14   :  { %14143 = sst [smem:[#allocation5_spill]] %s11443_s6 }
  0x15   :  { %s11468_s6 = sld [smem:[%s14114_s0 + %s11352_s7]]   ;;  %s11356_s7 = smov 22  }
  0x16   :  { %14144 = sst [smem:[#allocation6_spill]] %s11453_s20 }
  0x17   :  { %14145 = sst [smem:[#allocation7_spill]] %s11458_s27 }
  0x18   :  { %14146 = sst [smem:[#allocation8_spill]] %s11463_s4 }
  0x19   :  { %s11473_s20 = sld [smem:[%s14114_s0 + %s11353_s15]]   ;;  %s11357_s15 = smov 23  }
  0x1a   :  { %s11478_s27 = sld [smem:[%s14114_s0 + %s11354_s22]]   ;;  %s11358_s22 = smov 24  }
  0x1b   :  { %14147 = sst [smem:[#allocation9_spill]] %s11468_s6 }
  0x1c   :  { %s11483_s4 = sld [smem:[%s14114_s0 + %s11355_s28]]   ;;  %s11359_s28 = smov 25  }
  0x1d   :  { %s11488_s6 = sld [smem:[%s14114_s0 + %s11356_s7]]   ;;  %s11360_s7 = smov 26  }
  0x1f   :  { %14148 = sst [smem:[#allocation10_spill]] %s11473_s20 }
  0x20   :  { %14149 = sst [smem:[#allocation11_spill]] %s11478_s27 }
  0x21   :  { %s11493_s20 = sld [smem:[%s14114_s0 + %s11357_s15]]   ;;  %s11361_s15 = smov 27  }
  0x22   :  { %14150 = sst [smem:[#allocation12_spill]] %s11483_s4 }
  0x23   :  { %14151 = sst [smem:[#allocation13_spill]] %s11488_s6 }
  0x24   :  { %s11498_s27 = sld [smem:[%s14114_s0 + %s11358_s22]]   ;;  %s11362_s22 = smov 28  }
  0x25   :  { %s11503_s4 = sld [smem:[%s14114_s0 + %s11359_s28]]   ;;  %s11363_s28 = smov 29  }
  0x26   :  { %s11508_s6 = sld [smem:[%s14114_s0 + %s11360_s7]]   ;;  %s11364_s7 = smov 30  }
  0x27   :  { %14152 = sst [smem:[#allocation14_spill]] %s11493_s20 }
  0x28   :  { %s11513_s20 = sld [smem:[%s14114_s0 + %s11361_s15]]  }
  0x2a   :  { %14153 = sst [smem:[#allocation15_spill]] %s11498_s27 }
  0x2b   :  { %14154 = sst [smem:[#allocation16_spill]] %s11503_s4 }
  0x2c   :  { %14155 = sst [smem:[#allocation17_spill]] %s11508_s6 }
  0x2d   :  { %s11518_s27 = sld [smem:[%s14114_s0 + %s11362_s22]]  }
  0x2e   :  { %s11523_s4 = sld [smem:[%s14114_s0 + %s11363_s28]]  }
  0x2f   :  { %s11528_s6 = sld [smem:[%s14114_s0 + %s11364_s7]]  }
  0x30   :  { %v8300_v0 = vld [vmem:[%s11388_s13 + $0x1c0] sm:$0xf]  ;;  %v10441_v5 = vld [vmem:[%s11388_s13 + $0x1c4] sm:$0xf]  ;;  %v157_v36 = vld [vmem:[%s11378_s5 + $0xe8] sm:$0xff]  ;;  %vm752_vm0 = vcmask 523264  }
  0x31   :  { %v10445_v1 = vld [vmem:[%s11388_s13 + $0x1dc] sm:$0xf0]  ;;  %v8302_v6 = vld [vmem:[%s11388_s13 + $0x1e0] sm:$0xf0]  ;;  %v159_v39 = vld [vmem:[%s11378_s5 + $0xf8] sm:$0xff] }
  0x32   :  { %v8428_v2 = vld [vmem:[%s11388_s13 + $0x2c0] sm:$0xf]  ;;  %v8301_v3 = vor.u32 %v10445_v1, %v8300_v0  ;;  %v8305_v8 = vor.u32 %v10441_v5, %v8302_v6  ;;  %v10433_v14 = vld [vmem:[%s11388_s13 + $0x184] sm:$0xf]  ;;  %v11564_v47 = vpack.c.bf16 %v159_v39, %v157_v36  ;;  %v129_v55 = vld [vmem:[%s11378_s5 + $0x8] sm:$0xff] }
  0x33   :  { %v10477_v4 = vld [vmem:[%s11388_s13 + $0x2dc] sm:$0xf0]  ;;  %v8270_v15 = vld [vmem:[%s11388_s13 + $0x1a0] sm:$0xf0]  ;;  %v131_v56 = vld [vmem:[%s11378_s5 + $0x18] sm:$0xff] }
  0x34   :  { %v8429_v7 = vor.u32 %v10477_v4, %v8428_v2  ;;  %v8268_v9 = vld [vmem:[%s11388_s13 + $0x180] sm:$0xf]  ;;  %777 = vmatpush.bf16.msra.mxu0 %v8301_v3  ;;  %875 = vmatpush.bf16.msra.mxu2 %v8305_v8  ;;  %v8273_v17 = vor.u32 %v10433_v14, %v8270_v15  ;;  %v10425_v22 = vld [vmem:[%s11388_s13 + $0x144] sm:$0xf]  ;;  %14156 = vst [vmem:[#allocation18_spill] sm:$0xff] %v11564_v47 }
  0x35   :  { %v10437_v10 = vld [vmem:[%s11388_s13 + $0x19c] sm:$0xf0]  ;;  %v8238_v23 = vld [vmem:[%s11388_s13 + $0x160] sm:$0xf0]  ;;  %v11574_v59 = vpack.c.bf16 %v131_v56, %v129_v55 }
  0x36   :  { %v8396_v11 = vld [vmem:[%s11388_s13 + $0x280] sm:$0xf]  ;;  %v8269_v12 = vor.u32 %v10437_v10, %v8268_v9  ;;  %11241 = vmatpush.bf16.msra.mxu3 %v8429_v7  ;;  %830 = vmatpush.bf16.msra.mxu1 %v8429_v7  ;;  %v8241_v26 = vor.u32 %v10425_v22, %v8238_v23  ;;  %v10417_v31 = vld [vmem:[%s11388_s13 + $0x104] sm:$0xf] }
  0x37   :  { %v10469_v13 = vld [vmem:[%s11388_s13 + $0x29c] sm:$0xf0]  ;;  %v8206_v32 = vld [vmem:[%s11388_s13 + $0x120] sm:$0xf0] }
  0x38   :  { %v8397_v16 = vor.u32 %v10469_v13, %v8396_v11  ;;  %v8236_v18 = vld [vmem:[%s11388_s13 + $0x140] sm:$0xf]  ;;  %778 = vmatpush.bf16.msra.mxu0 %v8269_v12  ;;  %876 = vmatpush.bf16.msra.mxu2 %v8273_v17  ;;  %v10473_v33 = vld [vmem:[%s11388_s13 + $0x2c4] sm:$0xf]  ;;  %v8209_v38 = vor.u32 %v10417_v31, %v8206_v32 }
  0x39   :  { %v10429_v19 = vld [vmem:[%s11388_s13 + $0x15c] sm:$0xf0]  ;;  %v8430_v34 = vld [vmem:[%s11388_s13 + $0x2e0] sm:$0xf0] }
  0x3a   :  { %v8364_v20 = vld [vmem:[%s11388_s13 + $0x240] sm:$0xf]  ;;  %v8237_v24 = vor.u32 %v10429_v19, %v8236_v18  ;;  %11242 = vmatpush.bf16.msra.mxu3 %v8397_v16  ;;  %831 = vmatpush.bf16.msra.mxu1 %v8397_v16  ;;  %v10409_v42 = vld [vmem:[%s11388_s13 + $0xc4] sm:$0xf]  ;;  %v8433_v44 = vor.u32 %v10473_v33, %v8430_v34 }
  0x3b   :  { %v10461_v21 = vld [vmem:[%s11388_s13 + $0x25c] sm:$0xf0]  ;;  %v8174_v43 = vld [vmem:[%s11388_s13 + $0xe0] sm:$0xf0] }
  0x3c   :  { %v8365_v25 = vor.u32 %v10461_v21, %v8364_v20  ;;  %v8204_v27 = vld [vmem:[%s11388_s13 + $0x100] sm:$0xf]  ;;  %779 = vmatpush.bf16.msra.mxu0 %v8237_v24  ;;  %877 = vmatpush.bf16.msra.mxu2 %v8241_v26  ;;  %v10465_v45 = vld [vmem:[%s11388_s13 + $0x284] sm:$0xf]  ;;  %v8177_v49 = vor.u32 %v10409_v42, %v8174_v43 }
  0x3d   :  { %v10421_v28 = vld [vmem:[%s11388_s13 + $0x11c] sm:$0xf0]  ;;  %v8398_v46 = vld [vmem:[%s11388_s13 + $0x2a0] sm:$0xf0] }
  0x3e   :  { %v8332_v29 = vld [vmem:[%s11388_s13 + $0x200] sm:$0xf]  ;;  %v8205_v35 = vor.u32 %v10421_v28, %v8204_v27  ;;  %11243 = vmatpush.bf16.msra.mxu3 %v8365_v25  ;;  %832 = vmatpush.bf16.msra.mxu1 %v8365_v25  ;;  %v10401_v52 = vld [vmem:[%s11388_s13 + $0x84] sm:$0xf]  ;;  %v8401_v54 = vor.u32 %v10465_v45, %v8398_v46 }
  0x3f   :  { %v10453_v30 = vld [vmem:[%s11388_s13 + $0x21c] sm:$0xf0]  ;;  %v8142_v53 = vld [vmem:[%s11388_s13 + $0xa0] sm:$0xf0] }
  0x40   :  { %v8333_v37 = vor.u32 %v10453_v30, %v8332_v29  ;;  %v8172_v40 = vld [vmem:[%s11388_s13 + $0xc0] sm:$0xf]  ;;  %780 = vmatpush.bf16.msra.mxu0 %v8205_v35  ;;  %878 = vmatpush.bf16.msra.mxu2 %v8209_v38  ;;  %v10457_v57 = vld [vmem:[%s11388_s13 + $0x244] sm:$0xf]  ;;  %v8145_v62 = vor.u32 %v10401_v52, %v8142_v53 }
  0x41   :  { %v10413_v41 = vld [vmem:[%s11388_s13 + $0xdc] sm:$0xf0]  ;;  %v8366_v58 = vld [vmem:[%s11388_s13 + $0x260] sm:$0xf0] }
  0x42   :  { %v8173_v48 = vor.u32 %v10413_v41, %v8172_v40  ;;  %11244 = vmatpush.bf16.msra.mxu3 %v8333_v37  ;;  %v8140_v50 = vld [vmem:[%s11388_s13 + $0x80] sm:$0xf]  ;;  %833 = vmatpush.bf16.msra.mxu1 %v8333_v37 }
  0x43   :  { %v10405_v51 = vld [vmem:[%s11388_s13 + $0x9c] sm:$0xf0] }
  0x44   :  { %781 = vmatpush.bf16.msra.mxu0 %v8173_v48  ;;  %v8141_v60 = vor.u32 %v10405_v51, %v8140_v50  ;;  %v8108_v61 = vld [vmem:[%s11388_s13 + $0x40] sm:$0xf]  ;;  %879 = vmatpush.bf16.msra.mxu2 %v8177_v49 }
  0x45   :  { %8465 = vmatmul.msk.bf16.vlgmr.msra.gmra.mxu3 %vm752_vm0, %v11564_v47  ;;  %v10397_v63 = vld [vmem:[%s11388_s13 + $0x5c] sm:$0xf0]  ;;  %8458 = vmatmul.msk.bf16.vlgmr.msra.gmra.mxu1 %vm752_vm0, %v11574_v59 }
  0x46   :  { %928 = vmatpush.bf16.msrb.mxu3 %v8433_v44 }
  0x47   :  { %66 = vsyncpa [#allocation3], 0  ;;  %v10393_v0 = vld [vmem:[%s11388_s13 + $0x44] sm:$0xf]  ;;  %v8369_v2 = vor.u32 %v10457_v57, %v8366_v58  ;;  %v8109_v5 = vor.u32 %v10397_v63, %v8108_v61  ;;  %v8076_v7 = vld [vmem:[%s11388_s13] sm:$0xf] }
  0x48   :  { %v8110_v1 = vld [vmem:[%s11388_s13 + $0x60] sm:$0xf0]  ;;  %782 = vmatpush.bf16.msra.mxu0 %v8141_v60  ;;  %880 = vmatpush.bf16.msra.mxu2 %v8145_v62  ;;  %v10389_v8 = vld [vmem:[%s11388_s13 + $0x1c] sm:$0xf0]  ;;  %v130_v14 = vld [vmem:[%s11378_s5 + $0x10] sm:$0xff]  ;;  %vm2408_vm1 = vcmask 1040384  }
  0x49   :  { %v10449_v3 = vld [vmem:[%s11388_s13 + $0x204] sm:$0xf]  ;;  %v8113_v6 = vor.u32 %v10393_v0, %v8110_v1  ;;  %v8077_v12 = vor.u32 %v10389_v8, %v8076_v7  ;;  %v133_v17 = vld [vmem:[%s11378_s5 + $0x28] sm:$0xff]  ;;  %v135_v18 = vld [vmem:[%s11378_s5 + $0x38] sm:$0xff]  ;;  %vm2556_vm6 = vcmask 64512   ;;  %s14175_s0 = sld [smem:[#allocation5_spill]] }
  0x4a   :  { %929 = vmatpush.bf16.msrb.mxu3 %v8401_v54  ;;  %v8334_v4 = vld [vmem:[%s11388_s13 + $0x220] sm:$0xf0]  ;;  %v11597_v19 = vpack.c.bf16 %v135_v18, %v133_v17  ;;  %v10442_v20 = vld [vmem:[%s11388_s13 + $0x1cc] sm:$0xf]  ;;  %v134_v24 = vld [vmem:[%s11378_s5 + $0x30] sm:$0xff]  ;;  %s11325_s16 = scalar_lea.hbm %s11528_s6, 2 }
  0x4b   :  { %v10385_v9 = vld [vmem:[%s11388_s13 + $0x4] sm:$0xf]  ;;  %v8337_v11 = vor.u32 %v10449_v3, %v8334_v4  ;;  %v8310_v21 = vld [vmem:[%s11388_s13 + $0x1e8] sm:$0xf0]  ;;  %v139_v27 = vld [vmem:[%s11378_s5 + $0x58] sm:$0xff] }
  0x4c   :  { %v8078_v10 = vld [vmem:[%s11388_s13 + $0x20] sm:$0xf0]  ;;  %783 = vmatpush.bf16.msra.mxu0 %v8109_v5  ;;  %881 = vmatpush.bf16.msra.mxu2 %v8113_v6  ;;  %v8313_v22 = vor.u32 %v10442_v20, %v8310_v21  ;;  %v137_v26 = vld [vmem:[%s11378_s5 + $0x48] sm:$0xff]  ;;  %v138_v36 = vld [vmem:[%s11378_s5 + $0x50] sm:$0xff] }
  0x4d   :  { %v128_v13 = vld [vmem:[%s11378_s5] sm:$0xff]  ;;  %v8081_v15 = vor.u32 %v10385_v9, %v8078_v10  ;;  %v11613_v28 = vpack.c.bf16 %v139_v27, %v137_v26  ;;  %v8436_v29 = vld [vmem:[%s11388_s13 + $0x2c8] sm:$0xf]  ;;  %v10434_v31 = vld [vmem:[%s11388_s13 + $0x18c] sm:$0xf] }
  0x4e   :  { %930 = vmatpush.bf16.msrb.mxu3 %v8369_v2  ;;  %v11592_v16 = vpack.c.bf16 %v130_v14, %v128_v13  ;;  %v132_v23 = vld [vmem:[%s11378_s5 + $0x20] sm:$0xff]  ;;  %v10478_v30 = vld [vmem:[%s11388_s13 + $0x2e4] sm:$0xf0]  ;;  %v8278_v33 = vld [vmem:[%s11388_s13 + $0x1a8] sm:$0xf0] }
  0x4f   :  { %v11608_v25 = vpack.c.bf16 %v134_v24, %v132_v23  ;;  %v8437_v32 = vor.u32 %v10478_v30, %v8436_v29  ;;  %v8281_v34 = vor.u32 %v10434_v31, %v8278_v33  ;;  %v136_v35 = vld [vmem:[%s11378_s5 + $0x40] sm:$0xff]  ;;  %v141_v38 = vld [vmem:[%s11378_s5 + $0x68] sm:$0xff]  ;;  %v143_v39 = vld [vmem:[%s11378_s5 + $0x78] sm:$0xff] }
  0x50   :  { %14157 = vst [vmem:[#allocation19_spill] sm:$0xff] %v11592_v16  ;;  %784 = vmatpush.bf16.msra.mxu0 %v8077_v12  ;;  %882 = vmatpush.bf16.msra.mxu2 %v8081_v15  ;;  %v11626_v37 = vpack.c.bf16 %v138_v36, %v136_v35  ;;  %v11631_v40 = vpack.c.bf16 %v143_v39, %v141_v38  ;;  %v10426_v41 = vld [vmem:[%s11388_s13 + $0x14c] sm:$0xf]  ;;  %v8308_v43 = vld [vmem:[%s11388_s13 + $0x1c8] sm:$0xf]  ;;  %v140_v48 = vld [vmem:[%s11378_s5 + $0x60] sm:$0xff] }
  0x51   :  { %v8246_v42 = vld [vmem:[%s11388_s13 + $0x168] sm:$0xf0]  ;;  %v10446_v45 = vld [vmem:[%s11388_s13 + $0x1e4] sm:$0xf0]  ;;  %v142_v49 = vld [vmem:[%s11378_s5 + $0x70] sm:$0xff] }
  0x52   :  { %931 = vmatpush.bf16.msrb.mxu3 %v8337_v11  ;;  %14158 = vst [vmem:[#allocation20_spill] sm:$0xff] %v11631_v40  ;;  %v8249_v44 = vor.u32 %v10426_v41, %v8246_v42  ;;  %v8309_v46 = vor.u32 %v10446_v45, %v8308_v43  ;;  %v11644_v50 = vpack.c.bf16 %v142_v49, %v140_v48  ;;  %v145_v51 = vld [vmem:[%s11378_s5 + $0x88] sm:$0xff]  ;;  %v147_v52 = vld [vmem:[%s11378_s5 + $0x98] sm:$0xff]  ;;  %v144_v0 = vld [vmem:[%s11378_s5 + $0x80] sm:$0xff] }
  0x53   :  { %785 = vmatmul.bf16.vlgmr.msra.gmra.mxu0 %v11592_v16  ;;  %883 = vmatmul.bf16.vlgmr.msra.gmra.mxu2 %v11592_v16  ;;  %v11649_v53 = vpack.c.bf16 %v147_v52, %v145_v51  ;;  %v8404_v54 = vld [vmem:[%s11388_s13 + $0x288] sm:$0xf]  ;;  %v10418_v56 = vld [vmem:[%s11388_s13 + $0x10c] sm:$0xf]  ;;  %v146_v1 = vld [vmem:[%s11378_s5 + $0x90] sm:$0xff] }
  0x54   :  { %11245 = vmatpush.bf16.msrb.mxu2 %v8313_v22  ;;  %1071 = vmatpush.bf16.msrb.mxu0 %v8313_v22  ;;  %v10470_v55 = vld [vmem:[%s11388_s13 + $0x2a4] sm:$0xf0]  ;;  %v8214_v58 = vld [vmem:[%s11388_s13 + $0x128] sm:$0xf0]  ;;  %v11664_v2 = vpack.c.bf16 %v146_v1, %v144_v0  ;;  %v151_v4 = vld [vmem:[%s11378_s5 + $0xb8] sm:$0xff] }
  0x55   :  { %8466 = vmatmul.msk.bf16.vlgmr.msrb.gmra.mxu3 %vm752_vm0, %v11574_v59  ;;  %8459 = vmatmul.msk.bf16.gmra.mxu1 %vm752_vm0, %v11597_v19  ;;  %14159 = vst [vmem:[#allocation21_spill] sm:$0xff] %v11649_v53  ;;  %v8405_v57 = vor.u32 %v10470_v55, %v8404_v54  ;;  %v8276_v60 = vld [vmem:[%s11388_s13 + $0x188] sm:$0xf]  ;;  %v8217_v62 = vor.u32 %v10418_v56, %v8214_v58  ;;  %v10410_v6 = vld [vmem:[%s11388_s13 + $0xcc] sm:$0xf]  ;;  %v148_v12 = vld [vmem:[%s11378_s5 + $0xa0] sm:$0xff] }
  0x56   :  { %1026 = vmatpush.bf16.msra.mxu3 %v8437_v32  ;;  %973 = vmatpush.bf16.msrb.mxu1 %v8309_v46  ;;  %v10438_v61 = vld [vmem:[%s11388_s13 + $0x1a4] sm:$0xf0]  ;;  %v8182_v7 = vld [vmem:[%s11388_s13 + $0xe8] sm:$0xf0]  ;;  %v150_v13 = vld [vmem:[%s11378_s5 + $0xb0] sm:$0xff] }
  0x57   :  { %v8277_v63 = vor.u32 %v10438_v61, %v8276_v60  ;;  %v149_v3 = vld [vmem:[%s11378_s5 + $0xa8] sm:$0xff]  ;;  %v8185_v9 = vor.u32 %v10410_v6, %v8182_v7  ;;  %v11682_v14 = vpack.c.bf16 %v150_v13, %v148_v12  ;;  %v155_v17 = vld [vmem:[%s11378_s5 + $0xd8] sm:$0xff]  ;;  %v154_v35 = vld [vmem:[%s11378_s5 + $0xd0] sm:$0xff] }
  0x58   :  { %11246 = vmatpush.bf16.msrb.mxu2 %v8281_v34  ;;  %1072 = vmatpush.bf16.msrb.mxu0 %v8281_v34  ;;  %v11669_v5 = vpack.c.bf16 %v151_v4, %v149_v3  ;;  %v8244_v8 = vld [vmem:[%s11388_s13 + $0x148] sm:$0xf]  ;;  %v10402_v26 = vld [vmem:[%s11388_s13 + $0x8c] sm:$0xf]  ;;  %v152_v34 = vld [vmem:[%s11378_s5 + $0xc0] sm:$0xff] }
  0x59   :  { %v10430_v10 = vld [vmem:[%s11388_s13 + $0x164] sm:$0xf0]  ;;  %14161 = vst [vmem:[#allocation23_spill] sm:$0xff] %v11682_v14  ;;  %v8150_v27 = vld [vmem:[%s11388_s13 + $0xa8] sm:$0xf0]  ;;  %v11706_v39 = vpack.c.bf16 %v154_v35, %v152_v34  ;;  %v156_v3 = vld [vmem:[%s11378_s5 + $0xe0] sm:$0xff] }
  0x5a   :  { %1027 = vmatpush.bf16.msra.mxu3 %v8405_v57  ;;  %974 = vmatpush.bf16.msrb.mxu1 %v8277_v63  ;;  %14160 = vst [vmem:[#allocation22_spill] sm:$0xff] %v11669_v5  ;;  %v8245_v11 = vor.u32 %v10430_v10, %v8244_v8  ;;  %v153_v15 = vld [vmem:[%s11378_s5 + $0xc8] sm:$0xff]  ;;  %v8153_v30 = vor.u32 %v10402_v26, %v8150_v27  ;;  %v158_v6 = vld [vmem:[%s11378_s5 + $0xf0] sm:$0xff]  ;;  %s14176_s5 = sld [smem:[#allocation6_spill]] }
  0x5b   :  { %v11687_v18 = vpack.c.bf16 %v155_v17, %v153_v15  ;;  %v8212_v20 = vld [vmem:[%s11388_s13 + $0x108] sm:$0xf]  ;;  %v10394_v31 = vld [vmem:[%s11388_s13 + $0x4c] sm:$0xf]  ;;  %14163 = vst [vmem:[#allocation25_spill] sm:$0xff] %v11706_v39  ;;  %v11732_v12 = vpack.c.bf16 %v158_v6, %v156_v3 }
  0x5c   :  { %11247 = vmatpush.bf16.msrb.mxu2 %v8249_v44  ;;  %1073 = vmatpush.bf16.msrb.mxu0 %v8249_v44  ;;  %v10422_v21 = vld [vmem:[%s11388_s13 + $0x124] sm:$0xf0]  ;;  %v8118_v32 = vld [vmem:[%s11388_s13 + $0x68] sm:$0xf0]  ;;  %v10447_v6 = vld [vmem:[%s11388_s13 + $0x1ec] sm:$0xf0] }
  0x5d   :  { %14162 = vst [vmem:[#allocation24_spill] sm:$0xff] %v11687_v18  ;;  %v8372_v22 = vld [vmem:[%s11388_s13 + $0x248] sm:$0xf]  ;;  %v8213_v23 = vor.u32 %v10422_v21, %v8212_v20  ;;  %v8121_v33 = vor.u32 %v10394_v31, %v8118_v32  ;;  %v10386_v36 = vld [vmem:[%s11388_s13 + $0xc] sm:$0xf] }
  0x5e   :  { %975 = vmatpush.bf16.msrb.mxu1 %v8245_v11  ;;  %v10462_v24 = vld [vmem:[%s11388_s13 + $0x264] sm:$0xf0]  ;;  %v8086_v38 = vld [vmem:[%s11388_s13 + $0x28] sm:$0xf0]  ;;  %14164 = vst [vmem:[#allocation26_spill] sm:$0xff] %v11732_v12 }
  0x5f   :  { %v8373_v29 = vor.u32 %v10462_v24, %v8372_v22  ;;  %v8089_v41 = vor.u32 %v10386_v36, %v8086_v38  ;;  %v8180_v42 = vld [vmem:[%s11388_s13 + $0xc8] sm:$0xf]  ;;  %v10474_v45 = vld [vmem:[%s11388_s13 + $0x2cc] sm:$0xf] }
  0x60   :  { %11248 = vmatpush.bf16.msrb.mxu2 %v8217_v62  ;;  %1074 = vmatpush.bf16.msrb.mxu0 %v8217_v62  ;;  %v10414_v43 = vld [vmem:[%s11388_s13 + $0xe4] sm:$0xf0]  ;;  %v8438_v46 = vld [vmem:[%s11388_s13 + $0x2e8] sm:$0xf0] }
  0x61   :  { %1028 = vmatpush.bf16.msra.mxu3 %v8373_v29  ;;  %v8181_v44 = vor.u32 %v10414_v43, %v8180_v42  ;;  %v8441_v48 = vor.u32 %v10474_v45, %v8438_v46  ;;  %v8148_v49 = vld [vmem:[%s11388_s13 + $0x88] sm:$0xf]  ;;  %v10466_v56 = vld [vmem:[%s11388_s13 + $0x28c] sm:$0xf] }
  0x62   :  { %976 = vmatpush.bf16.msrb.mxu1 %v8213_v23  ;;  %v10406_v51 = vld [vmem:[%s11388_s13 + $0xa4] sm:$0xf0]  ;;  %v8406_v58 = vld [vmem:[%s11388_s13 + $0x2a8] sm:$0xf0] }
  0x63   :  { %790 = vmatmul.bf16.gmra.mxu0 %v11608_v25  ;;  %888 = vmatmul.bf16.gmra.mxu2 %v11608_v25  ;;  %v8149_v52 = vor.u32 %v10406_v51, %v8148_v49  ;;  %v8340_v54 = vld [vmem:[%s11388_s13 + $0x208] sm:$0xf]  ;;  %v8409_v60 = vor.u32 %v10466_v56, %v8406_v58  ;;  %v10458_v0 = vld [vmem:[%s11388_s13 + $0x24c] sm:$0xf]  ;;  %v8444_v49 = vld [vmem:[%s11388_s13 + $0x2d0] sm:$0xf] }
  0x64   :  { %11249 = vmatpush.bf16.msrb.mxu2 %v8185_v9  ;;  %1075 = vmatpush.bf16.msrb.mxu0 %v8185_v9  ;;  %v10454_v55 = vld [vmem:[%s11388_s13 + $0x224] sm:$0xf0]  ;;  %v8374_v1 = vld [vmem:[%s11388_s13 + $0x268] sm:$0xf0]  ;;  %v10479_v51 = vld [vmem:[%s11388_s13 + $0x2ec] sm:$0xf0] }
  0x65   :  { %8467 = vmatmul.msk.bf16.gmra.mxu3 %vm752_vm0, %v11597_v19  ;;  %8460 = vmatmul.msk.bf16.gmra.mxu1 %vm752_vm0, %v11613_v28  ;;  %v8341_v57 = vor.u32 %v10454_v55, %v8340_v54  ;;  %v8116_v61 = vld [vmem:[%s11388_s13 + $0x48] sm:$0xf]  ;;  %v8377_v4 = vor.u32 %v10458_v0, %v8374_v1  ;;  %v10450_v10 = vld [vmem:[%s11388_s13 + $0x20c] sm:$0xf]  ;;  %v8445_v54 = vor.u32 %v10479_v51, %v8444_v49  ;;  %v8446_v55 = vld [vmem:[%s11388_s13 + $0x2f0] sm:$0xf0] }
  0x66   :  { %977 = vmatpush.bf16.msrb.mxu1 %v8181_v44  ;;  %v10398_v62 = vld [vmem:[%s11388_s13 + $0x64] sm:$0xf0]  ;;  %v8342_v11 = vld [vmem:[%s11388_s13 + $0x228] sm:$0xf0]  ;;  %v10435_v49 = vld [vmem:[%s11388_s13 + $0x194] sm:$0xf] }
  0x67   :  { %1029 = vmatpush.bf16.msra.mxu3 %v8341_v57  ;;  %v8117_v63 = vor.u32 %v10398_v62, %v8116_v61  ;;  %v8084_v7 = vld [vmem:[%s11388_s13 + $0x8] sm:$0xf]  ;;  %v8345_v13 = vor.u32 %v10450_v10, %v8342_v11  ;;  %v8286_v51 = vld [vmem:[%s11388_s13 + $0x1b0] sm:$0xf0] }
  0x68   :  { %11250 = vmatpush.bf16.msrb.mxu2 %v8153_v30  ;;  %1076 = vmatpush.bf16.msrb.mxu0 %v8153_v30  ;;  %v10390_v8 = vld [vmem:[%s11388_s13 + $0x24] sm:$0xf0] }
  0x69   :  { %v8085_v9 = vor.u32 %v10390_v8, %v8084_v7 }
  0x6a   :  { %978 = vmatpush.bf16.msrb.mxu1 %v8149_v52  ;;  %v10475_v52 = vld [vmem:[%s11388_s13 + $0x2d4] sm:$0xf] }
  0x6b   :  { %v8449_v56 = vor.u32 %v10475_v52, %v8446_v55  ;;  %1222 = vmatpush.bf16.msrb.mxu3 %v8445_v54  ;;  %v8289_v55 = vor.u32 %v10435_v49, %v8286_v51  ;;  %v8158_v49 = vld [vmem:[%s11388_s13 + $0xb0] sm:$0xf0] }
  0x6c   :  { %11251 = vmatpush.bf16.msrb.mxu2 %v8121_v33  ;;  %1077 = vmatpush.bf16.msrb.mxu0 %v8121_v33 }
  0x6e   :  { %979 = vmatpush.bf16.msrb.mxu1 %v8117_v63 }
  0x70   :  { %11252 = vmatpush.bf16.msrb.mxu2 %v8089_v41  ;;  %1078 = vmatpush.bf16.msrb.mxu0 %v8089_v41 }
  0x72   :  { %980 = vmatpush.bf16.msrb.mxu1 %v8085_v9 }
  0x73   :  { %795 = vmatmul.bf16.gmra.mxu0 %v11626_v37  ;;  %893 = vmatmul.bf16.gmra.mxu2 %v11626_v37 }
  0x74   :  { %1124 = vmatpush.bf16.msra.mxu2 %v8441_v48 }
  0x75   :  { %8468 = vmatmul.msk.bf16.gmra.mxu3 %vm752_vm0, %v11613_v28  ;;  %8461 = vmatmul.msk.bf16.gmra.mxu1 %vm752_vm0, %v11631_v40 }
  0x78   :  { %1125 = vmatpush.bf16.msra.mxu2 %v8409_v60 }
  0x7c   :  { %1126 = vmatpush.bf16.msra.mxu2 %v8377_v4  ;;  %v8316_v4 = vld [vmem:[%s11388_s13 + $0x1d0] sm:$0xf] }
  0x7d   :  { %v8317_v7 = vor.u32 %v10447_v6, %v8316_v4  ;;  %v8412_v4 = vld [vmem:[%s11388_s13 + $0x290] sm:$0xf] }
  0x7e   :  { %v10471_v6 = vld [vmem:[%s11388_s13 + $0x2ac] sm:$0xf0] }
  0x7f   :  { %1169 = vmatpush.bf16.msra.mxu1 %v8317_v7  ;;  %v10467_v7 = vld [vmem:[%s11388_s13 + $0x294] sm:$0xf] }
  0x80   :  { %1127 = vmatpush.bf16.msra.mxu2 %v8345_v13 }
  0x83   :  { %800 = vmatmul.bf16.gmra.mxu0 %v11644_v50  ;;  %898 = vmatmul.bf16.gmra.mxu2 %v11644_v50 }
  0x85   :  { %8469 = vmatmul.msk.bf16.gmra.mxu3 %vm752_vm0, %v11631_v40  ;;  %8462 = vmatmul.msk.bf16.gmra.mxu1 %vm752_vm0, %v11649_v53 }
  0x93   :  { %805 = vmatmul.bf16.gmra.mxu0 %v11664_v2  ;;  %903 = vmatmul.bf16.gmra.mxu2 %v11664_v2 }
  0x95   :  { %8470 = vmatmul.msk.bf16.gmra.mxu3 %vm752_vm0, %v11649_v53  ;;  %8463 = vmatmul.msk.bf16.gmra.mxu1 %vm752_vm0, %v11669_v5 }
  0xa3   :  { %810 = vmatmul.bf16.gmra.mxu0 %v11682_v14  ;;  %908 = vmatmul.bf16.gmra.mxu2 %v11682_v14 }
  0xa5   :  { %8471 = vmatmul.msk.bf16.gmra.mxu3 %vm752_vm0, %v11669_v5  ;;  %8464 = vmatmul.msk.bf16.gmra.mxu1 %vm752_vm0, %v11687_v18 }
  0xb3   :  { %815 = vmatmul.bf16.gmra.mxu0 %v11706_v39  ;;  %913 = vmatmul.bf16.gmra.mxu2 %v11706_v39 }
  0xb5   :  { %8472 = vmatmul.msk.bf16.gmra.mxu3 %vm752_vm0, %v11687_v18  ;;  %981 = vmatmul.bf16.vlgmr.msrb.gmra.mxu1 %v11592_v16 }
  0xc2   :  { %v835_v15 = vpop.f32.mrf.mxu1 }
  0xc3   :  { %820 = vmatmul.bf16.gmra.mxu0 %v11732_v12  ;;  %918 = vmatmul.bf16.gmra.mxu2 %v11732_v12 }
  0xc5   :  { %8473 = vmatmul.msk.bf16.gmra.mxu3 %vm752_vm0, %v11564_v47  ;;  %986 = vmatmul.bf16.gmra.mxu1 %v11608_v25 }
  0xc8   :  { %v11739_v17 = vpop.f32.mrf.mxu3 }
  0xca   :  { %v837_v20 = vpop.f32.mrf.mxu1 }
  0xd0   :  { %v11741_v21 = vpop.f32.mrf.mxu3  ;;  %v786_v22 = vpop.f32.mrf.mxu0 }
  0xd1   :  { %v836_v23 = vadd.f32 %v835_v15, %v786_v22 }
  0xd2   :  { %v840_v24 = vpop.f32.mrf.mxu1 }
  0xd3   :  { %1079 = vmatmul.bf16.vlgmr.msrb.gmra.mxu0 %v11592_v16  ;;  %1114 = vmatmul.bf16.vlgmr.msrb.gmra.mxu2 %v11732_v12 }
  0xd4   :  { %1320 = vmatpush.bf16.msrb.mxu2 %v8449_v56 }
  0xd5   :  { %8474 = vmatmul.msk.bf16.vlgmr.msra.gmra.mxu3 %vm752_vm0, %v11574_v59  ;;  %991 = vmatmul.bf16.gmra.mxu1 %v11626_v37 }
  0xd6   :  { %v884_v26 = vpop.f32.mrf.mxu2 }
  0xd8   :  { %v933_v27 = vpop.f32.mrf.mxu3  ;;  %v788_v30 = vpop.f32.mrf.mxu0 }
  0xd9   :  { %v934_v29 = vadd.f32 %v933_v27, %v884_v26  ;;  %v838_v31 = vadd.f32 %v837_v20, %v788_v30 }
  0xda   :  { %v842_v33 = vpop.f32.mrf.mxu1 }
  0xdb   :  { %v1561_v32 = vpack.c.bf16 %v934_v29, %v836_v23 }
  0xdd   :  { %v1844_v44 = vunpack.c.l.b16 %v1561_v32  ;;  %v1845_v45 = vunpack.c.h.b16 %v1561_v32 }
  0xde   :  { %v886_v34 = vpop.f32.mrf.mxu2 }
  0xe0   :  { %v935_v35 = vpop.f32.mrf.mxu3  ;;  %v791_v38 = vpop.f32.mrf.mxu0 }
  0xe1   :  { %v936_v36 = vadd.f32 %v935_v35, %v886_v34  ;;  %v841_v41 = vadd.f32 %v840_v24, %v791_v38  ;;  %v8318_v38 = vld [vmem:[%s11388_s13 + $0x1f0] sm:$0xf0] }
  0xe2   :  { %v845_v43 = vpop.f32.mrf.mxu1 }
  0xe3   :  { %v1565_v42 = vpack.c.bf16 %v936_v36, %v838_v31  ;;  %1084 = vmatmul.bf16.gmra.mxu0 %v11608_v25  ;;  %8482 = vmatmul.msk.bf16.vlgmr.msra.gmra.mxu2 %vm752_vm0, %v11574_v59  ;;  %v10443_v36 = vld [vmem:[%s11388_s13 + $0x1d4] sm:$0xf] }
  0xe5   :  { %v1846_v46 = vunpack.c.l.b16 %v1565_v42  ;;  %v1847_v48 = vunpack.c.h.b16 %v1565_v42  ;;  %8475 = vmatmul.msk.bf16.gmra.mxu3 %vm752_vm0, %v11597_v19  ;;  %996 = vmatmul.bf16.gmra.mxu1 %v11644_v50  ;;  %v8284_v42 = vld [vmem:[%s11388_s13 + $0x190] sm:$0xf] }
  0xe6   :  { %v889_v60 = vpop.f32.mrf.mxu2 }
  0xe7   :  { %v11758_v57 = vpack.c.b16 %v1846_v46, %v1844_v44  ;;  %v11760_v58 = vpack.c.b16 %v1847_v48, %v1845_v45  ;;  %v8321_v44 = vor.u32 %v10443_v36, %v8318_v38  ;;  %v8252_v36 = vld [vmem:[%s11388_s13 + $0x150] sm:$0xf] }
  0xe8   :  { %v938_v61 = vpop.f32.mrf.mxu3  ;;  %v793_v63 = vpop.f32.mrf.mxu0  ;;  %v10431_v38 = vld [vmem:[%s11388_s13 + $0x16c] sm:$0xf0] }
  0xe9   :  { %v939_v62 = vadd.f32 %v938_v61, %v889_v60  ;;  %v843_v0 = vadd.f32 %v842_v33, %v793_v63  ;;  %1267 = vmatpush.bf16.msra.mxu0 %v8321_v44  ;;  %v8254_v63 = vld [vmem:[%s11388_s13 + $0x170] sm:$0xf0] }
  0xea   :  { %v847_v3 = vpop.f32.mrf.mxu1 }
  0xeb   :  { %v1569_v1 = vpack.c.bf16 %v939_v62, %v841_v41  ;;  %v10427_v62 = vld [vmem:[%s11388_s13 + $0x154] sm:$0xf] }
  0xed   :  { %v1848_v22 = vunpack.c.l.b16 %v1569_v1  ;;  %v1849_v23 = vunpack.c.h.b16 %v1569_v1  ;;  %1268 = vmatpush.bf16.msra.mxu0 %v8289_v55 }
  0xee   :  { %v891_v8 = vpop.f32.mrf.mxu2 }
  0xf0   :  { %v940_v9 = vpop.f32.mrf.mxu3  ;;  %v796_v11 = vpop.f32.mrf.mxu0 }
  0xf1   :  { %v941_v10 = vadd.f32 %v940_v9, %v891_v8  ;;  %v846_v13 = vadd.f32 %v845_v43, %v796_v11  ;;  %v10439_v43 = vld [vmem:[%s11388_s13 + $0x1ac] sm:$0xf0]  ;;  %v8257_v8 = vor.u32 %v10427_v62, %v8254_v63  ;;  %v8413_v9 = vor.u32 %v10471_v6, %v8412_v4 }
  0xf2   :  { %v850_v20 = vpop.f32.mrf.mxu1  ;;  %v8285_v45 = vor.u32 %v10439_v43, %v8284_v42  ;;  %v8253_v43 = vor.u32 %v10431_v38, %v8252_v36  ;;  %v8294_v36 = vld [vmem:[%s11388_s13 + $0x1b8] sm:$0xf0] }
  0xf3   :  { %v1573_v15 = vpack.c.bf16 %v941_v10, %v843_v0  ;;  %1089 = vmatmul.bf16.gmra.mxu0 %v11626_v37  ;;  %8483 = vmatmul.msk.bf16.gmra.mxu2 %vm752_vm0, %v11597_v19  ;;  %v8414_v10 = vld [vmem:[%s11388_s13 + $0x2b0] sm:$0xf0] }
  0xf4   :  { %1170 = vmatpush.bf16.msra.mxu1 %v8285_v45  ;;  %1269 = vmatpush.bf16.msra.mxu0 %v8257_v8 }
  0xf5   :  { %v1850_v24 = vunpack.c.l.b16 %v1573_v15  ;;  %v1851_v26 = vunpack.c.h.b16 %v1573_v15  ;;  %8476 = vmatmul.msk.bf16.gmra.mxu3 %vm752_vm0, %v11613_v28  ;;  %1001 = vmatmul.bf16.gmra.mxu1 %v11664_v2 }
  0xf6   :  { %v894_v30 = vpop.f32.mrf.mxu2  ;;  %1223 = vmatpush.bf16.msrb.mxu3 %v8413_v9  ;;  %v10387_v9 = vld [vmem:[%s11388_s13 + $0x14] sm:$0xf] }
  0xf7   :  { %v11770_v27 = vpack.c.b16 %v1850_v24, %v1848_v22  ;;  %v11772_v29 = vpack.c.b16 %v1851_v26, %v1849_v23  ;;  %v10419_v24 = vld [vmem:[%s11388_s13 + $0x114] sm:$0xf] }
  0xf8   :  { %v943_v31 = vpop.f32.mrf.mxu3  ;;  %v798_v33 = vpop.f32.mrf.mxu0  ;;  %v8222_v26 = vld [vmem:[%s11388_s13 + $0x130] sm:$0xf0]  ;;  %1171 = vmatpush.bf16.msra.mxu1 %v8253_v43 }
  0xf9   :  { %v944_v32 = vadd.f32 %v943_v31, %v894_v30  ;;  %v848_v34 = vadd.f32 %v847_v3, %v798_v33 }
  0xfa   :  { %v852_v41 = vpop.f32.mrf.mxu1 }
  0xfb   :  { %v1577_v35 = vpack.c.bf16 %v944_v32, %v846_v13  ;;  %v8417_v13 = vor.u32 %v10467_v7, %v8414_v10  ;;  %v8225_v32 = vor.u32 %v10419_v24, %v8222_v26  ;;  %v8094_v10 = vld [vmem:[%s11388_s13 + $0x30] sm:$0xf0]  ;;  %v10444_v24 = vld [vmem:[%s11388_s13 + $0x1dc] sm:$0xf] }
  0xfc   :  { %v8326_v26 = vld [vmem:[%s11388_s13 + $0x1f8] sm:$0xf0] }
  0xfd   :  { %v1852_v61 = vunpack.c.l.b16 %v1577_v35  ;;  %v1853_v0 = vunpack.c.h.b16 %v1577_v35  ;;  %1321 = vmatpush.bf16.msrb.mxu2 %v8417_v13  ;;  %1270 = vmatpush.bf16.msra.mxu0 %v8225_v32  ;;  %v8190_v35 = vld [vmem:[%s11388_s13 + $0xf0] sm:$0xf0]  ;;  %v8220_v32 = vld [vmem:[%s11388_s13 + $0x110] sm:$0xf] }
  0xfe   :  { %v896_v46 = vpop.f32.mrf.mxu2 }
 0x100   :  { %v945_v48 = vpop.f32.mrf.mxu3  ;;  %v801_v54 = vpop.f32.mrf.mxu0 }
 0x101   :  { %v946_v52 = vadd.f32 %v945_v48, %v896_v46  ;;  %v851_v56 = vadd.f32 %v850_v20, %v801_v54  ;;  %v10403_v48 = vld [vmem:[%s11388_s13 + $0x94] sm:$0xf] }
 0x102   :  { %v855_v11 = vpop.f32.mrf.mxu1  ;;  %v8161_v55 = vor.u32 %v10403_v48, %v8158_v49 }
 0x103   :  { %v1581_v60 = vpack.c.bf16 %v946_v52, %v848_v34  ;;  %1094 = vmatmul.bf16.gmra.mxu0 %v11644_v50  ;;  %8484 = vmatmul.msk.bf16.gmra.mxu2 %vm752_vm0, %v11613_v28  ;;  %v10411_v34 = vld [vmem:[%s11388_s13 + $0xd4] sm:$0xf] }
 0x104   :  { %v8193_v42 = vor.u32 %v10411_v34, %v8190_v35  ;;  %v10436_v34 = vld [vmem:[%s11388_s13 + $0x19c] sm:$0xf] }
 0x105   :  { %v1854_v1 = vunpack.c.l.b16 %v1581_v60  ;;  %v1855_v3 = vunpack.c.h.b16 %v1581_v60  ;;  %8477 = vmatmul.msk.bf16.gmra.mxu3 %vm752_vm0, %v11631_v40  ;;  %1006 = vmatmul.bf16.gmra.mxu1 %v11682_v14  ;;  %v8297_v38 = vor.u32 %v10436_v34, %v8294_v36  ;;  %v10396_v36 = vld [vmem:[%s11388_s13 + $0x5c] sm:$0xf] }
 0x106   :  { %v899_v22 = vpop.f32.mrf.mxu2  ;;  %1271 = vmatpush.bf16.msra.mxu0 %v8193_v42 }
 0x107   :  { %v11792_v15 = vpack.c.b16 %v1854_v1, %v1852_v61  ;;  %v11794_v20 = vpack.c.b16 %v1855_v3, %v1853_v0  ;;  %v8126_v61 = vld [vmem:[%s11388_s13 + $0x70] sm:$0xf0] }
 0x108   :  { %v948_v23 = vpop.f32.mrf.mxu3  ;;  %v803_v31 = vpop.f32.mrf.mxu0 }
 0x109   :  { %v949_v30 = vadd.f32 %v948_v23, %v899_v22  ;;  %v853_v44 = vadd.f32 %v852_v41, %v803_v31  ;;  %v10395_v41 = vld [vmem:[%s11388_s13 + $0x54] sm:$0xf]  ;;  %v8097_v23 = vor.u32 %v10387_v9, %v8094_v10  ;;  %v8188_v10 = vld [vmem:[%s11388_s13 + $0xd0] sm:$0xf] }
 0x10a   :  { %v11804_v54 = vpop.f32.mrf.mxu1  ;;  %1272 = vmatpush.bf16.msra.mxu0 %v8161_v55  ;;  %v8129_v1 = vor.u32 %v10395_v41, %v8126_v61  ;;  %v10459_v55 = vld [vmem:[%s11388_s13 + $0x254] sm:$0xf]  ;;  %v10420_v41 = vld [vmem:[%s11388_s13 + $0x11c] sm:$0xf] }
 0x10b   :  { %v1585_v33 = vpack.c.bf16 %v949_v30, %v851_v56  ;;  %v8230_v61 = vld [vmem:[%s11388_s13 + $0x138] sm:$0xf0] }
 0x10d   :  { %v1856_v60 = vunpack.c.l.b16 %v1585_v33  ;;  %v1857_v62 = vunpack.c.h.b16 %v1585_v33  ;;  %v10423_v33 = vld [vmem:[%s11388_s13 + $0x12c] sm:$0xf0] }
 0x10e   :  { %v901_v45 = vpop.f32.mrf.mxu2  ;;  %1273 = vmatpush.bf16.msra.mxu0 %v8129_v1  ;;  %v8221_v35 = vor.u32 %v10423_v33, %v8220_v32 }
 0x110   :  { %v950_v46 = vpop.f32.mrf.mxu3  ;;  %v806_v52 = vpop.f32.mrf.mxu0  ;;  %1172 = vmatpush.bf16.msra.mxu1 %v8221_v35 }
 0x111   :  { %v951_v51 = vadd.f32 %v950_v46, %v901_v45  ;;  %v856_v3 = vadd.f32 %v855_v11, %v806_v52  ;;  %v8329_v11 = vor.u32 %v10444_v24, %v8326_v26  ;;  %v10428_v45 = vld [vmem:[%s11388_s13 + $0x15c] sm:$0xf]  ;;  %v10463_v52 = vld [vmem:[%s11388_s13 + $0x26c] sm:$0xf0] }
 0x112   :  { %v11826_v31 = vpop.f32.mrf.mxu1  ;;  %1274 = vmatpush.bf16.msra.mxu0 %v8097_v23  ;;  %v8262_v46 = vld [vmem:[%s11388_s13 + $0x178] sm:$0xf0] }
 0x113   :  { %v1589_v56 = vpack.c.bf16 %v951_v51, %v853_v44  ;;  %1099 = vmatmul.bf16.gmra.mxu0 %v11664_v2  ;;  %8485 = vmatmul.msk.bf16.gmra.mxu2 %vm752_vm0, %v11631_v40  ;;  %v8265_v48 = vor.u32 %v10428_v45, %v8262_v46  ;;  %v8380_v51 = vld [vmem:[%s11388_s13 + $0x250] sm:$0xf]  ;;  %v10404_v23 = vld [vmem:[%s11388_s13 + $0x9c] sm:$0xf]  ;;  %v10451_v46 = vld [vmem:[%s11388_s13 + $0x214] sm:$0xf] }
 0x114   :  { %v8166_v26 = vld [vmem:[%s11388_s13 + $0xb8] sm:$0xf0] }
 0x115   :  { %v1858_v63 = vunpack.c.l.b16 %v1589_v56  ;;  %v1859_v0 = vunpack.c.h.b16 %v1589_v56  ;;  %8478 = vmatmul.msk.bf16.gmra.mxu3 %vm752_vm0, %v11649_v53  ;;  %1011 = vmatmul.bf16.gmra.mxu1 %v11706_v39  ;;  %v8381_v56 = vor.u32 %v10463_v52, %v8380_v51  ;;  %v8169_v32 = vor.u32 %v10404_v23, %v8166_v26  ;;  %v8156_v52 = vld [vmem:[%s11388_s13 + $0x90] sm:$0xf] }
 0x116   :  { %v904_v7 = vpop.f32.mrf.mxu2  ;;  %1463 = vmatpush.bf16.msrb.mxu0 %v8329_v11 }
 0x117   :  { %v11814_v4 = vpack.c.b16 %v1858_v63, %v1856_v60  ;;  %v11816_v6 = vpack.c.b16 %v1859_v0, %v1857_v62  ;;  %v8382_v60 = vld [vmem:[%s11388_s13 + $0x270] sm:$0xf0]  ;;  %v8233_v63 = vor.u32 %v10420_v41, %v8230_v61  ;;  %1224 = vmatpush.bf16.msrb.mxu3 %v8381_v56  ;;  %v10388_v56 = vld [vmem:[%s11388_s13 + $0x1c] sm:$0xf] }
 0x118   :  { %v953_v8 = vpop.f32.mrf.mxu3  ;;  %v11820_v22 = vpop.f32.mrf.mxu0  ;;  %v8385_v62 = vor.u32 %v10459_v55, %v8382_v60  ;;  %v10407_v55 = vld [vmem:[%s11388_s13 + $0xac] sm:$0xf0]  ;;  %v8102_v41 = vld [vmem:[%s11388_s13 + $0x38] sm:$0xf0] }
 0x119   :  { %v954_v13 = vadd.f32 %v953_v8, %v904_v7  ;;  %v10412_v7 = vld [vmem:[%s11388_s13 + $0xdc] sm:$0xf]  ;;  %v8157_v60 = vor.u32 %v10407_v55, %v8156_v52  ;;  %v10391_v52 = vld [vmem:[%s11388_s13 + $0x2c] sm:$0xf0] }
 0x11a   :  { %1464 = vmatpush.bf16.msrb.mxu0 %v8297_v38  ;;  %v11846_v49 = vpop.f32.mrf.mxu1  ;;  %1322 = vmatpush.bf16.msrb.mxu2 %v8385_v62  ;;  %v8198_v8 = vld [vmem:[%s11388_s13 + $0xf8] sm:$0xf0] }
 0x11b   :  { %v11824_v30 = vpack.c.bf16 %v954_v13, %v856_v3  ;;  %v8201_v9 = vor.u32 %v10412_v7, %v8198_v8  ;;  %v10415_v13 = vld [vmem:[%s11388_s13 + $0xec] sm:$0xf0]  ;;  %v8134_v38 = vld [vmem:[%s11388_s13 + $0x78] sm:$0xf0] }
 0x11c   :  { %v8189_v24 = vor.u32 %v10415_v13, %v8188_v10  ;;  %v8137_v45 = vor.u32 %v10396_v36, %v8134_v38  ;;  %v10476_v61 = vld [vmem:[%s11388_s13 + $0x2dc] sm:$0xf]  ;;  %v8348_v8 = vld [vmem:[%s11388_s13 + $0x210] sm:$0xf] }
 0x11d   :  { %v8454_v62 = vld [vmem:[%s11388_s13 + $0x2f8] sm:$0xf0]  ;;  %v10399_v36 = vld [vmem:[%s11388_s13 + $0x6c] sm:$0xf0] }
 0x11e   :  { %v11832_v42 = vpop.f32.mrf.mxu2  ;;  %1465 = vmatpush.bf16.msrb.mxu0 %v8265_v48  ;;  %1173 = vmatpush.bf16.msra.mxu1 %v8189_v24  ;;  %v8350_v48 = vld [vmem:[%s11388_s13 + $0x230] sm:$0xf0]  ;;  %v8457_v7 = vor.u32 %v10476_v61, %v8454_v62  ;;  %v10468_v38 = vld [vmem:[%s11388_s13 + $0x29c] sm:$0xf] }
 0x11f   :  { %v8353_v51 = vor.u32 %v10451_v46, %v8350_v48  ;;  %v8422_v46 = vld [vmem:[%s11388_s13 + $0x2b8] sm:$0xf0] }
 0x120   :  { %v11834_v43 = vpop.f32.mrf.mxu3  ;;  %v11836_v44 = vpop.f32.mrf.mxu0  ;;  %v8425_v48 = vor.u32 %v10468_v38, %v8422_v46  ;;  %v10460_v55 = vld [vmem:[%s11388_s13 + $0x25c] sm:$0xf] }
 0x121   :  { %1323 = vmatpush.bf16.msrb.mxu2 %v8353_v51  ;;  %v8092_v51 = vld [vmem:[%s11388_s13 + $0x10] sm:$0xf] }
 0x122   :  { %1466 = vmatpush.bf16.msrb.mxu0 %v8233_v63  ;;  %v11866_v11 = vpop.f32.mrf.mxu1  ;;  %v8105_v63 = vor.u32 %v10388_v56, %v8102_v41  ;;  %1174 = vmatpush.bf16.msra.mxu1 %v8157_v60  ;;  %v8093_v56 = vor.u32 %v10391_v52, %v8092_v51  ;;  %v8390_v60 = vld [vmem:[%s11388_s13 + $0x278] sm:$0xf0] }
 0x123   :  { %1104 = vmatmul.bf16.gmra.mxu0 %v11682_v14  ;;  %8486 = vmatmul.msk.bf16.gmra.mxu2 %vm752_vm0, %v11649_v53  ;;  %v8393_v41 = vor.u32 %v10460_v55, %v8390_v60 }
 0x125   :  { %8479 = vmatmul.msk.bf16.gmra.mxu3 %vm752_vm0, %v11669_v5  ;;  %1016 = vmatmul.bf16.gmra.mxu1 %v11732_v12 }
 0x126   :  { %v11854_v0 = vpop.f32.mrf.mxu2  ;;  %1467 = vmatpush.bf16.msrb.mxu0 %v8201_v9  ;;  %v10455_v9 = vld [vmem:[%s11388_s13 + $0x22c] sm:$0xf0]  ;;  %1516 = vmatpush.bf16.msra.mxu2 %v8457_v7 }
 0x127   :  { %v8349_v23 = vor.u32 %v10455_v9, %v8348_v8  ;;  %v8358_v9 = vld [vmem:[%s11388_s13 + $0x238] sm:$0xf0] }
 0x128   :  { %v11856_v1 = vpop.f32.mrf.mxu3  ;;  %v11858_v3 = vpop.f32.mrf.mxu0 }
 0x129   :  { %1225 = vmatpush.bf16.msrb.mxu3 %v8349_v23 }
 0x12a   :  { %1468 = vmatpush.bf16.msrb.mxu0 %v8169_v32  ;;  %v867_v26 = vpop.f32.mrf.mxu1  ;;  %v8124_v32 = vld [vmem:[%s11388_s13 + $0x50] sm:$0xf]  ;;  %1517 = vmatpush.bf16.msra.mxu2 %v8425_v48 }
 0x12e   :  { %v11868_v33 = vpop.f32.mrf.mxu2  ;;  %1469 = vmatpush.bf16.msrb.mxu0 %v8137_v45  ;;  %v8125_v45 = vor.u32 %v10399_v36, %v8124_v32  ;;  %1518 = vmatpush.bf16.msra.mxu2 %v8393_v41 }
 0x130   :  { %v11870_v34 = vpop.f32.mrf.mxu3  ;;  %v11872_v35 = vpop.f32.mrf.mxu0  ;;  %1175 = vmatpush.bf16.msra.mxu1 %v8125_v45 }
 0x131   :  { %v866_v55 = vadd.f32 %v11866_v11, %v11872_v35  ;;  %v861_v11 = vadd.f32 %v11826_v31, %v11836_v44  ;;  %v956_v31 = vadd.f32 %v11834_v43, %v11832_v42 }
 0x132   :  { %1470 = vmatpush.bf16.msrb.mxu0 %v8105_v63  ;;  %v982_v8 = vpop.f32.mrf.mxu1  ;;  %v10452_v63 = vld [vmem:[%s11388_s13 + $0x21c] sm:$0xf] }
 0x133   :  { %1109 = vmatmul.bf16.gmra.mxu0 %v11706_v39  ;;  %8487 = vmatmul.msk.bf16.gmra.mxu2 %vm752_vm0, %v11669_v5  ;;  %v8361_v23 = vor.u32 %v10452_v63, %v8358_v9 }
 0x134   :  { %1176 = vmatpush.bf16.msra.mxu1 %v8093_v56 }
 0x135   :  { %8480 = vmatmul.msk.bf16.gmra.mxu3 %vm752_vm0, %v11687_v18  ;;  %1519 = vmatpush.bf16.msra.mxu2 %v8361_v23 }
 0x136   :  { %v914_v10 = vpop.f32.mrf.mxu2 }
 0x137   :  { %1177 = vmatmul.bf16.vlgmr.msra.gmra.mxu1 %v11592_v16 }
 0x138   :  { %v963_v13 = vpop.f32.mrf.mxu3  ;;  %v818_v24 = vpop.f32.mrf.mxu0 }
 0x139   :  { %v868_v48 = vadd.f32 %v867_v26, %v818_v24  ;;  %v964_v41 = vadd.f32 %v963_v13, %v914_v10  ;;  %v961_v24 = vadd.f32 %v11870_v34, %v11868_v33 }
 0x13a   :  { %v984_v45 = vpop.f32.mrf.mxu1 }
 0x13b   :  { %v1609_v35 = vpack.c.bf16 %v964_v41, %v866_v55 }
 0x13d   :  { %v1868_v34 = vunpack.c.l.b16 %v1609_v35 }
 0x13e   :  { %v916_v61 = vpop.f32.mrf.mxu2 }
 0x140   :  { %v965_v62 = vpop.f32.mrf.mxu3  ;;  %v821_v7 = vpop.f32.mrf.mxu0 }
 0x141   :  { %v966_v51 = vadd.f32 %v965_v62, %v916_v61  ;;  %v871_v52 = vadd.f32 %v11739_v17, %v821_v7 }
 0x143   :  { %1275 = vmatmul.bf16.vlgmr.msra.gmra.mxu0 %v11592_v16  ;;  %8488 = vmatmul.msk.bf16.gmra.mxu2 %vm752_vm0, %v11687_v18  ;;  %v11912_v18 = vpop.f32.mrf.mxu1  ;;  %v1613_v17 = vpack.c.bf16 %v966_v51, %v868_v48 }
 0x145   :  { %8481 = vmatmul.msk.bf16.gmra.mxu3 %vm752_vm0, %v11564_v47 }
 0x146   :  { %v919_v32 = vpop.f32.mrf.mxu2 }
 0x147   :  { %1182 = vmatmul.bf16.gmra.mxu1 %v11608_v25 }
 0x148   :  { %v968_v36 = vpop.f32.mrf.mxu3  ;;  %v823_v38 = vpop.f32.mrf.mxu0 }
 0x149   :  { %v969_v46 = vadd.f32 %v968_v36, %v919_v32  ;;  %v873_v9 = vadd.f32 %v11741_v21, %v823_v38  ;;  %v863_v32 = vadd.f32 %v11846_v49, %v11858_v3  ;;  %v959_v21 = vadd.f32 %v11856_v1, %v11854_v0 }
 0x14a   :  { %v1870_v49 = vunpack.c.l.b16 %v1613_v17 }
 0x14b   :  { %v1617_v63 = vpack.c.bf16 %v969_v46, %v871_v52  ;;  %v1605_v44 = vpack.c.bf16 %v961_v24, %v863_v32  ;;  %v1601_v1 = vpack.c.bf16 %v959_v21, %v861_v11  ;;  %v989_v7 = vpop.f32.mrf.mxu1  ;;  %v1860_v52 = vunpack.c.l.b16 %v11824_v30  ;;  %v8452_v24 = vld [vmem:[%s11388_s13 + $0x2d8] sm:$0xf] }
 0x14c   :  { %v1888_v46 = vpack.c.b16 %v1870_v49, %v1868_v34  ;;  %v1869_v11 = vunpack.c.h.b16 %v1609_v35 }
 0x14d   :  { %v1872_v10 = vunpack.c.l.b16 %v1617_v63  ;;  %v1866_v38 = vunpack.c.l.b16 %v1605_v44  ;;  %v1864_v48 = vunpack.c.l.b16 %v1601_v1  ;;  %v1865_v35 = vunpack.c.h.b16 %v1601_v1 }
 0x14e   :  { %v921_v56 = vpop.f32.mrf.mxu2 }
 0x150   :  { %v970_v60 = vpop.f32.mrf.mxu3  ;;  %v1080_v23 = vpop.f32.mrf.mxu0 }
 0x151   :  { %v971_v16 = vadd.f32 %v970_v60, %v921_v56  ;;  %v1873_v60 = vunpack.c.h.b16 %v1617_v63  ;;  %v1867_v63 = vunpack.c.h.b16 %v1605_v44  ;;  %v8324_v44 = vld [vmem:[%s11388_s13 + $0x1d8] sm:$0xf] }
 0x153   :  { %v1621_v26 = vpack.c.bf16 %v971_v16, %v873_v9  ;;  %1280 = vmatmul.bf16.gmra.mxu0 %v11608_v25  ;;  %8489 = vmatmul.msk.bf16.gmra.mxu2 %vm752_vm0, %v11564_v47  ;;  %v858_v16 = vadd.f32 %v11804_v54, %v11820_v22  ;;  %v1886_v22 = vpack.c.b16 %v1866_v38, %v1864_v48  ;;  %v992_v56 = vpop.f32.mrf.mxu1  ;;  %v1871_v9 = vunpack.c.h.b16 %v1613_v17  ;;  %v10448_v38 = vld [vmem:[%s11388_s13 + $0x1f4] sm:$0xf0] }
 0x154   :  { %v1887_v34 = vpack.c.b16 %v1867_v63, %v1865_v35  ;;  %v8325_v48 = vor.u32 %v10448_v38, %v8324_v44 }
 0x155   :  { %v1874_v13 = vunpack.c.l.b16 %v1621_v26  ;;  %8490 = vmatmul.msk.bf16.vlgmr.msrb.gmra.mxu3 %vm752_vm0, %v11574_v59  ;;  %v1597_v36 = vpack.c.bf16 %v956_v31, %v858_v16  ;;  %v1875_v42 = vunpack.c.h.b16 %v1621_v26  ;;  %v10480_v26 = vld [vmem:[%s11388_s13 + $0x2f4] sm:$0xf0]  ;;  %v1889_v17 = vpack.c.b16 %v1871_v9, %v1869_v11 }
 0x156   :  { %v11932_v33 = vpop.f32.mrf.mxu2  ;;  %1365 = vmatpush.bf16.msrb.mxu1 %v8325_v48  ;;  %v8260_v48 = vld [vmem:[%s11388_s13 + $0x158] sm:$0xf] }
 0x157   :  { %v1890_v3 = vpack.c.b16 %v1874_v13, %v1872_v10  ;;  %v1862_v54 = vunpack.c.l.b16 %v1597_v36  ;;  %1187 = vmatmul.bf16.gmra.mxu1 %v11626_v37  ;;  %v1891_v32 = vpack.c.b16 %v1875_v42, %v1873_v60 }
 0x158   :  { %v1031_v0 = vpop.f32.mrf.mxu3  ;;  %v1082_v62 = vpop.f32.mrf.mxu0 }
 0x159   :  { %1908 = vmatpush.bf16.msra.mxu0 %v1890_v3  ;;  %v1032_v61 = vadd.f32 %v1031_v0, %v982_v8  ;;  %v1884_v41 = vpack.c.b16 %v1862_v54, %v1860_v52  ;;  %v1863_v0 = vunpack.c.h.b16 %v1597_v36 }
 0x15b   :  { %v994_v49 = vpop.f32.mrf.mxu1 }
 0x15d   :  { %1909 = vmatpush.bf16.msra.mxu0 %v1888_v46  ;;  %v1861_v46 = vunpack.c.h.b16 %v11824_v30 }
 0x15e   :  { %v11934_v43 = vpop.f32.mrf.mxu2 }
 0x15f   :  { %v1885_v54 = vpack.c.b16 %v1863_v0, %v1861_v46 }
 0x160   :  { %v1033_v51 = vpop.f32.mrf.mxu3  ;;  %v1085_v8 = vpop.f32.mrf.mxu0 }
 0x161   :  { %1910 = vmatpush.bf16.msra.mxu0 %v1886_v22  ;;  %v1034_v55 = vadd.f32 %v1033_v51, %v984_v45  ;;  %v8453_v45 = vor.u32 %v10480_v26, %v8452_v24  ;;  %v8292_v24 = vld [vmem:[%s11388_s13 + $0x198] sm:$0xf] }
 0x163   :  { %1285 = vmatmul.bf16.gmra.mxu0 %v11626_v37  ;;  %8498 = vmatmul.msk.bf16.vlgmr.msrb.gmra.mxu2 %vm752_vm0, %v11574_v59 }
 0x164   :  { %1937 = vmatpush.bf16.msrb.mxu2 %v1891_v32  ;;  %1418 = vmatpush.bf16.msra.mxu3 %v8453_v45 }
 0x165   :  { %1911 = vmatpush.bf16.msra.mxu0 %v1884_v41  ;;  %8491 = vmatmul.msk.bf16.gmra.mxu3 %vm752_vm0, %v11597_v19 }
 0x166   :  { %v1129_v21 = vpop.f32.mrf.mxu2 }
 0x167   :  { %v1130_v13 = vadd.f32 %v1129_v21, %v1080_v23  ;;  %1192 = vmatmul.bf16.gmra.mxu1 %v11644_v50 }
 0x168   :  { %v1036_v10 = vpop.f32.mrf.mxu3  ;;  %v1087_v31 = vpop.f32.mrf.mxu0  ;;  %1938 = vmatpush.bf16.msrb.mxu2 %v1889_v17 }
 0x169   :  { %1912 = vmatpush.bf16.msra.mxu0 %v11814_v4  ;;  %v1037_v16 = vadd.f32 %v1036_v10, %v11912_v18  ;;  %v1562_v3 = vpack.c.bf16 %v1130_v13, %v1032_v61  ;;  %v997_v61 = vpop.f32.mrf.mxu1  ;;  %v8420_v13 = vld [vmem:[%s11388_s13 + $0x298] sm:$0xf] }
 0x16b   :  { %v1683_v30 = vunpack.c.h.b16 %v1562_v3 }
 0x16c   :  { %1939 = vmatpush.bf16.msrb.mxu2 %v1887_v34 }
 0x16d   :  { %1913 = vmatpush.bf16.msra.mxu0 %v11792_v15  ;;  %v1682_v15 = vunpack.c.l.b16 %v1562_v3 }
 0x16e   :  { %v1131_v23 = vpop.f32.mrf.mxu2 }
 0x16f   :  { %v1132_v18 = vadd.f32 %v1131_v23, %v1082_v62  ;;  %v10432_v23 = vld [vmem:[%s11388_s13 + $0x174] sm:$0xf0] }
 0x170   :  { %v1038_v4 = vpop.f32.mrf.mxu3  ;;  %v1090_v22 = vpop.f32.mrf.mxu0  ;;  %1940 = vmatpush.bf16.msrb.mxu2 %v1885_v54  ;;  %v8261_v54 = vor.u32 %v10432_v23, %v8260_v48 }
 0x171   :  { %1914 = vmatpush.bf16.msra.mxu0 %v11770_v27  ;;  %v1039_v1 = vadd.f32 %v1038_v4, %v989_v7  ;;  %v1566_v36 = vpack.c.bf16 %v1132_v18, %v1034_v55  ;;  %v999_v9 = vpop.f32.mrf.mxu1 }
 0x173   :  { %1290 = vmatmul.bf16.gmra.mxu0 %v11644_v50  ;;  %v1684_v42 = vunpack.c.l.b16 %v1566_v36  ;;  %v1685_v51 = vunpack.c.h.b16 %v1566_v36  ;;  %8499 = vmatmul.msk.bf16.gmra.mxu2 %vm752_vm0, %v11597_v19 }
 0x174   :  { %1941 = vmatpush.bf16.msrb.mxu2 %v11816_v6 }
 0x175   :  { %1915 = vmatpush.bf16.msra.mxu0 %v11758_v57  ;;  %8492 = vmatmul.msk.bf16.gmra.mxu3 %vm752_vm0, %v11613_v28  ;;  %v11960_v27 = vpack.c.b16 %v1684_v42, %v1682_v15  ;;  %v11962_v62 = vpack.c.b16 %v1685_v51, %v1683_v30  ;;  %v10440_v57 = vld [vmem:[%s11388_s13 + $0x1b4] sm:$0xf0] }
 0x176   :  { %v1134_v7 = vpop.f32.mrf.mxu2  ;;  %v8293_v6 = vor.u32 %v10440_v57, %v8292_v24 }
 0x177   :  { %v1135_v55 = vadd.f32 %v1134_v7, %v1085_v8  ;;  %1197 = vmatmul.bf16.gmra.mxu1 %v11664_v2 }
 0x178   :  { %v1041_v52 = vpop.f32.mrf.mxu3  ;;  %v1092_v41 = vpop.f32.mrf.mxu0  ;;  %1942 = vmatpush.bf16.msrb.mxu2 %v11794_v20  ;;  %1366 = vmatpush.bf16.msrb.mxu1 %v8293_v6 }
 0x179   :  { %v1042_v60 = vadd.f32 %v1041_v52, %v992_v56  ;;  %v1570_v32 = vpack.c.bf16 %v1135_v55, %v1037_v16  ;;  %v1002_v8 = vpop.f32.mrf.mxu1  ;;  %v10472_v16 = vld [vmem:[%s11388_s13 + $0x2b4] sm:$0xf0] }
 0x17b   :  { %v1686_v20 = vunpack.c.l.b16 %v1570_v32  ;;  %v1687_v17 = vunpack.c.h.b16 %v1570_v32 }
 0x17c   :  { %1943 = vmatpush.bf16.msrb.mxu2 %v11772_v29  ;;  %1367 = vmatpush.bf16.msrb.mxu1 %v8261_v54 }
 0x17e   :  { %v1136_v26 = vpop.f32.mrf.mxu2 }
 0x17f   :  { %v1137_v45 = vadd.f32 %v1136_v26, %v1087_v31  ;;  %v8228_v26 = vld [vmem:[%s11388_s13 + $0x118] sm:$0xf] }
 0x180   :  { %v1043_v11 = vpop.f32.mrf.mxu3  ;;  %v1095_v21 = vpop.f32.mrf.mxu0  ;;  %1944 = vmatpush.bf16.msrb.mxu2 %v11760_v58  ;;  %v8421_v58 = vor.u32 %v10472_v16, %v8420_v13 }
 0x181   :  { %v1044_v63 = vadd.f32 %v1043_v11, %v994_v49  ;;  %v1574_v56 = vpack.c.bf16 %v1137_v45, %v1039_v1  ;;  %v11981_v38 = vpop.f32.mrf.mxu1  ;;  %v10424_v11 = vld [vmem:[%s11388_s13 + $0x134] sm:$0xf0] }
 0x182   :  { %1419 = vmatpush.bf16.msra.mxu3 %v8421_v58  ;;  %v8229_v45 = vor.u32 %v10424_v11, %v8228_v26  ;;  %v8388_v58 = vld [vmem:[%s11388_s13 + $0x258] sm:$0xf] }
 0x183   :  { %1295 = vmatmul.bf16.gmra.mxu0 %v11664_v2  ;;  %v1688_v29 = vunpack.c.l.b16 %v1574_v56  ;;  %v1689_v10 = vunpack.c.h.b16 %v1574_v56  ;;  %8500 = vmatmul.msk.bf16.gmra.mxu2 %vm752_vm0, %v11613_v28  ;;  %v10456_v26 = vld [vmem:[%s11388_s13 + $0x234] sm:$0xf0] }
 0x184   :  { %1368 = vmatpush.bf16.msrb.mxu1 %v8229_v45 }
 0x185   :  { %8493 = vmatmul.msk.bf16.gmra.mxu3 %vm752_vm0, %v11631_v40  ;;  %v11977_v31 = vpack.c.b16 %v1688_v29, %v1686_v20  ;;  %v11979_v49 = vpack.c.b16 %v1689_v10, %v1687_v17 }
 0x186   :  { %v1139_v35 = vpop.f32.mrf.mxu2 }
 0x187   :  { %v1140_v0 = vadd.f32 %v1139_v35, %v1090_v22  ;;  %1202 = vmatmul.bf16.gmra.mxu1 %v11682_v14  ;;  %v10464_v35 = vld [vmem:[%s11388_s13 + $0x274] sm:$0xf0] }
 0x188   :  { %v1046_v3 = vpop.f32.mrf.mxu3  ;;  %v1097_v44 = vpop.f32.mrf.mxu0 }
 0x189   :  { %v1047_v34 = vadd.f32 %v1046_v3, %v997_v61  ;;  %v1578_v46 = vpack.c.bf16 %v1140_v0, %v1042_v60  ;;  %v11985_v30 = vpop.f32.mrf.mxu1  ;;  %v8389_v3 = vor.u32 %v10464_v35, %v8388_v58 }
 0x18b   :  { %v1690_v22 = vunpack.c.l.b16 %v1578_v46  ;;  %v1691_v61 = vunpack.c.h.b16 %v1578_v46  ;;  %1420 = vmatpush.bf16.msra.mxu3 %v8389_v3 }
 0x18e   :  { %v1141_v4 = vpop.f32.mrf.mxu2 }
 0x18f   :  { %v1142_v1 = vadd.f32 %v1141_v4, %v1092_v41 }
 0x190   :  { %v1048_v18 = vpop.f32.mrf.mxu3  ;;  %v1100_v15 = vpop.f32.mrf.mxu0 }
 0x191   :  { %v1049_v36 = vadd.f32 %v1048_v18, %v999_v9  ;;  %v1582_v42 = vpack.c.bf16 %v1142_v1, %v1044_v63  ;;  %v11999_v57 = vpop.f32.mrf.mxu1  ;;  %v8196_v18 = vld [vmem:[%s11388_s13 + $0xd8] sm:$0xf] }
 0x192   :  { %v10416_v1 = vld [vmem:[%s11388_s13 + $0xf4] sm:$0xf0] }
 0x193   :  { %1300 = vmatmul.bf16.gmra.mxu0 %v11682_v14  ;;  %v1692_v51 = vunpack.c.l.b16 %v1582_v42  ;;  %v1693_v7 = vunpack.c.h.b16 %v1582_v42  ;;  %8501 = vmatmul.msk.bf16.gmra.mxu2 %vm752_vm0, %v11631_v40 }
 0x195   :  { %8494 = vmatmul.msk.bf16.gmra.mxu3 %vm752_vm0, %v11649_v53  ;;  %v11993_v52 = vpack.c.b16 %v1692_v51, %v1690_v22  ;;  %v11995_v55 = vpack.c.b16 %v1693_v7, %v1691_v61  ;;  %v14165_v51 = vld [vmem:[#allocation24_spill] sm:$0xff] }
 0x196   :  { %v1144_v60 = vpop.f32.mrf.mxu2  ;;  %v8164_v7 = vld [vmem:[%s11388_s13 + $0x98] sm:$0xf] }
 0x197   :  { %v1145_v9 = vadd.f32 %v1144_v60, %v1095_v21  ;;  %1207 = vmatmul.bf16.gmra.mxu1 %v11706_v39  ;;  %v10408_v60 = vld [vmem:[%s11388_s13 + $0xb4] sm:$0xf0] }
 0x198   :  { %v1051_v41 = vpop.f32.mrf.mxu3  ;;  %v11997_v24 = vpop.f32.mrf.mxu0 }
 0x199   :  { %v1052_v32 = vadd.f32 %v1051_v41, %v1002_v8  ;;  %v1586_v6 = vpack.c.bf16 %v1145_v9, %v1047_v34  ;;  %v12007_v29 = vpop.f32.mrf.mxu1  ;;  %v8165_v41 = vor.u32 %v10408_v60, %v8164_v7 }
 0x19b   :  { %v1694_v8 = vunpack.c.l.b16 %v1586_v6  ;;  %v1695_v10 = vunpack.c.h.b16 %v1586_v6  ;;  %v8356_v6 = vld [vmem:[%s11388_s13 + $0x218] sm:$0xf] }
 0x19e   :  { %v1146_v63 = vpop.f32.mrf.mxu2 }
 0x19f   :  { %v1147_v20 = vadd.f32 %v1146_v63, %v1097_v44  ;;  %v8357_v63 = vor.u32 %v10456_v26, %v8356_v6 }
 0x1a0   :  { %v12003_v56 = vpop.f32.mrf.mxu3  ;;  %v12005_v17 = vpop.f32.mrf.mxu0 }
 0x1a1   :  { %v1590_v21 = vpack.c.bf16 %v1147_v20, %v1049_v36  ;;  %v12025_v54 = vpop.f32.mrf.mxu1  ;;  %v8197_v36 = vor.u32 %v10416_v1, %v8196_v18  ;;  %v8132_v20 = vld [vmem:[%s11388_s13 + $0x58] sm:$0xf]  ;;  %1421 = vmatpush.bf16.msra.mxu3 %v8357_v63 }
 0x1a3   :  { %1305 = vmatmul.bf16.gmra.mxu0 %v11706_v39  ;;  %v1696_v13 = vunpack.c.l.b16 %v1590_v21  ;;  %v1697_v16 = vunpack.c.h.b16 %v1590_v21  ;;  %8502 = vmatmul.msk.bf16.gmra.mxu2 %vm752_vm0, %v11649_v53  ;;  %v10400_v21 = vld [vmem:[%s11388_s13 + $0x74] sm:$0xf0] }
 0x1a4   :  { %1369 = vmatpush.bf16.msrb.mxu1 %v8197_v36 }
 0x1a5   :  { %8495 = vmatmul.msk.bf16.gmra.mxu3 %vm752_vm0, %v11669_v5  ;;  %v12017_v0 = vpack.c.b16 %v1696_v13, %v1694_v8  ;;  %v12019_v34 = vpack.c.b16 %v1697_v16, %v1695_v10  ;;  %v8133_v8 = vor.u32 %v10400_v21, %v8132_v20  ;;  %v8100_v10 = vld [vmem:[%s11388_s13 + $0x18] sm:$0xf] }
 0x1a6   :  { %v1149_v44 = vpop.f32.mrf.mxu2  ;;  %v10392_v13 = vld [vmem:[%s11388_s13 + $0x34] sm:$0xf0]  ;;  %s14178_s13 = sld [smem:[#allocation11_spill]] }
 0x1a7   :  { %v1150_v48 = vadd.f32 %v1149_v44, %v1100_v15  ;;  %1212 = vmatmul.bf16.gmra.mxu1 %v11732_v12  ;;  %v8101_v16 = vor.u32 %v10392_v13, %v8100_v10 }
 0x1a8   :  { %v12021_v46 = vpop.f32.mrf.mxu3  ;;  %v12023_v23 = vpop.f32.mrf.mxu0  ;;  %1370 = vmatpush.bf16.msrb.mxu1 %v8165_v41 }
 0x1a9   :  { %v12027_v4 = vpack.c.bf16 %v1150_v48, %v1052_v32  ;;  %v1017_v15 = vpop.f32.mrf.mxu1  ;;  %v14166_v48 = vld [vmem:[#allocation19_spill] sm:$0xff] }
 0x1ac   :  { %1371 = vmatpush.bf16.msrb.mxu1 %v8133_v8 }
 0x1ae   :  { %v12031_v42 = vpop.f32.mrf.mxu2 }
 0x1b0   :  { %v12033_v22 = vpop.f32.mrf.mxu3  ;;  %v1110_v61 = vpop.f32.mrf.mxu0  ;;  %1372 = vmatpush.bf16.msrb.mxu1 %v8101_v16 }
 0x1b1   :  { %v1019_v45 = vpop.f32.mrf.mxu1 }
 0x1b3   :  { %1310 = vmatmul.bf16.gmra.mxu0 %v11732_v12  ;;  %8503 = vmatmul.msk.bf16.gmra.mxu2 %vm752_vm0, %v11669_v5 }
 0x1b5   :  { %8496 = vmatmul.msk.bf16.gmra.mxu3 %vm752_vm0, %v14165_v51 }
 0x1b6   :  { %v1154_v9 = vpop.f32.mrf.mxu2 }
 0x1b7   :  { %1373 = vmatmul.bf16.vlgmr.msrb.gmra.mxu1 %v14166_v48 }
 0x1b8   :  { %v1061_v32 = vpop.f32.mrf.mxu3  ;;  %v1112_v11 = vpop.f32.mrf.mxu0 }
 0x1b9   :  { %v1178_v3 = vpop.f32.mrf.mxu1 }
 0x1be   :  { %v1156_v58 = vpop.f32.mrf.mxu2 }
 0x1c0   :  { %v1063_v35 = vpop.f32.mrf.mxu3  ;;  %v12049_v44 = vpop.f32.mrf.mxu0 }
 0x1c1   :  { %v1180_v36 = vpop.f32.mrf.mxu1 }
 0x1c3   :  { %1471 = vmatmul.bf16.vlgmr.msrb.gmra.mxu0 %v14166_v48  ;;  %8504 = vmatmul.msk.bf16.gmra.mxu2 %vm752_vm0, %v14165_v51  ;;  %v1062_v51 = vadd.f32 %v1061_v32, %v12007_v29 }
 0x1c5   :  { %8497 = vmatmul.msk.bf16.gmra.mxu3 %vm752_vm0, %v11564_v47 }
 0x1c6   :  { %v1159_v18 = vpop.f32.mrf.mxu2 }
 0x1c7   :  { %1378 = vmatmul.bf16.gmra.mxu1 %v11608_v25  ;;  %v1160_v12 = vadd.f32 %v1159_v18, %v1110_v61  ;;  %v1155_v61 = vadd.f32 %v1154_v9, %v12005_v17 }
 0x1c8   :  { %v1066_v1 = vpop.f32.mrf.mxu3  ;;  %v12057_v7 = vpop.f32.mrf.mxu0 }
 0x1c9   :  { %v1183_v6 = vpop.f32.mrf.mxu1  ;;  %v1067_v13 = vadd.f32 %v1066_v1, %v1017_v15  ;;  %v1157_v15 = vadd.f32 %v1156_v58, %v12023_v23 }
 0x1ce   :  { %v1161_v60 = vpop.f32.mrf.mxu2 }
 0x1cf   :  { %v1162_v48 = vadd.f32 %v1161_v60, %v1112_v11  ;;  %v1610_v11 = vpack.c.bf16 %v1160_v12, %v1062_v51 }
 0x1d0   :  { %v1068_v41 = vpop.f32.mrf.mxu3  ;;  %v12059_v26 = vpop.f32.mrf.mxu0 }
 0x1d1   :  { %v12067_v8 = vpop.f32.mrf.mxu1  ;;  %v1069_v39 = vadd.f32 %v1068_v41, %v1019_v45  ;;  %v1706_v23 = vunpack.c.l.b16 %v1610_v11 }
 0x1d3   :  { %1476 = vmatmul.bf16.gmra.mxu0 %v11608_v25  ;;  %8505 = vmatmul.msk.bf16.gmra.mxu2 %vm752_vm0, %v11564_v47  ;;  %v1064_v25 = vadd.f32 %v1063_v35, %v12025_v54  ;;  %v1059_v54 = vadd.f32 %v12033_v22, %v11999_v57  ;;  %v1707_v22 = vunpack.c.h.b16 %v1610_v11 }
 0x1d5   :  { %8506 = vmatmul.msk.bf16.vlgmr.msra.gmra.mxu3 %vm752_vm0, %v11574_v59  ;;  %v1614_v29 = vpack.c.bf16 %v1162_v48, %v1064_v25  ;;  %v1698_v48 = vunpack.c.l.b16 %v12027_v4 }
 0x1d6   :  { %v1164_v63 = vpop.f32.mrf.mxu2 }
 0x1d7   :  { %v1165_v16 = vadd.f32 %v1164_v63, %v11932_v33  ;;  %v1057_v33 = vadd.f32 %v12021_v46, %v11985_v30  ;;  %1383 = vmatmul.bf16.gmra.mxu1 %v11626_v37  ;;  %v1708_v30 = vunpack.c.l.b16 %v1614_v29  ;;  %v1709_v12 = vunpack.c.h.b16 %v1614_v29 }
 0x1d8   :  { %v1227_v20 = vpop.f32.mrf.mxu3  ;;  %v12069_v10 = vpop.f32.mrf.mxu0 }
 0x1d9   :  { %v1228_v21 = vadd.f32 %v1227_v20, %v1178_v3  ;;  %v1618_v53 = vpack.c.bf16 %v1165_v16, %v1067_v13  ;;  %v12075_v20 = vpop.f32.mrf.mxu1  ;;  %v1602_v46 = vpack.c.bf16 %v1155_v61, %v1057_v33  ;;  %v1727_v60 = vpack.c.b16 %v1709_v12, %v1707_v22 }
 0x1de   :  { %v1166_v47 = vpop.f32.mrf.mxu2 }
 0x1df   :  { %v1167_v14 = vadd.f32 %v1166_v47, %v11934_v43  ;;  %v1710_v47 = vunpack.c.l.b16 %v1618_v53 }
 0x1e0   :  { %v1229_v5 = vpop.f32.mrf.mxu3  ;;  %v12077_v40 = vpop.f32.mrf.mxu0 }
 0x1e1   :  { %v1230_v3 = vadd.f32 %v1229_v5, %v1180_v36  ;;  %v1622_v32 = vpack.c.bf16 %v1167_v14, %v1069_v39  ;;  %v1711_v5 = vunpack.c.h.b16 %v1618_v53  ;;  %v1152_v14 = vadd.f32 %v12031_v42, %v11997_v24  ;;  %v1190_v42 = vpop.f32.mrf.mxu1 }
 0x1e2   :  { %v1606_v39 = vpack.c.bf16 %v1157_v15, %v1059_v54  ;;  %v1726_v36 = vpack.c.b16 %v1708_v30, %v1706_v23 }
 0x1e3   :  { %1481 = vmatmul.bf16.gmra.mxu0 %v11626_v37  ;;  %v1712_v43 = vunpack.c.l.b16 %v1622_v32  ;;  %v1713_v45 = vunpack.c.h.b16 %v1622_v32  ;;  %8514 = vmatmul.msk.bf16.vlgmr.msra.gmra.mxu2 %vm752_vm0, %v11574_v59  ;;  %v1054_v37 = vadd.f32 %v12003_v56, %v11981_v38  ;;  %v1702_v38 = vunpack.c.l.b16 %v1602_v46 }
 0x1e4   :  { %v1704_v9 = vunpack.c.l.b16 %v1606_v39  ;;  %v1705_v18 = vunpack.c.h.b16 %v1606_v39  ;;  %v1703_v56 = vunpack.c.h.b16 %v1602_v46 }
 0x1e5   :  { %8507 = vmatmul.msk.bf16.gmra.mxu3 %vm752_vm0, %v11597_v19  ;;  %v1728_v57 = vpack.c.b16 %v1712_v43, %v1710_v47  ;;  %v1729_v17 = vpack.c.b16 %v1713_v45, %v1711_v5  ;;  %v1598_v51 = vpack.c.bf16 %v1152_v14, %v1054_v37 }
 0x1e6   :  { %v1325_v53 = vpop.f32.mrf.mxu2  ;;  %v1724_v63 = vpack.c.b16 %v1704_v9, %v1702_v38  ;;  %v14169_v38 = vld [vmem:[#allocation21_spill] sm:$0xff] }
 0x1e7   :  { %v1326_v59 = vadd.f32 %v1325_v53, %v12049_v44  ;;  %1746 = vmatpush.bf16.msra.mxu1 %v1728_v57  ;;  %1775 = vmatpush.bf16.msrb.mxu3 %v1729_v17  ;;  %v1700_v41 = vunpack.c.l.b16 %v1598_v51  ;;  %v1725_v44 = vpack.c.b16 %v1705_v18, %v1703_v56  ;;  %v1701_v13 = vunpack.c.h.b16 %v1598_v51  ;;  %v14168_v18 = vld [vmem:[#allocation23_spill] sm:$0xff] }
 0x1e8   :  { %v1232_v24 = vpop.f32.mrf.mxu3  ;;  %v12096_v35 = vpop.f32.mrf.mxu0  ;;  %1388 = vmatmul.bf16.gmra.mxu1 %v11644_v50 }
 0x1e9   :  { %v1233_v58 = vadd.f32 %v1232_v24, %v1183_v6  ;;  %v1563_v1 = vpack.c.bf16 %v1326_v59, %v1228_v21  ;;  %v1193_v15 = vpop.f32.mrf.mxu1  ;;  %v1699_v21 = vunpack.c.h.b16 %v12027_v4  ;;  %v1722_v54 = vpack.c.b16 %v1700_v41, %v1698_v48 }
 0x1eb   :  { %1747 = vmatpush.bf16.msra.mxu1 %v1726_v36  ;;  %1776 = vmatpush.bf16.msrb.mxu3 %v1727_v60  ;;  %v1723_v61 = vpack.c.b16 %v1701_v13, %v1699_v21  ;;  %v2015_v11 = vunpack.c.l.b16 %v1563_v1  ;;  %v2016_v47 = vunpack.c.h.b16 %v1563_v1 }
 0x1ee   :  { %v1327_v16 = vpop.f32.mrf.mxu2 }
 0x1ef   :  { %v1328_v25 = vadd.f32 %v1327_v16, %v12057_v7  ;;  %1748 = vmatpush.bf16.msra.mxu1 %v1724_v63  ;;  %1777 = vmatpush.bf16.msrb.mxu3 %v1725_v44 }
 0x1f0   :  { %v1234_v6 = vpop.f32.mrf.mxu3  ;;  %v12102_v29 = vpop.f32.mrf.mxu0 }
 0x1f1   :  { %v1235_v33 = vadd.f32 %v1234_v6, %v12067_v8  ;;  %v1567_v32 = vpack.c.bf16 %v1328_v25, %v1230_v3  ;;  %v1195_v45 = vpop.f32.mrf.mxu1 }
 0x1f3   :  { %1486 = vmatmul.bf16.gmra.mxu0 %v11644_v50  ;;  %v2017_v7 = vunpack.c.l.b16 %v1567_v32  ;;  %v2018_v5 = vunpack.c.h.b16 %v1567_v32  ;;  %8515 = vmatmul.msk.bf16.gmra.mxu2 %vm752_vm0, %v11597_v19 }
 0x1f4   :  { %1749 = vmatpush.bf16.msra.mxu1 %v1722_v54  ;;  %1778 = vmatpush.bf16.msrb.mxu3 %v1723_v61  ;;  %v14170_v61 = vld [vmem:[#allocation25_spill] sm:$0xff] }
 0x1f5   :  { %8508 = vmatmul.msk.bf16.gmra.mxu3 %vm752_vm0, %v11613_v28  ;;  %v12110_v4 = vpack.c.b16 %v2017_v7, %v2015_v11  ;;  %v12112_v8 = vpack.c.b16 %v2018_v5, %v2016_v47  ;;  %v14171_v5 = vld [vmem:[#allocation22_spill] sm:$0xff] }
 0x1f6   :  { %v1330_v3 = vpop.f32.mrf.mxu2 }
 0x1f7   :  { %v1331_v43 = vadd.f32 %v1330_v3, %v12059_v26 }
 0x1f8   :  { %1750 = vmatpush.bf16.msra.mxu1 %v12017_v0  ;;  %v1237_v50 = vpop.f32.mrf.mxu3  ;;  %1779 = vmatpush.bf16.msrb.mxu3 %v12019_v34  ;;  %v1293_v14 = vpop.f32.mrf.mxu0 }
 0x1f9   :  { %v1238_v19 = vadd.f32 %v1237_v50, %v12075_v20  ;;  %v1571_v39 = vpack.c.bf16 %v1331_v43, %v1233_v58  ;;  %v1198_v57 = vpop.f32.mrf.mxu1  ;;  %1393 = vmatmul.bf16.gmra.mxu1 %v11664_v2 }
 0x1fb   :  { %v2019_v20 = vunpack.c.l.b16 %v1571_v39 }
 0x1fc   :  { %1751 = vmatpush.bf16.msra.mxu1 %v11993_v52  ;;  %1780 = vmatpush.bf16.msrb.mxu3 %v11995_v55  ;;  %v2020_v52 = vunpack.c.h.b16 %v1571_v39 }
 0x1fe   :  { %v1332_v30 = vpop.f32.mrf.mxu2 }
 0x1ff   :  { %v1333_v12 = vadd.f32 %v1332_v30, %v12069_v10 }
 0x200   :  { %1752 = vmatpush.bf16.msra.mxu1 %v11977_v31  ;;  %v1239_v26 = vpop.f32.mrf.mxu3  ;;  %1781 = vmatpush.bf16.msrb.mxu3 %v11979_v49  ;;  %v1296_v17 = vpop.f32.mrf.mxu0  ;;  %v14167_v31 = vld [vmem:[#allocation20_spill] sm:$0xff] }
 0x201   :  { %v1240_v0 = vadd.f32 %v1239_v26, %v1190_v42  ;;  %v1575_v34 = vpack.c.bf16 %v1333_v12, %v1235_v33  ;;  %v12136_v23 = vpop.f32.mrf.mxu1 }
 0x203   :  { %1491 = vmatmul.bf16.gmra.mxu0 %v11664_v2  ;;  %v2021_v37 = vunpack.c.l.b16 %v1575_v34  ;;  %v2022_v55 = vunpack.c.h.b16 %v1575_v34  ;;  %8516 = vmatmul.msk.bf16.gmra.mxu2 %vm752_vm0, %v11613_v28 }
 0x204   :  { %1753 = vmatpush.bf16.msra.mxu1 %v11960_v27  ;;  %1782 = vmatpush.bf16.msrb.mxu3 %v11962_v62 }
 0x205   :  { %8509 = vmatmul.msk.bf16.gmra.mxu3 %vm752_vm0, %v14167_v31  ;;  %v12131_v49 = vpack.c.b16 %v2021_v37, %v2019_v20  ;;  %v12133_v10 = vpack.c.b16 %v2022_v55, %v2020_v52  ;;  %v14173_v20 = vld [vmem:[#allocation24_spill] sm:$0xff] }
 0x206   :  { %v1335_v53 = vpop.f32.mrf.mxu2 }
 0x207   :  { %v1336_v2 = vadd.f32 %v1335_v53, %v12077_v40 }
 0x208   :  { %v1242_v46 = vpop.f32.mrf.mxu3  ;;  %v12138_v59 = vpop.f32.mrf.mxu0 }
 0x209   :  { %v1243_v22 = vadd.f32 %v1242_v46, %v1193_v15  ;;  %v1579_v28 = vpack.c.bf16 %v1336_v2, %v1238_v19  ;;  %v12141_v42 = vpop.f32.mrf.mxu1  ;;  %1398 = vmatmul.bf16.gmra.mxu1 %v14168_v18  ;;  %v14174_v2 = vld [vmem:[#allocation18_spill] sm:$0xff] }
 0x20b   :  { %v2023_v40 = vunpack.c.l.b16 %v1579_v28  ;;  %v2024_v1 = vunpack.c.h.b16 %v1579_v28 }
 0x20e   :  { %v1337_v27 = vpop.f32.mrf.mxu2 }
 0x20f   :  { %v1338_v62 = vadd.f32 %v1337_v27, %v12096_v35 }
 0x210   :  { %v1244_v24 = vpop.f32.mrf.mxu3  ;;  %v12143_v9 = vpop.f32.mrf.mxu0 }
 0x211   :  { %v1245_v51 = vadd.f32 %v1244_v24, %v1195_v45  ;;  %v1583_v58 = vpack.c.bf16 %v1338_v62, %v1240_v0  ;;  %v12156_v13 = vpop.f32.mrf.mxu1  ;;  %v14172_v0 = vld [vmem:[#allocation26_spill] sm:$0xff] }
 0x213   :  { %1496 = vmatmul.bf16.gmra.mxu0 %v14168_v18  ;;  %v2025_v36 = vunpack.c.l.b16 %v1583_v58  ;;  %v2026_v60 = vunpack.c.h.b16 %v1583_v58  ;;  %8517 = vmatmul.msk.bf16.gmra.mxu2 %vm752_vm0, %v14167_v31 }
 0x215   :  { %8510 = vmatmul.msk.bf16.gmra.mxu3 %vm752_vm0, %v14169_v38  ;;  %v12151_v35 = vpack.c.b16 %v2025_v36, %v2023_v40  ;;  %v12153_v56 = vpack.c.b16 %v2026_v60, %v2024_v1 }
 0x216   :  { %v1340_v41 = vpop.f32.mrf.mxu2 }
 0x217   :  { %v1341_v63 = vadd.f32 %v1340_v41, %v12102_v29 }
 0x218   :  { %v1247_v44 = vpop.f32.mrf.mxu3  ;;  %v12158_v48 = vpop.f32.mrf.mxu0 }
 0x219   :  { %v1248_v16 = vadd.f32 %v1247_v44, %v1198_v57  ;;  %v1587_v25 = vpack.c.bf16 %v1341_v63, %v1243_v22  ;;  %v1208_v33 = vpop.f32.mrf.mxu1  ;;  %1403 = vmatmul.bf16.gmra.mxu1 %v14170_v61  ;;  %v10485_v44 = vld [vmem:[%s11383_s9 + $0x20] sm:$0xff] }
 0x21b   :  { %v2027_v11 = vunpack.c.l.b16 %v1587_v25  ;;  %v2028_v29 = vunpack.c.h.b16 %v1587_v25 }
 0x21e   :  { %v1342_v6 = vpop.f32.mrf.mxu2 }
 0x21f   :  { %v1343_v15 = vadd.f32 %v1342_v6, %v1293_v14 }
 0x220   :  { %v12160_v21 = vpop.f32.mrf.mxu3  ;;  %v1306_v32 = vpop.f32.mrf.mxu0 }
 0x221   :  { %v1591_v54 = vpack.c.bf16 %v1343_v15, %v1245_v51  ;;  %v1210_v14 = vpop.f32.mrf.mxu1 }
 0x223   :  { %1501 = vmatmul.bf16.gmra.mxu0 %v14170_v61  ;;  %v2029_v47 = vunpack.c.l.b16 %v1591_v54  ;;  %v2030_v7 = vunpack.c.h.b16 %v1591_v54  ;;  %8518 = vmatmul.msk.bf16.gmra.mxu2 %vm752_vm0, %v14169_v38 }
 0x225   :  { %8511 = vmatmul.msk.bf16.gmra.mxu3 %vm752_vm0, %v14171_v5  ;;  %v12168_v3 = vpack.c.b16 %v2029_v47, %v2027_v11  ;;  %v12170_v43 = vpack.c.b16 %v2030_v7, %v2028_v29 }
 0x226   :  { %v1345_v50 = vpop.f32.mrf.mxu2 }
 0x227   :  { %v1346_v45 = vadd.f32 %v1345_v50, %v1296_v17 }
 0x228   :  { %v1252_v19 = vpop.f32.mrf.mxu3  ;;  %v1308_v30 = vpop.f32.mrf.mxu0 }
 0x229   :  { %v12172_v39 = vpack.c.bf16 %v1346_v45, %v1248_v16  ;;  %v1213_v57 = vpop.f32.mrf.mxu1  ;;  %1408 = vmatmul.bf16.gmra.mxu1 %v14172_v0  ;;  %v1253_v50 = vadd.f32 %v1252_v19, %v12141_v42  ;;  %v1250_v42 = vadd.f32 %v12160_v21, %v12136_v23 }
 0x22e   :  { %v1347_v12 = vpop.f32.mrf.mxu2 }
 0x230   :  { %v1254_v26 = vpop.f32.mrf.mxu3  ;;  %v1311_v34 = vpop.f32.mrf.mxu0 }
 0x231   :  { %v1215_v37 = vpop.f32.mrf.mxu1  ;;  %v1255_v45 = vadd.f32 %v1254_v26, %v12156_v13 }
 0x233   :  { %1506 = vmatmul.bf16.gmra.mxu0 %v14172_v0  ;;  %8519 = vmatmul.msk.bf16.gmra.mxu2 %vm752_vm0, %v14171_v5 }
 0x235   :  { %8512 = vmatmul.msk.bf16.gmra.mxu3 %vm752_vm0, %v14173_v20 }
 0x236   :  { %v1350_v17 = vpop.f32.mrf.mxu2 }
 0x238   :  { %v1257_v52 = vpop.f32.mrf.mxu3  ;;  %v1313_v31 = vpop.f32.mrf.mxu0 }
 0x239   :  { %v1374_v46 = vpop.f32.mrf.mxu1  ;;  %v1258_v16 = vadd.f32 %v1257_v52, %v1208_v33  ;;  %1754 = vmatmul.bf16.vlgmr.msra.gmra.mxu1 %v10485_v44 }
 0x23e   :  { %v1352_v55 = vpop.f32.mrf.mxu2 }
 0x23f   :  { %v1353_v47 = vadd.f32 %v1352_v55, %v12158_v48 }
 0x240   :  { %v1259_v53 = vpop.f32.mrf.mxu3  ;;  %v1472_v27 = vpop.f32.mrf.mxu0 }
 0x241   :  { %v12184_v51 = vpop.f32.mrf.mxu1  ;;  %v1260_v25 = vadd.f32 %v1259_v53, %v1210_v14  ;;  %v1607_v52 = vpack.c.bf16 %v1353_v47, %v1255_v45 }
 0x243   :  { %8520 = vmatmul.msk.bf16.gmra.mxu2 %vm752_vm0, %v14173_v20  ;;  %v1348_v20 = vadd.f32 %v1347_v12, %v12138_v59  ;;  %v2037_v59 = vunpack.c.l.b16 %v1607_v52 }
 0x245   :  { %8513 = vmatmul.msk.bf16.gmra.mxu3 %vm752_vm0, %v14174_v2 }
 0x246   :  { %v1355_v22 = vpop.f32.mrf.mxu2 }
 0x247   :  { %v1356_v6 = vadd.f32 %v1355_v22, %v1306_v32  ;;  %v2038_v22 = vunpack.c.h.b16 %v1607_v52 }
 0x248   :  { %v1262_v28 = vpop.f32.mrf.mxu3  ;;  %v12186_v58 = vpop.f32.mrf.mxu0 }
 0x249   :  { %v1379_v36 = vpop.f32.mrf.mxu1  ;;  %v1263_v60 = vadd.f32 %v1262_v28, %v1213_v57  ;;  %v1611_v33 = vpack.c.bf16 %v1356_v6, %v1258_v16  ;;  %v2031_v16 = vunpack.c.l.b16 %v12172_v39 }
 0x24b   :  { %v2039_v26 = vunpack.c.l.b16 %v1611_v33 }
 0x24e   :  { %v1357_v62 = vpop.f32.mrf.mxu2 }
 0x24f   :  { %v1358_v63 = vadd.f32 %v1357_v62, %v1308_v30  ;;  %v1351_v30 = vadd.f32 %v1350_v17, %v12143_v9  ;;  %v2040_v17 = vunpack.c.h.b16 %v1611_v33 }
 0x250   :  { %v1264_v24 = vpop.f32.mrf.mxu3  ;;  %v12190_v41 = vpop.f32.mrf.mxu0 }
 0x251   :  { %v1265_v54 = vadd.f32 %v1264_v24, %v1215_v37  ;;  %v1615_v7 = vpack.c.bf16 %v1358_v63, %v1260_v25  ;;  %v1603_v9 = vpack.c.bf16 %v1351_v30, %v1253_v50  ;;  %v10486_v63 = vld [vmem:[%s11383_s9 + $0x28] sm:$0xff]  ;;  %v2032_v25 = vunpack.c.h.b16 %v12172_v39 }
 0x252   :  { %1759 = vmatmul.bf16.gmra.mxu1 %v10486_v63 }
 0x253   :  { %8521 = vmatmul.msk.bf16.gmra.mxu2 %vm752_vm0, %v14174_v2  ;;  %v2041_v37 = vunpack.c.l.b16 %v1615_v7  ;;  %v2042_v48 = vunpack.c.h.b16 %v1615_v7 }
 0x255   :  { %1783 = vmatmul.bf16.vlgmr.msrb.gmra.mxu3 %v10485_v44  ;;  %v2059_v62 = vpack.c.b16 %v2041_v37, %v2039_v26  ;;  %v2060_v24 = vpack.c.b16 %v2042_v48, %v2040_v17  ;;  %v10488_v26 = vld [vmem:[%s11383_s9 + $0x38] sm:$0xff] }
 0x256   :  { %v1360_v18 = vpop.f32.mrf.mxu2 }
 0x257   :  { %v1361_v38 = vadd.f32 %v1360_v18, %v1311_v34  ;;  %v12197_v34 = vpop.f32.mrf.mxu1  ;;  %v2035_v18 = vunpack.c.l.b16 %v1603_v9 }
 0x258   :  { %v1423_v40 = vpop.f32.mrf.mxu3  ;;  %v1479_v19 = vpop.f32.mrf.mxu0 }
 0x259   :  { %v1424_v1 = vadd.f32 %v1423_v40, %v1374_v46  ;;  %v1619_v61 = vpack.c.bf16 %v1361_v38, %v1263_v60  ;;  %v1599_v46 = vpack.c.bf16 %v1348_v20, %v1250_v42  ;;  %v2036_v40 = vunpack.c.h.b16 %v1603_v9 }
 0x25a   :  { %v2057_v60 = vpack.c.b16 %v2037_v59, %v2035_v18 }
 0x25b   :  { %v2043_v14 = vunpack.c.l.b16 %v1619_v61  ;;  %v2044_v32 = vunpack.c.h.b16 %v1619_v61  ;;  %v2033_v23 = vunpack.c.l.b16 %v1599_v46  ;;  %v2034_v21 = vunpack.c.h.b16 %v1599_v46 }
 0x25c   :  { %v2058_v38 = vpack.c.b16 %v2038_v22, %v2036_v40 }
 0x25d   :  { %v2055_v61 = vpack.c.b16 %v2033_v23, %v2031_v16 }
 0x25e   :  { %v1362_v15 = vpop.f32.mrf.mxu2 }
 0x25f   :  { %v1363_v11 = vadd.f32 %v1362_v15, %v1313_v31 }
 0x260   :  { %v1425_v29 = vpop.f32.mrf.mxu3  ;;  %v1482_v15 = vpop.f32.mrf.mxu0 }
 0x261   :  { %v1623_v5 = vpack.c.bf16 %v1363_v11, %v1265_v54  ;;  %v2056_v11 = vpack.c.b16 %v2034_v21, %v2032_v25 }
 0x263   :  { %v2045_v57 = vunpack.c.l.b16 %v1623_v5  ;;  %v2046_v0 = vunpack.c.h.b16 %v1623_v5 }
 0x265   :  { %v2061_v55 = vpack.c.b16 %v2045_v57, %v2043_v14  ;;  %v2062_v31 = vpack.c.b16 %v2046_v0, %v2044_v32  ;;  %1788 = vmatmul.bf16.gmra.mxu3 %v10486_v63  ;;  %v10487_v57 = vld [vmem:[%s11383_s9 + $0x30] sm:$0xff]  ;;  %v10489_v63 = vld [vmem:[%s11383_s9 + $0x40] sm:$0xff] }
 0x266   :  { %v1521_v13 = vpop.f32.mrf.mxu2  ;;  %1764 = vmatmul.bf16.gmra.mxu1 %v10487_v57 }
 0x267   :  { %v1522_v53 = vadd.f32 %v1521_v13, %v1472_v27  ;;  %2079 = vmatpush.bf16.msrb.mxu1 %v2061_v55  ;;  %2108 = vmatpush.bf16.msra.mxu3 %v2062_v31  ;;  %v1384_v27 = vpop.f32.mrf.mxu1 }
 0x268   :  { %v1428_v2 = vpop.f32.mrf.mxu3  ;;  %v1484_v32 = vpop.f32.mrf.mxu0 }
 0x269   :  { %v1429_v12 = vadd.f32 %v1428_v2, %v1379_v36  ;;  %v1564_v28 = vpack.c.bf16 %v1522_v53, %v1424_v1  ;;  %v1426_v36 = vadd.f32 %v1425_v29, %v12184_v51 }
 0x26b   :  { %2080 = vmatpush.bf16.msrb.mxu1 %v2059_v62  ;;  %2109 = vmatpush.bf16.msra.mxu3 %v2060_v24  ;;  %v2202_v47 = vunpack.c.l.b16 %v1564_v28  ;;  %v2203_v7 = vunpack.c.h.b16 %v1564_v28 }
 0x26e   :  { %v1523_v44 = vpop.f32.mrf.mxu2 }
 0x26f   :  { %v1524_v1 = vadd.f32 %v1523_v44, %v12186_v58  ;;  %2081 = vmatpush.bf16.msrb.mxu1 %v2057_v60  ;;  %2110 = vmatpush.bf16.msra.mxu3 %v2058_v38  ;;  %v1386_v45 = vpop.f32.mrf.mxu1 }
 0x270   :  { %v1430_v6 = vpop.f32.mrf.mxu3 }
 0x271   :  { %v1568_v54 = vpack.c.bf16 %v1524_v1, %v1426_v36  ;;  %v1431_v20 = vadd.f32 %v1430_v6, %v12197_v34 }
 0x273   :  { %v2204_v5 = vunpack.c.l.b16 %v1568_v54  ;;  %v2205_v50 = vunpack.c.h.b16 %v1568_v54  ;;  %2082 = vmatpush.bf16.msrb.mxu1 %v2055_v61  ;;  %2111 = vmatpush.bf16.msra.mxu3 %v2056_v11 }
 0x275   :  { %v12207_v39 = vpack.c.b16 %v2204_v5, %v2202_v47  ;;  %v12209_v51 = vpack.c.b16 %v2205_v50, %v2203_v7  ;;  %1793 = vmatmul.bf16.gmra.mxu3 %v10487_v57 }
 0x276   :  { %v1526_v58 = vpop.f32.mrf.mxu2  ;;  %1769 = vmatmul.bf16.gmra.mxu1 %v10488_v26 }
 0x277   :  { %v1527_v29 = vadd.f32 %v1526_v58, %v12190_v41  ;;  %2083 = vmatpush.bf16.msrb.mxu1 %v12168_v3  ;;  %2112 = vmatpush.bf16.msra.mxu3 %v12170_v43  ;;  %v1389_v41 = vpop.f32.mrf.mxu1 }
 0x278   :  { %v1433_v30 = vpop.f32.mrf.mxu3 }
 0x279   :  { %v1572_v33 = vpack.c.bf16 %v1527_v29, %v1429_v12  ;;  %v1434_v14 = vadd.f32 %v1433_v30, %v1384_v27  ;;  %v10481_v27 = vld [vmem:[%s11383_s9] sm:$0xff]  ;;  %v10482_v30 = vld [vmem:[%s11383_s9 + $0x8] sm:$0xff] }
 0x27a   :  { %1945 = vmatmul.bf16.vlgmr.msrb.gmra.mxu2 %v10481_v27  ;;  %1916 = vmatmul.bf16.vlgmr.msra.gmra.mxu0 %v10481_v27 }
 0x27b   :  { %2084 = vmatpush.bf16.msrb.mxu1 %v12151_v35  ;;  %2113 = vmatpush.bf16.msra.mxu3 %v12153_v56  ;;  %v2206_v37 = vunpack.c.l.b16 %v1572_v33  ;;  %v2207_v48 = vunpack.c.h.b16 %v1572_v33  ;;  %v1487_v56 = vpop.f32.mrf.mxu0 }
 0x27e   :  { %v1528_v0 = vpop.f32.mrf.mxu2 }
 0x27f   :  { %v1529_v52 = vadd.f32 %v1528_v0, %v1479_v19  ;;  %2085 = vmatpush.bf16.msrb.mxu1 %v12131_v49  ;;  %2114 = vmatpush.bf16.msra.mxu3 %v12133_v10  ;;  %v1391_v9 = vpop.f32.mrf.mxu1 }
 0x280   :  { %v1435_v3 = vpop.f32.mrf.mxu3 }
 0x281   :  { %v1576_v43 = vpack.c.bf16 %v1529_v52, %v1431_v20  ;;  %v1436_v2 = vadd.f32 %v1435_v3, %v1386_v45  ;;  %v10483_v3 = vld [vmem:[%s11383_s9 + $0x10] sm:$0xff] }
 0x283   :  { %v2208_v35 = vunpack.c.l.b16 %v1576_v43  ;;  %v2209_v55 = vunpack.c.h.b16 %v1576_v43  ;;  %2086 = vmatpush.bf16.msrb.mxu1 %v12110_v4  ;;  %2115 = vmatpush.bf16.msra.mxu3 %v12112_v8  ;;  %v1489_v53 = vpop.f32.mrf.mxu0 }
 0x285   :  { %v12222_v34 = vpack.c.b16 %v2208_v35, %v2206_v37  ;;  %v12224_v49 = vpack.c.b16 %v2209_v55, %v2207_v48  ;;  %1798 = vmatmul.bf16.gmra.mxu3 %v10488_v26 }
 0x286   :  { %v1531_v10 = vpop.f32.mrf.mxu2  ;;  %2087 = vmatmul.bf16.vlgmr.msrb.gmra.mxu1 %v10489_v63 }
 0x287   :  { %v1532_v31 = vadd.f32 %v1531_v10, %v1482_v15  ;;  %v12227_v62 = vpop.f32.mrf.mxu1 }
 0x288   :  { %v1438_v42 = vpop.f32.mrf.mxu3 }
 0x289   :  { %v1580_v13 = vpack.c.bf16 %v1532_v31, %v1434_v14  ;;  %v1439_v19 = vadd.f32 %v1438_v42, %v1389_v41  ;;  %v10490_v14 = vld [vmem:[%s11383_s9 + $0x48] sm:$0xff]  ;;  %v10491_v41 = vld [vmem:[%s11383_s9 + $0x50] sm:$0xff]  ;;  %v10484_v42 = vld [vmem:[%s11383_s9 + $0x18] sm:$0xff] }
 0x28a   :  { %1950 = vmatmul.bf16.gmra.mxu2 %v10482_v30  ;;  %1921 = vmatmul.bf16.gmra.mxu0 %v10482_v30 }
 0x28b   :  { %v2210_v8 = vunpack.c.l.b16 %v1580_v13  ;;  %v2211_v12 = vunpack.c.h.b16 %v1580_v13  ;;  %v1492_v60 = vpop.f32.mrf.mxu0  ;;  %v10492_v13 = vld [vmem:[%s11383_s9 + $0x58] sm:$0xff] }
 0x28e   :  { %v1533_v17 = vpop.f32.mrf.mxu2 }
 0x28f   :  { %v1534_v46 = vadd.f32 %v1533_v17, %v1484_v32  ;;  %v12237_v36 = vpop.f32.mrf.mxu1 }
 0x290   :  { %v1440_v59 = vpop.f32.mrf.mxu3 }
 0x291   :  { %v1584_v4 = vpack.c.bf16 %v1534_v46, %v1436_v2  ;;  %v1441_v16 = vadd.f32 %v1440_v59, %v1391_v9 }
 0x293   :  { %v2212_v22 = vunpack.c.l.b16 %v1584_v4  ;;  %v2213_v28 = vunpack.c.h.b16 %v1584_v4  ;;  %v12241_v15 = vpop.f32.mrf.mxu0 }
 0x295   :  { %v12229_v24 = vpack.c.b16 %v2212_v22, %v2210_v8  ;;  %v12231_v18 = vpack.c.b16 %v2213_v28, %v2211_v12  ;;  %2116 = vmatmul.bf16.vlgmr.msra.gmra.mxu3 %v10489_v63 }
 0x296   :  { %v1536_v40 = vpop.f32.mrf.mxu2  ;;  %2092 = vmatmul.bf16.gmra.mxu1 %v10490_v14 }
 0x297   :  { %v1537_v23 = vadd.f32 %v1536_v40, %v1487_v56  ;;  %v1399_v29 = vpop.f32.mrf.mxu1 }
 0x298   :  { %v12233_v21 = vpop.f32.mrf.mxu3 }
 0x299   :  { %v1588_v38 = vpack.c.bf16 %v1537_v23, %v1439_v19 }
 0x29a   :  { %1955 = vmatmul.bf16.gmra.mxu2 %v10483_v3  ;;  %1926 = vmatmul.bf16.gmra.mxu0 %v10483_v3 }
 0x29b   :  { %v2214_v54 = vunpack.c.l.b16 %v1588_v38  ;;  %v2215_v61 = vunpack.c.h.b16 %v1588_v38  ;;  %v1497_v33 = vpop.f32.mrf.mxu0 }
 0x29e   :  { %v1538_v44 = vpop.f32.mrf.mxu2 }
 0x29f   :  { %v1539_v25 = vadd.f32 %v1538_v44, %v1489_v53  ;;  %v1401_v57 = vpop.f32.mrf.mxu1 }
 0x2a0   :  { %v12239_v1 = vpop.f32.mrf.mxu3 }
 0x2a1   :  { %v1592_v6 = vpack.c.bf16 %v1539_v25, %v1441_v16 }
 0x2a3   :  { %v2216_v11 = vunpack.c.l.b16 %v1592_v6  ;;  %v2217_v47 = vunpack.c.h.b16 %v1592_v6  ;;  %v1499_v20 = vpop.f32.mrf.mxu0 }
 0x2a5   :  { %v12243_v7 = vpack.c.b16 %v2216_v11, %v2214_v54  ;;  %v12245_v5 = vpack.c.b16 %v2217_v47, %v2215_v61  ;;  %2121 = vmatmul.bf16.gmra.mxu3 %v10490_v14 }
 0x2a6   :  { %v1541_v50 = vpop.f32.mrf.mxu2  ;;  %2097 = vmatmul.bf16.gmra.mxu1 %v10491_v41 }
 0x2a7   :  { %v12247_v58 = vadd.f32 %v1541_v50, %v1492_v60  ;;  %v1404_v43 = vpop.f32.mrf.mxu1 }
 0x2a8   :  { %v1448_v45 = vpop.f32.mrf.mxu3 }
 0x2a9   :  { %v1449_v25 = vadd.f32 %v1448_v45, %v1399_v29  ;;  %v1444_v29 = vadd.f32 %v12233_v21, %v12227_v62 }
 0x2aa   :  { %1960 = vmatmul.bf16.gmra.mxu2 %v10484_v42  ;;  %1931 = vmatmul.bf16.gmra.mxu0 %v10484_v42 }
 0x2ab   :  { %v1502_v35 = vpop.f32.mrf.mxu0 }
 0x2ae   :  { %v1543_v32 = vpop.f32.mrf.mxu2 }
 0x2af   :  { %v1406_v56 = vpop.f32.mrf.mxu1  ;;  %v1544_v14 = vadd.f32 %v1543_v32, %v12241_v15 }
 0x2b0   :  { %v1450_v0 = vpop.f32.mrf.mxu3 }
 0x2b1   :  { %v1451_v6 = vadd.f32 %v1450_v0, %v1401_v57 }
 0x2b3   :  { %v1504_v31 = vpop.f32.mrf.mxu0 }
 0x2b5   :  { %2126 = vmatmul.bf16.gmra.mxu3 %v10491_v41 }
 0x2b6   :  { %v1546_v52 = vpop.f32.mrf.mxu2  ;;  %2102 = vmatmul.bf16.gmra.mxu1 %v10492_v13 }
 0x2b7   :  { %v1409_v9 = vpop.f32.mrf.mxu1  ;;  %v1547_v54 = vadd.f32 %v1546_v52, %v1497_v33 }
 0x2b8   :  { %v1453_v37 = vpop.f32.mrf.mxu3 }
 0x2b9   :  { %v1454_v12 = vadd.f32 %v1453_v37, %v1404_v43  ;;  %v1604_v45 = vpack.c.bf16 %v1547_v54, %v1449_v25 }
 0x2bb   :  { %v1507_v17 = vpop.f32.mrf.mxu0 }
 0x2be   :  { %v1548_v48 = vpop.f32.mrf.mxu2 }
 0x2bf   :  { %v1411_v59 = vpop.f32.mrf.mxu1  ;;  %v1549_v63 = vadd.f32 %v1548_v48, %v1499_v20  ;;  %v1446_v20 = vadd.f32 %v12239_v1, %v12237_v36 }
 0x2c0   :  { %v1455_v10 = vpop.f32.mrf.mxu3 }
 0x2c1   :  { %v1456_v23 = vadd.f32 %v1455_v10, %v1406_v56  ;;  %v1608_v3 = vpack.c.bf16 %v1549_v63, %v1451_v6  ;;  %v1600_v0 = vpack.c.bf16 %v1544_v14, %v1446_v20  ;;  %v2222_v56 = vunpack.c.l.b16 %v1604_v45 }
 0x2c2   :  { %v2223_v10 = vunpack.c.h.b16 %v1604_v45 }
 0x2c3   :  { %v1509_v28 = vpop.f32.mrf.mxu0  ;;  %v2224_v52 = vunpack.c.l.b16 %v1608_v3  ;;  %v2225_v48 = vunpack.c.h.b16 %v1608_v3  ;;  %v2220_v36 = vunpack.c.l.b16 %v1600_v0  ;;  %v2221_v1 = vunpack.c.h.b16 %v1600_v0 }
 0x2c5   :  { %2131 = vmatmul.bf16.gmra.mxu3 %v10492_v13  ;;  %v2245_v62 = vpack.c.b16 %v2225_v48, %v2223_v10 }
 0x2c6   :  { %v1551_v55 = vpop.f32.mrf.mxu2 }
 0x2c7   :  { %v1552_v22 = vadd.f32 %v1551_v55, %v1502_v35  ;;  %v1596_v55 = vpack.c.bf16 %v12247_v58, %v1444_v29  ;;  %v10493_v58 = vld [vmem:[%s11383_s9 + $0x60] sm:$0xff] }
 0x2c8   :  { %v1458_v26 = vpop.f32.mrf.mxu3 }
 0x2c9   :  { %v1459_v2 = vadd.f32 %v1458_v26, %v1409_v9  ;;  %v1612_v61 = vpack.c.bf16 %v1552_v22, %v1454_v12  ;;  %v2218_v21 = vunpack.c.l.b16 %v1596_v55  ;;  %v2219_v42 = vunpack.c.h.b16 %v1596_v55  ;;  %v1755_v9 = vpop.f32.mrf.mxu1 }
 0x2cb   :  { %v2226_v33 = vunpack.c.l.b16 %v1612_v61  ;;  %v2227_v57 = vunpack.c.h.b16 %v1612_v61  ;;  %v2242_v13 = vpack.c.b16 %v2220_v36, %v2218_v21 }
 0x2ce   :  { %v1553_v19 = vpop.f32.mrf.mxu2 }
 0x2cf   :  { %v1554_v8 = vadd.f32 %v1553_v19, %v1504_v31  ;;  %v2244_v31 = vpack.c.b16 %v2224_v52, %v2222_v56  ;;  %v2243_v19 = vpack.c.b16 %v2221_v1, %v2219_v42  ;;  %v11187_v56 = vld [vmem:[%s11393_s17 + $0x38] sm:$0xff]  }
 0x2d0   :  { %v1460_v4 = vpop.f32.mrf.mxu3  ;;  %v10956_v10 = vunpack.c.h.bf16 %v11187_v56  ;;  %v10955_v1 = vunpack.c.l.bf16 %v11187_v56  ;;  %v11195_v42 = vld [vmem:[%s11393_s17 + $0x78] sm:$0xff]   ;;  %v11192_v56 = vld [vmem:[%s11393_s17 + $0x60] sm:$0xff]  }
 0x2d1   :  { %v1461_v60 = vadd.f32 %v1460_v4, %v1411_v59  ;;  %v1616_v44 = vpack.c.bf16 %v1554_v8, %v1456_v23 }
 0x2d2   :  { %2475 = vmatpush.msra.mxu1 %v10956_v10 }
 0x2d3   :  { %v2228_v43 = vunpack.c.l.b16 %v1616_v44  ;;  %v2229_v41 = vunpack.c.h.b16 %v1616_v44 }
 0x2d4   :  { %2476 = vmatpush.msra.mxu1 %v10955_v1 }
 0x2d5   :  { %v2246_v15 = vpack.c.b16 %v2228_v43, %v2226_v33  ;;  %v2247_v32 = vpack.c.b16 %v2229_v41, %v2227_v57 }
 0x2d6   :  { %v1556_v53 = vpop.f32.mrf.mxu2 }
 0x2d7   :  { %v1557_v46 = vadd.f32 %v1556_v53, %v1507_v17 }
 0x2d8   :  { %v1784_v26 = vpop.f32.mrf.mxu3 }
 0x2d9   :  { %v1620_v38 = vpack.c.bf16 %v1557_v46, %v1459_v2 }
 0x2db   :  { %v2230_v11 = vunpack.c.l.b16 %v1620_v38  ;;  %v2231_v47 = vunpack.c.h.b16 %v1620_v38 }
 0x2de   :  { %v1558_v40 = vpop.f32.mrf.mxu2 }
 0x2df   :  { %v1559_v27 = vadd.f32 %v1558_v40, %v1509_v28  ;;  %v10496_v40 = vld [vmem:[%s11383_s9 + $0x78] sm:$0xff] }
 0x2e1   :  { %v1624_v16 = vpack.c.bf16 %v1559_v27, %v1461_v60 }
 0x2e3   :  { %v2232_v50 = vunpack.c.l.b16 %v1624_v16  ;;  %v2233_v30 = vunpack.c.h.b16 %v1624_v16 }
 0x2e5   :  { %v2248_v37 = vpack.c.b16 %v2232_v50, %v2230_v11  ;;  %v2249_v35 = vpack.c.b16 %v2233_v30, %v2231_v47 }
 0x2e7   :  { %2266 = vmatpush.bf16.msrb.mxu0 %v2248_v37  ;;  %2295 = vmatpush.bf16.msra.mxu2 %v2249_v35 }
 0x2eb   :  { %2267 = vmatpush.bf16.msrb.mxu0 %v2246_v15  ;;  %2296 = vmatpush.bf16.msra.mxu2 %v2247_v32 }
 0x2ef   :  { %2268 = vmatpush.bf16.msrb.mxu0 %v2244_v31  ;;  %2297 = vmatpush.bf16.msra.mxu2 %v2245_v62  ;;  %v11186_v31 = vld [vmem:[%s11393_s17 + $0x30] sm:$0xff]  }
 0x2f0   :  { %v10952_v21 = vunpack.c.h.bf16 %v11186_v31 }
 0x2f2   :  { %2477 = vmatpush.msra.mxu1 %v10952_v21 }
 0x2f3   :  { %2269 = vmatpush.bf16.msrb.mxu0 %v2242_v13  ;;  %2298 = vmatpush.bf16.msra.mxu2 %v2243_v19  ;;  %v10951_v19 = vunpack.c.l.bf16 %v11186_v31  ;;  %v10976_v31 = vunpack.c.h.bf16 %v11192_v56 }
 0x2f5   :  { %2478 = vmatpush.msra.mxu1 %v10951_v19 }
 0x2f7   :  { %2270 = vmatpush.bf16.msrb.mxu0 %v12243_v7  ;;  %2299 = vmatpush.bf16.msra.mxu2 %v12245_v5  ;;  %v10494_v7 = vld [vmem:[%s11383_s9 + $0x68] sm:$0xff] }
 0x2fb   :  { %2271 = vmatpush.bf16.msrb.mxu0 %v12229_v24  ;;  %2300 = vmatpush.bf16.msra.mxu2 %v12231_v18  ;;  %v12271_v24 = vpop.f32.mrf.mxu1  ;;  %v1917_v18 = vpop.f32.mrf.mxu0 }
 0x2fc   :  { %v12273_v5 = vadd.f32 %v1917_v18, %v1755_v9  ;;  %v11185_v9 = vld [vmem:[%s11393_s17 + $0x28] sm:$0xff]  }
 0x2ff   :  { %2272 = vmatpush.bf16.msrb.mxu0 %v12222_v34  ;;  %2301 = vmatpush.bf16.msra.mxu2 %v12224_v49  ;;  %v12275_v34 = vpop.f32.mrf.mxu3  ;;  %v1946_v49 = vpop.f32.mrf.mxu2 }
 0x303   :  { %2273 = vmatpush.bf16.msrb.mxu0 %v12207_v39  ;;  %2302 = vmatpush.bf16.msra.mxu2 %v12209_v51  ;;  %v12277_v39 = vadd.f32 %v1946_v49, %v1784_v26  ;;  %v1760_v17 = vpop.f32.mrf.mxu1  ;;  %v10495_v51 = vld [vmem:[%s11383_s9 + $0x70] sm:$0xff]  ;;  %v12280_v53 = vpop.f32.mrf.mxu0  ;;  %v10987_v26 = vunpack.c.l.bf16 %v11195_v42  ;;  %s14177_s9 = sld [smem:[#allocation7_spill]] }
 0x304   :  { %v11194_v49 = vld [vmem:[%s11393_s17 + $0x70] sm:$0xff]  }
 0x306   :  { %2274 = vmatmul.bf16.vlgmr.msrb.gmra.mxu0 %v10493_v58  ;;  %2303 = vmatmul.bf16.vlgmr.msra.gmra.mxu2 %v10493_v58  ;;  %v10988_v58 = vunpack.c.h.bf16 %v11195_v42  ;;  %v11182_v42 = vld [vmem:[%s11393_s17 + $0x10] sm:$0xff]  }
 0x307   :  { %v1789_v2 = vpop.f32.mrf.mxu3  ;;  %v12282_v46 = vpop.f32.mrf.mxu2 }
 0x308   :  { %2495 = vmatpush.msrb.mxu3 %v10988_v58  ;;  %v10936_v58 = vunpack.c.h.bf16 %v11182_v42 }
 0x30a   :  { %2496 = vmatpush.msrb.mxu3 %v10987_v26  ;;  %v10935_v26 = vunpack.c.l.bf16 %v11182_v42 }
 0x30b   :  { %v1922_v59 = vpop.f32.mrf.mxu0  ;;  %v12286_v8 = vpop.f32.mrf.mxu1 }
 0x30c   :  { %v12284_v4 = vadd.f32 %v1922_v59, %v1760_v17  ;;  %v11184_v59 = vld [vmem:[%s11393_s17 + $0x20] sm:$0xff]  }
 0x30f   :  { %v1951_v12 = vpop.f32.mrf.mxu2  ;;  %v12290_v28 = vpop.f32.mrf.mxu3 }
 0x310   :  { %v12288_v22 = vadd.f32 %v1951_v12, %v1789_v2  ;;  %v10984_v2 = vunpack.c.h.bf16 %v11194_v49 }
 0x312   :  { %2497 = vmatpush.msrb.mxu3 %v10984_v2  ;;  %v11181_v2 = vld [vmem:[%s11393_s17 + $0x8] sm:$0xff]  }
 0x313   :  { %v12293_v23 = vpop.f32.mrf.mxu0  ;;  %v1765_v60 = vpop.f32.mrf.mxu1 }
 0x316   :  { %2279 = vmatmul.bf16.gmra.mxu0 %v10494_v7  ;;  %2308 = vmatmul.bf16.gmra.mxu2 %v10494_v7  ;;  %v10948_v7 = vunpack.c.h.bf16 %v11185_v9 }
 0x317   :  { %v12295_v38 = vpop.f32.mrf.mxu2  ;;  %v1794_v44 = vpop.f32.mrf.mxu3 }
 0x318   :  { %2479 = vmatpush.msra.mxu1 %v10948_v7  ;;  %v11191_v7 = vld [vmem:[%s11393_s17 + $0x58] sm:$0xff]  }
 0x31b   :  { %v1927_v27 = vpop.f32.mrf.mxu0  ;;  %v12299_v16 = vpop.f32.mrf.mxu1 }
 0x31c   :  { %v12297_v63 = vadd.f32 %v1927_v27, %v1765_v60  ;;  %v10983_v60 = vunpack.c.l.bf16 %v11194_v49  ;;  %v11193_v27 = vld [vmem:[%s11393_s17 + $0x68] sm:$0xff]   ;;  %v10972_v49 = vunpack.c.h.bf16 %v11191_v7 }
 0x31e   :  { %2498 = vmatpush.msrb.mxu3 %v10983_v60  ;;  %v11190_v60 = vld [vmem:[%s11393_s17 + $0x50] sm:$0xff]  }
 0x31f   :  { %v1956_v25 = vpop.f32.mrf.mxu2  ;;  %v12305_v61 = vpop.f32.mrf.mxu3  ;;  %v10967_v42 = vunpack.c.l.bf16 %v11190_v60 }
 0x320   :  { %v12301_v6 = vadd.f32 %v1956_v25, %v1794_v44  ;;  %v10943_v44 = vunpack.c.l.bf16 %v11184_v59  ;;  %v10980_v25 = vunpack.c.h.bf16 %v11193_v27 }
 0x322   :  { %2499 = vmatpush.msrb.mxu3 %v10980_v25  ;;  %v10931_v25 = vunpack.c.l.bf16 %v11181_v2 }
 0x323   :  { %v12303_v54 = vpop.f32.mrf.mxu0  ;;  %v1770_v47 = vpop.f32.mrf.mxu1 }
 0x326   :  { %2284 = vmatmul.bf16.gmra.mxu0 %v10495_v51  ;;  %2313 = vmatmul.bf16.gmra.mxu2 %v10495_v51  ;;  %v10947_v51 = vunpack.c.l.bf16 %v11185_v9  ;;  %v10975_v9 = vunpack.c.l.bf16 %v11192_v56  ;;  %v1954_v56 = vadd.f32 %v12295_v38, %v12290_v28 }
 0x327   :  { %v12307_v11 = vpop.f32.mrf.mxu2  ;;  %v1799_v14 = vpop.f32.mrf.mxu3 }
 0x328   :  { %2480 = vmatpush.msra.mxu1 %v10947_v51  ;;  %v1920_v51 = vadd.f32 %v12280_v53, %v12271_v24  ;;  %v10926_v24 = vld [vmem:[%s11393_s17] sm:$0xff]   ;;  %v1949_v53 = vadd.f32 %v12282_v46, %v12275_v34  ;;  %v11189_v34 = vld [vmem:[%s11393_s17 + $0x48] sm:$0xff]   ;;  %v1930_v46 = vadd.f32 %v12303_v54, %v12299_v16 }
 0x329   :  { %v10964_v28 = vunpack.c.h.bf16 %v11189_v34  ;;  %v10963_v54 = vunpack.c.l.bf16 %v11189_v34 }
 0x32b   :  { %v1932_v50 = vpop.f32.mrf.mxu0  ;;  %v12313_v41 = vpop.f32.mrf.mxu1 }
 0x32c   :  { %v12309_v30 = vadd.f32 %v1932_v50, %v1770_v47  ;;  %v11183_v47 = vld [vmem:[%s11393_s17 + $0x18] sm:$0xff]  }
 0x32d   :  { %v10939_v1 = vunpack.c.l.bf16 %v11183_v47 }
 0x32f   :  { %v1961_v3 = vpop.f32.mrf.mxu2  ;;  %v12315_v37 = vpop.f32.mrf.mxu3 }
 0x330   :  { %v12311_v43 = vadd.f32 %v1961_v3, %v1799_v14  ;;  %v10940_v14 = vunpack.c.h.bf16 %v11183_v47  ;;  %v10979_v3 = vunpack.c.l.bf16 %v11193_v27  ;;  %v10968_v47 = vunpack.c.h.bf16 %v11190_v60 }
 0x332   :  { %2500 = vmatpush.msrb.mxu3 %v10979_v3  ;;  %v1925_v3 = vadd.f32 %v12293_v23, %v12286_v8  ;;  %v10927_v23 = vunpack.c.l.bf16 %v10926_v24 }
 0x333   :  { %v12317_v35 = vpop.f32.mrf.mxu1  ;;  %v12321_v29 = vpop.f32.mrf.mxu0 }
 0x334   :  { %2501 = vmatpush.msrb.mxu3 %v10976_v31  ;;  %v10928_v31 = vunpack.c.h.bf16 %v10926_v24 }
 0x336   :  { %2289 = vmatmul.bf16.gmra.mxu0 %v10496_v40  ;;  %2318 = vmatmul.bf16.gmra.mxu2 %v10496_v40  ;;  %v10944_v40 = vunpack.c.h.bf16 %v11184_v59  ;;  %v10932_v59 = vunpack.c.h.bf16 %v11181_v2 }
 0x337   :  { %v12319_v20 = vpop.f32.mrf.mxu3  ;;  %v12327_v57 = vpop.f32.mrf.mxu2  ;;  %2502 = vmatpush.msrb.mxu3 %v10975_v9 }
 0x338   :  { %2481 = vmatpush.msra.mxu1 %v10944_v40  ;;  %v10971_v40 = vunpack.c.l.bf16 %v11191_v7  ;;  %v2138_v38 = vadd.f32 %v12319_v20, %v12277_v39  ;;  %v11188_v7 = vld [vmem:[%s11393_s17 + $0x40] sm:$0xff]   ;;  %v1964_v34 = vadd.f32 %v12327_v57, %v12315_v37  ;;  %s14179_s17 = sld [smem:[#allocation8_spill]] }
 0x339   :  { %2503 = vmatpush.msrb.mxu3 %v10972_v49 }
 0x33a   :  { %2482 = vmatpush.msra.mxu1 %v10943_v44 }
 0x33b   :  { %v12323_v45 = vpop.f32.mrf.mxu1  ;;  %2504 = vmatpush.msrb.mxu3 %v10971_v40 }
 0x33c   :  { %2483 = vmatpush.msra.mxu1 %v10940_v14  ;;  %v2139_v14 = vadd.f32 %v12323_v45, %v1920_v51 }
 0x33d   :  { %2505 = vmatpush.msrb.mxu3 %v10968_v47 }
 0x33e   :  { %2484 = vmatpush.msra.mxu1 %v10939_v1 }
 0x33f   :  { %v12325_v33 = vpop.f32.mrf.mxu3  ;;  %2506 = vmatpush.msrb.mxu3 %v10967_v42 }
 0x340   :  { %2485 = vmatpush.msra.mxu1 %v10936_v58  ;;  %v2137_v58 = vadd.f32 %v12317_v35, %v12273_v5 }
 0x341   :  { %2507 = vmatpush.msrb.mxu3 %v10964_v28 }
 0x342   :  { %2486 = vmatpush.msra.mxu1 %v10935_v26 }
 0x343   :  { %v12331_v52 = vpop.f32.mrf.mxu1  ;;  %2508 = vmatpush.msrb.mxu3 %v10963_v54 }
 0x344   :  { %2487 = vmatpush.msra.mxu1 %v10932_v59  ;;  %v2141_v45 = vadd.f32 %v12331_v52, %v12284_v4  ;;  %v2140_v52 = vadd.f32 %v12325_v33, %v1949_v53  ;;  %v1959_v33 = vadd.f32 %v12307_v11, %v12305_v61 }
 0x346   :  { %2488 = vmatpush.msra.mxu1 %v10931_v25 }
 0x347   :  { %v12335_v15 = vpop.f32.mrf.mxu3 }
 0x348   :  { %2489 = vmatpush.msra.mxu1 %v10928_v31 }
 0x34a   :  { %2490 = vmatpush.msra.mxu1 %v10927_v23 }
 0x34b   :  { %v12339_v55 = vpop.f32.mrf.mxu1 }
 0x34c   :  { %v2143_v5 = vadd.f32 %v12339_v55, %v1925_v3  ;;  %v10960_v55 = vunpack.c.h.bf16 %v11188_v7 }
 0x34e   :  { %2509 = vmatpush.msrb.mxu3 %v10960_v55 }
 0x34f   :  { %v12348_v13 = vpop.f32.mrf.mxu3 }
 0x350   :  { %v2144_v16 = vadd.f32 %v12348_v13, %v1954_v56  ;;  %v10959_v13 = vunpack.c.l.bf16 %v11188_v7 }
 0x352   :  { %2510 = vmatpush.msrb.mxu3 %v10959_v13 }
 0x353   :  { %v12351_v18 = vpop.f32.mrf.mxu1 }
 0x354   :  { %v2145_v39 = vadd.f32 %v12351_v18, %v12297_v63 }
 0x357   :  { %v12361_v50 = vpop.f32.mrf.mxu3 }
 0x358   :  { %v2146_v61 = vadd.f32 %v12361_v50, %v12301_v6 }
 0x35b   :  { %v2100_v21 = vpop.f32.mrf.mxu1 }
 0x35f   :  { %v2129_v27 = vpop.f32.mrf.mxu3 }
 0x360   :  { %v2148_v6 = vadd.f32 %v2129_v27, %v1959_v33 }
 0x363   :  { %v2103_v9 = vpop.f32.mrf.mxu1 }
 0x367   :  { %v2132_v11 = vpop.f32.mrf.mxu3 }
 0x368   :  { %v2150_v27 = vadd.f32 %v2132_v11, %v12311_v43 }
 0x36b   :  { %v2105_v50 = vpop.f32.mrf.mxu1 }
 0x36f   :  { %v2134_v7 = vpop.f32.mrf.mxu3 }
 0x370   :  { %v2152_v13 = vadd.f32 %v2134_v7, %v1964_v34 }
 0x383   :  { %v12329_v0 = vpop.f32.mrf.mxu0 }
 0x384   :  { %v12398_v4 = vadd.f32 %v12329_v0, %v2137_v58 }
 0x386   :  { %v2366_v63 = vmul.f32 %v12398_v4, %v12398_v4 }
 0x389   :  { %v12333_v48 = vpop.f32.mrf.mxu2 }
 0x38b   :  { %v12337_v32 = vpop.f32.mrf.mxu0 }
 0x38c   :  { %v12389_v8 = vadd.f32 %v12337_v32, %v2139_v14  ;;  %v2142_v32 = vadd.f32 %v12335_v15, %v12288_v22  ;;  %v2147_v22 = vadd.f32 %v2100_v21, %v1930_v46  ;;  %v12433_v21 = vadd.f32 %v12333_v48, %v2138_v38 }
 0x38e   :  { %v2368_v20 = vmul.f32 %v12389_v8, %v12389_v8  ;;  %v2340_v18 = vadd.f32 %v12389_v8, %v12398_v4 }
 0x390   :  { %v2382_v2 = vadd.f32 %v2368_v20, %v2366_v63 }
 0x391   :  { %v12342_v36 = vpop.f32.mrf.mxu2 }
 0x392   :  { %v12418_v15 = vadd.f32 %v12342_v36, %v2140_v52  ;;  %v2149_v36 = vadd.f32 %v2103_v9, %v12309_v30  ;;  %v1935_v30 = vadd.f32 %v12321_v29, %v12313_v41  ;;  %v2367_v41 = vmul.f32 %v12433_v21, %v12433_v21 }
 0x393   :  { %v12345_v62 = vpop.f32.mrf.mxu0 }
 0x394   :  { %v12401_v35 = vadd.f32 %v12345_v62, %v2141_v45  ;;  %v2369_v48 = vmul.f32 %v12418_v15, %v12418_v15  ;;  %v2353_v3 = vadd.f32 %v12418_v15, %v12433_v21 }
 0x396   :  { %v2341_v59 = vadd.f32 %v2340_v18, %v12401_v35  ;;  %v2395_v43 = vadd.f32 %v2369_v48, %v2367_v41 }
 0x399   :  { %v12354_v17 = vpop.f32.mrf.mxu2 }
 0x39a   :  { %v12436_v49 = vadd.f32 %v12354_v17, %v2142_v32 }
 0x39b   :  { %v12357_v12 = vpop.f32.mrf.mxu0 }
 0x39c   :  { %v12413_v0 = vadd.f32 %v12357_v12, %v2143_v5  ;;  %v2370_v12 = vmul.f32 %v12401_v35, %v12401_v35  ;;  %v2371_v29 = vmul.f32 %v12436_v49, %v12436_v49 }
 0x39e   :  { %v2383_v60 = vadd.f32 %v2382_v2, %v2370_v12  ;;  %v2342_v25 = vadd.f32 %v2341_v59, %v12413_v0  ;;  %v2396_v46 = vadd.f32 %v2395_v43, %v2371_v29 }
 0x3a1   :  { %v12364_v10 = vpop.f32.mrf.mxu2 }
 0x3a2   :  { %v12448_v17 = vadd.f32 %v12364_v10, %v2144_v16 }
 0x3a3   :  { %v12367_v19 = vpop.f32.mrf.mxu0 }
 0x3a4   :  { %v12427_v26 = vadd.f32 %v12367_v19, %v2145_v39  ;;  %v2372_v19 = vmul.f32 %v12413_v0, %v12413_v0  ;;  %v2373_v31 = vmul.f32 %v12448_v17, %v12448_v17 }
 0x3a6   :  { %v2374_v47 = vmul.f32 %v12427_v26, %v12427_v26  ;;  %v2384_v24 = vadd.f32 %v2383_v60, %v2372_v19  ;;  %v2343_v53 = vadd.f32 %v2342_v25, %v12427_v26  ;;  %v2397_v39 = vadd.f32 %v2396_v46, %v2373_v31 }
 0x3a8   :  { %v2385_v45 = vadd.f32 %v2384_v24, %v2374_v47 }
 0x3a9   :  { %v12374_v44 = vpop.f32.mrf.mxu2 }
 0x3aa   :  { %v12461_v10 = vadd.f32 %v12374_v44, %v2146_v61  ;;  %v2354_v44 = vadd.f32 %v2353_v3, %v12436_v49 }
 0x3ab   :  { %v2287_v1 = vpop.f32.mrf.mxu0 }
 0x3ac   :  { %v12441_v40 = vadd.f32 %v2287_v1, %v2147_v22  ;;  %v2151_v1 = vadd.f32 %v2105_v50, %v1935_v30  ;;  %v2375_v28 = vmul.f32 %v12461_v10, %v12461_v10  ;;  %v2355_v52 = vadd.f32 %v2354_v44, %v12448_v17 }
 0x3ae   :  { %v2376_v56 = vmul.f32 %v12441_v40, %v12441_v40  ;;  %v2344_v9 = vadd.f32 %v2343_v53, %v12441_v40  ;;  %v2356_v37 = vadd.f32 %v2355_v52, %v12461_v10  ;;  %v2398_v22 = vadd.f32 %v2397_v39, %v2375_v28 }
 0x3af   :  { %v11365_v52 = vmov 2048.0  }
 0x3b0   :  { %v2386_v32 = vadd.f32 %v2385_v45, %v2376_v56  ;;  %11289 = vrcp.f32 %v11365_v52 }
 0x3b1   :  { %v2316_v62 = vpop.f32.mrf.mxu2 }
 0x3b2   :  { %v12470_v42 = vadd.f32 %v2316_v62, %v2148_v6 }
 0x3b3   :  { %v2290_v51 = vpop.f32.mrf.mxu0 }
 0x3b4   :  { %v12453_v14 = vadd.f32 %v2290_v51, %v2149_v36  ;;  %v2377_v20 = vmul.f32 %v12470_v42, %v12470_v42  ;;  %v2357_v63 = vadd.f32 %v2356_v37, %v12470_v42 }
 0x3b6   :  { %v2378_v23 = vmul.f32 %v12453_v14, %v12453_v14  ;;  %v2345_v16 = vadd.f32 %v2344_v9, %v12453_v14  ;;  %v2399_v61 = vadd.f32 %v2398_v22, %v2377_v20 }
 0x3b8   :  { %v2387_v57 = vadd.f32 %v2386_v32, %v2378_v23  ;;  %v11290_v32 = vpop.eup %11289 }
 0x3b9   :  { %v2319_v58 = vpop.f32.mrf.mxu2  ;;  %vm2520_vm2 = vweird.f32 %v11290_v32 }
 0x3ba   :  { %v12480_v38 = vadd.f32 %v2319_v58, %v2150_v27 }
 0x3bb   :  { %v2292_v5 = vpop.f32.mrf.mxu0 }
 0x3bc   :  { %v12484_v54 = vadd.f32 %v2292_v5, %v2151_v1  ;;  %v2379_v62 = vmul.f32 %v12480_v38, %v12480_v38  ;;  %v2358_v36 = vadd.f32 %v2357_v63, %v12480_v38 }
 0x3be   :  { %v2346_v55 = vadd.f32 %v2345_v16, %v12484_v54  ;;  %v2380_v33 = vmul.f32 %v12484_v54, %v12484_v54  ;;  %v2400_v19 = vadd.f32 %v2399_v61, %v2379_v62  ;;  %v2516_v16 = vmul.f32 2048.0, %v11290_v32 }
 0x3c0   :  { %v2347_v18 = vrot.slane %v2346_v55, 4  ;;  %v2388_v12 = vadd.f32 %v2387_v57, %v2380_v33  ;;  %v2517_v7 = vsub.f32 1.0, %v2516_v16  ;;  %v8742_v16 = vld [vmem:[%s11418_s8 + $0x100] sm:$0xf] }
 0x3c1   :  { %v2321_v11 = vpop.f32.mrf.mxu2 }
 0x3c2   :  { %v2348_v51 = vadd.f32 %v2347_v18, %v2346_v55  ;;  %v2389_v2 = vrot.slane %v2388_v12, 4  ;;  %v12496_v59 = vadd.f32 %v2321_v11, %v2152_v13  ;;  %v2518_v39 = vmul.f32 %v11290_v32, %v2517_v7  ;;  %v10533_v7 = vld [vmem:[%s11418_s8 + $0x11c] sm:$0xf0] }
 0x3c4   :  { %v2349_v6 = vrot.slane %v2348_v51, 2  ;;  %v2390_v30 = vadd.f32 %v2389_v2, %v2388_v12  ;;  %v2359_v48 = vadd.f32 %v2358_v36, %v12496_v59  ;;  %v2381_v50 = vmul.f32 %v12496_v59, %v12496_v59  ;;  %v2553_v12 = vld [vmem:[%s11398_s21] sm:$0xff]  ;;  %s14180_s21 = sld [smem:[#allocation9_spill]] }
 0x3c5   :  { %v2519_v20 = vadd.f32 %v11290_v32, %v2518_v39  ;;  %v2554_v61 = vunpack.c.l.bf16 %v2553_v12  ;;  %v2555_v11 = vunpack.c.h.bf16 %v2553_v12  ;;  %v8838_v36 = vld [vmem:[%s11418_s8 + $0x1c0] sm:$0xf]  ;;  %v10553_v2 = vld [vmem:[%s11418_s8 + $0x1c4] sm:$0xf] }
 0x3c6   :  { %v2350_v60 = vadd.f32 %v2349_v6, %v2348_v51  ;;  %v2391_v25 = vrot.slane %v2390_v30, 2  ;;  %v2360_v47 = vrot.slane %v2359_v48, 4  ;;  %v2401_v27 = vadd.f32 %v2400_v19, %v2381_v50  ;;  %v10557_v51 = vld [vmem:[%s11418_s8 + $0x1dc] sm:$0xf0]  ;;  %v8840_v6 = vld [vmem:[%s11418_s8 + $0x1e0] sm:$0xf0] }
 0x3c7   :  { %v2521_v55 = vsel %vm2520_vm2, %v11290_v32, %v2519_v20  ;;  %2575 = vmatpush.msrb.mxu1 %v2554_v61  ;;  %2595 = vmatpush.msra.mxu3 %v2555_v11  ;;  %v8839_v19 = vor.u32 %v10557_v51, %v8838_v36  ;;  %v8843_v50 = vor.u32 %v10553_v2, %v8840_v6  ;;  %v10529_v39 = vld [vmem:[%s11418_s8 + $0x104] sm:$0xf]  ;;  %v8710_v36 = vld [vmem:[%s11418_s8 + $0xc0] sm:$0xf] }
 0x3c8   :  { %v2361_v41 = vadd.f32 %v2360_v47, %v2359_v48  ;;  %v2402_v29 = vrot.slane %v2401_v27, 4  ;;  %v2351_v3 = vrot.slane %v2350_v60, 1  ;;  %v2392_v24 = vadd.f32 %v2391_v25, %v2390_v30  ;;  %v8806_v30 = vld [vmem:[%s11418_s8 + $0x180] sm:$0xf]  ;;  %v8808_v25 = vld [vmem:[%s11418_s8 + $0x1a0] sm:$0xf0] }
 0x3c9   :  { %v10549_v48 = vld [vmem:[%s11418_s8 + $0x19c] sm:$0xf0]  ;;  %3460 = vmatpush.bf16.msra.mxu0 %v8839_v19  ;;  %v8743_v11 = vor.u32 %v10533_v7, %v8742_v16 }
 0x3ca   :  { %v2362_v53 = vrot.slane %v2361_v41, 2  ;;  %v2403_v56 = vadd.f32 %v2402_v29, %v2401_v27  ;;  %v2393_v1 = vrot.slane %v2392_v24, 1  ;;  %v2352_v58 = vadd.f32 %v2351_v3, %v2350_v60  ;;  %v10545_v60 = vld [vmem:[%s11418_s8 + $0x184] sm:$0xf]  ;;  %v9094_v47 = vld [vmem:[%s11418_s8 + $0x3c0] sm:$0xf] }
 0x3cb   :  { %v10621_v29 = vld [vmem:[%s11418_s8 + $0x3dc] sm:$0xf0]  ;;  %v10617_v3 = vld [vmem:[%s11418_s8 + $0x3c4] sm:$0xf] }
 0x3cc   :  { %v2363_v43 = vadd.f32 %v2362_v53, %v2361_v41  ;;  %v2404_v31 = vrot.slane %v2403_v56, 2  ;;  %v2394_v44 = vadd.f32 %v2393_v1, %v2392_v24  ;;  %v8807_v41 = vor.u32 %v10549_v48, %v8806_v30  ;;  %v9096_v24 = vld [vmem:[%s11418_s8 + $0x3e0] sm:$0xf0]  ;;  %v10525_v51 = vld [vmem:[%s11418_s8 + $0xdc] sm:$0xf0] }
 0x3cd   :  { %v9095_v1 = vor.u32 %v10621_v29, %v9094_v47  ;;  %v8998_v2 = vld [vmem:[%s11418_s8 + $0x300] sm:$0xf]  ;;  %v10593_v48 = vld [vmem:[%s11418_s8 + $0x304] sm:$0xf] }
 0x3ce   :  { %v2409_v45 = vsel %vm2408_vm1, %v2352_v58, %v2394_v44  ;;  %v2364_v9 = vrot.slane %v2363_v43, 1  ;;  %v2405_v23 = vadd.f32 %v2404_v31, %v2403_v56  ;;  %v8811_v56 = vor.u32 %v10545_v60, %v8808_v25  ;;  %v8774_v31 = vld [vmem:[%s11418_s8 + $0x140] sm:$0xf]  ;;  %v10537_v44 = vld [vmem:[%s11418_s8 + $0x144] sm:$0xf]  ;;  %3461 = vmatpush.bf16.msra.mxu0 %v8807_v41 }
 0x3cf   :  { %2491 = vmatmul.f32.vlgmr.msra.gmra.mxu1 %v2409_v45  ;;  %v10541_v58 = vld [vmem:[%s11418_s8 + $0x15c] sm:$0xf0]  ;;  %v8776_v45 = vld [vmem:[%s11418_s8 + $0x160] sm:$0xf0]  ;;  %3489 = vmatpush.bf16.msrb.mxu2 %v9095_v1 }
 0x3d0   :  { %v2406_v34 = vrot.slane %v2405_v23, 1  ;;  %v2365_v46 = vadd.f32 %v2364_v9, %v2363_v43  ;;  %3518 = vmatpush.bf16.msra.mxu1 %v8843_v50  ;;  %v9099_v43 = vor.u32 %v10617_v3, %v9096_v24  ;;  %v9062_v9 = vld [vmem:[%s11418_s8 + $0x380] sm:$0xf]  ;;  %v9000_v50 = vld [vmem:[%s11418_s8 + $0x320] sm:$0xf0] }
 0x3d1   :  { %v10597_v30 = vld [vmem:[%s11418_s8 + $0x31c] sm:$0xf0]  ;;  %v10521_v60 = vld [vmem:[%s11418_s8 + $0xc4] sm:$0xf]  ;;  %v9003_v29 = vor.u32 %v10593_v48, %v9000_v50 }
 0x3d2   :  { %v2407_v28 = vadd.f32 %v2406_v34, %v2405_v23  ;;  %v10613_v34 = vld [vmem:[%s11418_s8 + $0x39c] sm:$0xf0]  ;;  %v8712_v25 = vld [vmem:[%s11418_s8 + $0xe0] sm:$0xf0]  ;;  %v8999_v41 = vor.u32 %v10597_v30, %v8998_v2 }
 0x3d3   :  { %v9063_v52 = vor.u32 %v10613_v34, %v9062_v9  ;;  %v8715_v3 = vor.u32 %v10521_v60, %v8712_v25  ;;  %v2528_v24 = vld [vmem:[%s11403_s25] sm:$0x1]  ;;  %v10513_v9 = vld [vmem:[%s11418_s8 + $0x84] sm:$0xf]  ;;  %s14181_s25 = sld [smem:[#allocation10_spill]] }
 0x3d4   :  { %v2410_v5 = vsel %vm2408_vm1, %v2365_v46, %v2407_v28  ;;  %v10609_v46 = vld [vmem:[%s11418_s8 + $0x384] sm:$0xf]  ;;  %3519 = vmatpush.bf16.msra.mxu1 %v8811_v56  ;;  %v2546_v56 = vld [vmem:[%s11408_s29] sm:$0x1]  ;;  %s14182_s29 = sld [smem:[#allocation12_spill]] }
 0x3d5   :  { %2511 = vmatmul.f32.vlgmr.msrb.gmra.mxu3 %v2410_v5  ;;  %v9064_v28 = vld [vmem:[%s11418_s8 + $0x3a0] sm:$0xf0]  ;;  %v8775_v5 = vor.u32 %v10541_v58, %v8774_v31  ;;  %3490 = vmatpush.bf16.msrb.mxu2 %v9063_v52  ;;  %v8646_v7 = vld [vmem:[%s11418_s8 + $0x40] sm:$0xf] }
 0x3d6   :  { %3547 = vmatpush.bf16.msrb.mxu3 %v9099_v43  ;;  %v9067_v32 = vor.u32 %v10609_v46, %v9064_v28  ;;  %v8680_v34 = vld [vmem:[%s11418_s8 + $0xa0] sm:$0xf0]  ;;  %v8966_v46 = vld [vmem:[%s11418_s8 + $0x2c0] sm:$0xf] }
 0x3d7   :  { %3462 = vmatpush.bf16.msra.mxu0 %v8775_v5  ;;  %v10589_v28 = vld [vmem:[%s11418_s8 + $0x2dc] sm:$0xf0]  ;;  %v10585_v5 = vld [vmem:[%s11418_s8 + $0x2c4] sm:$0xf] }
 0x3d8   :  { %v8967_v52 = vor.u32 %v10589_v28, %v8966_v46  ;;  %v8902_v30 = vld [vmem:[%s11418_s8 + $0x240] sm:$0xf]  ;;  %v10569_v50 = vld [vmem:[%s11418_s8 + $0x244] sm:$0xf] }
 0x3d9   :  { %v10573_v48 = vld [vmem:[%s11418_s8 + $0x25c] sm:$0xf0]  ;;  %v8904_v25 = vld [vmem:[%s11418_s8 + $0x260] sm:$0xf0] }
 0x3da   :  { %3548 = vmatpush.bf16.msrb.mxu3 %v9067_v32  ;;  %v8968_v32 = vld [vmem:[%s11418_s8 + $0x2e0] sm:$0xf0]  ;;  %v8903_v60 = vor.u32 %v10573_v48, %v8902_v30  ;;  %v9102_v30 = vld [vmem:[%s11418_s8 + $0x3c8] sm:$0xf] }
 0x3db   :  { %3463 = vmatpush.bf16.msra.mxu0 %v8743_v11  ;;  %v8971_v16 = vor.u32 %v10585_v5, %v8968_v32  ;;  %v8614_v11 = vld [vmem:[%s11418_s8] sm:$0xf] }
 0x44c   :  { %v2492_v37 = vpop.f32.mrf.mxu1 }
 0x458   :  { %v2512_v57 = vpop.f32.mrf.mxu3 }
 0x459   :  { %v2513_v33 = vadd.f32 %v2512_v57, %v2492_v37  ;;  %v8779_v37 = vor.u32 %v10537_v44, %v8776_v45  ;;  %v8744_v57 = vld [vmem:[%s11418_s8 + $0x120] sm:$0xf0]  ;;  %v8678_v44 = vld [vmem:[%s11418_s8 + $0x80] sm:$0xf] }
 0x45a   :  { %v8747_v6 = vor.u32 %v10529_v39, %v8744_v57  ;;  %v10517_v45 = vld [vmem:[%s11418_s8 + $0x9c] sm:$0xf0]  ;;  %v8648_v57 = vld [vmem:[%s11418_s8 + $0x60] sm:$0xf0] }
 0x45b   :  { %v12503_v22 = vmul.f32 %v2521_v55, %v2513_v33  ;;  %v9030_v55 = vld [vmem:[%s11418_s8 + $0x340] sm:$0xf]  ;;  %3520 = vmatpush.bf16.msra.mxu1 %v8779_v37 }
 0x45c   :  { %v10605_v33 = vld [vmem:[%s11418_s8 + $0x35c] sm:$0xf0] }
 0x45d   :  { %v2523_v62 = vmul.f32 %v12503_v22, %v12503_v22  ;;  %v9031_v12 = vor.u32 %v10605_v33, %v9030_v55  ;;  %v10509_v39 = vld [vmem:[%s11418_s8 + $0x5c] sm:$0xf0] }
 0x45e   :  { %v8647_v37 = vor.u32 %v10509_v39, %v8646_v7  ;;  %v8934_v33 = vld [vmem:[%s11418_s8 + $0x280] sm:$0xf] }
 0x45f   :  { %v2525_v13 = vrot.slane %v2523_v62, 7  ;;  %v10601_v62 = vld [vmem:[%s11418_s8 + $0x344] sm:$0xf]  ;;  %3491 = vmatpush.bf16.msrb.mxu2 %v9031_v12  ;;  %3521 = vmatpush.bf16.msra.mxu1 %v8747_v6 }
 0x460   :  { %v8936_v12 = vld [vmem:[%s11418_s8 + $0x2a0] sm:$0xf0] }
 0x461   :  { %v2527_v63 = vsub.f32 %v12503_v22, %v2525_v13  ;;  %v9032_v13 = vld [vmem:[%s11418_s8 + $0x360] sm:$0xf0] }
 0x462   :  { %v9035_v61 = vor.u32 %v10601_v62, %v9032_v13  ;;  %v10581_v62 = vld [vmem:[%s11418_s8 + $0x29c] sm:$0xf0]  ;;  %v10577_v13 = vld [vmem:[%s11418_s8 + $0x284] sm:$0xf] }
 0x463   :  { %v12508_v18 = vadd.f32 1e-05, %v2527_v63  ;;  %3492 = vmatpush.bf16.msrb.mxu2 %v8999_v41  ;;  %3522 = vmatpush.bf16.msra.mxu1 %v8715_v3  ;;  %v8870_v41 = vld [vmem:[%s11418_s8 + $0x200] sm:$0xf] }
 0x464   :  { %3549 = vmatpush.bf16.msrb.mxu3 %v9035_v61  ;;  %v8939_v61 = vor.u32 %v10577_v13, %v8936_v12  ;;  %v10554_v13 = vld [vmem:[%s11418_s8 + $0x1cc] sm:$0xf] }
 0x465   :  { %11291 = vrsqrt.f32 %v12508_v18  ;;  %vm2536_vm4 = vweird.f32 %v12508_v18 }
 0x467   :  { %3493 = vmatpush.bf16.msrb.mxu2 %v8967_v52 }
 0x468   :  { %3550 = vmatpush.bf16.msrb.mxu3 %v9003_v29  ;;  %v10565_v29 = vld [vmem:[%s11418_s8 + $0x21c] sm:$0xf0] }
 0x469   :  { %v8871_v3 = vor.u32 %v10565_v29, %v8870_v41  ;;  %v10618_v29 = vld [vmem:[%s11418_s8 + $0x3cc] sm:$0xf] }
 0x46b   :  { %v12521_v27 = vpop.eup %11291 }
 0x46c   :  { %v2531_v53 = vmul.f32 %v12521_v27, %v12508_v18  ;;  %vm2537_vm3 = vweird.f32 %v12521_v27  ;;  %v8711_v18 = vor.u32 %v10525_v51, %v8710_v36  ;;  %3551 = vmatpush.bf16.msrb.mxu3 %v8971_v16  ;;  %v10501_v36 = vld [vmem:[%s11418_s8 + $0x1c] sm:$0xf0]  ;;  %v10497_v51 = vld [vmem:[%s11418_s8 + $0x4] sm:$0xf] }
 0x46d   :  { %vm2538_vm5 = vmor %vm2536_vm4, %vm2537_vm3  ;;  %v8615_v2 = vor.u32 %v10501_v36, %v8614_v11 }
 0x46e   :  { %v2532_v23 = vmul.f32 %v12521_v27, %v2531_v53  ;;  %3464 = vmatpush.bf16.msra.mxu0 %v8711_v18  ;;  %v10561_v18 = vld [vmem:[%s11418_s8 + $0x204] sm:$0xf] }
 0x470   :  { %v2533_v20 = vmul.f32 0.5, %v2532_v23  ;;  %v8679_v23 = vor.u32 %v10517_v45, %v8678_v44  ;;  %3552 = vmatpush.bf16.msrb.mxu3 %v8939_v61  ;;  %v8814_v61 = vld [vmem:[%s11418_s8 + $0x188] sm:$0xf] }
 0x472   :  { %v2534_v63 = vsub.f32 1.5, %v2533_v20  ;;  %3465 = vmatpush.bf16.msra.mxu0 %v8679_v23  ;;  %v10505_v20 = vld [vmem:[%s11418_s8 + $0x44] sm:$0xf] }
 0x473   :  { %v8651_v55 = vor.u32 %v10505_v20, %v8648_v57 }
 0x474   :  { %v2535_v19 = vmul.f32 %v12521_v27, %v2534_v63  ;;  %v8935_v63 = vor.u32 %v10581_v62, %v8934_v33  ;;  %v10558_v33 = vld [vmem:[%s11418_s8 + $0x1e4] sm:$0xf0] }
 0x476   :  { %v2539_v47 = vsel %vm2538_vm5, %v12521_v27, %v2535_v19  ;;  %3466 = vmatpush.bf16.msra.mxu0 %v8647_v37  ;;  %3494 = vmatpush.bf16.msrb.mxu2 %v8935_v63  ;;  %v8616_v19 = vld [vmem:[%s11418_s8 + $0x20] sm:$0xf0]  ;;  %v8848_v63 = vld [vmem:[%s11418_s8 + $0x1e8] sm:$0xf0] }
 0x477   :  { %2541 = vst [vmem:[#allocation1] sm:$0xff] %v2539_v47  ;;  %v8619_v6 = vor.u32 %v10497_v51, %v8616_v19  ;;  %v8907_v47 = vor.u32 %v10569_v50, %v8904_v25  ;;  %v8851_v51 = vor.u32 %v10554_v13, %v8848_v63  ;;  %v10546_v19 = vld [vmem:[%s11418_s8 + $0x18c] sm:$0xf] }
 0x479   :  { %3553 = vmatpush.bf16.msrb.mxu3 %v8907_v47  ;;  %v10622_v47 = vld [vmem:[%s11418_s8 + $0x3e4] sm:$0xf0] }
 0x47a   :  { %3467 = vmatpush.bf16.msra.mxu0 %v8615_v2  ;;  %3495 = vmatpush.bf16.msrb.mxu2 %v8903_v60  ;;  %v10550_v2 = vld [vmem:[%s11418_s8 + $0x1a4] sm:$0xf0]  ;;  %v9103_v41 = vor.u32 %v10622_v47, %v9102_v30 }
 0x47b   :  { %v8815_v60 = vor.u32 %v10550_v2, %v8814_v61  ;;  %v10522_v2 = vld [vmem:[%s11418_s8 + $0xcc] sm:$0xf]  ;;  %v10598_v30 = vld [vmem:[%s11418_s8 + $0x324] sm:$0xf0] }
 0x47c   :  { %v8686_v47 = vld [vmem:[%s11418_s8 + $0x88] sm:$0xf] }
 0x47e   :  { %v2543_v27 = vld [vmem:[#allocation1 + $0x1] ss:$9 sm:$0xff]  ;;  %3496 = vmatpush.bf16.msrb.mxu2 %v8871_v3 }
 0x47f   :  { %v2545_v53 = vmul.f32 %v2543_v27, %v2528_v24  ;;  %v8872_v24 = vld [vmem:[%s11418_s8 + $0x220] sm:$0xf0]  ;;  %v8782_v3 = vld [vmem:[%s11418_s8 + $0x148] sm:$0xf] }
 0x480   :  { %v8875_v27 = vor.u32 %v10561_v18, %v8872_v24  ;;  %v9104_v18 = vld [vmem:[%s11418_s8 + $0x3e8] sm:$0xf0] }
 0x481   :  { %v2547_v1 = vmul.f32 %v2545_v53, %v12503_v22  ;;  %v8683_v22 = vor.u32 %v10513_v9, %v8680_v34 }
 0x482   :  { %3554 = vmatpush.bf16.msrb.mxu3 %v8875_v27  ;;  %3605 = vmatpush.bf16.msra.mxu2 %v9103_v41 }
 0x483   :  { %v2548_v43 = vsub.f32 %v2546_v56, %v2547_v1  ;;  %3523 = vmatpush.bf16.msra.mxu1 %v8683_v22 }
 0x485   :  { %v2550_v31 = vperm.slane %v2548_v43, 0 }
 0x487   :  { %v2552_v58 = vsel %vm2408_vm1, %v2545_v53, %v2550_v31  ;;  %3524 = vmatpush.bf16.msra.mxu1 %v8651_v55  ;;  %v8846_v55 = vld [vmem:[%s11418_s8 + $0x1c8] sm:$0xf] }
 0x488   :  { %8610 = vmatmul.msk.f32.vlgmr.msrb.gmra.mxu1 %vm2556_vm6, %v2552_v58  ;;  %8611 = vmatmul.msk.f32.vlgmr.msra.gmra.mxu3 %vm2556_vm6, %v2552_v58  ;;  %v8847_v36 = vor.u32 %v10558_v33, %v8846_v55 }
 0x48a   :  { %3576 = vmatpush.bf16.msrb.mxu0 %v8847_v36  ;;  %v8718_v36 = vld [vmem:[%s11418_s8 + $0xc8] sm:$0xf] }
 0x48b   :  { %3525 = vmatpush.bf16.msra.mxu1 %v8619_v6  ;;  %v8816_v6 = vld [vmem:[%s11418_s8 + $0x1a8] sm:$0xf0] }
 0x48c   :  { %v8819_v25 = vor.u32 %v10546_v19, %v8816_v6  ;;  %v8720_v6 = vld [vmem:[%s11418_s8 + $0xe8] sm:$0xf0] }
 0x48e   :  { %3577 = vmatpush.bf16.msrb.mxu0 %v8815_v60  ;;  %v10594_v60 = vld [vmem:[%s11418_s8 + $0x30c] sm:$0xf] }
 0x48f   :  { %3634 = vmatpush.bf16.msrb.mxu1 %v8851_v51  ;;  %v10526_v51 = vld [vmem:[%s11418_s8 + $0xe4] sm:$0xf0] }
 0x493   :  { %3635 = vmatpush.bf16.msrb.mxu1 %v8819_v25  ;;  %v9008_v25 = vld [vmem:[%s11418_s8 + $0x328] sm:$0xf0] }
 0x494   :  { %v9011_v41 = vor.u32 %v10594_v60, %v9008_v25  ;;  %v10562_v60 = vld [vmem:[%s11418_s8 + $0x20c] sm:$0xf] }
 0x505   :  { %v2577_v53 = vpop.f32.mrf.mxu1 }
 0x506   :  { %v12593_v56 = vperm.slane %v2577_v53, 0  ;;  %v12599_v31 = vperm.slane %v2577_v53, 1  ;;  %v9107_v53 = vor.u32 %v10618_v29, %v9104_v18  ;;  %v10518_v29 = vld [vmem:[%s11418_s8 + $0xa4] sm:$0xf0]  ;;  %v10514_v18 = vld [vmem:[%s11418_s8 + $0x8c] sm:$0xf] }
 0x508   :  { %v2602_v1 = vmul.f32 %v12593_v56, %v12398_v4  ;;  %v2604_v43 = vmul.f32 %v12593_v56, %v12389_v8  ;;  %v2606_v23 = vmul.f32 %v12593_v56, %v12401_v35  ;;  %v2608_v28 = vmul.f32 %v12593_v56, %v12413_v0  ;;  %3663 = vmatpush.bf16.msra.mxu3 %v9107_v53  ;;  %v8974_v53 = vld [vmem:[%s11418_s8 + $0x2c8] sm:$0xf] }
 0x509   :  { %v2610_v24 = vmul.f32 %v12593_v56, %v12427_v26  ;;  %v2612_v27 = vmul.f32 %v12593_v56, %v12441_v40 }
 0x50a   :  { %v2620_v58 = vadd.f32 %v12599_v31, %v2602_v1  ;;  %v2622_v44 = vadd.f32 %v12599_v31, %v2604_v43  ;;  %v12620_v32 = vadd.f32 %v12599_v31, %v2606_v23  ;;  %v12625_v0 = vadd.f32 %v12599_v31, %v2608_v28  ;;  %v10542_v1 = vld [vmem:[%s11418_s8 + $0x164] sm:$0xf0]  ;;  %v10538_v43 = vld [vmem:[%s11418_s8 + $0x14c] sm:$0xf] }
 0x50b   :  { %v2597_v45 = vpop.f32.mrf.mxu3  ;;  %v10610_v23 = vld [vmem:[%s11418_s8 + $0x38c] sm:$0xf]  ;;  %v8783_v26 = vor.u32 %v10542_v1, %v8782_v3  ;;  %v10590_v1 = vld [vmem:[%s11418_s8 + $0x2e4] sm:$0xf0] }
 0x50c   :  { %v12603_v9 = vperm.slane %v2597_v45, 0  ;;  %v12607_v34 = vperm.slane %v2597_v45, 1  ;;  %v2652_v22 = vmul.f32 0.2, %v2620_v58  ;;  %v2654_v46 = vmul.f32 0.2, %v2622_v44 }
 0x50d   :  { %vm2636_vm7 = vcmp.ge.f32.partialorder %v2620_v58, 0.0  ;;  %vm2638_vm8 = vcmp.ge.f32.partialorder %v2622_v44, 0.0  ;;  %vm2640_vm11 = vcmp.ge.f32.partialorder %v12620_v32, 0.0  ;;  %vm2642_vm12 = vcmp.ge.f32.partialorder %v12625_v0, 0.0  ;;  %v10614_v45 = vld [vmem:[%s11418_s8 + $0x3a4] sm:$0xf0]  ;;  %3578 = vmatpush.bf16.msrb.mxu0 %v8783_v26 }
 0x50e   :  { %v2603_v4 = vmul.f32 %v12603_v9, %v12433_v21  ;;  %v2605_v8 = vmul.f32 %v12603_v9, %v12418_v15  ;;  %v2607_v5 = vmul.f32 %v12603_v9, %v12436_v49  ;;  %v2609_v15 = vmul.f32 %v12603_v9, %v12448_v17  ;;  %v8688_v3 = vld [vmem:[%s11418_s8 + $0xa8] sm:$0xf0]  ;;  %v10510_v26 = vld [vmem:[%s11418_s8 + $0x64] sm:$0xf0] }
 0x50f   :  { %v2668_v21 = vsel %vm2636_vm7, %v2620_v58, %v2652_v22  ;;  %v2670_v16 = vsel %vm2638_vm8, %v2622_v44, %v2654_v46  ;;  %v2656_v12 = vmul.f32 0.2, %v12620_v32  ;;  %v2658_v11 = vmul.f32 0.2, %v12625_v0  ;;  %v8784_v58 = vld [vmem:[%s11418_s8 + $0x168] sm:$0xf0] }
 0x510   :  { %v2621_v35 = vadd.f32 %v12607_v34, %v2603_v4  ;;  %v2623_v52 = vadd.f32 %v12607_v34, %v2605_v8  ;;  %v12627_v49 = vpack.c.bf16 %v2670_v16, %v2668_v21  ;;  %v12630_v20 = vadd.f32 %v12607_v34, %v2607_v5  ;;  %v9070_v44 = vld [vmem:[%s11418_s8 + $0x388] sm:$0xf]  ;;  %v9072_v8 = vld [vmem:[%s11418_s8 + $0x3a8] sm:$0xf0] }
 0x511   :  { %v12633_v17 = vadd.f32 %v12607_v34, %v2609_v15  ;;  %v8787_v4 = vor.u32 %v10538_v43, %v8784_v58  ;;  %v9071_v40 = vor.u32 %v10614_v45, %v9070_v44  ;;  %v8750_v22 = vld [vmem:[%s11418_s8 + $0x108] sm:$0xf]  ;;  %v9075_v28 = vor.u32 %v10610_v23, %v9072_v8  ;;  %v10530_v5 = vld [vmem:[%s11418_s8 + $0x10c] sm:$0xf] }
 0x512   :  { %vm2637_vm9 = vcmp.ge.f32.partialorder %v2621_v35, 0.0  ;;  %vm2639_vm10 = vcmp.ge.f32.partialorder %v2623_v52, 0.0  ;;  %v2653_v7 = vmul.f32 0.2, %v2621_v35  ;;  %v2655_v39 = vmul.f32 0.2, %v2623_v52  ;;  %3468 = vmatmul.bf16.vlgmr.msra.gmra.mxu0 %v12627_v49  ;;  %3526 = vmatmul.bf16.vlgmr.msra.gmra.mxu1 %v12627_v49 }
 0x513   :  { %vm2641_vm13 = vcmp.ge.f32.partialorder %v12630_v20, 0.0  ;;  %vm2643_vm14 = vcmp.ge.f32.partialorder %v12633_v17, 0.0  ;;  %v2657_v48 = vmul.f32 0.2, %v12630_v20  ;;  %v2659_v50 = vmul.f32 0.2, %v12633_v17  ;;  %3606 = vmatpush.bf16.msra.mxu2 %v9071_v40  ;;  %3636 = vmatpush.bf16.msrb.mxu1 %v8787_v4 }
 0x514   :  { %v2669_v37 = vsel %vm2637_vm9, %v2621_v35, %v2653_v7  ;;  %v2671_v57 = vsel %vm2639_vm10, %v2623_v52, %v2655_v39  ;;  %v10534_v46 = vld [vmem:[%s11418_s8 + $0x124] sm:$0xf0]  ;;  %v8752_v35 = vld [vmem:[%s11418_s8 + $0x128] sm:$0xf0]  ;;  %v12679_v15 = vadd.f32 %v12599_v31, %v2610_v24  ;;  %v12682_v21 = vadd.f32 %v12599_v31, %v2612_v27  ;;  %3664 = vmatpush.bf16.msra.mxu3 %v9075_v28 }
 0x515   :  { %v12639_v62 = vpack.c.bf16 %v2671_v57, %v2669_v37  ;;  %v9038_v52 = vld [vmem:[%s11418_s8 + $0x348] sm:$0xf]  ;;  %v2672_v16 = vsel %vm2640_vm11, %v12620_v32, %v2656_v12  ;;  %v2674_v7 = vsel %vm2642_vm12, %v12625_v0, %v2658_v11  ;;  %v10602_v37 = vld [vmem:[%s11418_s8 + $0x34c] sm:$0xf]  ;;  %v2673_v55 = vsel %vm2641_vm13, %v12630_v20, %v2657_v48 }
 0x516   :  { %v10606_v39 = vld [vmem:[%s11418_s8 + $0x364] sm:$0xf0]  ;;  %v9040_v57 = vld [vmem:[%s11418_s8 + $0x368] sm:$0xf0]  ;;  %v8751_v33 = vor.u32 %v10534_v46, %v8750_v22  ;;  %v8755_v13 = vor.u32 %v10530_v5, %v8752_v35  ;;  %v12696_v32 = vpack.c.bf16 %v2674_v7, %v2672_v16  ;;  %v2675_v0 = vsel %vm2643_vm14, %v12633_v17, %v2659_v50 }
 0x517   :  { %3497 = vmatmul.bf16.vlgmr.msrb.gmra.mxu2 %v12639_v62  ;;  %3555 = vmatmul.bf16.vlgmr.msrb.gmra.mxu3 %v12639_v62  ;;  %v9039_v63 = vor.u32 %v10606_v39, %v9038_v52  ;;  %v9043_v12 = vor.u32 %v10602_v37, %v9040_v57  ;;  %vm2644_vm15 = vcmp.ge.f32.partialorder %v12679_v15, 0.0  ;;  %vm2646_vm2 = vcmp.ge.f32.partialorder %v12682_v21, 0.0  ;;  %v10586_v43 = vld [vmem:[%s11418_s8 + $0x2cc] sm:$0xf]  ;;  %v8654_v23 = vld [vmem:[%s11418_s8 + $0x48] sm:$0xf] }
 0x518   :  { %v2660_v20 = vmul.f32 0.2, %v12679_v15  ;;  %v2662_v61 = vmul.f32 0.2, %v12682_v21  ;;  %v2611_v11 = vmul.f32 %v12603_v9, %v12461_v10  ;;  %v2613_v17 = vmul.f32 %v12603_v9, %v12470_v42  ;;  %3579 = vmatpush.bf16.msrb.mxu0 %v8751_v33  ;;  %3637 = vmatpush.bf16.msrb.mxu1 %v8755_v13  ;;  %v9006_v42 = vld [vmem:[%s11418_s8 + $0x308] sm:$0xf] }
 0x519   :  { %v12714_v19 = vpack.c.bf16 %v2675_v0, %v2673_v55  ;;  %v8719_v10 = vor.u32 %v10526_v51, %v8718_v36  ;;  %3607 = vmatpush.bf16.msra.mxu2 %v9039_v63  ;;  %3665 = vmatpush.bf16.msra.mxu3 %v9043_v12  ;;  %v8723_v48 = vor.u32 %v10522_v2, %v8720_v6  ;;  %v8976_v45 = vld [vmem:[%s11418_s8 + $0x2e8] sm:$0xf0]  ;;  %v8942_v46 = vld [vmem:[%s11418_s8 + $0x288] sm:$0xf]  ;;  %vm4561_vm14 = vcmask 130048  }
 0x51a   :  { %v9007_v50 = vor.u32 %v10598_v30, %v9006_v42  ;;  %v2629_v24 = vadd.f32 %v12607_v34, %v2611_v11  ;;  %v2631_v27 = vadd.f32 %v12607_v34, %v2613_v17  ;;  %v8687_v58 = vor.u32 %v10518_v29, %v8686_v47  ;;  %v10506_v8 = vld [vmem:[%s11418_s8 + $0x4c] sm:$0xf]  ;;  %v10582_v28 = vld [vmem:[%s11418_s8 + $0x2a4] sm:$0xf0] }
 0x51b   :  { %v8691_v44 = vor.u32 %v10514_v18, %v8688_v3  ;;  %v8975_v4 = vor.u32 %v10590_v1, %v8974_v53  ;;  %v8979_v40 = vor.u32 %v10586_v43, %v8976_v45  ;;  %v8656_v22 = vld [vmem:[%s11418_s8 + $0x68] sm:$0xf0]  ;;  %v2676_v52 = vsel %vm2644_vm15, %v12679_v15, %v2660_v20  ;;  %v8622_v55 = vld [vmem:[%s11418_s8 + $0x8] sm:$0xf]  ;;  %v10559_v45 = vld [vmem:[%s11418_s8 + $0x1ec] sm:$0xf0] }
 0x51c   :  { %3580 = vmatpush.bf16.msrb.mxu0 %v8719_v10  ;;  %3638 = vmatpush.bf16.msrb.mxu1 %v8723_v48  ;;  %v10578_v5 = vld [vmem:[%s11418_s8 + $0x28c] sm:$0xf]  ;;  %vm2645_vm3 = vcmp.ge.f32.partialorder %v2629_v24, 0.0  ;;  %vm2647_vm4 = vcmp.ge.f32.partialorder %v2631_v27, 0.0  ;;  %v2661_v16 = vmul.f32 0.2, %v2629_v24  ;;  %v2678_v7 = vsel %vm2646_vm2, %v12682_v21, %v2662_v61 }
 0x51d   :  { %3608 = vmatpush.bf16.msra.mxu2 %v9007_v50  ;;  %3666 = vmatpush.bf16.msra.mxu3 %v9011_v41  ;;  %v8944_v35 = vld [vmem:[%s11418_s8 + $0x2a8] sm:$0xf0]  ;;  %v2663_v39 = vmul.f32 0.2, %v2631_v27  ;;  %v8655_v37 = vor.u32 %v10510_v26, %v8654_v23  ;;  %v8659_v57 = vor.u32 %v10506_v8, %v8656_v22  ;;  %v10502_v15 = vld [vmem:[%s11418_s8 + $0x24] sm:$0xf0]  ;;  %v8943_v33 = vor.u32 %v10582_v28, %v8942_v46 }
 0x51e   :  { %v8947_v13 = vor.u32 %v10578_v5, %v8944_v35  ;;  %v10498_v0 = vld [vmem:[%s11418_s8 + $0xc] sm:$0xf]  ;;  %v8910_v12 = vld [vmem:[%s11418_s8 + $0x248] sm:$0xf]  ;;  %v12755_v21 = vpack.c.bf16 %v2678_v7, %v2676_v52  ;;  %v2677_v61 = vsel %vm2645_vm3, %v2629_v24, %v2661_v16  ;;  %v8623_v36 = vor.u32 %v10502_v15, %v8622_v55  ;;  %v10555_v23 = vld [vmem:[%s11418_s8 + $0x1d4] sm:$0xf] }
 0x51f   :  { %v8624_v63 = vld [vmem:[%s11418_s8 + $0x28] sm:$0xf0]  ;;  %v10574_v20 = vld [vmem:[%s11418_s8 + $0x264] sm:$0xf0]  ;;  %v2679_v2 = vsel %vm2647_vm4, %v2631_v27, %v2663_v39  ;;  %v2614_v42 = vmul.f32 %v12593_v56, %v12453_v14  ;;  %v2616_v30 = vmul.f32 %v12593_v56, %v12484_v54  ;;  %v2615_v25 = vmul.f32 %v12603_v9, %v12480_v38  ;;  %v10551_v8 = vld [vmem:[%s11418_s8 + $0x1ac] sm:$0xf0] }
 0x520   :  { %3581 = vmatpush.bf16.msrb.mxu0 %v8687_v58  ;;  %3639 = vmatpush.bf16.msrb.mxu1 %v8691_v44  ;;  %v10570_v11 = vld [vmem:[%s11418_s8 + $0x24c] sm:$0xf]  ;;  %v8627_v51 = vor.u32 %v10498_v0, %v8624_v63  ;;  %v8911_v10 = vor.u32 %v10574_v20, %v8910_v12  ;;  %v8878_v48 = vld [vmem:[%s11418_s8 + $0x208] sm:$0xf]  ;;  %v12770_v47 = vpack.c.bf16 %v2679_v2, %v2677_v61  ;;  %v8854_v44 = vld [vmem:[%s11418_s8 + $0x1d0] sm:$0xf] }
 0x521   :  { %3609 = vmatpush.bf16.msra.mxu2 %v8975_v4  ;;  %3667 = vmatpush.bf16.msra.mxu3 %v8979_v40  ;;  %v8912_v17 = vld [vmem:[%s11418_s8 + $0x268] sm:$0xf0]  ;;  %v10566_v50 = vld [vmem:[%s11418_s8 + $0x224] sm:$0xf0]  ;;  %v2617_v14 = vmul.f32 %v12603_v9, %v12496_v59  ;;  %v2632_v29 = vadd.f32 %v12599_v31, %v2614_v42  ;;  %v2634_v18 = vadd.f32 %v12599_v31, %v2616_v30  ;;  %v8856_v4 = vld [vmem:[%s11418_s8 + $0x1f0] sm:$0xf0] }
 0x522   :  { %3473 = vmatmul.bf16.gmra.mxu0 %v12696_v32  ;;  %3531 = vmatmul.bf16.gmra.mxu1 %v12696_v32  ;;  %v8915_v6 = vor.u32 %v10570_v11, %v8912_v17  ;;  %v8880_v41 = vld [vmem:[%s11418_s8 + $0x228] sm:$0xf0]  ;;  %v8879_v54 = vor.u32 %v10566_v50, %v8878_v48  ;;  %v2633_v38 = vadd.f32 %v12607_v34, %v2615_v25  ;;  %v8822_v40 = vld [vmem:[%s11418_s8 + $0x190] sm:$0xf]  ;;  %v10547_v46 = vld [vmem:[%s11418_s8 + $0x194] sm:$0xf] }
 0x523   :  { %v8883_v56 = vor.u32 %v10562_v60, %v8880_v41  ;;  %v2635_v3 = vadd.f32 %v12607_v34, %v2617_v14  ;;  %v2664_v24 = vmul.f32 0.2, %v2632_v29  ;;  %v2666_v59 = vmul.f32 0.2, %v2634_v18  ;;  %v8824_v28 = vld [vmem:[%s11418_s8 + $0x1b0] sm:$0xf0] }
 0x524   :  { %3582 = vmatpush.bf16.msrb.mxu0 %v8655_v37  ;;  %3640 = vmatpush.bf16.msrb.mxu1 %v8659_v57  ;;  %vm2648_vm5 = vcmp.ge.f32.partialorder %v2632_v29, 0.0  ;;  %vm2650_vm7 = vcmp.ge.f32.partialorder %v2634_v18, 0.0  ;;  %v2665_v9 = vmul.f32 0.2, %v2633_v38  ;;  %vm2649_vm8 = vcmp.ge.f32.partialorder %v2633_v38, 0.0 }
 0x525   :  { %3610 = vmatpush.bf16.msra.mxu2 %v8943_v33  ;;  %3668 = vmatpush.bf16.msra.mxu3 %v8947_v13  ;;  %v2667_v27 = vmul.f32 0.2, %v2635_v3  ;;  %v2680_v53 = vsel %vm2648_vm5, %v2632_v29, %v2664_v24  ;;  %v2682_v31 = vsel %vm2650_vm7, %v2634_v18, %v2666_v59  ;;  %vm2651_vm9 = vcmp.ge.f32.partialorder %v2635_v3, 0.0  ;;  %v9110_v5 = vld [vmem:[%s11418_s8 + $0x3d0] sm:$0xf] }
 0x526   :  { %v12781_v1 = vpack.c.bf16 %v2682_v31, %v2680_v53  ;;  %v2681_v34 = vsel %vm2649_vm8, %v2633_v38, %v2665_v9  ;;  %v8855_v26 = vor.u32 %v10559_v45, %v8854_v44  ;;  %v8859_v22 = vor.u32 %v10555_v23, %v8856_v4  ;;  %v10623_v35 = vld [vmem:[%s11418_s8 + $0x3ec] sm:$0xf0]  ;;  %v10619_v52 = vld [vmem:[%s11418_s8 + $0x3d4] sm:$0xf] }
 0x527   :  { %3502 = vmatmul.bf16.gmra.mxu2 %v12714_v19  ;;  %3560 = vmatmul.bf16.gmra.mxu3 %v12714_v19  ;;  %v2683_v43 = vsel %vm2651_vm9, %v2635_v3, %v2667_v27  ;;  %v8823_v16 = vor.u32 %v10551_v8, %v8822_v40  ;;  %v8827_v7 = vor.u32 %v10547_v46, %v8824_v28  ;;  %v9112_v37 = vld [vmem:[%s11418_s8 + $0x3f0] sm:$0xf0]  ;;  %v8790_v57 = vld [vmem:[%s11418_s8 + $0x150] sm:$0xf] }
 0x528   :  { %3583 = vmatpush.bf16.msrb.mxu0 %v8623_v36  ;;  %3641 = vmatpush.bf16.msrb.mxu1 %v8627_v51  ;;  %v12785_v58 = vpack.c.bf16 %v2683_v43, %v2681_v34  ;;  %v9111_v39 = vor.u32 %v10623_v35, %v9110_v5  ;;  %v10543_v55 = vld [vmem:[%s11418_s8 + $0x16c] sm:$0xf0]  ;;  %v9115_v15 = vor.u32 %v10619_v52, %v9112_v37  ;;  %v10539_v33 = vld [vmem:[%s11418_s8 + $0x154] sm:$0xf] }
 0x529   :  { %3611 = vmatpush.bf16.msra.mxu2 %v8911_v10  ;;  %3669 = vmatpush.bf16.msra.mxu3 %v8915_v6  ;;  %v8792_v13 = vld [vmem:[%s11418_s8 + $0x170] sm:$0xf0]  ;;  %v9078_v0 = vld [vmem:[%s11418_s8 + $0x390] sm:$0xf]  ;;  %v8791_v61 = vor.u32 %v10543_v55, %v8790_v57 }
 0x52a   :  { %v10615_v63 = vld [vmem:[%s11418_s8 + $0x3ac] sm:$0xf0]  ;;  %v10611_v12 = vld [vmem:[%s11418_s8 + $0x394] sm:$0xf]  ;;  %v8795_v36 = vor.u32 %v10539_v33, %v8792_v13 }
 0x52b   :  { %v9080_v20 = vld [vmem:[%s11418_s8 + $0x3b0] sm:$0xf0]  ;;  %v9079_v11 = vor.u32 %v10615_v63, %v9078_v0  ;;  %v9046_v51 = vld [vmem:[%s11418_s8 + $0x350] sm:$0xf] }
 0x52c   :  { %3692 = vmatpush.bf16.msra.mxu0 %v8855_v26  ;;  %3750 = vmatpush.bf16.msra.mxu1 %v8859_v22  ;;  %v9083_v17 = vor.u32 %v10611_v12, %v9080_v20  ;;  %v10607_v2 = vld [vmem:[%s11418_s8 + $0x36c] sm:$0xf0]  ;;  %v10603_v6 = vld [vmem:[%s11418_s8 + $0x354] sm:$0xf] }
 0x52d   :  { %3612 = vmatpush.bf16.msra.mxu2 %v8879_v54  ;;  %3670 = vmatpush.bf16.msra.mxu3 %v8883_v56  ;;  %v8758_v10 = vld [vmem:[%s11418_s8 + $0x110] sm:$0xf]  ;;  %v9048_v42 = vld [vmem:[%s11418_s8 + $0x370] sm:$0xf0]  ;;  %v9047_v60 = vor.u32 %v10607_v2, %v9046_v51 }
 0x52e   :  { %v10535_v30 = vld [vmem:[%s11418_s8 + $0x12c] sm:$0xf0]  ;;  %v10531_v48 = vld [vmem:[%s11418_s8 + $0x114] sm:$0xf]  ;;  %v9051_v25 = vor.u32 %v10603_v6, %v9048_v42 }
 0x52f   :  { %v8760_v50 = vld [vmem:[%s11418_s8 + $0x130] sm:$0xf0]  ;;  %v8759_v41 = vor.u32 %v10535_v30, %v8758_v10  ;;  %v8726_v54 = vld [vmem:[%s11418_s8 + $0xd0] sm:$0xf] }
 0x530   :  { %3693 = vmatpush.bf16.msra.mxu0 %v8823_v16  ;;  %3751 = vmatpush.bf16.msra.mxu1 %v8827_v7  ;;  %v8763_v14 = vor.u32 %v10531_v48, %v8760_v50  ;;  %v10527_v56 = vld [vmem:[%s11418_s8 + $0xec] sm:$0xf0]  ;;  %v10523_v29 = vld [vmem:[%s11418_s8 + $0xd4] sm:$0xf] }
 0x531   :  { %3721 = vmatpush.bf16.msrb.mxu2 %v9111_v39  ;;  %3779 = vmatpush.bf16.msrb.mxu3 %v9115_v15  ;;  %v8727_v18 = vor.u32 %v10527_v56, %v8726_v54  ;;  %v8728_v38 = vld [vmem:[%s11418_s8 + $0xf0] sm:$0xf0]  ;;  %v9014_v3 = vld [vmem:[%s11418_s8 + $0x310] sm:$0xf]  ;;  %v8862_v54 = vld [vmem:[%s11418_s8 + $0x1d8] sm:$0xf] }
 0x532   :  { %3478 = vmatmul.bf16.gmra.mxu0 %v12755_v21  ;;  %3536 = vmatmul.bf16.gmra.mxu1 %v12755_v21  ;;  %v10599_v24 = vld [vmem:[%s11418_s8 + $0x32c] sm:$0xf0]  ;;  %v8731_v59 = vor.u32 %v10523_v29, %v8728_v38  ;;  %v10595_v27 = vld [vmem:[%s11418_s8 + $0x314] sm:$0xf]  ;;  %v10560_v56 = vld [vmem:[%s11418_s8 + $0x1f4] sm:$0xf0] }
 0x533   :  { %v9015_v9 = vor.u32 %v10599_v24, %v9014_v3  ;;  %v9016_v53 = vld [vmem:[%s11418_s8 + $0x330] sm:$0xf0]  ;;  %v8694_v31 = vld [vmem:[%s11418_s8 + $0x90] sm:$0xf]  ;;  %v10556_v29 = vld [vmem:[%s11418_s8 + $0x1dc] sm:$0xf] }
 0x534   :  { %3694 = vmatpush.bf16.msra.mxu0 %v8791_v61  ;;  %3752 = vmatpush.bf16.msra.mxu1 %v8795_v36  ;;  %v9019_v34 = vor.u32 %v10595_v27, %v9016_v53  ;;  %v10519_v43 = vld [vmem:[%s11418_s8 + $0xac] sm:$0xf0]  ;;  %v10515_v44 = vld [vmem:[%s11418_s8 + $0x94] sm:$0xf]  ;;  %v8864_v38 = vld [vmem:[%s11418_s8 + $0x1f8] sm:$0xf0] }
 0x535   :  { %3722 = vmatpush.bf16.msrb.mxu2 %v9079_v11  ;;  %3780 = vmatpush.bf16.msrb.mxu3 %v9083_v17  ;;  %v8696_v45 = vld [vmem:[%s11418_s8 + $0xb0] sm:$0xf0]  ;;  %v8982_v23 = vld [vmem:[%s11418_s8 + $0x2d0] sm:$0xf]  ;;  %v8695_v40 = vor.u32 %v10519_v43, %v8694_v31  ;;  %v10552_v27 = vld [vmem:[%s11418_s8 + $0x1b4] sm:$0xf0] }
 0x536   :  { %v10591_v26 = vld [vmem:[%s11418_s8 + $0x2ec] sm:$0xf0]  ;;  %v10587_v4 = vld [vmem:[%s11418_s8 + $0x2d4] sm:$0xf]  ;;  %v8699_v8 = vor.u32 %v10515_v44, %v8696_v45  ;;  %v10548_v53 = vld [vmem:[%s11418_s8 + $0x19c] sm:$0xf] }
 0x537   :  { %3507 = vmatmul.bf16.gmra.mxu2 %v12770_v47  ;;  %3565 = vmatmul.bf16.gmra.mxu3 %v12770_v47  ;;  %v8983_v22 = vor.u32 %v10591_v26, %v8982_v23  ;;  %v8984_v46 = vld [vmem:[%s11418_s8 + $0x2f0] sm:$0xf0]  ;;  %v8662_v28 = vld [vmem:[%s11418_s8 + $0x50] sm:$0xf]  ;;  %v8832_v44 = vld [vmem:[%s11418_s8 + $0x1b8] sm:$0xf0] }
 0x538   :  { %3695 = vmatpush.bf16.msra.mxu0 %v8759_v41  ;;  %3753 = vmatpush.bf16.msra.mxu1 %v8763_v14  ;;  %v10511_v5 = vld [vmem:[%s11418_s8 + $0x6c] sm:$0xf0]  ;;  %v8987_v35 = vor.u32 %v10587_v4, %v8984_v46  ;;  %v10507_v52 = vld [vmem:[%s11418_s8 + $0x54] sm:$0xf]  ;;  %v9118_v45 = vld [vmem:[%s11418_s8 + $0x3d8] sm:$0xf] }
 0x539   :  { %3723 = vmatpush.bf16.msrb.mxu2 %v9047_v60  ;;  %3781 = vmatpush.bf16.msrb.mxu3 %v9051_v25  ;;  %v8664_v16 = vld [vmem:[%s11418_s8 + $0x70] sm:$0xf0]  ;;  %v8950_v7 = vld [vmem:[%s11418_s8 + $0x290] sm:$0xf]  ;;  %v8663_v15 = vor.u32 %v10511_v5, %v8662_v28  ;;  %v10624_v23 = vld [vmem:[%s11418_s8 + $0x3f4] sm:$0xf0] }
 0x53a   :  { %v10583_v39 = vld [vmem:[%s11418_s8 + $0x2ac] sm:$0xf0]  ;;  %v10579_v37 = vld [vmem:[%s11418_s8 + $0x294] sm:$0xf]  ;;  %v8667_v33 = vor.u32 %v10507_v52, %v8664_v16  ;;  %v9120_v46 = vld [vmem:[%s11418_s8 + $0x3f8] sm:$0xf0] }
 0x53b   :  { %v8952_v57 = vld [vmem:[%s11418_s8 + $0x2b0] sm:$0xf0]  ;;  %v8951_v55 = vor.u32 %v10583_v39, %v8950_v7  ;;  %v8630_v0 = vld [vmem:[%s11418_s8 + $0x10] sm:$0xf]  ;;  %v10544_v52 = vld [vmem:[%s11418_s8 + $0x174] sm:$0xf0] }
 0x53c   :  { %3696 = vmatpush.bf16.msra.mxu0 %v8727_v18  ;;  %3754 = vmatpush.bf16.msra.mxu1 %v8731_v59  ;;  %v8955_v13 = vor.u32 %v10579_v37, %v8952_v57  ;;  %v10503_v63 = vld [vmem:[%s11418_s8 + $0x2c] sm:$0xf0]  ;;  %v10499_v12 = vld [vmem:[%s11418_s8 + $0x14] sm:$0xf]  ;;  %v8863_v18 = vor.u32 %v10560_v56, %v8862_v54  ;;  %v8867_v59 = vor.u32 %v10556_v29, %v8864_v38  ;;  %v10540_v16 = vld [vmem:[%s11418_s8 + $0x15c] sm:$0xf] }
 0x53d   :  { %3724 = vmatpush.bf16.msrb.mxu2 %v9015_v9  ;;  %3782 = vmatpush.bf16.msrb.mxu3 %v9019_v34  ;;  %v8631_v20 = vor.u32 %v10503_v63, %v8630_v0  ;;  %v8632_v11 = vld [vmem:[%s11418_s8 + $0x30] sm:$0xf0]  ;;  %v8918_v17 = vld [vmem:[%s11418_s8 + $0x250] sm:$0xf]  ;;  %v8830_v9 = vld [vmem:[%s11418_s8 + $0x198] sm:$0xf] }
 0x53e   :  { %v10575_v61 = vld [vmem:[%s11418_s8 + $0x26c] sm:$0xf0]  ;;  %v8635_v36 = vor.u32 %v10499_v12, %v8632_v11  ;;  %v10571_v2 = vld [vmem:[%s11418_s8 + $0x254] sm:$0xf]  ;;  %v8831_v43 = vor.u32 %v10552_v27, %v8830_v9  ;;  %v8800_v39 = vld [vmem:[%s11418_s8 + $0x178] sm:$0xf0] }
 0x53f   :  { %v8919_v51 = vor.u32 %v10575_v61, %v8918_v17  ;;  %v8920_v10 = vld [vmem:[%s11418_s8 + $0x270] sm:$0xf0]  ;;  %v8886_v42 = vld [vmem:[%s11418_s8 + $0x210] sm:$0xf]  ;;  %v9086_v37 = vld [vmem:[%s11418_s8 + $0x398] sm:$0xf] }
 0x540   :  { %3697 = vmatpush.bf16.msra.mxu0 %v8695_v40  ;;  %3755 = vmatpush.bf16.msra.mxu1 %v8699_v8  ;;  %v8923_v6 = vor.u32 %v10571_v2, %v8920_v10  ;;  %v10567_v30 = vld [vmem:[%s11418_s8 + $0x22c] sm:$0xf0]  ;;  %v10563_v48 = vld [vmem:[%s11418_s8 + $0x214] sm:$0xf]  ;;  %v8835_v40 = vor.u32 %v10548_v53, %v8832_v44  ;;  %v9119_v8 = vor.u32 %v10624_v23, %v9118_v45  ;;  %v10616_v57 = vld [vmem:[%s11418_s8 + $0x3b4] sm:$0xf0] }
 0x541   :  { %3725 = vmatpush.bf16.msrb.mxu2 %v8983_v22  ;;  %3783 = vmatpush.bf16.msrb.mxu3 %v8987_v35  ;;  %v8888_v50 = vld [vmem:[%s11418_s8 + $0x230] sm:$0xf0]  ;;  %v8887_v60 = vor.u32 %v10567_v30, %v8886_v42  ;;  %v10620_v22 = vld [vmem:[%s11418_s8 + $0x3dc] sm:$0xf]  ;;  %v8798_v35 = vld [vmem:[%s11418_s8 + $0x158] sm:$0xf] }
 0x542   :  { %3483 = vmatmul.bf16.gmra.mxu0 %v12781_v1  ;;  %3541 = vmatmul.bf16.gmra.mxu1 %v12781_v1  ;;  %v8891_v25 = vor.u32 %v10563_v48, %v8888_v50  ;;  %v9123_v28 = vor.u32 %v10620_v22, %v9120_v46  ;;  %v8799_v7 = vor.u32 %v10544_v52, %v8798_v35  ;;  %v10612_v0 = vld [vmem:[%s11418_s8 + $0x39c] sm:$0xf]  ;;  %v8766_v12 = vld [vmem:[%s11418_s8 + $0x118] sm:$0xf] }
 0x543   :  { %v9088_v63 = vld [vmem:[%s11418_s8 + $0x3b8] sm:$0xf0]  ;;  %v10536_v61 = vld [vmem:[%s11418_s8 + $0x134] sm:$0xf0] }
 0x544   :  { %3698 = vmatpush.bf16.msra.mxu0 %v8663_v15  ;;  %3756 = vmatpush.bf16.msra.mxu1 %v8667_v33  ;;  %v8803_v33 = vor.u32 %v10540_v16, %v8800_v39  ;;  %v9091_v17 = vor.u32 %v10612_v0, %v9088_v63  ;;  %v8767_v2 = vor.u32 %v10536_v61, %v8766_v12  ;;  %v9054_v10 = vld [vmem:[%s11418_s8 + $0x358] sm:$0xf]  ;;  %v10604_v42 = vld [vmem:[%s11418_s8 + $0x35c] sm:$0xf] }
 0x545   :  { %3726 = vmatpush.bf16.msrb.mxu2 %v8951_v55  ;;  %3784 = vmatpush.bf16.msrb.mxu3 %v8955_v13  ;;  %v9087_v13 = vor.u32 %v10616_v57, %v9086_v37  ;;  %v9056_v50 = vld [vmem:[%s11418_s8 + $0x378] sm:$0xf0]  ;;  %v9022_v29 = vld [vmem:[%s11418_s8 + $0x318] sm:$0xf] }
 0x546   :  { %v8736_v56 = vld [vmem:[%s11418_s8 + $0xf8] sm:$0xf0]  ;;  %v10520_v23 = vld [vmem:[%s11418_s8 + $0xb4] sm:$0xf0] }
 0x547   :  { %3512 = vmatmul.bf16.gmra.mxu2 %v12785_v58  ;;  %3570 = vmatmul.bf16.gmra.mxu3 %v12785_v58  ;;  %v10596_v53 = vld [vmem:[%s11418_s8 + $0x31c] sm:$0xf]  ;;  %v10592_v22 = vld [vmem:[%s11418_s8 + $0x2f4] sm:$0xf0] }
 0x548   :  { %3699 = vmatpush.bf16.msra.mxu0 %v8631_v20  ;;  %3757 = vmatpush.bf16.msra.mxu1 %v8635_v36  ;;  %v10532_v36 = vld [vmem:[%s11418_s8 + $0x11c] sm:$0xf]  ;;  %v10512_v39 = vld [vmem:[%s11418_s8 + $0x74] sm:$0xf0] }
 0x549   :  { %3727 = vmatpush.bf16.msrb.mxu2 %v8919_v51  ;;  %3785 = vmatpush.bf16.msrb.mxu3 %v8923_v6  ;;  %v8768_v51 = vld [vmem:[%s11418_s8 + $0x138] sm:$0xf0]  ;;  %v10608_v6 = vld [vmem:[%s11418_s8 + $0x374] sm:$0xf0] }
 0x54a   :  { %v8771_v30 = vor.u32 %v10532_v36, %v8768_v51  ;;  %v9055_v48 = vor.u32 %v10608_v6, %v9054_v10  ;;  %v10588_v46 = vld [vmem:[%s11418_s8 + $0x2dc] sm:$0xf]  ;;  %v10584_v0 = vld [vmem:[%s11418_s8 + $0x2b4] sm:$0xf0] }
 0x54b   :  { %v8992_v52 = vld [vmem:[%s11418_s8 + $0x2f8] sm:$0xf0] }
 0x54c   :  { %v8995_v16 = vor.u32 %v10588_v46, %v8992_v52  ;;  %v10508_v37 = vld [vmem:[%s11418_s8 + $0x5c] sm:$0xf] }
 0x54d   :  { %3728 = vmatpush.bf16.msrb.mxu2 %v8887_v60  ;;  %3786 = vmatpush.bf16.msrb.mxu3 %v8891_v25  ;;  %v9059_v60 = vor.u32 %v10604_v42, %v9056_v50  ;;  %v8734_v25 = vld [vmem:[%s11418_s8 + $0xd8] sm:$0xf]  ;;  %v10580_v36 = vld [vmem:[%s11418_s8 + $0x29c] sm:$0xf] }
 0x54e   :  { %v8960_v51 = vld [vmem:[%s11418_s8 + $0x2b8] sm:$0xf0] }
 0x54f   :  { %v8963_v42 = vor.u32 %v10580_v36, %v8960_v51  ;;  %v8640_v50 = vld [vmem:[%s11418_s8 + $0x38] sm:$0xf0] }
 0x552   :  { %3584 = vmatmul.bf16.vlgmr.msrb.gmra.mxu0 %v12627_v49  ;;  %3642 = vmatmul.bf16.vlgmr.msrb.gmra.mxu1 %v12627_v49 }
 0x553   :  { %3808 = vmatpush.bf16.msrb.mxu0 %v8863_v18  ;;  %3866 = vmatpush.bf16.msrb.mxu1 %v8867_v59  ;;  %v10600_v18 = vld [vmem:[%s11418_s8 + $0x334] sm:$0xf0] }
 0x554   :  { %v9023_v27 = vor.u32 %v10600_v18, %v9022_v29 }
 0x557   :  { %3613 = vmatmul.bf16.vlgmr.msra.gmra.mxu2 %v12639_v62  ;;  %3671 = vmatmul.bf16.vlgmr.msra.gmra.mxu3 %v12639_v62 }
 0x558   :  { %3837 = vmatpush.bf16.msra.mxu2 %v9119_v8  ;;  %3809 = vmatpush.bf16.msrb.mxu0 %v8831_v43  ;;  %v8990_v8 = vld [vmem:[%s11418_s8 + $0x2d8] sm:$0xf] }
 0x559   :  { %3895 = vmatpush.bf16.msra.mxu3 %v9123_v28  ;;  %3867 = vmatpush.bf16.msrb.mxu1 %v8835_v40  ;;  %v8991_v35 = vor.u32 %v10592_v22, %v8990_v8 }
 0x55c   :  { %3810 = vmatpush.bf16.msrb.mxu0 %v8799_v7  ;;  %3838 = vmatpush.bf16.msra.mxu2 %v9087_v13  ;;  %v8670_v7 = vld [vmem:[%s11418_s8 + $0x58] sm:$0xf] }
 0x55d   :  { %3868 = vmatpush.bf16.msrb.mxu1 %v8803_v33  ;;  %3896 = vmatpush.bf16.msra.mxu3 %v9091_v17  ;;  %v8671_v57 = vor.u32 %v10512_v39, %v8670_v7  ;;  %v8672_v33 = vld [vmem:[%s11418_s8 + $0x78] sm:$0xf0]  ;;  %v8958_v13 = vld [vmem:[%s11418_s8 + $0x298] sm:$0xf] }
 0x55e   :  { %v8675_v17 = vor.u32 %v10508_v37, %v8672_v33  ;;  %v8959_v61 = vor.u32 %v10584_v0, %v8958_v13 }
 0x560   :  { %3811 = vmatpush.bf16.msrb.mxu0 %v8767_v2  ;;  %3839 = vmatpush.bf16.msra.mxu2 %v9055_v48  ;;  %v8638_v2 = vld [vmem:[%s11418_s8 + $0x18] sm:$0xf]  ;;  %v10500_v48 = vld [vmem:[%s11418_s8 + $0x1c] sm:$0xf] }
 0x561   :  { %3869 = vmatpush.bf16.msrb.mxu1 %v8771_v30  ;;  %3897 = vmatpush.bf16.msra.mxu3 %v9059_v60  ;;  %v10504_v30 = vld [vmem:[%s11418_s8 + $0x34] sm:$0xf0] }
 0x562   :  { %3589 = vmatmul.bf16.gmra.mxu0 %v12696_v32  ;;  %3647 = vmatmul.bf16.gmra.mxu1 %v12696_v32  ;;  %v8639_v60 = vor.u32 %v10504_v30, %v8638_v2 }
 0x564   :  { %3840 = vmatpush.bf16.msra.mxu2 %v9023_v27  ;;  %v10568_v27 = vld [vmem:[%s11418_s8 + $0x234] sm:$0xf0] }
 0x567   :  { %3618 = vmatmul.bf16.gmra.mxu2 %v12714_v19  ;;  %3676 = vmatmul.bf16.gmra.mxu3 %v12714_v19 }
 0x568   :  { %3841 = vmatpush.bf16.msra.mxu2 %v8991_v35 }
 0x56c   :  { %3842 = vmatpush.bf16.msra.mxu2 %v8959_v61 }
 0x572   :  { %3594 = vmatmul.bf16.gmra.mxu0 %v12755_v21  ;;  %3652 = vmatmul.bf16.gmra.mxu1 %v12755_v21 }
 0x577   :  { %3623 = vmatmul.bf16.gmra.mxu2 %v12770_v47  ;;  %3681 = vmatmul.bf16.gmra.mxu3 %v12770_v47 }
 0x582   :  { %3599 = vmatmul.bf16.gmra.mxu0 %v12781_v1  ;;  %3657 = vmatmul.bf16.gmra.mxu1 %v12781_v1 }
 0x587   :  { %3628 = vmatmul.bf16.gmra.mxu2 %v12785_v58  ;;  %3686 = vmatmul.bf16.gmra.mxu3 %v12785_v58 }
 0x58f   :  { %v3469_v41 = vpop.f32.mrf.mxu0  ;;  %v3527_v14 = vpop.f32.mrf.mxu1 }
 0x592   :  { %3700 = vmatmul.bf16.vlgmr.msra.gmra.mxu0 %v12627_v49  ;;  %3758 = vmatmul.bf16.vlgmr.msra.gmra.mxu1 %v12627_v49 }
 0x597   :  { %3729 = vmatmul.bf16.vlgmr.msrb.gmra.mxu2 %v12639_v62  ;;  %3787 = vmatmul.bf16.vlgmr.msrb.gmra.mxu3 %v12639_v62  ;;  %v12877_v3 = vpop.f32.mrf.mxu0  ;;  %v12879_v24 = vpop.f32.mrf.mxu1 }
 0x59a   :  { %v3498_v31 = vpop.f32.mrf.mxu2  ;;  %v3556_v34 = vpop.f32.mrf.mxu3 }
 0x59b   :  { %v3499_v26 = vadd.f32 %v3498_v31, %v3469_v41  ;;  %v3557_v4 = vadd.f32 %v3556_v34, %v3527_v14  ;;  %v10528_v41 = vld [vmem:[%s11418_s8 + $0xf4] sm:$0xf0]  ;;  %v10524_v14 = vld [vmem:[%s11418_s8 + $0xdc] sm:$0xf] }
 0x59c   :  { %v8735_v54 = vor.u32 %v10528_v41, %v8734_v25  ;;  %v8739_v9 = vor.u32 %v10524_v14, %v8736_v56  ;;  %v9024_v31 = vld [vmem:[%s11418_s8 + $0x338] sm:$0xf0]  ;;  %v8702_v34 = vld [vmem:[%s11418_s8 + $0x98] sm:$0xf]  ;;  %v8643_v56 = vor.u32 %v10500_v48, %v8640_v50 }
 0x59d   :  { %v12889_v5 = vpack.c.bf16 %v3557_v4, %v3499_v26  ;;  %v9027_v45 = vor.u32 %v10596_v53, %v9024_v31  ;;  %v10516_v26 = vld [vmem:[%s11418_s8 + $0x9c] sm:$0xf]  ;;  %v8703_v40 = vor.u32 %v10520_v23, %v8702_v34  ;;  %v8926_v25 = vld [vmem:[%s11418_s8 + $0x258] sm:$0xf] }
 0x59e   :  { %3812 = vmatpush.bf16.msrb.mxu0 %v8735_v54  ;;  %v8704_v4 = vld [vmem:[%s11418_s8 + $0xb8] sm:$0xf0]  ;;  %3870 = vmatpush.bf16.msrb.mxu1 %v8739_v9  ;;  %v10576_v41 = vld [vmem:[%s11418_s8 + $0x274] sm:$0xf0] }
 0x59f   :  { %v12897_v55 = vpop.f32.mrf.mxu0  ;;  %v12899_v15 = vpop.f32.mrf.mxu1  ;;  %v8707_v28 = vor.u32 %v10516_v26, %v8704_v4  ;;  %3898 = vmatpush.bf16.msra.mxu3 %v9027_v45  ;;  %v10572_v14 = vld [vmem:[%s11418_s8 + $0x25c] sm:$0xf]  ;;  %v8927_v29 = vor.u32 %v10576_v41, %v8926_v25  ;;  %v8894_v9 = vld [vmem:[%s11418_s8 + $0x218] sm:$0xf] }
 0x5a0   :  { %v8928_v54 = vld [vmem:[%s11418_s8 + $0x278] sm:$0xf0]  ;;  %v8895_v23 = vor.u32 %v10568_v27, %v8894_v9 }
 0x5a1   :  { %v8931_v18 = vor.u32 %v10572_v14, %v8928_v54  ;;  %v10564_v53 = vld [vmem:[%s11418_s8 + $0x21c] sm:$0xf]  ;;  %3843 = vmatpush.bf16.msra.mxu2 %v8927_v29 }
 0x5a2   :  { %v12904_v20 = vpop.f32.mrf.mxu2  ;;  %v12906_v11 = vpop.f32.mrf.mxu3  ;;  %3705 = vmatmul.bf16.gmra.mxu0 %v12696_v32  ;;  %3763 = vmatmul.bf16.gmra.mxu1 %v12696_v32  ;;  %v8896_v31 = vld [vmem:[%s11418_s8 + $0x238] sm:$0xf0]  ;;  %s14184_s8 = sld [smem:[#allocation16_spill]] }
 0x5a3   :  { %3813 = vmatpush.bf16.msrb.mxu0 %v8703_v40  ;;  %3871 = vmatpush.bf16.msrb.mxu1 %v8707_v28  ;;  %v8899_v40 = vor.u32 %v10564_v53, %v8896_v31 }
 0x5a4   :  { %3899 = vmatpush.bf16.msra.mxu3 %v8995_v16 }
 0x5a5   :  { %3844 = vmatpush.bf16.msra.mxu2 %v8895_v23 }
 0x5a7   :  { %3734 = vmatmul.bf16.gmra.mxu2 %v12714_v19  ;;  %3792 = vmatmul.bf16.gmra.mxu3 %v12714_v19  ;;  %v12925_v38 = vpop.f32.mrf.mxu0  ;;  %v12927_v59 = vpop.f32.mrf.mxu1 }
 0x5a8   :  { %3814 = vmatpush.bf16.msrb.mxu0 %v8671_v57  ;;  %3872 = vmatpush.bf16.msrb.mxu1 %v8675_v17 }
 0x5a9   :  { %3900 = vmatpush.bf16.msra.mxu3 %v8963_v42 }
 0x5aa   :  { %v12932_v43 = vpop.f32.mrf.mxu2  ;;  %v12934_v44 = vpop.f32.mrf.mxu3 }
 0x5ac   :  { %3815 = vmatpush.bf16.msrb.mxu0 %v8639_v60  ;;  %3873 = vmatpush.bf16.msrb.mxu1 %v8643_v56 }
 0x5ad   :  { %3901 = vmatpush.bf16.msra.mxu3 %v8931_v18 }
 0x5af   :  { %v12949_v63 = vpop.f32.mrf.mxu0  ;;  %v12951_v12 = vpop.f32.mrf.mxu1 }
 0x5b1   :  { %3902 = vmatpush.bf16.msra.mxu3 %v8899_v40 }
 0x5b2   :  { %v12956_v10 = vpop.f32.mrf.mxu2  ;;  %v12958_v6 = vpop.f32.mrf.mxu3  ;;  %3710 = vmatmul.bf16.gmra.mxu0 %v12755_v21  ;;  %3768 = vmatmul.bf16.gmra.mxu1 %v12755_v21 }
 0x5b3   :  { %v3506_v48 = vadd.f32 %v12956_v10, %v12925_v38  ;;  %v3564_v50 = vadd.f32 %v12958_v6, %v12927_v59 }
 0x5b5   :  { %v3936_v59 = vpack.c.bf16 %v3564_v50, %v3506_v48 }
 0x5b7   :  { %3739 = vmatmul.bf16.gmra.mxu2 %v12770_v47  ;;  %3797 = vmatmul.bf16.gmra.mxu3 %v12770_v47  ;;  %v3481_v34 = vpop.f32.mrf.mxu0  ;;  %v3539_v45 = vpop.f32.mrf.mxu1  ;;  %v4084_v23 = vunpack.c.h.b16 %v3936_v59 }
 0x5ba   :  { %v3508_v26 = vpop.f32.mrf.mxu2  ;;  %v3566_v4 = vpop.f32.mrf.mxu3 }
 0x5bb   :  { %v3509_v17 = vadd.f32 %v3508_v26, %v12949_v63  ;;  %v3567_v61 = vadd.f32 %v3566_v4, %v12951_v12  ;;  %v3504_v63 = vadd.f32 %v12932_v43, %v12897_v55  ;;  %v3562_v12 = vadd.f32 %v12934_v44, %v12899_v15 }
 0x5bc   :  { %v3501_v15 = vadd.f32 %v12904_v20, %v12877_v3  ;;  %v3559_v44 = vadd.f32 %v12906_v11, %v12879_v24 }
 0x5bd   :  { %v3940_v41 = vpack.c.bf16 %v3567_v61, %v3509_v17  ;;  %v3932_v18 = vpack.c.bf16 %v3562_v12, %v3504_v63 }
 0x5bf   :  { %v3484_v8 = vpop.f32.mrf.mxu0  ;;  %v3542_v22 = vpop.f32.mrf.mxu1  ;;  %v4085_v53 = vunpack.c.l.b16 %v3940_v41  ;;  %v4081_v3 = vunpack.c.l.b16 %v3932_v18  ;;  %v4082_v20 = vunpack.c.h.b16 %v3932_v18 }
 0x5c2   :  { %v3510_v46 = vpop.f32.mrf.mxu2  ;;  %v3568_v28 = vpop.f32.mrf.mxu3  ;;  %3715 = vmatmul.bf16.gmra.mxu0 %v12781_v1  ;;  %3773 = vmatmul.bf16.gmra.mxu1 %v12781_v1 }
 0x5c3   :  { %v3511_v57 = vadd.f32 %v3510_v46, %v3481_v34  ;;  %v3569_v33 = vadd.f32 %v3568_v28, %v3539_v45  ;;  %v4083_v45 = vunpack.c.l.b16 %v3936_v59  ;;  %v4096_v46 = vpack.c.b16 %v4084_v23, %v4082_v20 }
 0x5c5   :  { %v3944_v60 = vpack.c.bf16 %v3569_v33, %v3511_v57 }
 0x5c7   :  { %3744 = vmatmul.bf16.gmra.mxu2 %v12785_v58  ;;  %3802 = vmatmul.bf16.gmra.mxu3 %v12785_v58  ;;  %v3486_v35 = vpop.f32.mrf.mxu0  ;;  %v3544_v52 = vpop.f32.mrf.mxu1  ;;  %v4087_v10 = vunpack.c.l.b16 %v3944_v60 }
 0x5c9   :  { %v4097_v4 = vpack.c.b16 %v4087_v10, %v4085_v53 }
 0x5ca   :  { %v3513_v16 = vpop.f32.mrf.mxu2  ;;  %v3571_v7 = vpop.f32.mrf.mxu3 }
 0x5cb   :  { %v3514_v39 = vadd.f32 %v3513_v16, %v3484_v8  ;;  %v3572_v37 = vadd.f32 %v3571_v7, %v3542_v22  ;;  %v3928_v8 = vpack.c.bf16 %v3559_v44, %v3501_v15  ;;  %v4095_v22 = vpack.c.b16 %v4083_v45, %v4081_v3 }
 0x5cc   :  { %v4077_v7 = vunpack.c.l.b16 %v12889_v5 }
 0x5cd   :  { %v3948_v2 = vpack.c.bf16 %v3572_v37, %v3514_v39  ;;  %v4079_v28 = vunpack.c.l.b16 %v3928_v8  ;;  %v4078_v39 = vunpack.c.h.b16 %v12889_v5 }
 0x5cf   :  { %v3585_v13 = vpop.f32.mrf.mxu0  ;;  %v3643_v0 = vpop.f32.mrf.mxu1  ;;  %v4089_v14 = vunpack.c.l.b16 %v3948_v2  ;;  %v4090_v54 = vunpack.c.h.b16 %v3948_v2  ;;  %v4093_v37 = vpack.c.b16 %v4079_v28, %v4077_v7 }
 0x5d2   :  { %v3515_v36 = vpop.f32.mrf.mxu2  ;;  %v3573_v51 = vpop.f32.mrf.mxu3  ;;  %3816 = vmatmul.bf16.vlgmr.msrb.gmra.mxu0 %v12627_v49  ;;  %3874 = vmatmul.bf16.vlgmr.msrb.gmra.mxu1 %v12627_v49  ;;  %v4088_v49 = vunpack.c.h.b16 %v3944_v60 }
 0x5d3   :  { %v3516_v42 = vadd.f32 %v3515_v36, %v3486_v35  ;;  %v3574_v30 = vadd.f32 %v3573_v51, %v3544_v52  ;;  %v4080_v35 = vunpack.c.h.b16 %v3928_v8 }
 0x5d5   :  { %v3952_v25 = vpack.c.bf16 %v3574_v30, %v3516_v42  ;;  %v4094_v57 = vpack.c.b16 %v4080_v35, %v4078_v39 }
 0x5d7   :  { %v4091_v56 = vunpack.c.l.b16 %v3952_v25  ;;  %v4092_v38 = vunpack.c.h.b16 %v3952_v25  ;;  %3845 = vmatmul.bf16.vlgmr.msra.gmra.mxu2 %v12639_v62  ;;  %3903 = vmatmul.bf16.vlgmr.msra.gmra.mxu3 %v12639_v62  ;;  %v12993_v6 = vpop.f32.mrf.mxu0  ;;  %v12995_v29 = vpop.f32.mrf.mxu1  ;;  %v4086_v62 = vunpack.c.h.b16 %v3940_v41 }
 0x5d9   :  { %v4099_v55 = vpack.c.b16 %v4091_v56, %v4089_v14  ;;  %v4100_v43 = vpack.c.b16 %v4092_v38, %v4090_v54  ;;  %v4098_v40 = vpack.c.b16 %v4088_v49, %v4086_v62 }
 0x5da   :  { %v3614_v9 = vpop.f32.mrf.mxu2  ;;  %v3672_v27 = vpop.f32.mrf.mxu3 }
 0x5db   :  { %v3615_v31 = vadd.f32 %v3614_v9, %v3585_v13  ;;  %v3673_v34 = vadd.f32 %v3672_v27, %v3643_v0  ;;  %4119 = vmatpush.bf16.msra.mxu1 %v4099_v55  ;;  %4138 = vmatpush.bf16.msrb.mxu3 %v4100_v43 }
 0x5dd   :  { %v13001_v26 = vpack.c.bf16 %v3673_v34, %v3615_v31 }
 0x5df   :  { %4120 = vmatpush.bf16.msra.mxu1 %v4097_v4  ;;  %4139 = vmatpush.bf16.msrb.mxu3 %v4098_v40  ;;  %v13003_v24 = vpop.f32.mrf.mxu0  ;;  %v13005_v11 = vpop.f32.mrf.mxu1 }
 0x5e2   :  { %v13007_v52 = vpop.f32.mrf.mxu2  ;;  %v13009_v16 = vpop.f32.mrf.mxu3  ;;  %3821 = vmatmul.bf16.gmra.mxu0 %v12696_v32  ;;  %3879 = vmatmul.bf16.gmra.mxu1 %v12696_v32 }
 0x5e3   :  { %4121 = vmatpush.bf16.msra.mxu1 %v4095_v22  ;;  %4140 = vmatpush.bf16.msrb.mxu3 %v4096_v46  ;;  %v3617_v4 = vadd.f32 %v13007_v52, %v12993_v6  ;;  %v3675_v40 = vadd.f32 %v13009_v16, %v12995_v29 }
 0x5e5   :  { %v3929_v6 = vpack.c.bf16 %v3675_v40, %v3617_v4 }
 0x5e7   :  { %3850 = vmatmul.bf16.gmra.mxu2 %v12714_v19  ;;  %3908 = vmatmul.bf16.gmra.mxu3 %v12714_v19  ;;  %v3592_v33 = vpop.f32.mrf.mxu0  ;;  %v3650_v13 = vpop.f32.mrf.mxu1 }
 0x5e8   :  { %4122 = vmatpush.bf16.msra.mxu1 %v4093_v37  ;;  %4141 = vmatpush.bf16.msrb.mxu3 %v4094_v57 }
 0x5ea   :  { %v3619_v0 = vpop.f32.mrf.mxu2  ;;  %v3677_v17 = vpop.f32.mrf.mxu3 }
 0x5eb   :  { %v3620_v27 = vadd.f32 %v3619_v0, %v13003_v24  ;;  %v3678_v53 = vadd.f32 %v3677_v17, %v13005_v11  ;;  %v3985_v17 = vunpack.c.l.b16 %v3929_v6 }
 0x5ed   :  { %v3933_v7 = vpack.c.bf16 %v3678_v53, %v3620_v27 }
 0x5ef   :  { %v3595_v61 = vpop.f32.mrf.mxu0  ;;  %v3653_v36 = vpop.f32.mrf.mxu1  ;;  %v3988_v0 = vunpack.c.h.b16 %v3933_v7 }
 0x5f2   :  { %v3621_v51 = vpop.f32.mrf.mxu2  ;;  %v3679_v5 = vpop.f32.mrf.mxu3  ;;  %3826 = vmatmul.bf16.gmra.mxu0 %v12755_v21  ;;  %3884 = vmatmul.bf16.gmra.mxu1 %v12755_v21 }
 0x5f3   :  { %v3622_v44 = vadd.f32 %v3621_v51, %v3592_v33 }
 0x5f7   :  { %3855 = vmatmul.bf16.gmra.mxu2 %v12770_v47  ;;  %3913 = vmatmul.bf16.gmra.mxu3 %v12770_v47  ;;  %v3597_v32 = vpop.f32.mrf.mxu0  ;;  %v3655_v19 = vpop.f32.mrf.mxu1 }
 0x5fa   :  { %v3624_v2 = vpop.f32.mrf.mxu2  ;;  %v3682_v42 = vpop.f32.mrf.mxu3 }
 0x5fb   :  { %v3625_v59 = vadd.f32 %v3624_v2, %v3595_v61  ;;  %v3683_v10 = vadd.f32 %v3682_v42, %v3653_v36  ;;  %v3986_v61 = vunpack.c.h.b16 %v3929_v6  ;;  %v3983_v42 = vunpack.c.l.b16 %v13001_v26 }
 0x5fd   :  { %v3941_v62 = vpack.c.bf16 %v3683_v10, %v3625_v59 }
 0x5ff   :  { %v3600_v30 = vpop.f32.mrf.mxu0  ;;  %v3658_v48 = vpop.f32.mrf.mxu1  ;;  %v3991_v39 = vunpack.c.l.b16 %v3941_v62  ;;  %v3992_v37 = vunpack.c.h.b16 %v3941_v62 }
 0x602   :  { %v3626_v50 = vpop.f32.mrf.mxu2  ;;  %v3684_v60 = vpop.f32.mrf.mxu3  ;;  %3831 = vmatmul.bf16.gmra.mxu0 %v12781_v1  ;;  %3889 = vmatmul.bf16.gmra.mxu1 %v12781_v1 }
 0x603   :  { %v3627_v14 = vadd.f32 %v3626_v50, %v3597_v32  ;;  %v3685_v54 = vadd.f32 %v3684_v60, %v3655_v19 }
 0x605   :  { %v3945_v18 = vpack.c.bf16 %v3685_v54, %v3627_v14 }
 0x607   :  { %3860 = vmatmul.bf16.gmra.mxu2 %v12785_v58  ;;  %3918 = vmatmul.bf16.gmra.mxu3 %v12785_v58  ;;  %v3602_v21 = vpop.f32.mrf.mxu0  ;;  %v3660_v25 = vpop.f32.mrf.mxu1  ;;  %v3680_v58 = vadd.f32 %v3679_v5, %v3650_v13  ;;  %v3993_v3 = vunpack.c.l.b16 %v3945_v18  ;;  %v3994_v20 = vunpack.c.h.b16 %v3945_v18  ;;  %v3987_v13 = vunpack.c.l.b16 %v3933_v7 }
 0x609   :  { %v3937_v8 = vpack.c.bf16 %v3680_v58, %v3622_v44  ;;  %v4003_v16 = vpack.c.b16 %v3993_v3, %v3991_v39  ;;  %v4004_v33 = vpack.c.b16 %v3994_v20, %v3992_v37  ;;  %v10627_v44 = vld [vmem:[%s11413_s3 + $0x10] sm:$0xff] }
 0x60a   :  { %v3629_v63 = vpop.f32.mrf.mxu2  ;;  %v3687_v47 = vpop.f32.mrf.mxu3 }
 0x60b   :  { %v3630_v12 = vadd.f32 %v3629_v63, %v3600_v30  ;;  %v3688_v41 = vadd.f32 %v3687_v47, %v3658_v48  ;;  %v3989_v29 = vunpack.c.l.b16 %v3937_v8  ;;  %v3990_v52 = vunpack.c.h.b16 %v3937_v8 }
 0x60c   :  { %v3984_v30 = vunpack.c.h.b16 %v13001_v26  ;;  %v3999_v48 = vpack.c.b16 %v3985_v17, %v3983_v42 }
 0x60d   :  { %v3949_v1 = vpack.c.bf16 %v3688_v41, %v3630_v12  ;;  %v4001_v5 = vpack.c.b16 %v3989_v29, %v3987_v13  ;;  %v4002_v32 = vpack.c.b16 %v3990_v52, %v3988_v0 }
 0x60e   :  { %v4000_v50 = vpack.c.b16 %v3986_v61, %v3984_v30 }
 0x60f   :  { %v13025_v56 = vpop.f32.mrf.mxu0  ;;  %v3759_v38 = vpop.f32.mrf.mxu1  ;;  %v3995_v31 = vunpack.c.l.b16 %v3949_v1  ;;  %v3996_v34 = vunpack.c.h.b16 %v3949_v1 }
 0x612   :  { %v3631_v49 = vpop.f32.mrf.mxu2  ;;  %v3689_v55 = vpop.f32.mrf.mxu3 }
 0x613   :  { %v3632_v43 = vadd.f32 %v3631_v49, %v3602_v21  ;;  %v3690_v15 = vadd.f32 %v3689_v55, %v3660_v25 }
 0x615   :  { %v3953_v9 = vpack.c.bf16 %v3690_v15, %v3632_v43 }
 0x617   :  { %v3997_v45 = vunpack.c.l.b16 %v3953_v9  ;;  %v3998_v23 = vunpack.c.h.b16 %v3953_v9  ;;  %v13033_v22 = vpop.f32.mrf.mxu0  ;;  %v13035_v46 = vpop.f32.mrf.mxu1 }
 0x619   :  { %v4005_v24 = vpack.c.b16 %v3997_v45, %v3995_v31  ;;  %v4006_v11 = vpack.c.b16 %v3998_v23, %v3996_v34 }
 0x61a   :  { %v13037_v28 = vpop.f32.mrf.mxu2  ;;  %v3788_v35 = vpop.f32.mrf.mxu3 }
 0x61b   :  { %v13039_v57 = vadd.f32 %v3788_v35, %v3759_v38  ;;  %4025 = vmatpush.bf16.msra.mxu0 %v4005_v24  ;;  %4044 = vmatpush.bf16.msrb.mxu2 %v4006_v11 }
 0x61f   :  { %4026 = vmatpush.bf16.msra.mxu0 %v4003_v16  ;;  %4045 = vmatpush.bf16.msrb.mxu2 %v4004_v33  ;;  %v3706_v36 = vpop.f32.mrf.mxu0  ;;  %v3764_v51 = vpop.f32.mrf.mxu1 }
 0x622   :  { %v3732_v19 = vpop.f32.mrf.mxu2  ;;  %v3790_v2 = vpop.f32.mrf.mxu3 }
 0x623   :  { %4027 = vmatpush.bf16.msra.mxu0 %v4001_v5  ;;  %4046 = vmatpush.bf16.msrb.mxu2 %v4002_v32  ;;  %v3733_v13 = vadd.f32 %v3732_v19, %v13033_v22  ;;  %v3791_v0 = vadd.f32 %v3790_v2, %v13035_v46 }
 0x625   :  { %v3930_v2 = vpack.c.bf16 %v3791_v0, %v3733_v13 }
 0x627   :  { %4028 = vmatpush.bf16.msra.mxu0 %v3999_v48  ;;  %4047 = vmatpush.bf16.msrb.mxu2 %v4000_v50  ;;  %v3708_v60 = vpop.f32.mrf.mxu0  ;;  %v3766_v21 = vpop.f32.mrf.mxu1  ;;  %v10628_v48 = vld [vmem:[%s11413_s3 + $0x18] sm:$0xff] }
 0x62a   :  { %v3735_v25 = vpop.f32.mrf.mxu2  ;;  %v3793_v63 = vpop.f32.mrf.mxu3  ;;  %9138 = vmatmul.msk.bf16.vlgmr.msrb.gmra.mxu2 %vm752_vm0, %v10627_v44  ;;  %9136 = vmatmul.msk.bf16.vlgmr.msra.gmra.mxu0 %vm752_vm0, %v10627_v44 }
 0x62b   :  { %v3736_v39 = vadd.f32 %v3735_v25, %v3706_v36  ;;  %v3794_v37 = vadd.f32 %v3793_v63, %v3764_v51  ;;  %v3731_v51 = vadd.f32 %v13037_v28, %v13025_v56 }
 0x62d   :  { %v3934_v50 = vpack.c.bf16 %v3794_v37, %v3736_v39  ;;  %v3926_v28 = vpack.c.bf16 %v13039_v57, %v3731_v51 }
 0x62f   :  { %v3711_v47 = vpop.f32.mrf.mxu0  ;;  %v3769_v12 = vpop.f32.mrf.mxu1  ;;  %v4177_v44 = vunpack.c.h.b16 %v3926_v28 }
 0x632   :  { %v3737_v41 = vpop.f32.mrf.mxu2  ;;  %v3795_v14 = vpop.f32.mrf.mxu3 }
 0x633   :  { %v3738_v24 = vadd.f32 %v3737_v41, %v3708_v60  ;;  %v3796_v11 = vadd.f32 %v3795_v14, %v3766_v21  ;;  %v4180_v14 = vunpack.c.l.b16 %v3934_v50 }
 0x635   :  { %v3938_v17 = vpack.c.bf16 %v3796_v11, %v3738_v24 }
 0x637   :  { %v3713_v54 = vpop.f32.mrf.mxu0  ;;  %v3771_v38 = vpop.f32.mrf.mxu1  ;;  %v4182_v63 = vunpack.c.l.b16 %v3938_v17 }
 0x63a   :  { %v3740_v59 = vpop.f32.mrf.mxu2  ;;  %v3798_v10 = vpop.f32.mrf.mxu3  ;;  %9139 = vmatmul.msk.bf16.gmra.mxu2 %vm752_vm0, %v10628_v48  ;;  %9137 = vmatmul.msk.bf16.gmra.mxu0 %vm752_vm0, %v10628_v48 }
 0x63b   :  { %v3741_v45 = vadd.f32 %v3740_v59, %v3711_v47  ;;  %v3799_v23 = vadd.f32 %v3798_v10, %v3769_v12  ;;  %v4183_v47 = vunpack.c.h.b16 %v3938_v17  ;;  %v4179_v59 = vunpack.c.h.b16 %v3930_v2 }
 0x63d   :  { %v3942_v6 = vpack.c.bf16 %v3799_v23, %v3741_v45 }
 0x63f   :  { %v3716_v26 = vpop.f32.mrf.mxu0  ;;  %v3774_v49 = vpop.f32.mrf.mxu1  ;;  %v4184_v25 = vunpack.c.l.b16 %v3942_v6  ;;  %v4185_v22 = vunpack.c.h.b16 %v3942_v6 }
 0x642   :  { %v3742_v55 = vpop.f32.mrf.mxu2  ;;  %v3800_v1 = vpop.f32.mrf.mxu3 }
 0x643   :  { %v3743_v53 = vadd.f32 %v3742_v55, %v3713_v54  ;;  %v3801_v62 = vadd.f32 %v3800_v1, %v3771_v38  ;;  %v4181_v54 = vunpack.c.h.b16 %v3934_v50  ;;  %v4178_v38 = vunpack.c.l.b16 %v3930_v2 }
 0x645   :  { %v3946_v35 = vpack.c.bf16 %v3801_v62, %v3743_v53  ;;  %v4195_v55 = vpack.c.b16 %v4183_v47, %v4181_v54  ;;  %v10629_v53 = vld [vmem:[%s11413_s3 + $0x20] sm:$0xff] }
 0x647   :  { %v3718_v43 = vpop.f32.mrf.mxu0  ;;  %v3776_v15 = vpop.f32.mrf.mxu1  ;;  %v4186_v61 = vunpack.c.l.b16 %v3946_v35  ;;  %v4187_v5 = vunpack.c.h.b16 %v3946_v35 }
 0x649   :  { %v4196_v41 = vpack.c.b16 %v4186_v61, %v4184_v25  ;;  %v4197_v56 = vpack.c.b16 %v4187_v5, %v4185_v22 }
 0x64a   :  { %v3745_v58 = vpop.f32.mrf.mxu2  ;;  %v3803_v18 = vpop.f32.mrf.mxu3 }
 0x64b   :  { %v3746_v9 = vadd.f32 %v3745_v58, %v3716_v26  ;;  %v3804_v27 = vadd.f32 %v3803_v18, %v3774_v49  ;;  %v4194_v49 = vpack.c.b16 %v4182_v63, %v4180_v14  ;;  %v4193_v58 = vpack.c.b16 %v4179_v59, %v4177_v44 }
 0x64d   :  { %v3950_v8 = vpack.c.bf16 %v3804_v27, %v3746_v9  ;;  %v10625_v27 = vld [vmem:[%s11413_s3] sm:$0xff] }
 0x64e   :  { %9150 = vmatmul.msk.bf16.vlgmr.msrb.gmra.mxu3 %vm752_vm0, %v10625_v27  ;;  %9148 = vmatmul.msk.bf16.vlgmr.msra.gmra.mxu1 %vm752_vm0, %v10625_v27 }
 0x64f   :  { %v3817_v31 = vpop.f32.mrf.mxu0  ;;  %v3875_v34 = vpop.f32.mrf.mxu1  ;;  %v4188_v29 = vunpack.c.l.b16 %v3950_v8  ;;  %v4189_v52 = vunpack.c.h.b16 %v3950_v8  ;;  %v10630_v8 = vld [vmem:[%s11413_s3 + $0x28] sm:$0xff] }
 0x652   :  { %v3747_v4 = vpop.f32.mrf.mxu2  ;;  %v3805_v40 = vpop.f32.mrf.mxu3 }
 0x653   :  { %v3748_v3 = vadd.f32 %v3747_v4, %v3718_v43  ;;  %v3806_v20 = vadd.f32 %v3805_v40, %v3776_v15  ;;  %v4176_v15 = vunpack.c.l.b16 %v3926_v28  ;;  %v10626_v40 = vld [vmem:[%s11413_s3 + $0x8] sm:$0xff] }
 0x655   :  { %v3954_v7 = vpack.c.bf16 %v3806_v20, %v3748_v3  ;;  %v4192_v57 = vpack.c.b16 %v4178_v38, %v4176_v15 }
 0x657   :  { %v4190_v16 = vunpack.c.l.b16 %v3954_v7  ;;  %v4191_v33 = vunpack.c.h.b16 %v3954_v7  ;;  %v13048_v32 = vpop.f32.mrf.mxu0  ;;  %v13050_v42 = vpop.f32.mrf.mxu1 }
 0x659   :  { %v4198_v30 = vpack.c.b16 %v4190_v16, %v4188_v29  ;;  %v4199_v36 = vpack.c.b16 %v4191_v33, %v4189_v52 }
 0x65a   :  { %v3846_v60 = vpop.f32.mrf.mxu2  ;;  %v3904_v21 = vpop.f32.mrf.mxu3 }
 0x65b   :  { %v3847_v19 = vadd.f32 %v3846_v60, %v3817_v31  ;;  %v3905_v46 = vadd.f32 %v3904_v21, %v3875_v34  ;;  %4218 = vmatpush.bf16.msrb.mxu0 %v4198_v30  ;;  %4237 = vmatpush.bf16.msra.mxu2 %v4199_v36 }
 0x65d   :  { %v13057_v12 = vpack.c.bf16 %v3905_v46, %v3847_v19 }
 0x65e   :  { %9151 = vmatmul.msk.bf16.gmra.mxu3 %vm752_vm0, %v10626_v40  ;;  %9149 = vmatmul.msk.bf16.gmra.mxu1 %vm752_vm0, %v10626_v40 }
 0x65f   :  { %4219 = vmatpush.bf16.msrb.mxu0 %v4196_v41  ;;  %4238 = vmatpush.bf16.msra.mxu2 %v4197_v56  ;;  %v3822_v10 = vpop.f32.mrf.mxu0  ;;  %v3880_v26 = vpop.f32.mrf.mxu1 }
 0x662   :  { %v13060_v1 = vpop.f32.mrf.mxu2  ;;  %v13062_v43 = vpop.f32.mrf.mxu3 }
 0x663   :  { %4220 = vmatpush.bf16.msrb.mxu0 %v4194_v49  ;;  %4239 = vmatpush.bf16.msra.mxu2 %v4195_v55  ;;  %v3849_v28 = vadd.f32 %v13060_v1, %v13048_v32  ;;  %v3907_v14 = vadd.f32 %v13062_v43, %v13050_v42 }
 0x667   :  { %4221 = vmatpush.bf16.msrb.mxu0 %v4192_v57  ;;  %4240 = vmatpush.bf16.msra.mxu2 %v4193_v58  ;;  %v3824_v18 = vpop.f32.mrf.mxu0  ;;  %v3882_v9 = vpop.f32.mrf.mxu1 }
 0x66a   :  { %v3851_v62 = vpop.f32.mrf.mxu2  ;;  %v3909_v31 = vpop.f32.mrf.mxu3  ;;  %9166 = vmatmul.msk.bf16.vlgmr.msra.gmra.mxu2 %vm752_vm0, %v10629_v53  ;;  %9164 = vmatmul.msk.bf16.vlgmr.msrb.gmra.mxu0 %vm752_vm0, %v10629_v53 }
 0x66b   :  { %v3852_v19 = vadd.f32 %v3851_v62, %v3822_v10  ;;  %v3910_v46 = vadd.f32 %v3909_v31, %v3880_v26  ;;  %v3931_v26 = vpack.c.bf16 %v3907_v14, %v3849_v28  ;;  %v4283_v62 = vunpack.c.l.b16 %v13057_v12  ;;  %v11198_v28 = vld [vmem:[%s11423_s14 + $0x18] sm:$0xff]  }
 0x66c   :  { %v4284_v31 = vunpack.c.h.b16 %v13057_v12 }
 0x66d   :  { %v3935_v15 = vpack.c.bf16 %v3910_v46, %v3852_v19  ;;  %v4285_v42 = vunpack.c.l.b16 %v3931_v26  ;;  %v4286_v43 = vunpack.c.h.b16 %v3931_v26 }
 0x66f   :  { %v3827_v23 = vpop.f32.mrf.mxu0  ;;  %v3885_v4 = vpop.f32.mrf.mxu1  ;;  %v4287_v32 = vunpack.c.l.b16 %v3935_v15  ;;  %v4288_v1 = vunpack.c.h.b16 %v3935_v15 }
 0x672   :  { %v3853_v34 = vpop.f32.mrf.mxu2  ;;  %v3911_v45 = vpop.f32.mrf.mxu3 }
 0x673   :  { %v3854_v60 = vadd.f32 %v3853_v34, %v3824_v18  ;;  %v3912_v21 = vadd.f32 %v3911_v45, %v3882_v9  ;;  %v4299_v34 = vpack.c.b16 %v4285_v42, %v4283_v62  ;;  %v4300_v45 = vpack.c.b16 %v4286_v43, %v4284_v31 }
 0x675   :  { %v3939_v54 = vpack.c.bf16 %v3912_v21, %v3854_v60 }
 0x677   :  { %v3829_v24 = vpop.f32.mrf.mxu0  ;;  %v3887_v11 = vpop.f32.mrf.mxu1  ;;  %v4289_v57 = vunpack.c.l.b16 %v3939_v54  ;;  %v4290_v58 = vunpack.c.h.b16 %v3939_v54 }
 0x679   :  { %v4301_v27 = vpack.c.b16 %v4289_v57, %v4287_v32  ;;  %v4302_v53 = vpack.c.b16 %v4290_v58, %v4288_v1  ;;  %v11003_v57 = vunpack.c.l.bf16 %v11198_v28  ;;  %v11207_v58 = vld [vmem:[%s11423_s14 + $0x60] sm:$0xff]  }
 0x67a   :  { %v3856_v3 = vpop.f32.mrf.mxu2  ;;  %v3914_v20 = vpop.f32.mrf.mxu3  ;;  %9167 = vmatmul.msk.bf16.gmra.mxu2 %vm752_vm0, %v10630_v8  ;;  %9165 = vmatmul.msk.bf16.gmra.mxu0 %vm752_vm0, %v10630_v8  ;;  %v11040_v32 = vunpack.c.h.bf16 %v11207_v58  ;;  %v11039_v42 = vunpack.c.l.bf16 %v11207_v58 }
 0x67b   :  { %v3857_v61 = vadd.f32 %v3856_v3, %v3827_v23  ;;  %v3915_v5 = vadd.f32 %v3914_v20, %v3885_v4  ;;  %v10631_v23 = vld [vmem:[%s11413_s3 + $0x30] sm:$0xff]  ;;  %v10632_v4 = vld [vmem:[%s11413_s3 + $0x38] sm:$0xff]  ;;  %s14183_s3 = sld [smem:[#allocation13_spill]] }
 0x67d   :  { %v3943_v2 = vpack.c.bf16 %v3915_v5, %v3857_v61  ;;  %v11200_v61 = vld [vmem:[%s11423_s14 + $0x28] sm:$0xff]  }
 0x67e   :  { %v11012_v60 = vunpack.c.h.bf16 %v11200_v61  ;;  %v11011_v21 = vunpack.c.l.bf16 %v11200_v61 }
 0x67f   :  { %v3832_v39 = vpop.f32.mrf.mxu0  ;;  %v3890_v37 = vpop.f32.mrf.mxu1  ;;  %v4291_v44 = vunpack.c.l.b16 %v3943_v2  ;;  %v4292_v10 = vunpack.c.h.b16 %v3943_v2 }
 0x682   :  { %v3858_v35 = vpop.f32.mrf.mxu2  ;;  %v3916_v7 = vpop.f32.mrf.mxu3 }
 0x683   :  { %v3859_v33 = vadd.f32 %v3858_v35, %v3829_v24  ;;  %v3917_v13 = vadd.f32 %v3916_v7, %v3887_v11 }
 0x685   :  { %v3947_v25 = vpack.c.bf16 %v3917_v13, %v3859_v33 }
 0x687   :  { %v3834_v0 = vpop.f32.mrf.mxu0  ;;  %v3892_v17 = vpop.f32.mrf.mxu1  ;;  %v4293_v38 = vunpack.c.l.b16 %v3947_v25  ;;  %v4294_v59 = vunpack.c.h.b16 %v3947_v25  ;;  %v11209_v25 = vld [vmem:[%s11423_s14 + $0x70] sm:$0xff]  }
 0x688   :  { %v11048_v19 = vunpack.c.h.bf16 %v11209_v25 }
 0x689   :  { %v4303_v18 = vpack.c.b16 %v4293_v38, %v4291_v44  ;;  %v4304_v9 = vpack.c.b16 %v4294_v59, %v4292_v10  ;;  %v11004_v44 = vunpack.c.h.bf16 %v11198_v28 }
 0x68a   :  { %v3861_v6 = vpop.f32.mrf.mxu2  ;;  %v3919_v29 = vpop.f32.mrf.mxu3 }
 0x68b   :  { %v3862_v52 = vadd.f32 %v3861_v6, %v3832_v39  ;;  %v3920_v16 = vadd.f32 %v3919_v29, %v3890_v37  ;;  %v11202_v29 = vld [vmem:[%s11423_s14 + $0x38] sm:$0xff]  }
 0x68c   :  { %v11019_v33 = vunpack.c.l.bf16 %v11202_v29 }
 0x68d   :  { %v3951_v48 = vpack.c.bf16 %v3920_v16, %v3862_v52  ;;  %v11020_v52 = vunpack.c.h.bf16 %v11202_v29 }
 0x68f   :  { %v4295_v63 = vunpack.c.l.b16 %v3951_v48  ;;  %v4296_v47 = vunpack.c.h.b16 %v3951_v48  ;;  %4477 = vmatpush.msra.mxu0 %v11020_v52 }
 0x691   :  { %4478 = vmatpush.msra.mxu0 %v11019_v33  ;;  %v10990_v33 = vld [vmem:[%s11423_s14] sm:$0xff]  }
 0x692   :  { %v3863_v30 = vpop.f32.mrf.mxu2  ;;  %v3921_v36 = vpop.f32.mrf.mxu3 }
 0x693   :  { %v3864_v51 = vadd.f32 %v3863_v30, %v3834_v0  ;;  %v3922_v50 = vadd.f32 %v3921_v36, %v3892_v17  ;;  %v11201_v0 = vld [vmem:[%s11423_s14 + $0x30] sm:$0xff]   ;;  %v11210_v17 = vld [vmem:[%s11423_s14 + $0x78] sm:$0xff]  }
 0x694   :  { %v11016_v36 = vunpack.c.h.bf16 %v11201_v0  ;;  %v11015_v48 = vunpack.c.l.bf16 %v11201_v0 }
 0x695   :  { %v3955_v22 = vpack.c.bf16 %v3922_v50, %v3864_v51  ;;  %v11052_v51 = vunpack.c.h.bf16 %v11210_v17  ;;  %v11051_v50 = vunpack.c.l.bf16 %v11210_v17 }
 0x696   :  { %4479 = vmatpush.msra.mxu0 %v11016_v36 }
 0x697   :  { %v4297_v41 = vunpack.c.l.b16 %v3955_v22  ;;  %v4298_v56 = vunpack.c.h.b16 %v3955_v22  ;;  %4497 = vmatpush.msrb.mxu2 %v11052_v51 }
 0x698   :  { %4480 = vmatpush.msra.mxu0 %v11015_v48  ;;  %v10992_v48 = vunpack.c.h.bf16 %v10990_v33 }
 0x699   :  { %v4305_v49 = vpack.c.b16 %v4297_v41, %v4295_v63  ;;  %v4306_v55 = vpack.c.b16 %v4298_v56, %v4296_v47  ;;  %4498 = vmatpush.msrb.mxu2 %v11051_v50  ;;  %v11199_v47 = vld [vmem:[%s11423_s14 + $0x20] sm:$0xff]   ;;  %v11047_v41 = vunpack.c.l.bf16 %v11209_v25  ;;  %v11208_v56 = vld [vmem:[%s11423_s14 + $0x68] sm:$0xff]  }
 0x69a   :  { %4481 = vmatpush.msra.mxu0 %v11012_v60  ;;  %v11008_v38 = vunpack.c.h.bf16 %v11199_v47  ;;  %v11007_v59 = vunpack.c.l.bf16 %v11199_v47 }
 0x69b   :  { %4325 = vmatpush.bf16.msrb.mxu1 %v4305_v49  ;;  %4344 = vmatpush.bf16.msra.mxu3 %v4306_v55  ;;  %v11044_v49 = vunpack.c.h.bf16 %v11208_v56  ;;  %v11043_v55 = vunpack.c.l.bf16 %v11208_v56 }
 0x69c   :  { %4482 = vmatpush.msra.mxu0 %v11011_v21  ;;  %4499 = vmatpush.msrb.mxu2 %v11048_v19 }
 0x69e   :  { %4500 = vmatpush.msrb.mxu2 %v11047_v41  ;;  %4483 = vmatpush.msra.mxu0 %v11008_v38 }
 0x69f   :  { %4326 = vmatpush.bf16.msrb.mxu1 %v4303_v18  ;;  %4345 = vmatpush.bf16.msra.mxu3 %v4304_v9  ;;  %v11197_v18 = vld [vmem:[%s11423_s14 + $0x10] sm:$0xff]   ;;  %v11206_v9 = vld [vmem:[%s11423_s14 + $0x58] sm:$0xff]  }
 0x6a0   :  { %4501 = vmatpush.msrb.mxu2 %v11044_v49  ;;  %4484 = vmatpush.msra.mxu0 %v11007_v59  ;;  %v11000_v1 = vunpack.c.h.bf16 %v11197_v18  ;;  %v10999_v31 = vunpack.c.l.bf16 %v11197_v18 }
 0x6a2   :  { %4502 = vmatpush.msrb.mxu2 %v11043_v55  ;;  %4485 = vmatpush.msra.mxu0 %v11004_v44 }
 0x6a3   :  { %4327 = vmatpush.bf16.msrb.mxu1 %v4301_v27  ;;  %4346 = vmatpush.bf16.msra.mxu3 %v4302_v53  ;;  %v11196_v53 = vld [vmem:[%s11423_s14 + $0x8] sm:$0xff]  }
 0x6a4   :  { %4486 = vmatpush.msra.mxu0 %v11003_v57  ;;  %4503 = vmatpush.msrb.mxu2 %v11040_v32 }
 0x6a6   :  { %4487 = vmatpush.msra.mxu0 %v11000_v1  ;;  %4504 = vmatpush.msrb.mxu2 %v11039_v42 }
 0x6a7   :  { %4328 = vmatpush.bf16.msrb.mxu1 %v4299_v34  ;;  %4347 = vmatpush.bf16.msra.mxu3 %v4300_v45  ;;  %v13088_v40 = vpop.f32.mrf.mxu0  ;;  %v11036_v34 = vunpack.c.h.bf16 %v11206_v9 }
 0x6a8   :  { %4488 = vmatpush.msra.mxu0 %v10999_v31 }
 0x6a9   :  { %4505 = vmatpush.msrb.mxu2 %v11036_v34 }
 0x6aa   :  { %9180 = vmatmul.msk.bf16.vlgmr.msrb.gmra.mxu1 %vm752_vm0, %v10631_v23  ;;  %9182 = vmatmul.msk.bf16.vlgmr.msra.gmra.mxu3 %vm752_vm0, %v10631_v23  ;;  %v11205_v23 = vld [vmem:[%s11423_s14 + $0x50] sm:$0xff]  }
 0x6ab   :  { %v11031_v51 = vunpack.c.l.bf16 %v11205_v23 }
 0x6ad   :  { %v13090_v12 = vpop.f32.mrf.mxu2 }
 0x6af   :  { %v4032_v8 = vpop.f32.mrf.mxu0 }
 0x6b5   :  { %v13094_v20 = vpop.f32.mrf.mxu2 }
 0x6b7   :  { %v13098_v11 = vpop.f32.mrf.mxu0 }
 0x6ba   :  { %9181 = vmatmul.msk.bf16.gmra.mxu1 %vm752_vm0, %v10632_v4  ;;  %9183 = vmatmul.msk.bf16.gmra.mxu3 %vm752_vm0, %v10632_v4 }
 0x6bd   :  { %v13100_v7 = vpop.f32.mrf.mxu2 }
 0x6bf   :  { %v13104_v37 = vpop.f32.mrf.mxu0 }
 0x6c5   :  { %v13107_v16 = vpop.f32.mrf.mxu2 }
 0x6cb   :  { %v13092_v3 = vpop.f32.mrf.mxu1 }
 0x6cc   :  { %v4125_v43 = vadd.f32 %v13092_v3, %v13088_v40  ;;  %v10996_v40 = vunpack.c.h.bf16 %v11196_v53  ;;  %v11035_v3 = vunpack.c.l.bf16 %v11206_v9 }
 0x6ce   :  { %4489 = vmatpush.msra.mxu0 %v10996_v40  ;;  %4506 = vmatpush.msrb.mxu2 %v11035_v3 }
 0x6d1   :  { %v13096_v24 = vpop.f32.mrf.mxu3 }
 0x6d3   :  { %v4126_v35 = vpop.f32.mrf.mxu1 }
 0x6d4   :  { %v4127_v26 = vadd.f32 %v4126_v35, %v4032_v8 }
 0x6d9   :  { %v13102_v39 = vpop.f32.mrf.mxu3 }
 0x6da   :  { %v4146_v4 = vadd.f32 %v13102_v39, %v13094_v20  ;;  %v10995_v20 = vunpack.c.l.bf16 %v11196_v53  ;;  %v11032_v39 = vunpack.c.h.bf16 %v11205_v23 }
 0x6db   :  { %v4129_v6 = vpop.f32.mrf.mxu1 }
 0x6dc   :  { %v4130_v27 = vadd.f32 %v4129_v6, %v13098_v11  ;;  %v4144_v11 = vadd.f32 %v13096_v24, %v13090_v12  ;;  %v11204_v12 = vld [vmem:[%s11423_s14 + $0x48] sm:$0xff]   ;;  %4490 = vmatpush.msra.mxu0 %v10995_v20  ;;  %4507 = vmatpush.msrb.mxu2 %v11032_v39 }
 0x6dd   :  { %v11028_v21 = vunpack.c.h.bf16 %v11204_v12  ;;  %v11027_v28 = vunpack.c.l.bf16 %v11204_v12 }
 0x6de   :  { %4491 = vmatpush.msra.mxu0 %v10992_v48  ;;  %4508 = vmatpush.msrb.mxu2 %v11031_v51 }
 0x6e0   :  { %4509 = vmatpush.msrb.mxu2 %v11028_v21  ;;  %v11366_v21 = vmov 512.0  }
 0x6e1   :  { %v13109_v13 = vpop.f32.mrf.mxu3  ;;  %11293 = vrcp.f32 %v11366_v21 }
 0x6e2   :  { %v4149_v0 = vadd.f32 %v13109_v13, %v13100_v7  ;;  %4510 = vmatpush.msrb.mxu2 %v11027_v28 }
 0x6e3   :  { %v13116_v30 = vpop.f32.mrf.mxu1 }
 0x6e4   :  { %v4132_v17 = vadd.f32 %v13116_v30, %v13104_v37  ;;  %v10991_v30 = vunpack.c.l.bf16 %v10990_v33 }
 0x6e6   :  { %4492 = vmatpush.msra.mxu0 %v10991_v30 }
 0x6e7   :  { %v13114_v5 = vpop.f32.mrf.mxu0 }
 0x6e8   :  { %v4252_v6 = vadd.f32 %v13114_v5, %v4125_v43 }
 0x6e9   :  { %v13121_v46 = vpop.f32.mrf.mxu3 }
 0x6ed   :  { %v13119_v22 = vpop.f32.mrf.mxu2 }
 0x6ee   :  { %v4253_v7 = vadd.f32 %v13119_v22, %v4144_v11 }
 0x6ef   :  { %v4225_v2 = vpop.f32.mrf.mxu0 }
 0x6f0   :  { %v4254_v45 = vadd.f32 %v4225_v2, %v4127_v26 }
 0x6f5   :  { %v4244_v14 = vpop.f32.mrf.mxu2 }
 0x6f6   :  { %v4255_v24 = vadd.f32 %v4244_v14, %v4146_v4  ;;  %v4151_v14 = vadd.f32 %v13121_v46, %v13107_v16 }
 0x6f7   :  { %v4228_v10 = vpop.f32.mrf.mxu0 }
 0x6f8   :  { %v4256_v29 = vadd.f32 %v4228_v10, %v4130_v27 }
 0x6fd   :  { %v4247_v8 = vpop.f32.mrf.mxu2 }
 0x6fe   :  { %v4257_v50 = vadd.f32 %v4247_v8, %v4149_v0 }
 0x6ff   :  { %v4230_v5 = vpop.f32.mrf.mxu0 }
 0x700   :  { %v4258_v19 = vadd.f32 %v4230_v5, %v4132_v17 }
 0x705   :  { %v4249_v55 = vpop.f32.mrf.mxu2 }
 0x706   :  { %v4259_v58 = vadd.f32 %v4249_v55, %v4151_v14 }
 0x727   :  { %v4330_v63 = vpop.f32.mrf.mxu1 }
 0x728   :  { %v13148_v61 = vadd.f32 %v4330_v63, %v4252_v6  ;;  %v11203_v63 = vld [vmem:[%s11423_s14 + $0x40] sm:$0xff]   ;;  %s14185_s14 = sld [smem:[#allocation14_spill]] }
 0x729   :  { %v11023_v57 = vunpack.c.l.bf16 %v11203_v63 }
 0x72a   :  { %v4385_v25 = vmul.f32 %v13148_v61, %v13148_v61 }
 0x72d   :  { %v13126_v54 = vpop.f32.mrf.mxu3 }
 0x72e   :  { %v13166_v47 = vadd.f32 %v13126_v54, %v4253_v7  ;;  %v11024_v54 = vunpack.c.h.bf16 %v11203_v63 }
 0x72f   :  { %v4332_v15 = vpop.f32.mrf.mxu1 }
 0x730   :  { %v13141_v52 = vadd.f32 %v4332_v15, %v4254_v45  ;;  %v4386_v16 = vmul.f32 %v13166_v47, %v13166_v47  ;;  %4511 = vmatpush.msrb.mxu2 %v11024_v54 }
 0x732   :  { %v4387_v13 = vmul.f32 %v13141_v52, %v13141_v52  ;;  %v4367_v2 = vadd.f32 %v13141_v52, %v13148_v61  ;;  %4512 = vmatpush.msrb.mxu2 %v11023_v57 }
 0x734   :  { %v4393_v38 = vadd.f32 %v4387_v13, %v4385_v25  ;;  %v11294_v25 = vpop.eup %11293 }
 0x735   :  { %v4351_v62 = vpop.f32.mrf.mxu3  ;;  %vm4522_vm10 = vweird.f32 %v11294_v25 }
 0x736   :  { %v13156_v60 = vadd.f32 %v4351_v62, %v4255_v24 }
 0x737   :  { %v4335_v35 = vpop.f32.mrf.mxu1 }
 0x738   :  { %v13150_v36 = vadd.f32 %v4335_v35, %v4256_v29  ;;  %v4388_v15 = vmul.f32 %v13156_v60, %v13156_v60  ;;  %v4376_v18 = vadd.f32 %v13156_v60, %v13166_v47 }
 0x73a   :  { %v4389_v22 = vmul.f32 %v13150_v36, %v13150_v36  ;;  %v4368_v59 = vadd.f32 %v4367_v2, %v13150_v36  ;;  %v4402_v1 = vadd.f32 %v4388_v15, %v4386_v16 }
 0x73c   :  { %v4394_v44 = vadd.f32 %v4393_v38, %v4389_v22 }
 0x73d   :  { %v4354_v37 = vpop.f32.mrf.mxu3 }
 0x73e   :  { %v13168_v41 = vadd.f32 %v4354_v37, %v4257_v50 }
 0x73f   :  { %v4337_v56 = vpop.f32.mrf.mxu1 }
 0x740   :  { %v13173_v49 = vadd.f32 %v4337_v56, %v4258_v19  ;;  %v4390_v46 = vmul.f32 %v13168_v41, %v13168_v41  ;;  %v4377_v43 = vadd.f32 %v4376_v18, %v13168_v41  ;;  %v4518_v19 = vmul.f32 512.0, %v11294_v25  ;;  %v9412_v18 = vld [vmem:[%s11448_s12 + $0x1c0] sm:$0xf] }
 0x742   :  { %v4369_v10 = vadd.f32 %v4368_v59, %v13173_v49  ;;  %v4391_v26 = vmul.f32 %v13173_v49, %v13173_v49  ;;  %v4403_v31 = vadd.f32 %v4402_v1, %v4390_v46  ;;  %v4519_v2 = vsub.f32 1.0, %v4518_v19  ;;  %v9318_v19 = vld [vmem:[%s11448_s12 + $0x120] sm:$0xf0] }
 0x744   :  { %v4370_v9 = vrot.slane %v4369_v10, 4  ;;  %v4395_v32 = vadd.f32 %v4394_v44, %v4391_v26  ;;  %v4520_v22 = vmul.f32 %v11294_v25, %v4519_v2  ;;  %v4555_v26 = vld [vmem:[%s11428_s19] sm:$0xff] }
 0x745   :  { %v4356_v42 = vpop.f32.mrf.mxu3  ;;  %v4557_v57 = vunpack.c.l.bf16 %v4555_v26  ;;  %v9604_v2 = vld [vmem:[%s11448_s12 + $0x340] sm:$0xf] }
 0x746   :  { %v4371_v27 = vadd.f32 %v4370_v9, %v4369_v10  ;;  %v4396_v53 = vrot.slane %v4395_v32, 4  ;;  %v13187_v62 = vadd.f32 %v4356_v42, %v4259_v58  ;;  %v4521_v63 = vadd.f32 %v11294_v25, %v4520_v22  ;;  %v4556_v10 = vld [vmem:[%s11428_s19 + $0x8] sm:$0xff]  ;;  %v10693_v9 = vld [vmem:[%s11448_s12 + $0x1dc] sm:$0xf0]  ;;  %v9414_v42 = vld [vmem:[%s11448_s12 + $0x1e0] sm:$0xf0] }
 0x747   :  { %v4559_v16 = vunpack.c.l.bf16 %v4556_v10  ;;  %v4560_v46 = vunpack.c.h.bf16 %v4556_v10  ;;  %v4558_v58 = vunpack.c.h.bf16 %v4555_v26  ;;  %v9413_v1 = vor.u32 %v10693_v9, %v9412_v18  ;;  %v10741_v22 = vld [vmem:[%s11448_s12 + $0x35c] sm:$0xf0]  ;;  %v10657_v18 = vld [vmem:[%s11448_s12 + $0xc4] sm:$0xf]  ;;  %s14186_s19 = sld [smem:[#allocation15_spill]] }
 0x748   :  { %v4372_v34 = vrot.slane %v4371_v27, 2  ;;  %v4397_v45 = vadd.f32 %v4396_v53, %v4395_v32  ;;  %v4378_v23 = vadd.f32 %v4377_v43, %v13187_v62  ;;  %v4392_v4 = vmul.f32 %v13187_v62, %v13187_v62  ;;  %v10689_v32 = vld [vmem:[%s11448_s12 + $0x1c4] sm:$0xf]  ;;  %v9380_v43 = vld [vmem:[%s11448_s12 + $0x180] sm:$0xf] }
 0x749   :  { %v4523_v14 = vsel %vm4522_vm10, %v11294_v25, %v4521_v63  ;;  %4579 = vmatpush.msrb.mxu0 %v4559_v16  ;;  %4599 = vmatpush.msra.mxu2 %v4560_v46  ;;  %v9417_v53 = vor.u32 %v10689_v32, %v9414_v42  ;;  %v10737_v63 = vld [vmem:[%s11448_s12 + $0x344] sm:$0xf]  ;;  %v9572_v10 = vld [vmem:[%s11448_s12 + $0x300] sm:$0xf]  ;;  %vm5771_vm10 = vcmask 261120  }
 0x74a   :  { %v4373_v8 = vadd.f32 %v4372_v34, %v4371_v27  ;;  %v4398_v35 = vrot.slane %v4397_v45, 2  ;;  %v4379_v40 = vrot.slane %v4378_v23, 4  ;;  %v4404_v3 = vadd.f32 %v4403_v31, %v4392_v4  ;;  %v10685_v27 = vld [vmem:[%s11448_s12 + $0x19c] sm:$0xf0]  ;;  %v10681_v31 = vld [vmem:[%s11448_s12 + $0x184] sm:$0xf]  ;;  %5421 = vmatpush.bf16.msra.mxu1 %v9413_v1 }
 0x74b   :  { %4580 = vmatpush.msrb.mxu0 %v4557_v57  ;;  %4600 = vmatpush.msra.mxu2 %v4558_v58  ;;  %v9382_v34 = vld [vmem:[%s11448_s12 + $0x1a0] sm:$0xf0]  ;;  %v9381_v4 = vor.u32 %v10685_v27, %v9380_v43  ;;  %v10733_v46 = vld [vmem:[%s11448_s12 + $0x31c] sm:$0xf0] }
 0x74c   :  { %v4374_v11 = vrot.slane %v4373_v8, 1  ;;  %v4399_v6 = vadd.f32 %v4398_v35, %v4397_v45  ;;  %v4380_v29 = vadd.f32 %v4379_v40, %v4378_v23  ;;  %v4405_v33 = vrot.slane %v4404_v3, 4  ;;  %v9668_v45 = vld [vmem:[%s11448_s12 + $0x3c0] sm:$0xf]  ;;  %v10753_v35 = vld [vmem:[%s11448_s12 + $0x3c4] sm:$0xf] }
 0x74d   :  { %v9670_v40 = vld [vmem:[%s11448_s12 + $0x3e0] sm:$0xf0]  ;;  %v9573_v1 = vor.u32 %v10733_v46, %v9572_v10  ;;  %v4530_v27 = vld [vmem:[%s11433_s24] sm:$0x1]  ;;  %v10690_v46 = vld [vmem:[%s11448_s12 + $0x1cc] sm:$0xf] }
 0x74e   :  { %v4381_v0 = vrot.slane %v4380_v29, 2  ;;  %v4406_v20 = vadd.f32 %v4405_v33, %v4404_v3  ;;  %v4400_v39 = vrot.slane %v4399_v6, 1  ;;  %v4375_v24 = vadd.f32 %v4374_v11, %v4373_v8  ;;  %v10757_v8 = vld [vmem:[%s11448_s12 + $0x3dc] sm:$0xf0]  ;;  %5422 = vmatpush.bf16.msra.mxu1 %v9381_v4  ;;  %v10729_v57 = vld [vmem:[%s11448_s12 + $0x304] sm:$0xf] }
 0x74f   :  { %v9385_v11 = vor.u32 %v10681_v31, %v9382_v34  ;;  %v9348_v33 = vld [vmem:[%s11448_s12 + $0x140] sm:$0xf]  ;;  %v9574_v58 = vld [vmem:[%s11448_s12 + $0x320] sm:$0xf0]  ;;  %s14187_s24 = sld [smem:[#allocation17_spill]] }
 0x750   :  { %v4382_v17 = vadd.f32 %v4381_v0, %v4380_v29  ;;  %v4407_v12 = vrot.slane %v4406_v20, 2  ;;  %v4401_v5 = vadd.f32 %v4400_v39, %v4399_v6  ;;  %v9669_v6 = vor.u32 %v10757_v8, %v9668_v45  ;;  %v10677_v0 = vld [vmem:[%s11448_s12 + $0x15c] sm:$0xf0]  ;;  %v9350_v39 = vld [vmem:[%s11448_s12 + $0x160] sm:$0xf0] }
 0x751   :  { %v9673_v29 = vor.u32 %v10753_v35, %v9670_v40  ;;  %v9286_v9 = vld [vmem:[%s11448_s12 + $0xe0] sm:$0xf0]  ;;  %v9577_v42 = vor.u32 %v10729_v57, %v9574_v58  ;;  %v4548_v34 = vld [vmem:[%s11438_s30] sm:$0x1]  ;;  %v9422_v58 = vld [vmem:[%s11448_s12 + $0x1e8] sm:$0xf0] }
 0x752   :  { %v4383_v48 = vrot.slane %v4382_v17, 1  ;;  %v4408_v51 = vadd.f32 %v4407_v12, %v4406_v20  ;;  %v4411_v7 = vsel %vm2408_vm1, %v4375_v24, %v4401_v5  ;;  %v10673_v20 = vld [vmem:[%s11448_s12 + $0x144] sm:$0xf]  ;;  %5440 = vmatpush.bf16.msrb.mxu3 %v9669_v6  ;;  %v10749_v24 = vld [vmem:[%s11448_s12 + $0x39c] sm:$0xf0]  ;;  %v9289_v43 = vor.u32 %v10657_v18, %v9286_v9  ;;  %s11369_s30 = smov [#allocation2]  }
 0x753   :  { %4493 = vmatmul.f32.vlgmr.msra.gmra.mxu0 %v4411_v7  ;;  %v10745_v5 = vld [vmem:[%s11448_s12 + $0x384] sm:$0xf]  ;;  %v9353_v25 = vor.u32 %v10673_v20, %v9350_v39  ;;  %v9252_v35 = vld [vmem:[%s11448_s12 + $0x80] sm:$0xf] }
 0x754   :  { %v4409_v13 = vrot.slane %v4408_v51, 1  ;;  %v4384_v50 = vadd.f32 %v4383_v48, %v4382_v17  ;;  %5459 = vmatpush.bf16.msra.mxu0 %v9417_v53  ;;  %v9636_v17 = vld [vmem:[%s11448_s12 + $0x380] sm:$0xf]  ;;  %v9638_v48 = vld [vmem:[%s11448_s12 + $0x3a0] sm:$0xf0] }
 0x755   :  { %v9637_v7 = vor.u32 %v10749_v24, %v9636_v17  ;;  %v10653_v40 = vld [vmem:[%s11448_s12 + $0x9c] sm:$0xf0]  ;;  %v10721_v20 = vld [vmem:[%s11448_s12 + $0x2c4] sm:$0xf] }
 0x756   :  { %v4410_v37 = vadd.f32 %v4409_v13, %v4408_v51  ;;  %v9349_v51 = vor.u32 %v10677_v0, %v9348_v33  ;;  %v9641_v13 = vor.u32 %v10745_v5, %v9638_v48  ;;  %v9540_v6 = vld [vmem:[%s11448_s12 + $0x2c0] sm:$0xf]  ;;  %v9542_v39 = vld [vmem:[%s11448_s12 + $0x2e0] sm:$0xf0] }
 0x757   :  { %5441 = vmatpush.bf16.msrb.mxu3 %v9637_v7  ;;  %v9220_v17 = vld [vmem:[%s11448_s12 + $0x40] sm:$0xf]  ;;  %v10641_v5 = vld [vmem:[%s11448_s12 + $0x44] sm:$0xf] }
 0x758   :  { %v4412_v30 = vsel %vm2408_vm1, %v4384_v50, %v4410_v37  ;;  %v9316_v50 = vld [vmem:[%s11448_s12 + $0x100] sm:$0xf]  ;;  %5460 = vmatpush.bf16.msra.mxu0 %v9385_v11  ;;  %5423 = vmatpush.bf16.msra.mxu1 %v9349_v51  ;;  %v9253_v11 = vor.u32 %v10653_v40, %v9252_v35  ;;  %v9222_v48 = vld [vmem:[%s11448_s12 + $0x60] sm:$0xf0]  ;;  %v10754_v35 = vld [vmem:[%s11448_s12 + $0x3cc] sm:$0xf] }
 0x759   :  { %4513 = vmatmul.f32.vlgmr.msrb.gmra.mxu2 %v4412_v30  ;;  %v10669_v37 = vld [vmem:[%s11448_s12 + $0x11c] sm:$0xf0]  ;;  %v10665_v30 = vld [vmem:[%s11448_s12 + $0x104] sm:$0xf]  ;;  %v9225_v7 = vor.u32 %v10641_v5, %v9222_v48  ;;  %v9324_v5 = vld [vmem:[%s11448_s12 + $0x108] sm:$0xf] }
 0x75a   :  { %5478 = vmatpush.bf16.msrb.mxu2 %v9673_v29  ;;  %v9321_v16 = vor.u32 %v10665_v30, %v9318_v19  ;;  %v10725_v29 = vld [vmem:[%s11448_s12 + $0x2dc] sm:$0xf0]  ;;  %v10670_v48 = vld [vmem:[%s11448_s12 + $0x124] sm:$0xf0] }
 0x75b   :  { %v9541_v0 = vor.u32 %v10725_v29, %v9540_v6  ;;  %v10645_v24 = vld [vmem:[%s11448_s12 + $0x5c] sm:$0xf0]  ;;  %v10674_v29 = vld [vmem:[%s11448_s12 + $0x14c] sm:$0xf] }
 0x75c   :  { %5461 = vmatpush.bf16.msra.mxu0 %v9353_v25  ;;  %v9221_v51 = vor.u32 %v10645_v24, %v9220_v17  ;;  %v9188_v25 = vld [vmem:[%s11448_s12] sm:$0xf]  ;;  %v10746_v17 = vld [vmem:[%s11448_s12 + $0x38c] sm:$0xf] }
 0x75d   :  { %v10637_v19 = vld [vmem:[%s11448_s12 + $0x1c] sm:$0xf0] }
 0x75e   :  { %5479 = vmatpush.bf16.msrb.mxu2 %v9641_v13  ;;  %v9508_v13 = vld [vmem:[%s11448_s12 + $0x280] sm:$0xf] }
 0x75f   :  { %v9444_v18 = vld [vmem:[%s11448_s12 + $0x200] sm:$0xf] }
 0x760   :  { %5462 = vmatpush.bf16.msra.mxu0 %v9321_v16  ;;  %v10694_v16 = vld [vmem:[%s11448_s12 + $0x1e4] sm:$0xf0]  ;;  %v10701_v9 = vld [vmem:[%s11448_s12 + $0x21c] sm:$0xf0] }
 0x764   :  { %5463 = vmatpush.bf16.msra.mxu0 %v9289_v43  ;;  %v9445_v43 = vor.u32 %v10701_v9, %v9444_v18  ;;  %v9582_v18 = vld [vmem:[%s11448_s12 + $0x328] sm:$0xf0] }
 0x7d0   :  { %v4494_v56 = vpop.f32.mrf.mxu0 }
 0x7dc   :  { %v4514_v28 = vpop.f32.mrf.mxu2 }
 0x7dd   :  { %v4515_v38 = vadd.f32 %v4514_v28, %v4494_v56  ;;  %v9606_v56 = vld [vmem:[%s11448_s12 + $0x360] sm:$0xf0] }
 0x7df   :  { %v13194_v59 = vmul.f32 %v4523_v14, %v4515_v38  ;;  %v9605_v14 = vor.u32 %v10741_v22, %v9604_v2  ;;  %v9609_v38 = vor.u32 %v10737_v63, %v9606_v56  ;;  %v9189_v22 = vor.u32 %v10637_v19, %v9188_v25  ;;  %v10633_v63 = vld [vmem:[%s11448_s12 + $0x4] sm:$0xf]  ;;  %v10738_v19 = vld [vmem:[%s11448_s12 + $0x34c] sm:$0xf] }
 0x7e0   :  { %v9190_v56 = vld [vmem:[%s11448_s12 + $0x20] sm:$0xf0] }
 0x7e1   :  { %v4525_v55 = vmul.f32 %v13194_v59, %v13194_v59  ;;  %5442 = vmatpush.bf16.msrb.mxu3 %v9605_v14  ;;  %5480 = vmatpush.bf16.msrb.mxu2 %v9609_v38  ;;  %v9193_v14 = vor.u32 %v10633_v63, %v9190_v56  ;;  %v10709_v38 = vld [vmem:[%s11448_s12 + $0x25c] sm:$0xf0]  ;;  %v9325_v63 = vor.u32 %v10670_v48, %v9324_v5  ;;  %v9292_v56 = vld [vmem:[%s11448_s12 + $0xc8] sm:$0xf]  ;;  %v9230_v5 = vld [vmem:[%s11448_s12 + $0x68] sm:$0xf0] }
 0x7e3   :  { %v4527_v15 = vrot.slane %v4525_v55, 7  ;;  %v9317_v55 = vor.u32 %v10669_v37, %v9316_v50  ;;  %v10717_v50 = vld [vmem:[%s11448_s12 + $0x29c] sm:$0xf0]  ;;  %v10713_v37 = vld [vmem:[%s11448_s12 + $0x284] sm:$0xf] }
 0x7e4   :  { %v9509_v30 = vor.u32 %v10717_v50, %v9508_v13 }
 0x7e5   :  { %v4529_v54 = vsub.f32 %v13194_v59, %v4527_v15  ;;  %v9284_v15 = vld [vmem:[%s11448_s12 + $0xc0] sm:$0xf]  ;;  %5424 = vmatpush.bf16.msra.mxu1 %v9317_v55  ;;  %5443 = vmatpush.bf16.msrb.mxu3 %v9573_v1  ;;  %v10705_v55 = vld [vmem:[%s11448_s12 + $0x244] sm:$0xf] }
 0x7e6   :  { %5481 = vmatpush.bf16.msrb.mxu2 %v9577_v42  ;;  %v10697_v1 = vld [vmem:[%s11448_s12 + $0x204] sm:$0xf] }
 0x7e7   :  { %v13199_v44 = vadd.f32 1e-05, %v4529_v54  ;;  %v10661_v54 = vld [vmem:[%s11448_s12 + $0xdc] sm:$0xf0]  ;;  %v9446_v42 = vld [vmem:[%s11448_s12 + $0x220] sm:$0xf0] }
 0x7e9   :  { %11295 = vrsqrt.f32 %v13199_v44  ;;  %vm4538_vm12 = vweird.f32 %v13199_v44  ;;  %5444 = vmatpush.bf16.msrb.mxu3 %v9541_v0  ;;  %v9644_v0 = vld [vmem:[%s11448_s12 + $0x388] sm:$0xf] }
 0x7ed   :  { %5445 = vmatpush.bf16.msrb.mxu3 %v9509_v30  ;;  %v9612_v30 = vld [vmem:[%s11448_s12 + $0x348] sm:$0xf] }
 0x7ef   :  { %v13213_v23 = vpop.eup %11295 }
 0x7f0   :  { %v4533_v3 = vmul.f32 %v13213_v23, %v13199_v44  ;;  %vm4539_vm11 = vweird.f32 %v13213_v23  ;;  %v9285_v44 = vor.u32 %v10661_v54, %v9284_v15  ;;  %v9478_v15 = vld [vmem:[%s11448_s12 + $0x260] sm:$0xf0] }
 0x7f1   :  { %vm4540_vm13 = vmor %vm4538_vm12, %vm4539_vm11  ;;  %v9481_v10 = vor.u32 %v10705_v55, %v9478_v15  ;;  %v10662_v15 = vld [vmem:[%s11448_s12 + $0xe4] sm:$0xf0] }
 0x7f2   :  { %v4534_v12 = vmul.f32 %v13213_v23, %v4533_v3  ;;  %5425 = vmatpush.bf16.msra.mxu1 %v9285_v44  ;;  %v10649_v3 = vld [vmem:[%s11448_s12 + $0x84] sm:$0xf]  ;;  %v9388_v44 = vld [vmem:[%s11448_s12 + $0x188] sm:$0xf] }
 0x7f4   :  { %v4535_v21 = vmul.f32 0.5, %v4534_v12  ;;  %v9545_v12 = vor.u32 %v10721_v20, %v9542_v39  ;;  %v10750_v39 = vld [vmem:[%s11448_s12 + $0x3a4] sm:$0xf0] }
 0x7f5   :  { %v9645_v13 = vor.u32 %v10750_v39, %v9644_v0 }
 0x7f6   :  { %v4536_v28 = vsub.f32 1.5, %v4535_v21  ;;  %5426 = vmatpush.bf16.msra.mxu1 %v9253_v11  ;;  %5482 = vmatpush.bf16.msrb.mxu2 %v9545_v12  ;;  %v9510_v21 = vld [vmem:[%s11448_s12 + $0x2a0] sm:$0xf0]  ;;  %v9356_v11 = vld [vmem:[%s11448_s12 + $0x148] sm:$0xf] }
 0x7f7   :  { %v9513_v2 = vor.u32 %v10713_v37, %v9510_v21  ;;  %v9646_v12 = vld [vmem:[%s11448_s12 + $0x3a8] sm:$0xf0]  ;;  %v10742_v21 = vld [vmem:[%s11448_s12 + $0x364] sm:$0xf0] }
 0x7f8   :  { %v4537_v26 = vmul.f32 %v13213_v23, %v4536_v28  ;;  %v9476_v28 = vld [vmem:[%s11448_s12 + $0x240] sm:$0xf]  ;;  %v9649_v50 = vor.u32 %v10746_v17, %v9646_v12  ;;  %v9326_v37 = vld [vmem:[%s11448_s12 + $0x128] sm:$0xf0]  ;;  %v10646_v12 = vld [vmem:[%s11448_s12 + $0x64] sm:$0xf0] }
 0x7f9   :  { %v9477_v54 = vor.u32 %v10709_v38, %v9476_v28 }
 0x7fa   :  { %v4541_v32 = vsel %vm4540_vm13, %v13213_v23, %v4537_v26  ;;  %5427 = vmatpush.bf16.msra.mxu1 %v9221_v51  ;;  %5483 = vmatpush.bf16.msrb.mxu2 %v9513_v2  ;;  %v9420_v26 = vld [vmem:[%s11448_s12 + $0x1c8] sm:$0xf]  ;;  %v10666_v51 = vld [vmem:[%s11448_s12 + $0x10c] sm:$0xf] }
 0x7fb   :  { %4543 = vst [vmem:[#allocation1] sm:$0xff] %v4541_v32  ;;  %v9421_v57 = vor.u32 %v10694_v16, %v9420_v26  ;;  %v9425_v32 = vor.u32 %v10690_v46, %v9422_v58  ;;  %5446 = vmatpush.bf16.msrb.mxu3 %v9477_v54  ;;  %v9614_v2 = vld [vmem:[%s11448_s12 + $0x368] sm:$0xf0]  ;;  %v9329_v55 = vor.u32 %v10666_v51, %v9326_v37  ;;  %v9580_v46 = vld [vmem:[%s11448_s12 + $0x308] sm:$0xf] }
 0x7fc   :  { %v10658_v54 = vld [vmem:[%s11448_s12 + $0xcc] sm:$0xf]  ;;  %v9613_v16 = vor.u32 %v10742_v21, %v9612_v30  ;;  %v10718_v37 = vld [vmem:[%s11448_s12 + $0x2a4] sm:$0xf0] }
 0x7fd   :  { %v10730_v58 = vld [vmem:[%s11448_s12 + $0x30c] sm:$0xf] }
 0x7fe   :  { %5428 = vmatpush.bf16.msra.mxu1 %v9189_v22  ;;  %5484 = vmatpush.bf16.msrb.mxu2 %v9481_v10  ;;  %v9294_v10 = vld [vmem:[%s11448_s12 + $0xe8] sm:$0xf0] }
 0x7ff   :  { %5447 = vmatpush.bf16.msrb.mxu3 %v9445_v43  ;;  %v10714_v30 = vld [vmem:[%s11448_s12 + $0x28c] sm:$0xf] }
 0x800   :  { %v9518_v21 = vld [vmem:[%s11448_s12 + $0x2a8] sm:$0xf0] }
 0x802   :  { %v4545_v53 = vld [vmem:[#allocation1 + $0x1] ss:$9 sm:$0xff]  ;;  %5497 = vmatpush.bf16.msrb.mxu1 %v9421_v57 }
 0x803   :  { %v4547_v31 = vmul.f32 %v4545_v53, %v4530_v27  ;;  %v10686_v27 = vld [vmem:[%s11448_s12 + $0x1a4] sm:$0xf0]  ;;  %v10682_v53 = vld [vmem:[%s11448_s12 + $0x18c] sm:$0xf] }
 0x805   :  { %v4549_v45 = vmul.f32 %v4547_v31, %v13194_v59  ;;  %v9254_v59 = vld [vmem:[%s11448_s12 + $0xa0] sm:$0xf0] }
 0x806   :  { %v9257_v33 = vor.u32 %v10649_v3, %v9254_v59  ;;  %v9678_v3 = vld [vmem:[%s11448_s12 + $0x3e8] sm:$0xf0]  ;;  %v10678_v59 = vld [vmem:[%s11448_s12 + $0x164] sm:$0xf0] }
 0x807   :  { %v4550_v23 = vsub.f32 %v4548_v34, %v4549_v45  ;;  %v9449_v34 = vor.u32 %v10697_v1, %v9446_v42  ;;  %v9389_v45 = vor.u32 %v10686_v27, %v9388_v44  ;;  %v9681_v6 = vor.u32 %v10754_v35, %v9678_v3  ;;  %v9260_v42 = vld [vmem:[%s11448_s12 + $0x88] sm:$0xf]  ;;  %v10650_v44 = vld [vmem:[%s11448_s12 + $0x8c] sm:$0xf] }
 0x808   :  { %5464 = vmatpush.bf16.msra.mxu0 %v9257_v33  ;;  %v9358_v33 = vld [vmem:[%s11448_s12 + $0x168] sm:$0xf0]  ;;  %v9357_v20 = vor.u32 %v10678_v59, %v9356_v11  ;;  %v9297_v1 = vor.u32 %v10658_v54, %v9294_v10 }
 0x809   :  { %v4552_v4 = vperm.slane %v4550_v23, 0  ;;  %5498 = vmatpush.bf16.msrb.mxu1 %v9389_v45  ;;  %5485 = vmatpush.bf16.msrb.mxu2 %v9449_v34  ;;  %v9361_v24 = vor.u32 %v10674_v29, %v9358_v33  ;;  %v9550_v3 = vld [vmem:[%s11448_s12 + $0x2e8] sm:$0xf0]  ;;  %v9228_v33 = vld [vmem:[%s11448_s12 + $0x48] sm:$0xf] }
 0x80b   :  { %v4554_v8 = vsel %vm2408_vm1, %v4547_v31, %v4552_v4  ;;  %v9390_v31 = vld [vmem:[%s11448_s12 + $0x1a8] sm:$0xf0]  ;;  %v9676_v4 = vld [vmem:[%s11448_s12 + $0x3c8] sm:$0xf] }
 0x80c   :  { %9184 = vmatmul.msk.f32.vlgmr.msrb.gmra.mxu0 %vm4561_vm14, %v4554_v8  ;;  %9185 = vmatmul.msk.f32.vlgmr.msra.gmra.mxu2 %vm4561_vm14, %v4554_v8  ;;  %v9393_v23 = vor.u32 %v10682_v53, %v9390_v31  ;;  %v10758_v8 = vld [vmem:[%s11448_s12 + $0x3e4] sm:$0xf0]  ;;  %v9262_v53 = vld [vmem:[%s11448_s12 + $0xa8] sm:$0xf0] }
 0x80d   :  { %5465 = vmatpush.bf16.msra.mxu0 %v9225_v7  ;;  %v9677_v40 = vor.u32 %v10758_v8, %v9676_v4  ;;  %5554 = vmatpush.bf16.msra.mxu2 %v9681_v6  ;;  %v9548_v31 = vld [vmem:[%s11448_s12 + $0x2c8] sm:$0xf]  ;;  %v9585_v4 = vor.u32 %v10730_v58, %v9582_v18  ;;  %v9265_v17 = vor.u32 %v10650_v44, %v9262_v53  ;;  %v10706_v58 = vld [vmem:[%s11448_s12 + $0x24c] sm:$0xf]  ;;  %v10687_v44 = vld [vmem:[%s11448_s12 + $0x1ac] sm:$0xf0] }
 0x80e   :  { %5499 = vmatpush.bf16.msrb.mxu1 %v9357_v20  ;;  %v10726_v8 = vld [vmem:[%s11448_s12 + $0x2e4] sm:$0xf0]  ;;  %v9486_v18 = vld [vmem:[%s11448_s12 + $0x268] sm:$0xf0] }
 0x80f   :  { %5516 = vmatpush.bf16.msra.mxu3 %v9677_v40  ;;  %v10722_v40 = vld [vmem:[%s11448_s12 + $0x2cc] sm:$0xf]  ;;  %v9489_v53 = vor.u32 %v10706_v58, %v9486_v18  ;;  %v9302_v58 = vld [vmem:[%s11448_s12 + $0xf0] sm:$0xf0] }
 0x811   :  { %5466 = vmatpush.bf16.msra.mxu0 %v9193_v14  ;;  %5555 = vmatpush.bf16.msra.mxu2 %v9649_v50 }
 0x812   :  { %5500 = vmatpush.bf16.msrb.mxu1 %v9325_v63  ;;  %v10634_v63 = vld [vmem:[%s11448_s12 + $0xc] sm:$0xf] }
 0x813   :  { %5517 = vmatpush.bf16.msra.mxu3 %v9645_v13 }
 0x815   :  { %5535 = vmatpush.bf16.msrb.mxu0 %v9425_v32  ;;  %v9293_v32 = vor.u32 %v10662_v15, %v9292_v56 }
 0x817   :  { %5518 = vmatpush.bf16.msra.mxu3 %v9613_v16  ;;  %5501 = vmatpush.bf16.msrb.mxu1 %v9293_v32  ;;  %v9428_v16 = vld [vmem:[%s11448_s12 + $0x1d0] sm:$0xf] }
 0x819   :  { %5536 = vmatpush.bf16.msrb.mxu0 %v9393_v23 }
 0x81d   :  { %5537 = vmatpush.bf16.msrb.mxu0 %v9361_v24  ;;  %v10642_v24 = vld [vmem:[%s11448_s12 + $0x4c] sm:$0xf] }
 0x821   :  { %5538 = vmatpush.bf16.msrb.mxu0 %v9329_v55  ;;  %v10710_v55 = vld [vmem:[%s11448_s12 + $0x264] sm:$0xf0] }
 0x825   :  { %5539 = vmatpush.bf16.msrb.mxu0 %v9297_v1 }
 0x829   :  { %5540 = vmatpush.bf16.msrb.mxu0 %v9265_v17 }
 0x889   :  { %v4582_v7 = vpop.f32.mrf.mxu0 }
 0x88a   :  { %v4605_v25 = vperm.slane %v4582_v7, 0  ;;  %v4615_v22 = vperm.slane %v4582_v7, 1  ;;  %v9553_v7 = vor.u32 %v10722_v40, %v9550_v3  ;;  %v10698_v40 = vld [vmem:[%s11448_s12 + $0x20c] sm:$0xf] }
 0x88c   :  { %v4607_v28 = vmul.f32 %v4605_v25, %v13148_v61  ;;  %v4609_v14 = vmul.f32 %v4605_v25, %v13141_v52  ;;  %v4611_v38 = vmul.f32 %v4605_v25, %v13150_v36  ;;  %v4613_v26 = vmul.f32 %v4605_v25, %v13173_v49  ;;  %v10734_v52 = vld [vmem:[%s11448_s12 + $0x324] sm:$0xf0] }
 0x88d   :  { %v9617_v61 = vor.u32 %v10738_v19, %v9614_v2  ;;  %v10654_v49 = vld [vmem:[%s11448_s12 + $0xa4] sm:$0xf0]  ;;  %v9581_v27 = vor.u32 %v10734_v52, %v9580_v46  ;;  %v9229_v25 = vor.u32 %v10646_v12, %v9228_v33  ;;  %v9233_v19 = vor.u32 %v10642_v24, %v9230_v5  ;;  %v10691_v46 = vld [vmem:[%s11448_s12 + $0x1d4] sm:$0xf]  ;;  %v10679_v12 = vld [vmem:[%s11448_s12 + $0x16c] sm:$0xf0] }
 0x88e   :  { %v4617_v57 = vadd.f32 %v4615_v22, %v4607_v28  ;;  %v4619_v36 = vadd.f32 %v4615_v22, %v4609_v14  ;;  %v13328_v43 = vadd.f32 %v4615_v22, %v4611_v38  ;;  %v13332_v34 = vadd.f32 %v4615_v22, %v4613_v26  ;;  %v9196_v2 = vld [vmem:[%s11448_s12 + $0x8] sm:$0xf]  ;;  %v9198_v14 = vld [vmem:[%s11448_s12 + $0x28] sm:$0xf0]  ;;  %v10755_v33 = vld [vmem:[%s11448_s12 + $0x3d4] sm:$0xf] }
 0x88f   :  { %v4602_v9 = vpop.f32.mrf.mxu2  ;;  %5556 = vmatpush.bf16.msra.mxu2 %v9617_v61  ;;  %v9261_v29 = vor.u32 %v10654_v49, %v9260_v42  ;;  %5519 = vmatpush.bf16.msra.mxu3 %v9581_v27  ;;  %v10638_v22 = vld [vmem:[%s11448_s12 + $0x24] sm:$0xf0]  ;;  %v9521_v26 = vor.u32 %v10714_v30, %v9518_v21  ;;  %v10695_v61 = vld [vmem:[%s11448_s12 + $0x1ec] sm:$0xf0]  ;;  %v9201_v1 = vor.u32 %v10634_v63, %v9198_v14  ;;  %v9366_v24 = vld [vmem:[%s11448_s12 + $0x170] sm:$0xf0] }
 0x890   :  { %vm4625_vm15 = vcmp.ge.f32.partialorder %v4617_v57, 0.0  ;;  %vm4627_vm2 = vcmp.ge.f32.partialorder %v4619_v36, 0.0  ;;  %v4633_v45 = vmul.f32 0.2, %v4617_v57  ;;  %v4635_v23 = vmul.f32 0.2, %v4619_v36  ;;  %5541 = vmatpush.bf16.msrb.mxu0 %v9233_v19 }
 0x891   :  { %v13335_v35 = vperm.slane %v4602_v9, 0  ;;  %v13341_v6 = vperm.slane %v4602_v9, 1  ;;  %vm4629_vm3 = vcmp.ge.f32.partialorder %v13328_v43, 0.0  ;;  %v4637_v48 = vmul.f32 0.2, %v13328_v43  ;;  %5502 = vmatpush.bf16.msrb.mxu1 %v9261_v29 }
 0x892   :  { %v4641_v11 = vsel %vm4625_vm15, %v4617_v57, %v4633_v45  ;;  %v4643_v59 = vsel %vm4627_vm2, %v4619_v36, %v4635_v23  ;;  %v4639_v51 = vmul.f32 0.2, %v13332_v34  ;;  %v9484_v38 = vld [vmem:[%s11448_s12 + $0x248] sm:$0xf]  ;;  %v9197_v36 = vor.u32 %v10638_v22, %v9196_v2  ;;  %v9430_v9 = vld [vmem:[%s11448_s12 + $0x1f0] sm:$0xf0] }
 0x893   :  { %v13345_v0 = vpack.c.bf16 %v4643_v59, %v4641_v11  ;;  %v4608_v20 = vmul.f32 %v13335_v35, %v13166_v47  ;;  %v4610_v39 = vmul.f32 %v13335_v35, %v13156_v60  ;;  %5557 = vmatpush.bf16.msra.mxu2 %v9585_v4  ;;  %v9549_v47 = vor.u32 %v10726_v8, %v9548_v31  ;;  %v9516_v60 = vld [vmem:[%s11448_s12 + $0x288] sm:$0xf]  ;;  %v9396_v49 = vld [vmem:[%s11448_s12 + $0x190] sm:$0xf]  ;;  %v9398_v31 = vld [vmem:[%s11448_s12 + $0x1b0] sm:$0xf0] }
 0x894   :  { %v9517_v10 = vor.u32 %v10718_v37, %v9516_v60  ;;  %v4612_v52 = vmul.f32 %v13335_v35, %v13168_v41  ;;  %vm4631_vm7 = vcmp.ge.f32.partialorder %v13332_v34, 0.0  ;;  %v4614_v32 = vmul.f32 %v13335_v35, %v13187_v62  ;;  %v10683_v62 = vld [vmem:[%s11448_s12 + $0x194] sm:$0xf]  ;;  %v9452_v8 = vld [vmem:[%s11448_s12 + $0x208] sm:$0xf]  ;;  %5542 = vmatpush.bf16.msrb.mxu0 %v9201_v1 }
 0x895   :  { %v4618_v13 = vadd.f32 %v13341_v6, %v4608_v20  ;;  %v4620_v50 = vadd.f32 %v13341_v6, %v4610_v39  ;;  %5429 = vmatmul.bf16.vlgmr.msra.gmra.mxu1 %v13345_v0  ;;  %5467 = vmatmul.bf16.vlgmr.msra.gmra.mxu0 %v13345_v0  ;;  %v9429_v42 = vor.u32 %v10695_v61, %v9428_v16  ;;  %v10702_v35 = vld [vmem:[%s11448_s12 + $0x224] sm:$0xf0]  ;;  %v9684_v59 = vld [vmem:[%s11448_s12 + $0x3d0] sm:$0xf]  ;;  %v9686_v20 = vld [vmem:[%s11448_s12 + $0x3f0] sm:$0xf0] }
 0x896   :  { %5520 = vmatpush.bf16.msra.mxu3 %v9549_v47  ;;  %5503 = vmatpush.bf16.msrb.mxu1 %v9229_v25  ;;  %v9433_v41 = vor.u32 %v10691_v46, %v9430_v9  ;;  %v9485_v27 = vor.u32 %v10710_v55, %v9484_v38  ;;  %v4645_v45 = vsel %vm4629_vm3, %v13328_v43, %v4637_v48  ;;  %v9454_v43 = vld [vmem:[%s11448_s12 + $0x228] sm:$0xf0]  ;;  %v10759_v29 = vld [vmem:[%s11448_s12 + $0x3ec] sm:$0xf0]  ;;  %v10747_v21 = vld [vmem:[%s11448_s12 + $0x394] sm:$0xf] }
 0x897   :  { %vm4626_vm4 = vcmp.ge.f32.partialorder %v4618_v13, 0.0  ;;  %vm4628_vm5 = vcmp.ge.f32.partialorder %v4620_v50, 0.0  ;;  %v4634_v56 = vmul.f32 0.2, %v4618_v13  ;;  %v4636_v28 = vmul.f32 0.2, %v4620_v50  ;;  %5558 = vmatpush.bf16.msra.mxu2 %v9553_v7 }
 0x898   :  { %v4647_v23 = vsel %vm4631_vm7, %v13332_v34, %v4639_v51  ;;  %v4622_v4 = vadd.f32 %v13341_v6, %v4612_v52  ;;  %v4624_v3 = vadd.f32 %v13341_v6, %v4614_v32  ;;  %v9397_v11 = vor.u32 %v10687_v44, %v9396_v49  ;;  %5611 = vmatpush.bf16.msra.mxu0 %v9433_v41  ;;  %v9364_v39 = vld [vmem:[%s11448_s12 + $0x150] sm:$0xf]  ;;  %v10675_v6 = vld [vmem:[%s11448_s12 + $0x154] sm:$0xf] }
 0x899   :  { %v4642_v15 = vsel %vm4626_vm4, %v4618_v13, %v4634_v56  ;;  %v4644_v54 = vsel %vm4628_vm5, %v4620_v50, %v4636_v28  ;;  %v9401_v34 = vor.u32 %v10683_v62, %v9398_v31  ;;  %v13406_v17 = vpack.c.bf16 %v4647_v23, %v4645_v45  ;;  %v9652_v13 = vld [vmem:[%s11448_s12 + $0x390] sm:$0xf]  ;;  %v9654_v25 = vld [vmem:[%s11448_s12 + $0x3b0] sm:$0xf0] }
 0x89a   :  { %v13375_v57 = vpack.c.bf16 %v4644_v54, %v4642_v15  ;;  %5521 = vmatpush.bf16.msra.mxu3 %v9517_v10  ;;  %5504 = vmatpush.bf16.msrb.mxu1 %v9197_v36  ;;  %vm4630_vm8 = vcmp.ge.f32.partialorder %v4622_v4, 0.0  ;;  %v4638_v5 = vmul.f32 0.2, %v4622_v4  ;;  %v9453_v48 = vor.u32 %v10702_v35, %v9452_v8  ;;  %v10751_v30 = vld [vmem:[%s11448_s12 + $0x3ac] sm:$0xf0] }
 0x89b   :  { %5559 = vmatpush.bf16.msra.mxu2 %v9521_v26  ;;  %v9457_v51 = vor.u32 %v10698_v40, %v9454_v43  ;;  %vm4632_vm9 = vcmp.ge.f32.partialorder %v4624_v3, 0.0  ;;  %v4640_v47 = vmul.f32 0.2, %v4624_v3  ;;  %v9685_v7 = vor.u32 %v10759_v29, %v9684_v59  ;;  %v9332_v19 = vld [vmem:[%s11448_s12 + $0x110] sm:$0xf] }
 0x89c   :  { %5448 = vmatmul.bf16.vlgmr.msrb.gmra.mxu3 %v13375_v57  ;;  %5486 = vmatmul.bf16.vlgmr.msrb.gmra.mxu2 %v13375_v57  ;;  %v9689_v60 = vor.u32 %v10755_v33, %v9686_v20  ;;  %v9365_v50 = vor.u32 %v10679_v12, %v9364_v39  ;;  %v9369_v37 = vor.u32 %v10675_v6, %v9366_v24  ;;  %v10671_v22 = vld [vmem:[%s11448_s12 + $0x12c] sm:$0xf0]  ;;  %v10667_v63 = vld [vmem:[%s11448_s12 + $0x114] sm:$0xf] }
 0x89d   :  { %5612 = vmatpush.bf16.msra.mxu0 %v9401_v34  ;;  %v4646_v2 = vsel %vm4630_vm8, %v4622_v4, %v4638_v5  ;;  %v9334_v56 = vld [vmem:[%s11448_s12 + $0x130] sm:$0xf0]  ;;  %v4648_v28 = vsel %vm4632_vm9, %v4624_v3, %v4640_v47  ;;  %v9653_v14 = vor.u32 %v10751_v30, %v9652_v13  ;;  %v9657_v38 = vor.u32 %v10747_v21, %v9654_v25  ;;  %v9620_v55 = vld [vmem:[%s11448_s12 + $0x350] sm:$0xf] }
 0x89e   :  { %5573 = vmatpush.bf16.msra.mxu1 %v9429_v42  ;;  %5522 = vmatpush.bf16.msra.mxu3 %v9485_v27  ;;  %v10743_v15 = vld [vmem:[%s11448_s12 + $0x36c] sm:$0xf0]  ;;  %v10739_v54 = vld [vmem:[%s11448_s12 + $0x354] sm:$0xf]  ;;  %v9333_v26 = vor.u32 %v10671_v22, %v9332_v19  ;;  %v9337_v16 = vor.u32 %v10667_v63, %v9334_v56  ;;  %v13428_v46 = vpack.c.bf16 %v4648_v28, %v4646_v2  ;;  %v9436_v19 = vld [vmem:[%s11448_s12 + $0x1d8] sm:$0xf] }
 0x89f   :  { %5560 = vmatpush.bf16.msra.mxu2 %v9489_v53  ;;  %v9622_v10 = vld [vmem:[%s11448_s12 + $0x370] sm:$0xf0]  ;;  %v9300_v61 = vld [vmem:[%s11448_s12 + $0xd0] sm:$0xf]  ;;  %v9621_v18 = vor.u32 %v10743_v15, %v9620_v55  ;;  %v10696_v2 = vld [vmem:[%s11448_s12 + $0x1f4] sm:$0xf0] }
 0x8a0   :  { %v10663_v52 = vld [vmem:[%s11448_s12 + $0xec] sm:$0xf0]  ;;  %v10659_v36 = vld [vmem:[%s11448_s12 + $0xd4] sm:$0xf]  ;;  %v9625_v9 = vor.u32 %v10739_v54, %v9622_v10  ;;  %v10692_v22 = vld [vmem:[%s11448_s12 + $0x1dc] sm:$0xf]  ;;  %v9437_v54 = vor.u32 %v10696_v2, %v9436_v19 }
 0x8a1   :  { %5613 = vmatpush.bf16.msra.mxu0 %v9369_v37  ;;  %v9588_v32 = vld [vmem:[%s11448_s12 + $0x310] sm:$0xf]  ;;  %v10731_v42 = vld [vmem:[%s11448_s12 + $0x314] sm:$0xf]  ;;  %v9301_v49 = vor.u32 %v10663_v52, %v9300_v61  ;;  %v9305_v44 = vor.u32 %v10659_v36, %v9302_v58  ;;  %v9438_v63 = vld [vmem:[%s11448_s12 + $0x1f8] sm:$0xf0] }
 0x8a2   :  { %5574 = vmatpush.bf16.msra.mxu1 %v9397_v11  ;;  %5523 = vmatpush.bf16.msra.mxu3 %v9453_v48  ;;  %v10735_v1 = vld [vmem:[%s11448_s12 + $0x32c] sm:$0xf0]  ;;  %v9590_v41 = vld [vmem:[%s11448_s12 + $0x330] sm:$0xf0]  ;;  %v9441_v10 = vor.u32 %v10692_v22, %v9438_v63  ;;  %v9404_v61 = vld [vmem:[%s11448_s12 + $0x198] sm:$0xf] }
 0x8a3   :  { %5561 = vmatpush.bf16.msra.mxu2 %v9457_v51  ;;  %v9268_v27 = vld [vmem:[%s11448_s12 + $0x90] sm:$0xf]  ;;  %v9589_v62 = vor.u32 %v10735_v1, %v9588_v32  ;;  %v9593_v31 = vor.u32 %v10731_v42, %v9590_v41  ;;  %v10651_v45 = vld [vmem:[%s11448_s12 + $0x94] sm:$0xf]  ;;  %v10688_v52 = vld [vmem:[%s11448_s12 + $0x1b4] sm:$0xf0] }
 0x8a4   :  { %v10655_v53 = vld [vmem:[%s11448_s12 + $0xac] sm:$0xf0]  ;;  %v9270_v23 = vld [vmem:[%s11448_s12 + $0xb0] sm:$0xf0]  ;;  %v10684_v36 = vld [vmem:[%s11448_s12 + $0x19c] sm:$0xf] }
 0x8a5   :  { %5434 = vmatmul.bf16.gmra.mxu1 %v13406_v17  ;;  %5472 = vmatmul.bf16.gmra.mxu0 %v13406_v17  ;;  %v9556_v4 = vld [vmem:[%s11448_s12 + $0x2d0] sm:$0xf]  ;;  %v10723_v35 = vld [vmem:[%s11448_s12 + $0x2d4] sm:$0xf]  ;;  %v9269_v3 = vor.u32 %v10655_v53, %v9268_v27  ;;  %v9273_v43 = vor.u32 %v10651_v45, %v9270_v23  ;;  %v9406_v58 = vld [vmem:[%s11448_s12 + $0x1b8] sm:$0xf0] }
 0x8a6   :  { %5592 = vmatpush.bf16.msrb.mxu3 %v9685_v7  ;;  %5575 = vmatpush.bf16.msra.mxu1 %v9365_v50  ;;  %v10727_v8 = vld [vmem:[%s11448_s12 + $0x2ec] sm:$0xf0]  ;;  %v9558_v40 = vld [vmem:[%s11448_s12 + $0x2f0] sm:$0xf0]  ;;  %v10760_v1 = vld [vmem:[%s11448_s12 + $0x3f4] sm:$0xf0] }
 0x8a7   :  { %5630 = vmatpush.bf16.msrb.mxu2 %v9689_v60  ;;  %5614 = vmatpush.bf16.msra.mxu0 %v9337_v16  ;;  %v9236_v11 = vld [vmem:[%s11448_s12 + $0x50] sm:$0xf]  ;;  %v9557_v29 = vor.u32 %v10727_v8, %v9556_v4  ;;  %v9561_v34 = vor.u32 %v10723_v35, %v9558_v40  ;;  %v10643_v33 = vld [vmem:[%s11448_s12 + $0x54] sm:$0xf]  ;;  %v10756_v42 = vld [vmem:[%s11448_s12 + $0x3dc] sm:$0xf] }
 0x8a8   :  { %v10647_v59 = vld [vmem:[%s11448_s12 + $0x6c] sm:$0xf0]  ;;  %v9238_v20 = vld [vmem:[%s11448_s12 + $0x70] sm:$0xf0]  ;;  %v9694_v41 = vld [vmem:[%s11448_s12 + $0x3f8] sm:$0xf0] }
 0x8a9   :  { %v9524_v39 = vld [vmem:[%s11448_s12 + $0x290] sm:$0xf]  ;;  %v10715_v6 = vld [vmem:[%s11448_s12 + $0x294] sm:$0xf]  ;;  %v9237_v5 = vor.u32 %v10647_v59, %v9236_v11  ;;  %v9241_v48 = vor.u32 %v10643_v33, %v9238_v20  ;;  %v9372_v27 = vld [vmem:[%s11448_s12 + $0x158] sm:$0xf]  ;;  %v9697_v23 = vor.u32 %v10756_v42, %v9694_v41 }
 0x8aa   :  { %5593 = vmatpush.bf16.msrb.mxu3 %v9653_v14  ;;  %5576 = vmatpush.bf16.msra.mxu1 %v9333_v26  ;;  %v10719_v12 = vld [vmem:[%s11448_s12 + $0x2ac] sm:$0xf0]  ;;  %v9526_v24 = vld [vmem:[%s11448_s12 + $0x2b0] sm:$0xf0]  ;;  %v10680_v53 = vld [vmem:[%s11448_s12 + $0x174] sm:$0xf0] }
 0x8ab   :  { %5631 = vmatpush.bf16.msrb.mxu2 %v9657_v38  ;;  %5615 = vmatpush.bf16.msra.mxu0 %v9305_v44  ;;  %v9204_v51 = vld [vmem:[%s11448_s12 + $0x10] sm:$0xf]  ;;  %v10635_v7 = vld [vmem:[%s11448_s12 + $0x14] sm:$0xf]  ;;  %v9525_v60 = vor.u32 %v10719_v12, %v9524_v39  ;;  %v9529_v13 = vor.u32 %v10715_v6, %v9526_v24  ;;  %v9409_v44 = vor.u32 %v10684_v36, %v9406_v58  ;;  %v9660_v4 = vld [vmem:[%s11448_s12 + $0x398] sm:$0xf] }
 0x8ac   :  { %5453 = vmatmul.bf16.gmra.mxu3 %v13428_v46  ;;  %5491 = vmatmul.bf16.gmra.mxu2 %v13428_v46  ;;  %v10639_v47 = vld [vmem:[%s11448_s12 + $0x2c] sm:$0xf0]  ;;  %v9206_v50 = vld [vmem:[%s11448_s12 + $0x30] sm:$0xf0]  ;;  %v10752_v8 = vld [vmem:[%s11448_s12 + $0x3b4] sm:$0xf0] }
 0x8ad   :  { %v9492_v37 = vld [vmem:[%s11448_s12 + $0x250] sm:$0xf]  ;;  %v10707_v21 = vld [vmem:[%s11448_s12 + $0x254] sm:$0xf]  ;;  %v9205_v56 = vor.u32 %v10639_v47, %v9204_v51  ;;  %v9209_v28 = vor.u32 %v10635_v7, %v9206_v50  ;;  %v10748_v35 = vld [vmem:[%s11448_s12 + $0x39c] sm:$0xf] }
 0x8ae   :  { %5594 = vmatpush.bf16.msrb.mxu3 %v9621_v18  ;;  %5577 = vmatpush.bf16.msra.mxu1 %v9301_v49  ;;  %v10711_v30 = vld [vmem:[%s11448_s12 + $0x26c] sm:$0xf0]  ;;  %v9494_v25 = vld [vmem:[%s11448_s12 + $0x270] sm:$0xf0]  ;;  %v9692_v18 = vld [vmem:[%s11448_s12 + $0x3d8] sm:$0xf]  ;;  %v9405_v49 = vor.u32 %v10688_v52, %v9404_v61 }
 0x8af   :  { %5632 = vmatpush.bf16.msrb.mxu2 %v9625_v9  ;;  %5616 = vmatpush.bf16.msra.mxu0 %v9273_v43  ;;  %v9493_v14 = vor.u32 %v10711_v30, %v9492_v37  ;;  %v9497_v38 = vor.u32 %v10707_v21, %v9494_v25  ;;  %v9460_v55 = vld [vmem:[%s11448_s12 + $0x210] sm:$0xf]  ;;  %v10699_v26 = vld [vmem:[%s11448_s12 + $0x214] sm:$0xf]  ;;  %v9693_v45 = vor.u32 %v10760_v1, %v9692_v18  ;;  %v9662_v40 = vld [vmem:[%s11448_s12 + $0x3b8] sm:$0xf0] }
 0x8b0   :  { %v10703_v15 = vld [vmem:[%s11448_s12 + $0x22c] sm:$0xf0]  ;;  %v9462_v16 = vld [vmem:[%s11448_s12 + $0x230] sm:$0xf0]  ;;  %v9340_v11 = vld [vmem:[%s11448_s12 + $0x118] sm:$0xf] }
 0x8b1   :  { %v9461_v9 = vor.u32 %v10703_v15, %v9460_v55  ;;  %v9465_v32 = vor.u32 %v10699_v26, %v9462_v16  ;;  %v10672_v59 = vld [vmem:[%s11448_s12 + $0x134] sm:$0xf0]  ;;  %v10668_v33 = vld [vmem:[%s11448_s12 + $0x11c] sm:$0xf] }
 0x8b2   :  { %5595 = vmatpush.bf16.msrb.mxu3 %v9589_v62  ;;  %5578 = vmatpush.bf16.msra.mxu1 %v9269_v3  ;;  %v10676_v62 = vld [vmem:[%s11448_s12 + $0x15c] sm:$0xf]  ;;  %v9373_v3 = vor.u32 %v10680_v53, %v9372_v27  ;;  %v9628_v39 = vld [vmem:[%s11448_s12 + $0x358] sm:$0xf] }
 0x8b3   :  { %5633 = vmatpush.bf16.msrb.mxu2 %v9593_v31  ;;  %5617 = vmatpush.bf16.msra.mxu0 %v9241_v48  ;;  %v9374_v31 = vld [vmem:[%s11448_s12 + $0x178] sm:$0xf0]  ;;  %v10744_v12 = vld [vmem:[%s11448_s12 + $0x374] sm:$0xf0] }
 0x8b4   :  { %v9377_v43 = vor.u32 %v10676_v62, %v9374_v31  ;;  %v9342_v20 = vld [vmem:[%s11448_s12 + $0x138] sm:$0xf0]  ;;  %v9308_v51 = vld [vmem:[%s11448_s12 + $0xd8] sm:$0xf]  ;;  %v9629_v7 = vor.u32 %v10744_v12, %v9628_v39 }
 0x8b5   :  { %5505 = vmatmul.bf16.vlgmr.msrb.gmra.mxu1 %v13345_v0  ;;  %5543 = vmatmul.bf16.vlgmr.msrb.gmra.mxu0 %v13345_v0  ;;  %v10740_v6 = vld [vmem:[%s11448_s12 + $0x35c] sm:$0xf]  ;;  %v9345_v48 = vor.u32 %v10668_v33, %v9342_v20  ;;  %v10664_v47 = vld [vmem:[%s11448_s12 + $0xf4] sm:$0xf0] }
 0x8b6   :  { %5596 = vmatpush.bf16.msrb.mxu3 %v9557_v29  ;;  %5579 = vmatpush.bf16.msra.mxu1 %v9237_v5  ;;  %v9661_v29 = vor.u32 %v10752_v8, %v9660_v4  ;;  %v9630_v24 = vld [vmem:[%s11448_s12 + $0x378] sm:$0xf0]  ;;  %v9341_v5 = vor.u32 %v10672_v59, %v9340_v11  ;;  %v9596_v37 = vld [vmem:[%s11448_s12 + $0x318] sm:$0xf]  ;;  %v9309_v19 = vor.u32 %v10664_v47, %v9308_v51 }
 0x8b7   :  { %5634 = vmatpush.bf16.msrb.mxu2 %v9561_v34  ;;  %5618 = vmatpush.bf16.msra.mxu0 %v9209_v28  ;;  %v9665_v34 = vor.u32 %v10748_v35, %v9662_v40  ;;  %v9310_v50 = vld [vmem:[%s11448_s12 + $0xf8] sm:$0xf0]  ;;  %v10736_v30 = vld [vmem:[%s11448_s12 + $0x334] sm:$0xf0] }
 0x8b8   :  { %v10732_v21 = vld [vmem:[%s11448_s12 + $0x31c] sm:$0xf]  ;;  %v9597_v22 = vor.u32 %v10736_v30, %v9596_v37  ;;  %v10656_v28 = vld [vmem:[%s11448_s12 + $0xb4] sm:$0xf0] }
 0x8b9   :  { %v9598_v25 = vld [vmem:[%s11448_s12 + $0x338] sm:$0xf0]  ;;  %v9564_v55 = vld [vmem:[%s11448_s12 + $0x2d8] sm:$0xf] }
 0x8ba   :  { %5597 = vmatpush.bf16.msrb.mxu3 %v9525_v60  ;;  %5580 = vmatpush.bf16.msra.mxu1 %v9205_v56  ;;  %v9633_v60 = vor.u32 %v10740_v6, %v9630_v24  ;;  %v9601_v63 = vor.u32 %v10732_v21, %v9598_v25  ;;  %v9276_v56 = vld [vmem:[%s11448_s12 + $0x98] sm:$0xf]  ;;  %v10644_v18 = vld [vmem:[%s11448_s12 + $0x5c] sm:$0xf] }
 0x8bb   :  { %5635 = vmatpush.bf16.msrb.mxu2 %v9529_v13  ;;  %5687 = vmatpush.bf16.msrb.mxu0 %v9441_v10  ;;  %v10660_v13 = vld [vmem:[%s11448_s12 + $0xdc] sm:$0xf]  ;;  %v10728_v15 = vld [vmem:[%s11448_s12 + $0x2f4] sm:$0xf0]  ;;  %v9277_v26 = vor.u32 %v10656_v28, %v9276_v56 }
 0x8bc   :  { %5524 = vmatmul.bf16.vlgmr.msra.gmra.mxu3 %v13375_v57  ;;  %5562 = vmatmul.bf16.vlgmr.msra.gmra.mxu2 %v13375_v57  ;;  %v9313_v2 = vor.u32 %v10660_v13, %v9310_v50  ;;  %v9566_v10 = vld [vmem:[%s11448_s12 + $0x2f8] sm:$0xf0]  ;;  %v9244_v61 = vld [vmem:[%s11448_s12 + $0x58] sm:$0xf]  ;;  %v9565_v36 = vor.u32 %v10728_v15, %v9564_v55 }
 0x8bd   :  { %v10648_v52 = vld [vmem:[%s11448_s12 + $0x74] sm:$0xf0]  ;;  %v10716_v42 = vld [vmem:[%s11448_s12 + $0x29c] sm:$0xf] }
 0x8be   :  { %5598 = vmatpush.bf16.msrb.mxu3 %v9493_v14  ;;  %5649 = vmatpush.bf16.msrb.mxu1 %v9437_v54  ;;  %v10652_v14 = vld [vmem:[%s11448_s12 + $0x9c] sm:$0xf]  ;;  %v10720_v1 = vld [vmem:[%s11448_s12 + $0x2b4] sm:$0xf0] }
 0x8bf   :  { %5636 = vmatpush.bf16.msrb.mxu2 %v9497_v38  ;;  %5688 = vmatpush.bf16.msrb.mxu0 %v9409_v44  ;;  %v9278_v38 = vld [vmem:[%s11448_s12 + $0xb8] sm:$0xf0]  ;;  %v9212_v27 = vld [vmem:[%s11448_s12 + $0x18] sm:$0xf] }
 0x8c0   :  { %v10724_v54 = vld [vmem:[%s11448_s12 + $0x2dc] sm:$0xf]  ;;  %v9281_v16 = vor.u32 %v10652_v14, %v9278_v38  ;;  %v10640_v53 = vld [vmem:[%s11448_s12 + $0x34] sm:$0xf0] }
 0x8c1   :  { %v9569_v58 = vor.u32 %v10724_v54, %v9566_v10  ;;  %v9534_v41 = vld [vmem:[%s11448_s12 + $0x2b8] sm:$0xf0]  ;;  %v9500_v4 = vld [vmem:[%s11448_s12 + $0x258] sm:$0xf] }
 0x8c2   :  { %5599 = vmatpush.bf16.msrb.mxu3 %v9461_v9  ;;  %5650 = vmatpush.bf16.msrb.mxu1 %v9405_v49  ;;  %v9246_v9 = vld [vmem:[%s11448_s12 + $0x78] sm:$0xf0]  ;;  %v9245_v49 = vor.u32 %v10648_v52, %v9244_v61  ;;  %v9537_v31 = vor.u32 %v10716_v42, %v9534_v41  ;;  %v10712_v8 = vld [vmem:[%s11448_s12 + $0x274] sm:$0xf0] }
 0x8c3   :  { %5637 = vmatpush.bf16.msrb.mxu2 %v9465_v32  ;;  %5689 = vmatpush.bf16.msrb.mxu0 %v9377_v43  ;;  %v9532_v32 = vld [vmem:[%s11448_s12 + $0x298] sm:$0xf]  ;;  %v9249_v44 = vor.u32 %v10644_v18, %v9246_v9  ;;  %v10708_v35 = vld [vmem:[%s11448_s12 + $0x25c] sm:$0xf]  ;;  %v9501_v11 = vor.u32 %v10712_v8, %v9500_v4 }
 0x8c4   :  { %v9533_v62 = vor.u32 %v10720_v1, %v9532_v32  ;;  %v9502_v40 = vld [vmem:[%s11448_s12 + $0x278] sm:$0xf0] }
 0x8c5   :  { %5510 = vmatmul.bf16.gmra.mxu1 %v13406_v17  ;;  %5548 = vmatmul.bf16.gmra.mxu0 %v13406_v17  ;;  %v9505_v59 = vor.u32 %v10708_v35, %v9502_v40  ;;  %v10700_v33 = vld [vmem:[%s11448_s12 + $0x21c] sm:$0xf] }
 0x8c6   :  { %5668 = vmatpush.bf16.msra.mxu3 %v9693_v45  ;;  %5651 = vmatpush.bf16.msrb.mxu1 %v9373_v3  ;;  %v10636_v45 = vld [vmem:[%s11448_s12 + $0x1c] sm:$0xf]  ;;  %v9213_v3 = vor.u32 %v10640_v53, %v9212_v27 }
 0x8c7   :  { %5706 = vmatpush.bf16.msra.mxu2 %v9697_v23  ;;  %5690 = vmatpush.bf16.msrb.mxu0 %v9345_v48  ;;  %v9214_v23 = vld [vmem:[%s11448_s12 + $0x38] sm:$0xf0] }
 0x8c8   :  { %v9217_v43 = vor.u32 %v10636_v45, %v9214_v23  ;;  %v9470_v20 = vld [vmem:[%s11448_s12 + $0x238] sm:$0xf0] }
 0x8c9   :  { %v9473_v12 = vor.u32 %v10700_v33, %v9470_v20 }
 0x8ca   :  { %5669 = vmatpush.bf16.msra.mxu3 %v9661_v29  ;;  %5652 = vmatpush.bf16.msrb.mxu1 %v9341_v5  ;;  %v9468_v29 = vld [vmem:[%s11448_s12 + $0x218] sm:$0xf] }
 0x8cb   :  { %5707 = vmatpush.bf16.msra.mxu2 %v9665_v34  ;;  %5691 = vmatpush.bf16.msrb.mxu0 %v9313_v2  ;;  %v10704_v34 = vld [vmem:[%s11448_s12 + $0x234] sm:$0xf0]  ;;  %s8033_s12 = sshll.u32 %s11369_s30, 4  ;;  %s8034_s12 = int_to_ptr.vmem [resolvable:$true] %s8033_s12 }
 0x8cc   :  { %5529 = vmatmul.bf16.gmra.mxu3 %v13428_v46  ;;  %5567 = vmatmul.bf16.gmra.mxu2 %v13428_v46  ;;  %v9469_v39 = vor.u32 %v10704_v34, %v9468_v29 }
 0x8ce   :  { %5670 = vmatpush.bf16.msra.mxu3 %v9629_v7  ;;  %5653 = vmatpush.bf16.msrb.mxu1 %v9309_v19 }
 0x8cf   :  { %5708 = vmatpush.bf16.msra.mxu2 %v9633_v60  ;;  %5692 = vmatpush.bf16.msrb.mxu0 %v9281_v16 }
 0x8d2   :  { %5671 = vmatpush.bf16.msra.mxu3 %v9597_v22  ;;  %5654 = vmatpush.bf16.msrb.mxu1 %v9277_v26 }
 0x8d3   :  { %5709 = vmatpush.bf16.msra.mxu2 %v9601_v63  ;;  %5693 = vmatpush.bf16.msrb.mxu0 %v9249_v44 }
 0x8d5   :  { %5581 = vmatmul.bf16.vlgmr.msra.gmra.mxu1 %v13345_v0  ;;  %5619 = vmatmul.bf16.vlgmr.msra.gmra.mxu0 %v13345_v0 }
 0x8d6   :  { %5672 = vmatpush.bf16.msra.mxu3 %v9565_v36  ;;  %5655 = vmatpush.bf16.msrb.mxu1 %v9245_v49 }
 0x8d7   :  { %5710 = vmatpush.bf16.msra.mxu2 %v9569_v58  ;;  %5694 = vmatpush.bf16.msrb.mxu0 %v9217_v43 }
 0x8da   :  { %5673 = vmatpush.bf16.msra.mxu3 %v9533_v62  ;;  %5656 = vmatpush.bf16.msrb.mxu1 %v9213_v3 }
 0x8db   :  { %5711 = vmatpush.bf16.msra.mxu2 %v9537_v31 }
 0x8dc   :  { %5600 = vmatmul.bf16.vlgmr.msrb.gmra.mxu3 %v13375_v57  ;;  %5638 = vmatmul.bf16.vlgmr.msrb.gmra.mxu2 %v13375_v57 }
 0x8de   :  { %5674 = vmatpush.bf16.msra.mxu3 %v9501_v11 }
 0x8df   :  { %5712 = vmatpush.bf16.msra.mxu2 %v9505_v59 }
 0x8e2   :  { %5675 = vmatpush.bf16.msra.mxu3 %v9469_v39 }
 0x8e3   :  { %5713 = vmatpush.bf16.msra.mxu2 %v9473_v12 }
 0x8e5   :  { %5586 = vmatmul.bf16.gmra.mxu1 %v13406_v17  ;;  %5624 = vmatmul.bf16.gmra.mxu0 %v13406_v17 }
 0x8ec   :  { %5605 = vmatmul.bf16.gmra.mxu3 %v13428_v46  ;;  %5643 = vmatmul.bf16.gmra.mxu2 %v13428_v46 }
 0x8f5   :  { %5657 = vmatmul.bf16.vlgmr.msrb.gmra.mxu1 %v13345_v0  ;;  %5695 = vmatmul.bf16.vlgmr.msrb.gmra.mxu0 %v13345_v0 }
 0x8fc   :  { %5676 = vmatmul.bf16.vlgmr.msra.gmra.mxu3 %v13375_v57  ;;  %5714 = vmatmul.bf16.vlgmr.msra.gmra.mxu2 %v13375_v57 }
 0x905   :  { %5662 = vmatmul.bf16.gmra.mxu1 %v13406_v17  ;;  %5700 = vmatmul.bf16.gmra.mxu0 %v13406_v17 }
 0x90c   :  { %5681 = vmatmul.bf16.gmra.mxu3 %v13428_v46  ;;  %5719 = vmatmul.bf16.gmra.mxu2 %v13428_v46 }
 0x912   :  { %v5430_v6 = vpop.f32.mrf.mxu1  ;;  %v5468_v24 = vpop.f32.mrf.mxu0 }
 0x91a   :  { %v5432_v5 = vpop.f32.mrf.mxu1  ;;  %v5470_v48 = vpop.f32.mrf.mxu0 }
 0x91f   :  { %v5449_v51 = vpop.f32.mrf.mxu3  ;;  %v5487_v47 = vpop.f32.mrf.mxu2 }
 0x920   :  { %v5450_v22 = vadd.f32 %v5449_v51, %v5430_v6  ;;  %v5488_v28 = vadd.f32 %v5487_v47, %v5468_v24 }
 0x922   :  { %v5435_v7 = vpop.f32.mrf.mxu1  ;;  %v5473_v0 = vpop.f32.mrf.mxu0  ;;  %v13559_v16 = vpack.c.bf16 %v5488_v28, %v5450_v22  ;;  %v10761_v28 = vld [vmem:[%s14175_s0] sm:$0xff] }
 0x924   :  { %v5812_v32 = vunpack.c.l.b16 %v13559_v16 }
 0x927   :  { %v5451_v60 = vpop.f32.mrf.mxu3  ;;  %v5489_v13 = vpop.f32.mrf.mxu2 }
 0x928   :  { %v5452_v2 = vadd.f32 %v5451_v60, %v5432_v5  ;;  %v5490_v46 = vadd.f32 %v5489_v13, %v5470_v48 }
 0x92a   :  { %v5437_v50 = vpop.f32.mrf.mxu1  ;;  %v5475_v57 = vpop.f32.mrf.mxu0  ;;  %v13557_v15 = vpack.c.bf16 %v5490_v46, %v5452_v2 }
 0x92c   :  { %v5814_v36 = vunpack.c.l.b16 %v13557_v15  ;;  %v5815_v2 = vunpack.c.h.b16 %v13557_v15 }
 0x92e   :  { %v5820_v41 = vpack.c.b16 %v5814_v36, %v5812_v32 }
 0x92f   :  { %v5454_v37 = vpop.f32.mrf.mxu3  ;;  %v5492_v30 = vpop.f32.mrf.mxu2 }
 0x930   :  { %v5455_v25 = vadd.f32 %v5454_v37, %v5435_v7  ;;  %v5493_v19 = vadd.f32 %v5492_v30, %v5473_v0 }
 0x932   :  { %v5506_v21 = vpop.f32.mrf.mxu1  ;;  %v5544_v17 = vpop.f32.mrf.mxu0  ;;  %v13555_v14 = vpack.c.bf16 %v5493_v19, %v5455_v25 }
 0x934   :  { %v5816_v61 = vunpack.c.l.b16 %v13555_v14 }
 0x937   :  { %v5456_v63 = vpop.f32.mrf.mxu3  ;;  %v5494_v56 = vpop.f32.mrf.mxu2 }
 0x938   :  { %v5457_v38 = vadd.f32 %v5456_v63, %v5437_v50  ;;  %v5495_v55 = vadd.f32 %v5494_v56, %v5475_v57  ;;  %v10762_v56 = vld [vmem:[%s14175_s0 + $0x8] sm:$0xff] }
 0x93a   :  { %v5737_v54 = vpack.c.bf16 %v5495_v55, %v5457_v38  ;;  %v5508_v10 = vpop.f32.mrf.mxu1  ;;  %v5546_v26 = vpop.f32.mrf.mxu0  ;;  %v5813_v38 = vunpack.c.h.b16 %v13559_v16 }
 0x93c   :  { %v5818_v52 = vunpack.c.l.b16 %v5737_v54  ;;  %v5819_v50 = vunpack.c.h.b16 %v5737_v54 }
 0x93e   :  { %v5822_v58 = vpack.c.b16 %v5818_v52, %v5816_v61 }
 0x93f   :  { %v5525_v18 = vpop.f32.mrf.mxu3  ;;  %v5563_v9 = vpop.f32.mrf.mxu2 }
 0x940   :  { %5837 = vmatpush.bf16.msra.mxu0 %v5822_v58  ;;  %v5526_v3 = vadd.f32 %v5525_v18, %v5506_v21  ;;  %v5564_v43 = vadd.f32 %v5563_v9, %v5544_v17  ;;  %v5817_v17 = vunpack.c.h.b16 %v13555_v14  ;;  %v5821_v14 = vpack.c.b16 %v5815_v2, %v5813_v38 }
 0x942   :  { %v5511_v1 = vpop.f32.mrf.mxu1  ;;  %v5549_v42 = vpop.f32.mrf.mxu0  ;;  %v5726_v24 = vpack.c.bf16 %v5564_v43, %v5526_v3  ;;  %v5823_v46 = vpack.c.b16 %v5819_v50, %v5817_v17 }
 0x944   :  { %5838 = vmatpush.bf16.msra.mxu0 %v5820_v41  ;;  %v5755_v30 = vunpack.c.l.b16 %v5726_v24  ;;  %v5756_v21 = vunpack.c.h.b16 %v5726_v24 }
 0x947   :  { %v5527_v49 = vpop.f32.mrf.mxu3  ;;  %v5565_v44 = vpop.f32.mrf.mxu2  ;;  %9710 = vmatmul.msk.bf16.vlgmr.msra.gmra.mxu0 %vm5771_vm10, %v10761_v28 }
 0x948   :  { %v5528_v35 = vadd.f32 %v5527_v49, %v5508_v10  ;;  %v5566_v40 = vadd.f32 %v5565_v44, %v5546_v26 }
 0x94a   :  { %v5513_v27 = vpop.f32.mrf.mxu1  ;;  %v5551_v53 = vpop.f32.mrf.mxu0  ;;  %v5730_v20 = vpack.c.bf16 %v5566_v40, %v5528_v35 }
 0x94c   :  { %v5757_v7 = vunpack.c.l.b16 %v5730_v20  ;;  %v5758_v0 = vunpack.c.h.b16 %v5730_v20 }
 0x94e   :  { %v5763_v25 = vpack.c.b16 %v5757_v7, %v5755_v30  ;;  %v5764_v19 = vpack.c.b16 %v5758_v0, %v5756_v21 }
 0x94f   :  { %v5530_v62 = vpop.f32.mrf.mxu3  ;;  %v5568_v31 = vpop.f32.mrf.mxu2 }
 0x950   :  { %v5531_v4 = vadd.f32 %v5530_v62, %v5511_v1  ;;  %v5569_v8 = vadd.f32 %v5568_v31, %v5549_v42 }
 0x952   :  { %v5582_v45 = vpop.f32.mrf.mxu1  ;;  %v5620_v23 = vpop.f32.mrf.mxu0  ;;  %v5734_v29 = vpack.c.bf16 %v5569_v8, %v5531_v4 }
 0x954   :  { %v5759_v5 = vunpack.c.l.b16 %v5734_v29  ;;  %v5760_v48 = vunpack.c.h.b16 %v5734_v29 }
 0x957   :  { %v5532_v11 = vpop.f32.mrf.mxu3  ;;  %v5570_v59 = vpop.f32.mrf.mxu2 }
 0x958   :  { %v5533_v34 = vadd.f32 %v5532_v11, %v5513_v27  ;;  %v5571_v33 = vadd.f32 %v5570_v59, %v5551_v53 }
 0x95a   :  { %v5738_v39 = vpack.c.bf16 %v5571_v33, %v5533_v34  ;;  %v5584_v12 = vpop.f32.mrf.mxu1  ;;  %v5622_v6 = vpop.f32.mrf.mxu0 }
 0x95c   :  { %v5761_v51 = vunpack.c.l.b16 %v5738_v39  ;;  %v5762_v47 = vunpack.c.h.b16 %v5738_v39 }
 0x95e   :  { %v5765_v60 = vpack.c.b16 %v5761_v51, %v5759_v5  ;;  %v5766_v13 = vpack.c.b16 %v5762_v47, %v5760_v48 }
 0x95f   :  { %v5601_v57 = vpop.f32.mrf.mxu3  ;;  %v5639_v37 = vpop.f32.mrf.mxu2 }
 0x960   :  { %5781 = vmatpush.bf16.msra.mxu1 %v5765_v60  ;;  %5795 = vmatpush.bf16.msrb.mxu3 %v5766_v13  ;;  %v5602_v16 = vadd.f32 %v5601_v57, %v5582_v45  ;;  %v5640_v9 = vadd.f32 %v5639_v37, %v5620_v23 }
 0x962   :  { %v5587_v22 = vpop.f32.mrf.mxu1  ;;  %v5625_v63 = vpop.f32.mrf.mxu0  ;;  %v5727_v31 = vpack.c.bf16 %v5640_v9, %v5602_v16  ;;  %v11217_v16 = vld [vmem:[%s14176_s5 + $0x38] sm:$0xff]  }
 0x963   :  { %v11225_v9 = vld [vmem:[%s14176_s5 + $0x78] sm:$0xff]  }
 0x964   :  { %5782 = vmatpush.bf16.msra.mxu1 %v5763_v25  ;;  %5796 = vmatpush.bf16.msrb.mxu3 %v5764_v19  ;;  %v5871_v29 = vunpack.c.l.b16 %v5727_v31  ;;  %v5872_v34 = vunpack.c.h.b16 %v5727_v31 }
 0x967   :  { %v5603_v55 = vpop.f32.mrf.mxu3  ;;  %v5641_v54 = vpop.f32.mrf.mxu2  ;;  %9705 = vmatmul.msk.bf16.vlgmr.msrb.gmra.mxu3 %vm5771_vm10, %v10762_v56  ;;  %9704 = vmatmul.msk.bf16.vlgmr.msra.gmra.mxu1 %vm5771_vm10, %v10762_v56 }
 0x968   :  { %5851 = vmatpush.bf16.msrb.mxu1 %v5823_v46  ;;  %v5604_v58 = vadd.f32 %v5603_v55, %v5584_v12  ;;  %v5642_v18 = vadd.f32 %v5641_v54, %v5622_v6  ;;  %v10763_v6 = vld [vmem:[%s14175_s0 + $0x10] sm:$0xff] }
 0x96a   :  { %v5589_v15 = vpop.f32.mrf.mxu1  ;;  %v5627_v10 = vpop.f32.mrf.mxu0  ;;  %v5731_v53 = vpack.c.bf16 %v5642_v18, %v5604_v58  ;;  %v10764_v18 = vld [vmem:[%s14175_s0 + $0x18] sm:$0xff] }
 0x96c   :  { %5852 = vmatpush.bf16.msrb.mxu1 %v5821_v14  ;;  %v5873_v3 = vunpack.c.l.b16 %v5731_v53  ;;  %v5874_v45 = vunpack.c.h.b16 %v5731_v53  ;;  %v11215_v53 = vld [vmem:[%s14176_s5 + $0x28] sm:$0xff]  }
 0x96e   :  { %v5879_v39 = vpack.c.b16 %v5873_v3, %v5871_v29  ;;  %v5880_v12 = vpack.c.b16 %v5874_v45, %v5872_v34  ;;  %v11076_v45 = vunpack.c.h.bf16 %v11215_v53 }
 0x96f   :  { %v5606_v26 = vpop.f32.mrf.mxu3  ;;  %v5644_v61 = vpop.f32.mrf.mxu2 }
 0x970   :  { %v5607_v52 = vadd.f32 %v5606_v26, %v5587_v22  ;;  %v5645_v36 = vadd.f32 %v5644_v61, %v5625_v63 }
 0x972   :  { %v5735_v42 = vpack.c.bf16 %v5645_v36, %v5607_v52  ;;  %v5658_v41 = vpop.f32.mrf.mxu1  ;;  %v5696_v49 = vpop.f32.mrf.mxu0 }
 0x974   :  { %v5875_v4 = vunpack.c.l.b16 %v5735_v42  ;;  %v5876_v8 = vunpack.c.h.b16 %v5735_v42  ;;  %v11083_v42 = vunpack.c.l.bf16 %v11217_v16 }
 0x977   :  { %v5608_v32 = vpop.f32.mrf.mxu3  ;;  %v5646_v1 = vpop.f32.mrf.mxu2  ;;  %9711 = vmatmul.msk.bf16.vlgmr.msrb.gmra.mxu1 %vm5771_vm10, %v10761_v28 }
 0x978   :  { %v5609_v44 = vadd.f32 %v5608_v32, %v5589_v15  ;;  %v5647_v27 = vadd.f32 %v5646_v1, %v5627_v10  ;;  %v11084_v32 = vunpack.c.h.bf16 %v11217_v16  ;;  %v11116_v1 = vunpack.c.h.bf16 %v11225_v9 }
 0x97a   :  { %v5739_v62 = vpack.c.bf16 %v5647_v27, %v5609_v44  ;;  %v5660_v33 = vpop.f32.mrf.mxu1  ;;  %v5698_v20 = vpop.f32.mrf.mxu0  ;;  %v11216_v44 = vld [vmem:[%s14176_s5 + $0x30] sm:$0xff]  }
 0x97b   :  { %v11224_v27 = vld [vmem:[%s14176_s5 + $0x70] sm:$0xff]   ;;  %v11080_v31 = vunpack.c.h.bf16 %v11216_v44 }
 0x97c   :  { %v5877_v35 = vunpack.c.l.b16 %v5739_v62  ;;  %v5878_v40 = vunpack.c.h.b16 %v5739_v62 }
 0x97e   :  { %v5881_v23 = vpack.c.b16 %v5877_v35, %v5875_v4  ;;  %v5882_v43 = vpack.c.b16 %v5878_v40, %v5876_v8  ;;  %v11112_v4 = vunpack.c.h.bf16 %v11224_v27  ;;  %v11079_v8 = vunpack.c.l.bf16 %v11216_v44  ;;  %v11223_v40 = vld [vmem:[%s14176_s5 + $0x68] sm:$0xff]  }
 0x97f   :  { %v5677_v11 = vpop.f32.mrf.mxu3  ;;  %v5715_v59 = vpop.f32.mrf.mxu2  ;;  %v11111_v35 = vunpack.c.l.bf16 %v11224_v27 }
 0x980   :  { %5896 = vmatpush.bf16.msrb.mxu2 %v5881_v23  ;;  %5910 = vmatpush.bf16.msra.mxu3 %v5882_v43  ;;  %v5678_v30 = vadd.f32 %v5677_v11, %v5658_v41  ;;  %v5716_v21 = vadd.f32 %v5715_v59, %v5696_v49  ;;  %v11115_v41 = vunpack.c.l.bf16 %v11225_v9  ;;  %v11108_v23 = vunpack.c.h.bf16 %v11223_v40 }
 0x981   :  { %v11075_v43 = vunpack.c.l.bf16 %v11215_v53  ;;  %v11107_v11 = vunpack.c.l.bf16 %v11223_v40 }
 0x982   :  { %v5663_v48 = vpop.f32.mrf.mxu1  ;;  %v5701_v51 = vpop.f32.mrf.mxu0  ;;  %v5728_v56 = vpack.c.bf16 %v5716_v21, %v5678_v30 }
 0x984   :  { %5897 = vmatpush.bf16.msrb.mxu2 %v5879_v39  ;;  %5911 = vmatpush.bf16.msra.mxu3 %v5880_v12  ;;  %v5934_v61 = vunpack.c.l.b16 %v5728_v56  ;;  %v5935_v52 = vunpack.c.h.b16 %v5728_v56  ;;  %v11213_v39 = vld [vmem:[%s14176_s5 + $0x18] sm:$0xff]  }
 0x987   :  { %v5679_v24 = vpop.f32.mrf.mxu3  ;;  %v5717_v5 = vpop.f32.mrf.mxu2  ;;  %9718 = vmatmul.msk.bf16.vlgmr.msrb.gmra.mxu2 %vm5771_vm10, %v10763_v6  ;;  %9719 = vmatmul.msk.bf16.vlgmr.msra.gmra.mxu3 %vm5771_vm10, %v10763_v6 }
 0x988   :  { %v5680_v13 = vadd.f32 %v5679_v24, %v5660_v33  ;;  %v5718_v50 = vadd.f32 %v5717_v5, %v5698_v20  ;;  %6083 = vmatpush.msra.mxu2 %v11084_v32  ;;  %6103 = vmatpush.msrb.mxu3 %v11116_v1  ;;  %v11214_v33 = vld [vmem:[%s14176_s5 + $0x20] sm:$0xff]  }
 0x989   :  { %v11222_v20 = vld [vmem:[%s14176_s5 + $0x60] sm:$0xff]   ;;  %v11072_v12 = vunpack.c.h.bf16 %v11214_v33  ;;  %v11071_v24 = vunpack.c.l.bf16 %v11214_v33 }
 0x98a   :  { %v5665_v57 = vpop.f32.mrf.mxu1  ;;  %v5703_v37 = vpop.f32.mrf.mxu0  ;;  %v5732_v22 = vpack.c.bf16 %v5718_v50, %v5680_v13  ;;  %6084 = vmatpush.msra.mxu2 %v11083_v42  ;;  %6104 = vmatpush.msrb.mxu3 %v11115_v41  ;;  %v11104_v6 = vunpack.c.h.bf16 %v11222_v20  ;;  %v11103_v5 = vunpack.c.l.bf16 %v11222_v20  ;;  %v11220_v13 = vld [vmem:[%s14176_s5 + $0x50] sm:$0xff]  }
 0x98c   :  { %v5936_v14 = vunpack.c.l.b16 %v5732_v22  ;;  %v5937_v15 = vunpack.c.h.b16 %v5732_v22  ;;  %6085 = vmatpush.msra.mxu2 %v11080_v31  ;;  %6105 = vmatpush.msrb.mxu3 %v11112_v4 }
 0x98e   :  { %v5942_v36 = vpack.c.b16 %v5936_v14, %v5934_v61  ;;  %v5943_v58 = vpack.c.b16 %v5937_v15, %v5935_v52  ;;  %6086 = vmatpush.msra.mxu2 %v11079_v8  ;;  %6106 = vmatpush.msrb.mxu3 %v11111_v35 }
 0x98f   :  { %v5682_v47 = vpop.f32.mrf.mxu3  ;;  %v5720_v7 = vpop.f32.mrf.mxu2 }
 0x990   :  { %v5683_v0 = vadd.f32 %v5682_v47, %v5663_v48  ;;  %v5721_v60 = vadd.f32 %v5720_v7, %v5701_v51  ;;  %6087 = vmatpush.msra.mxu2 %v11076_v45  ;;  %6107 = vmatpush.msrb.mxu3 %v11108_v23  ;;  %v11221_v48 = vld [vmem:[%s14176_s5 + $0x58] sm:$0xff]   ;;  %v11068_v7 = vunpack.c.h.bf16 %v11213_v39 }
 0x991   :  { %v11099_v30 = vunpack.c.l.bf16 %v11221_v48 }
 0x992   :  { %v5736_v19 = vpack.c.bf16 %v5721_v60, %v5683_v0  ;;  %6088 = vmatpush.msra.mxu2 %v11075_v43  ;;  %6108 = vmatpush.msrb.mxu3 %v11107_v11  ;;  %v11100_v0 = vunpack.c.h.bf16 %v11221_v48  ;;  %v11212_v60 = vld [vmem:[%s14176_s5 + $0x10] sm:$0xff]  }
 0x993   :  { %v11064_v21 = vunpack.c.h.bf16 %v11212_v60 }
 0x994   :  { %v5938_v28 = vunpack.c.l.b16 %v5736_v19  ;;  %v5939_v38 = vunpack.c.h.b16 %v5736_v19  ;;  %6089 = vmatpush.msra.mxu2 %v11072_v12  ;;  %6109 = vmatpush.msrb.mxu3 %v11104_v6  ;;  %v11219_v19 = vld [vmem:[%s14176_s5 + $0x48] sm:$0xff]  }
 0x996   :  { %6090 = vmatpush.msra.mxu2 %v11071_v24  ;;  %6110 = vmatpush.msrb.mxu3 %v11103_v5 }
 0x997   :  { %v5684_v17 = vpop.f32.mrf.mxu3  ;;  %v5722_v25 = vpop.f32.mrf.mxu2 }
 0x998   :  { %v5685_v2 = vadd.f32 %v5684_v17, %v5665_v57  ;;  %v5723_v46 = vadd.f32 %v5722_v25, %v5703_v37  ;;  %v11067_v37 = vunpack.c.l.bf16 %v11213_v39  ;;  %6091 = vmatpush.msra.mxu2 %v11068_v7  ;;  %6111 = vmatpush.msrb.mxu3 %v11100_v0  ;;  %v11096_v17 = vunpack.c.h.bf16 %v11220_v13  ;;  %v11211_v25 = vld [vmem:[%s14176_s5 + $0x8] sm:$0xff]  }
 0x999   :  { %v11059_v15 = vunpack.c.l.bf16 %v11211_v25 }
 0x99a   :  { %v5740_v63 = vpack.c.bf16 %v5723_v46, %v5685_v2  ;;  %6092 = vmatpush.msra.mxu2 %v11067_v37  ;;  %6112 = vmatpush.msrb.mxu3 %v11099_v30  ;;  %v11063_v2 = vunpack.c.l.bf16 %v11212_v60  ;;  %v11095_v46 = vunpack.c.l.bf16 %v11220_v13 }
 0x99c   :  { %v5940_v55 = vunpack.c.l.b16 %v5740_v63  ;;  %v5941_v54 = vunpack.c.h.b16 %v5740_v63  ;;  %6093 = vmatpush.msra.mxu2 %v11064_v21  ;;  %6113 = vmatpush.msrb.mxu3 %v11096_v17 }
 0x99e   :  { %v5944_v10 = vpack.c.b16 %v5940_v55, %v5938_v28  ;;  %v5945_v26 = vpack.c.b16 %v5941_v54, %v5939_v38  ;;  %v11060_v28 = vunpack.c.h.bf16 %v11211_v25  ;;  %v11092_v38 = vunpack.c.h.bf16 %v11219_v19  ;;  %v11054_v55 = vld [vmem:[%s14176_s5] sm:$0xff]   ;;  %6094 = vmatpush.msra.mxu2 %v11063_v2  ;;  %6114 = vmatpush.msrb.mxu3 %v11095_v46 }
 0x99f   :  { %v11218_v54 = vld [vmem:[%s14176_s5 + $0x40] sm:$0xff]   ;;  %v11055_v42 = vunpack.c.l.bf16 %v11054_v55  ;;  %v11367_v2 = vmov 128.0  }
 0x9a0   :  { %5959 = vmatpush.bf16.msrb.mxu0 %v5944_v10  ;;  %5973 = vmatpush.bf16.msra.mxu1 %v5945_v26  ;;  %v11091_v10 = vunpack.c.l.bf16 %v11219_v19  ;;  %v11088_v16 = vunpack.c.h.bf16 %v11218_v54  ;;  %v11087_v41 = vunpack.c.l.bf16 %v11218_v54  ;;  %11297 = vrcp.f32 %v11367_v2 }
 0x9a1   :  { %6095 = vmatpush.msra.mxu2 %v11060_v28  ;;  %6115 = vmatpush.msrb.mxu3 %v11092_v38 }
 0x9a3   :  { %6096 = vmatpush.msra.mxu2 %v11059_v15  ;;  %6116 = vmatpush.msrb.mxu3 %v11091_v10 }
 0x9a4   :  { %5960 = vmatpush.bf16.msrb.mxu0 %v5942_v36  ;;  %5974 = vmatpush.bf16.msra.mxu1 %v5943_v58 }
 0x9a5   :  { %6117 = vmatpush.msrb.mxu3 %v11088_v16 }
 0x9a6   :  { %v11298_v46 = vpop.eup %11297 }
 0x9a7   :  { %9726 = vmatmul.msk.bf16.vlgmr.msrb.gmra.mxu0 %vm5771_vm10, %v10764_v18  ;;  %9727 = vmatmul.msk.bf16.vlgmr.msra.gmra.mxu1 %vm5771_vm10, %v10764_v18  ;;  %v11056_v18 = vunpack.c.h.bf16 %v11054_v55  ;;  %vm6128_vm11 = vweird.f32 %v11298_v46 }
 0x9a8   :  { %6118 = vmatpush.msrb.mxu3 %v11087_v41 }
 0x9a9   :  { %6097 = vmatpush.msra.mxu2 %v11056_v18  ;;  %v6162_v18 = vld [vmem:[%s14177_s9 + $0x8] sm:$0xff] }
 0x9ab   :  { %6098 = vmatpush.msra.mxu2 %v11055_v42 }
 0x9c4   :  { %v5840_v59 = vpop.f32.mrf.mxu0 }
 0x9cc   :  { %v5842_v51 = vpop.f32.mrf.mxu0 }
 0x9e4   :  { %v13581_v49 = vpop.f32.mrf.mxu1 }
 0x9e5   :  { %v5841_v14 = vadd.f32 %v5840_v59, %v13581_v49 }
 0x9ea   :  { %v5798_v3 = vpop.f32.mrf.mxu3 }
 0x9ec   :  { %v13586_v62 = vpop.f32.mrf.mxu1 }
 0x9ed   :  { %v5843_v9 = vadd.f32 %v5842_v51, %v13586_v62 }
 0x9f2   :  { %v5800_v34 = vpop.f32.mrf.mxu3 }
 0x9f4   :  { %v5854_v29 = vpop.f32.mrf.mxu1 }
 0x9f5   :  { %v5855_v22 = vadd.f32 %v5854_v29, %v5798_v3 }
 0x9fc   :  { %v5856_v47 = vpop.f32.mrf.mxu1 }
 0x9fd   :  { %v5857_v26 = vadd.f32 %v5856_v47, %v5800_v34 }
 0xa0a   :  { %v5899_v50 = vpop.f32.mrf.mxu2  ;;  %v5913_v57 = vpop.f32.mrf.mxu3 }
 0xa0b   :  { %v5918_v61 = vadd.f32 %v5899_v50, %v5841_v14  ;;  %v5919_v36 = vadd.f32 %v5913_v57, %v5855_v22  ;;  %v6124_v22 = vmul.f32 128.0, %v11298_v46 }
 0xa12   :  { %v5901_v52 = vpop.f32.mrf.mxu2  ;;  %v5915_v58 = vpop.f32.mrf.mxu3 }
 0xa13   :  { %v5920_v49 = vadd.f32 %v5901_v52, %v5843_v9  ;;  %v5921_v44 = vadd.f32 %v5915_v58, %v5857_v26  ;;  %v6163_v58 = vld [vmem:[%s14177_s9 + $0x10] sm:$0xff] }
 0xa14   :  { %v6169_v42 = vunpack.c.l.bf16 %v6163_v58  ;;  %v6170_v41 = vunpack.c.h.bf16 %v6163_v58  ;;  %v10801_v58 = vld [vmem:[%s14178_s13 + $0x11c] sm:$0xf0] }
 0xa24   :  { %v5962_v63 = vpop.f32.mrf.mxu0  ;;  %v5976_v56 = vpop.f32.mrf.mxu1 }
 0xa25   :  { %v13601_v32 = vadd.f32 %v5962_v63, %v5918_v61  ;;  %v13603_v1 = vadd.f32 %v5976_v56, %v5919_v36  ;;  %v6125_v63 = vsub.f32 1.0, %v6124_v22  ;;  %v6164_v36 = vld [vmem:[%s14177_s9 + $0x18] sm:$0xff]  ;;  %v10150_v22 = vld [vmem:[%s14178_s13 + $0x360] sm:$0xf0] }
 0xa26   :  { %v6171_v16 = vunpack.c.l.bf16 %v6164_v36  ;;  %v6172_v9 = vunpack.c.h.bf16 %v6164_v36 }
 0xa27   :  { %v5999_v62 = vmul.f32 %v13601_v32, %v13601_v32  ;;  %v6000_v8 = vmul.f32 %v13603_v1, %v13603_v1  ;;  %v6126_v56 = vmul.f32 %v11298_v46, %v6125_v63 }
 0xa28   :  { %6188 = vmatpush.msra.mxu0 %v6171_v16  ;;  %6208 = vmatpush.msrb.mxu1 %v6172_v9  ;;  %v10865_v16 = vld [vmem:[%s14178_s13 + $0x31c] sm:$0xf0] }
 0xa29   :  { %v6127_v28 = vadd.f32 %v11298_v46, %v6126_v56 }
 0xa2a   :  { %6189 = vmatpush.msra.mxu0 %v6169_v42  ;;  %6209 = vmatpush.msrb.mxu1 %v6170_v41  ;;  %v10789_v41 = vld [vmem:[%s14178_s13 + $0xc4] sm:$0xf] }
 0xa2b   :  { %v6129_v54 = vsel %vm6128_vm11, %v11298_v46, %v6127_v28  ;;  %v10873_v46 = vld [vmem:[%s14178_s13 + $0x35c] sm:$0xf0] }
 0xa2c   :  { %v5964_v27 = vpop.f32.mrf.mxu0  ;;  %v5978_v53 = vpop.f32.mrf.mxu1 }
 0xa2d   :  { %v13605_v31 = vadd.f32 %v5964_v27, %v5920_v49  ;;  %v13607_v4 = vadd.f32 %v5978_v53, %v5921_v44  ;;  %v6161_v49 = vld [vmem:[%s14177_s9] sm:$0xff]  ;;  %v6167_v44 = vunpack.c.l.bf16 %v6162_v18  ;;  %v6168_v27 = vunpack.c.h.bf16 %v6162_v18 }
 0xa2e   :  { %v9956_v53 = vld [vmem:[%s14178_s13 + $0x1c0] sm:$0xf] }
 0xa2f   :  { %v5985_v35 = vadd.f32 %v13605_v31, %v13601_v32  ;;  %v6001_v40 = vmul.f32 %v13605_v31, %v13605_v31  ;;  %v5992_v3 = vadd.f32 %v13607_v4, %v13603_v1  ;;  %v6002_v45 = vmul.f32 %v13607_v4, %v13607_v4  ;;  %6190 = vmatpush.msra.mxu0 %v6167_v44  ;;  %v10116_v18 = vld [vmem:[%s14178_s13 + $0x300] sm:$0xf]  ;;  %v9830_v44 = vld [vmem:[%s14178_s13 + $0xe0] sm:$0xf0] }
 0xa30   :  { %6210 = vmatpush.msrb.mxu1 %v6168_v27  ;;  %v10086_v27 = vld [vmem:[%s14178_s13 + $0x2e0] sm:$0xf0] }
 0xa31   :  { %v5986_v23 = vrot.slane %v5985_v35, 4  ;;  %v6003_v43 = vadd.f32 %v6001_v40, %v5999_v62  ;;  %v5993_v11 = vrot.slane %v5992_v3, 4  ;;  %v6010_v59 = vadd.f32 %v6002_v45, %v6000_v8  ;;  %v10825_v62 = vld [vmem:[%s14178_s13 + $0x1dc] sm:$0xf0]  ;;  %v10821_v40 = vld [vmem:[%s14178_s13 + $0x1c4] sm:$0xf] }
 0xa32   :  { %v10212_v8 = vld [vmem:[%s14178_s13 + $0x3c0] sm:$0xf]  ;;  %v6165_v45 = vunpack.c.l.bf16 %v6161_v49 }
 0xa33   :  { %v5987_v29 = vadd.f32 %v5986_v23, %v5985_v35  ;;  %v6004_v34 = vrot.slane %v6003_v43, 4  ;;  %v5994_v33 = vadd.f32 %v5993_v11, %v5992_v3  ;;  %v6011_v20 = vrot.slane %v6010_v59, 4  ;;  %v10889_v35 = vld [vmem:[%s14178_s13 + $0x3dc] sm:$0xf0]  ;;  %v9958_v3 = vld [vmem:[%s14178_s13 + $0x1e0] sm:$0xf0] }
 0xa34   :  { %v6166_v23 = vunpack.c.h.bf16 %v6161_v49  ;;  %v10885_v11 = vld [vmem:[%s14178_s13 + $0x3c4] sm:$0xf]  ;;  %6191 = vmatpush.msra.mxu0 %v6165_v45  ;;  %v9833_v45 = vor.u32 %v10789_v41, %v9830_v44  ;;  %v10220_v44 = vld [vmem:[%s14178_s13 + $0x3c8] sm:$0xf] }
 0xa35   :  { %v5988_v39 = vrot.slane %v5987_v29, 2  ;;  %v6005_v12 = vadd.f32 %v6004_v34, %v6003_v43  ;;  %v5995_v6 = vrot.slane %v5994_v33, 2  ;;  %v6012_v24 = vadd.f32 %v6011_v20, %v6010_v59  ;;  %v10214_v59 = vld [vmem:[%s14178_s13 + $0x3e0] sm:$0xf0] }
 0xa36   :  { %v9961_v43 = vor.u32 %v10821_v40, %v9958_v3  ;;  %v10213_v20 = vor.u32 %v10889_v35, %v10212_v8  ;;  %6211 = vmatpush.msrb.mxu1 %v6166_v23  ;;  %v9828_v8 = vld [vmem:[%s14178_s13 + $0xc0] sm:$0xf] }
 0xa37   :  { %v5989_v5 = vadd.f32 %v5988_v39, %v5987_v29  ;;  %v6006_v48 = vrot.slane %v6005_v12, 2  ;;  %v5996_v51 = vadd.f32 %v5995_v6, %v5994_v33  ;;  %v6013_v47 = vrot.slane %v6012_v24, 2  ;;  %v9924_v29 = vld [vmem:[%s14178_s13 + $0x180] sm:$0xf] }
 0xa38   :  { %v9957_v33 = vor.u32 %v10825_v62, %v9956_v53  ;;  %v10217_v39 = vor.u32 %v10885_v11, %v10214_v59  ;;  %v10180_v6 = vld [vmem:[%s14178_s13 + $0x380] sm:$0xf]  ;;  %7038 = vmatpush.bf16.msrb.mxu2 %v9961_v43  ;;  %7024 = vmatpush.bf16.msra.mxu1 %v10213_v20  ;;  %v10117_v62 = vor.u32 %v10865_v16, %v10116_v18  ;;  %v10781_v43 = vld [vmem:[%s14178_s13 + $0x84] sm:$0xf]  ;;  %v9964_v16 = vld [vmem:[%s14178_s13 + $0x1c8] sm:$0xf] }
 0xa39   :  { %v5990_v7 = vrot.slane %v5989_v5, 1  ;;  %v6007_v0 = vadd.f32 %v6006_v48, %v6005_v12  ;;  %v5997_v60 = vrot.slane %v5996_v51, 1  ;;  %v6014_v13 = vadd.f32 %v6013_v47, %v6012_v24  ;;  %v10817_v12 = vld [vmem:[%s14178_s13 + $0x19c] sm:$0xf0]  ;;  %v10813_v48 = vld [vmem:[%s14178_s13 + $0x184] sm:$0xf] }
 0xa3a   :  { %v10881_v24 = vld [vmem:[%s14178_s13 + $0x39c] sm:$0xf0]  ;;  %v10877_v47 = vld [vmem:[%s14178_s13 + $0x384] sm:$0xf]  ;;  %7052 = vmatpush.bf16.msra.mxu3 %v10217_v39  ;;  %7010 = vmatpush.bf16.msrb.mxu0 %v9957_v33 }
 0xa3b   :  { %v6008_v50 = vrot.slane %v6007_v0, 1  ;;  %v6015_v57 = vrot.slane %v6014_v13, 1  ;;  %v5991_v37 = vadd.f32 %v5990_v7, %v5989_v5  ;;  %v5998_v21 = vadd.f32 %v5997_v60, %v5996_v51  ;;  %v9926_v51 = vld [vmem:[%s14178_s13 + $0x1a0] sm:$0xf0]  ;;  %v10793_v35 = vld [vmem:[%s14178_s13 + $0xdc] sm:$0xf0] }
 0xa3c   :  { %v9929_v7 = vor.u32 %v10813_v48, %v9926_v51  ;;  %v10084_v40 = vld [vmem:[%s14178_s13 + $0x2c0] sm:$0xf]  ;;  %v9798_v11 = vld [vmem:[%s14178_s13 + $0xa0] sm:$0xf0]  ;;  %v9829_v33 = vor.u32 %v10793_v35, %v9828_v8 }
 0xa3d   :  { %v6009_v30 = vadd.f32 %v6008_v50, %v6007_v0  ;;  %v6016_v17 = vadd.f32 %v6015_v57, %v6014_v13  ;;  %v10182_v0 = vld [vmem:[%s14178_s13 + $0x3a0] sm:$0xf0]  ;;  %v9892_v50 = vld [vmem:[%s14178_s13 + $0x140] sm:$0xf] }
 0xa3e   :  { %v10185_v13 = vor.u32 %v10877_v47, %v10182_v0  ;;  %v10809_v57 = vld [vmem:[%s14178_s13 + $0x15c] sm:$0xf0]  ;;  %7039 = vmatpush.bf16.msrb.mxu2 %v9929_v7  ;;  %v10845_v59 = vld [vmem:[%s14178_s13 + $0x284] sm:$0xf] }
 0xa3f   :  { %v6017_v25 = vsel %vm2408_vm1, %v5991_v37, %v6009_v30  ;;  %v6018_v19 = vsel %vm2408_vm1, %v5998_v21, %v6016_v17  ;;  %v10148_v37 = vld [vmem:[%s14178_s13 + $0x340] sm:$0xf]  ;;  %v9925_v30 = vor.u32 %v10817_v12, %v9924_v29  ;;  %v10181_v21 = vor.u32 %v10881_v24, %v10180_v6  ;;  %v10805_v17 = vld [vmem:[%s14178_s13 + $0x144] sm:$0xf] }
 0xa40   :  { %6099 = vmatmul.f32.vlgmr.msra.gmra.mxu2 %v6017_v25  ;;  %6119 = vmatmul.f32.vlgmr.msrb.gmra.mxu3 %v6018_v19  ;;  %v9894_v25 = vld [vmem:[%s14178_s13 + $0x160] sm:$0xf0]  ;;  %v10857_v3 = vld [vmem:[%s14178_s13 + $0x2dc] sm:$0xf0] }
 0xa41   :  { %v10869_v19 = vld [vmem:[%s14178_s13 + $0x344] sm:$0xf]  ;;  %7053 = vmatpush.bf16.msra.mxu3 %v10185_v13  ;;  %v9897_v63 = vor.u32 %v10805_v17, %v9894_v25  ;;  %7011 = vmatpush.bf16.msrb.mxu0 %v9925_v30  ;;  %v10085_v20 = vor.u32 %v10857_v3, %v10084_v40  ;;  %v9796_v39 = vld [vmem:[%s14178_s13 + $0x80] sm:$0xf]  ;;  %v9934_v3 = vld [vmem:[%s14178_s13 + $0x1a8] sm:$0xf0] }
 0xa42   :  { %v10153_v56 = vor.u32 %v10869_v19, %v10150_v22  ;;  %7025 = vmatpush.bf16.msra.mxu1 %v10181_v21  ;;  %v10054_v29 = vld [vmem:[%s14178_s13 + $0x2a0] sm:$0xf0]  ;;  %v10785_v12 = vld [vmem:[%s14178_s13 + $0x9c] sm:$0xf0] }
 0xa43   :  { %7040 = vmatpush.bf16.msrb.mxu2 %v9897_v63  ;;  %v10052_v6 = vld [vmem:[%s14178_s13 + $0x280] sm:$0xf]  ;;  %v10057_v48 = vor.u32 %v10845_v59, %v10054_v29  ;;  %v10773_v51 = vld [vmem:[%s14178_s13 + $0x44] sm:$0xf]  ;;  %v9932_v59 = vld [vmem:[%s14178_s13 + $0x188] sm:$0xf] }
 0xa44   :  { %v10849_v24 = vld [vmem:[%s14178_s13 + $0x29c] sm:$0xf0]  ;;  %v9766_v47 = vld [vmem:[%s14178_s13 + $0x60] sm:$0xf0]  ;;  %v10818_v29 = vld [vmem:[%s14178_s13 + $0x1a4] sm:$0xf0] }
 0xa45   :  { %7054 = vmatpush.bf16.msra.mxu3 %v10153_v56  ;;  %v10837_v0 = vld [vmem:[%s14178_s13 + $0x244] sm:$0xf]  ;;  %v9764_v30 = vld [vmem:[%s14178_s13 + $0x40] sm:$0xf] }
 0xa46   :  { %v10777_v21 = vld [vmem:[%s14178_s13 + $0x5c] sm:$0xf0]  ;;  %v10765_v22 = vld [vmem:[%s14178_s13 + $0x4] sm:$0xf] }
 0xa47   :  { %v10020_v17 = vld [vmem:[%s14178_s13 + $0x240] sm:$0xf]  ;;  %v9734_v63 = vld [vmem:[%s14178_s13 + $0x20] sm:$0xf0] }
 0xa48   :  { %v10841_v25 = vld [vmem:[%s14178_s13 + $0x25c] sm:$0xf0]  ;;  %v9737_v41 = vor.u32 %v10765_v22, %v9734_v63  ;;  %v10866_v22 = vld [vmem:[%s14178_s13 + $0x324] sm:$0xf0] }
 0xa49   :  { %v9732_v56 = vld [vmem:[%s14178_s13] sm:$0xf] }
 0xa4a   :  { %v10833_v18 = vld [vmem:[%s14178_s13 + $0x21c] sm:$0xf0] }
 0xac3   :  { %v6100_v38 = vpop.f32.mrf.mxu2  ;;  %v6120_v55 = vpop.f32.mrf.mxu3 }
 0xac4   :  { %v6121_v14 = vadd.f32 %v6120_v55, %v6100_v38  ;;  %v10797_v38 = vld [vmem:[%s14178_s13 + $0x104] sm:$0xf] }
 0xac5   :  { %v9862_v55 = vld [vmem:[%s14178_s13 + $0x120] sm:$0xf0] }
 0xac6   :  { %v13623_v15 = vmul.f32 %v6129_v54, %v6121_v14  ;;  %v9893_v54 = vor.u32 %v10809_v57, %v9892_v50  ;;  %v10149_v14 = vor.u32 %v10873_v46, %v10148_v37  ;;  %v9865_v9 = vor.u32 %v10797_v38, %v9862_v55  ;;  %v6154_v50 = vld [vmem:[%s14180_s21] sm:$0x1]  ;;  %v10829_v55 = vld [vmem:[%s14178_s13 + $0x204] sm:$0xf] }
 0xac7   :  { %v9797_v57 = vor.u32 %v10785_v12, %v9796_v39  ;;  %v10053_v37 = vor.u32 %v10849_v24, %v10052_v6  ;;  %v9988_v38 = vld [vmem:[%s14178_s13 + $0x200] sm:$0xf]  ;;  %v10806_v12 = vld [vmem:[%s14178_s13 + $0x14c] sm:$0xf] }
 0xac8   :  { %v6131_v10 = vmul.f32 %v13623_v15, %v13623_v15  ;;  %7012 = vmatpush.bf16.msrb.mxu0 %v9893_v54  ;;  %7026 = vmatpush.bf16.msra.mxu1 %v10149_v14  ;;  %v9990_v54 = vld [vmem:[%s14178_s13 + $0x220] sm:$0xf0]  ;;  %v10822_v14 = vld [vmem:[%s14178_s13 + $0x1cc] sm:$0xf]  ;;  %v9989_v40 = vor.u32 %v10833_v18, %v9988_v38 }
 0xac9   :  { %7041 = vmatpush.bf16.msrb.mxu2 %v9865_v9  ;;  %v10826_v9 = vld [vmem:[%s14178_s13 + $0x1e4] sm:$0xf0]  ;;  %v9902_v6 = vld [vmem:[%s14178_s13 + $0x168] sm:$0xf0] }
 0xaca   :  { %v6133_v26 = vrot.slane %v6131_v10, 7  ;;  %v9860_v10 = vld [vmem:[%s14178_s13 + $0x100] sm:$0xf]  ;;  %v10870_v24 = vld [vmem:[%s14178_s13 + $0x34c] sm:$0xf] }
 0xacb   :  { %v9861_v53 = vor.u32 %v10801_v58, %v9860_v10  ;;  %v10222_v58 = vld [vmem:[%s14178_s13 + $0x3e8] sm:$0xf0] }
 0xacc   :  { %v6135_v61 = vsub.f32 %v13623_v15, %v6133_v26  ;;  %v10861_v26 = vld [vmem:[%s14178_s13 + $0x304] sm:$0xf]  ;;  %7027 = vmatpush.bf16.msra.mxu1 %v10117_v62  ;;  %v10814_v62 = vld [vmem:[%s14178_s13 + $0x18c] sm:$0xf] }
 0xacd   :  { %7013 = vmatpush.bf16.msrb.mxu0 %v9861_v53  ;;  %7042 = vmatpush.bf16.msrb.mxu2 %v9833_v45  ;;  %v10878_v45 = vld [vmem:[%s14178_s13 + $0x38c] sm:$0xf] }
 0xace   :  { %v13628_v52 = vadd.f32 1e-05, %v6135_v61  ;;  %v10118_v61 = vld [vmem:[%s14178_s13 + $0x320] sm:$0xf0]  ;;  %v9838_v38 = vld [vmem:[%s14178_s13 + $0xe8] sm:$0xf0] }
 0xacf   :  { %v10121_v42 = vor.u32 %v10861_v26, %v10118_v61  ;;  %v10021_v26 = vor.u32 %v10841_v25, %v10020_v17  ;;  %v9966_v61 = vld [vmem:[%s14178_s13 + $0x1e8] sm:$0xf0] }
 0xad0   :  { %11299 = vrsqrt.f32 %v13628_v52  ;;  %vm6144_vm13 = vweird.f32 %v13628_v52  ;;  %7028 = vmatpush.bf16.msra.mxu1 %v10085_v20  ;;  %v9937_v20 = vor.u32 %v10814_v62, %v9934_v3  ;;  %v9772_v3 = vld [vmem:[%s14178_s13 + $0x48] sm:$0xf] }
 0xad1   :  { %7055 = vmatpush.bf16.msra.mxu3 %v10121_v42  ;;  %7014 = vmatpush.bf16.msrb.mxu0 %v9829_v33  ;;  %v10882_v33 = vld [vmem:[%s14178_s13 + $0x3a4] sm:$0xf0] }
 0xad4   :  { %7029 = vmatpush.bf16.msra.mxu1 %v10053_v37  ;;  %v9870_v37 = vld [vmem:[%s14178_s13 + $0x128] sm:$0xf0] }
 0xad5   :  { %7015 = vmatpush.bf16.msrb.mxu0 %v9797_v57  ;;  %v10798_v57 = vld [vmem:[%s14178_s13 + $0x10c] sm:$0xf] }
 0xad6   :  { %v13644_v34 = vpop.eup %11299  ;;  %v9873_v63 = vor.u32 %v10798_v57, %v9870_v37 }
 0xad7   :  { %v6139_v5 = vmul.f32 %v13644_v34, %v13628_v52  ;;  %vm6145_vm12 = vweird.f32 %v13644_v34  ;;  %v10853_v52 = vld [vmem:[%s14178_s13 + $0x2c4] sm:$0xf] }
 0xad8   :  { %vm6146_vm15 = vmor %vm6144_vm13, %vm6145_vm12  ;;  %v10089_v23 = vor.u32 %v10853_v52, %v10086_v27  ;;  %v10890_v52 = vld [vmem:[%s14178_s13 + $0x3e4] sm:$0xf0]  ;;  %v9969_v27 = vor.u32 %v10822_v14, %v9966_v61  ;;  %7030 = vmatpush.bf16.msra.mxu1 %v10021_v26 }
 0xad9   :  { %v6140_v60 = vmul.f32 %v13644_v34, %v6139_v5  ;;  %v9801_v5 = vor.u32 %v10781_v43, %v9798_v11  ;;  %v9965_v43 = vor.u32 %v10826_v9, %v9964_v16  ;;  %v10221_v11 = vor.u32 %v10890_v52, %v10220_v44  ;;  %v10794_v26 = vld [vmem:[%s14178_s13 + $0xe4] sm:$0xf0] }
 0xada   :  { %7056 = vmatpush.bf16.msra.mxu3 %v10089_v23  ;;  %v10190_v23 = vld [vmem:[%s14178_s13 + $0x3a8] sm:$0xf0]  ;;  %v10092_v61 = vld [vmem:[%s14178_s13 + $0x2c8] sm:$0xf] }
 0xadb   :  { %v6141_v2 = vmul.f32 0.5, %v6140_v60  ;;  %v10022_v60 = vld [vmem:[%s14178_s13 + $0x260] sm:$0xf0]  ;;  %7043 = vmatpush.bf16.msrb.mxu2 %v9801_v5  ;;  %v10193_v39 = vor.u32 %v10878_v45, %v10190_v23  ;;  %v10158_v5 = vld [vmem:[%s14178_s13 + $0x368] sm:$0xf0] }
 0xadc   :  { %v10025_v46 = vor.u32 %v10837_v0, %v10022_v60  ;;  %7031 = vmatpush.bf16.msra.mxu1 %v9989_v40  ;;  %v10156_v0 = vld [vmem:[%s14178_s13 + $0x348] sm:$0xf]  ;;  %v10062_v40 = vld [vmem:[%s14178_s13 + $0x2a8] sm:$0xf0] }
 0xadd   :  { %v6142_v28 = vsub.f32 1.5, %v6141_v2  ;;  %v9769_v2 = vor.u32 %v10773_v51, %v9766_v47  ;;  %v9900_v47 = vld [vmem:[%s14178_s13 + $0x148] sm:$0xf] }
 0xade   :  { %7057 = vmatpush.bf16.msra.mxu3 %v10057_v48  ;;  %v9933_v48 = vor.u32 %v10818_v29, %v9932_v59  ;;  %v10874_v60 = vld [vmem:[%s14178_s13 + $0x364] sm:$0xf0] }
 0xadf   :  { %v6143_v36 = vmul.f32 %v13644_v34, %v6142_v28  ;;  %v10769_v28 = vld [vmem:[%s14178_s13 + $0x1c] sm:$0xf0]  ;;  %7044 = vmatpush.bf16.msrb.mxu2 %v9769_v2  ;;  %v10157_v25 = vor.u32 %v10874_v60, %v10156_v0  ;;  %v10802_v2 = vld [vmem:[%s14178_s13 + $0x124] sm:$0xf0]  ;;  %v9742_v0 = vld [vmem:[%s14178_s13 + $0x28] sm:$0xf0] }
 0xae0   :  { %v9733_v35 = vor.u32 %v10769_v28, %v9732_v56  ;;  %v10790_v28 = vld [vmem:[%s14178_s13 + $0xcc] sm:$0xf]  ;;  %v10850_v52 = vld [vmem:[%s14178_s13 + $0x2a4] sm:$0xf0] }
 0xae1   :  { %v6147_v49 = vsel %vm6146_vm15, %v13644_v34, %v6143_v36  ;;  %v6136_v34 = vld [vmem:[%s14179_s17] sm:$0x1]  ;;  %v10886_v36 = vld [vmem:[%s14178_s13 + $0x3cc] sm:$0xf]  ;;  %v10778_v23 = vld [vmem:[%s14178_s13 + $0x64] sm:$0xf0] }
 0xae2   :  { %6149 = vst [vmem:[#allocation1] sm:$0xff] %v6147_v49  ;;  %7058 = vmatpush.bf16.msra.mxu3 %v10025_v46  ;;  %v9993_v49 = vor.u32 %v10829_v55, %v9990_v54  ;;  %v10225_v53 = vor.u32 %v10886_v36, %v10222_v58  ;;  %v10124_v46 = vld [vmem:[%s14178_s13 + $0x308] sm:$0xf]  ;;  %v10854_v55 = vld [vmem:[%s14178_s13 + $0x2cc] sm:$0xf]  ;;  %v9841_v58 = vor.u32 %v10790_v28, %v9838_v38 }
 0xae3   :  { %7045 = vmatpush.bf16.msrb.mxu2 %v9737_v41  ;;  %v10094_v54 = vld [vmem:[%s14178_s13 + $0x2e8] sm:$0xf0]  ;;  %v10858_v36 = vld [vmem:[%s14178_s13 + $0x2e4] sm:$0xf0]  ;;  %v9773_v59 = vor.u32 %v10778_v23, %v9772_v3  ;;  %v9972_v28 = vld [vmem:[%s14178_s13 + $0x1d0] sm:$0xf] }
 0xae4   :  { %v10097_v18 = vor.u32 %v10854_v55, %v10094_v54  ;;  %v10093_v9 = vor.u32 %v10858_v36, %v10092_v61  ;;  %v10786_v41 = vld [vmem:[%s14178_s13 + $0xa4] sm:$0xf0]  ;;  %v10830_v60 = vld [vmem:[%s14178_s13 + $0x20c] sm:$0xf]  ;;  %v10823_v61 = vld [vmem:[%s14178_s13 + $0x1d4] sm:$0xf] }
 0xae5   :  { %v9974_v36 = vld [vmem:[%s14178_s13 + $0x1f0] sm:$0xf0]  ;;  %v10883_v3 = vld [vmem:[%s14178_s13 + $0x3ac] sm:$0xf0] }
 0xae6   :  { %7059 = vmatpush.bf16.msra.mxu3 %v9993_v49  ;;  %v10060_v49 = vld [vmem:[%s14178_s13 + $0x288] sm:$0xf]  ;;  %v9942_v23 = vld [vmem:[%s14178_s13 + $0x1b0] sm:$0xf0] }
 0xae7   :  { %7094 = vmatpush.bf16.msra.mxu2 %v9969_v27  ;;  %v10782_v27 = vld [vmem:[%s14178_s13 + $0x8c] sm:$0xf]  ;;  %v10061_v62 = vor.u32 %v10850_v52, %v10060_v49 }
 0xae9   :  { %v6151_v7 = vld [vmem:[#allocation1 + $0x1] ss:$9 sm:$0xff] }
 0xaea   :  { %v6153_v13 = vmul.f32 %v6151_v7, %v6136_v34  ;;  %v10188_v34 = vld [vmem:[%s14178_s13 + $0x388] sm:$0xf]  ;;  %7108 = vmatpush.bf16.msrb.mxu3 %v10225_v53  ;;  %v9806_v53 = vld [vmem:[%s14178_s13 + $0xa8] sm:$0xf0] }
 0xaeb   :  { %v10189_v51 = vor.u32 %v10882_v33, %v10188_v34  ;;  %v10810_v7 = vld [vmem:[%s14178_s13 + $0x164] sm:$0xf0]  ;;  %7095 = vmatpush.bf16.msra.mxu2 %v9937_v20  ;;  %v10774_v34 = vld [vmem:[%s14178_s13 + $0x4c] sm:$0xf] }
 0xaec   :  { %v6155_v19 = vmul.f32 %v6153_v13, %v13623_v15  ;;  %v9765_v15 = vor.u32 %v10777_v21, %v9764_v30  ;;  %v10862_v30 = vld [vmem:[%s14178_s13 + $0x30c] sm:$0xf]  ;;  %v9901_v17 = vor.u32 %v10810_v7, %v9900_v47 }
 0xaed   :  { %v10126_v21 = vld [vmem:[%s14178_s13 + $0x328] sm:$0xf0] }
 0xaee   :  { %v6156_v10 = vsub.f32 %v6154_v50, %v6155_v19  ;;  %7016 = vmatpush.bf16.msrb.mxu0 %v9765_v15  ;;  %7109 = vmatpush.bf16.msrb.mxu3 %v10193_v39  ;;  %v10161_v50 = vor.u32 %v10870_v24, %v10158_v5  ;;  %v9868_v19 = vld [vmem:[%s14178_s13 + $0x108] sm:$0xf]  ;;  %v10129_v56 = vor.u32 %v10862_v30, %v10126_v21  ;;  %v9774_v33 = vld [vmem:[%s14178_s13 + $0x68] sm:$0xf0] }
 0xaef   :  { %v9869_v14 = vor.u32 %v10802_v2, %v9868_v19  ;;  %v9836_v15 = vld [vmem:[%s14178_s13 + $0xc8] sm:$0xf]  ;;  %v10838_v20 = vld [vmem:[%s14178_s13 + $0x24c] sm:$0xf]  ;;  %v9777_v39 = vor.u32 %v10774_v34, %v9774_v33  ;;  %v9908_v34 = vld [vmem:[%s14178_s13 + $0x150] sm:$0xf] }
 0xaf0   :  { %v6158_v42 = vperm.slane %v6156_v10, 0  ;;  %v10125_v10 = vor.u32 %v10866_v22, %v10124_v46  ;;  %v9837_v16 = vor.u32 %v10794_v26, %v9836_v15  ;;  %v10770_v24 = vld [vmem:[%s14178_s13 + $0x24] sm:$0xf0]  ;;  %v10766_v47 = vld [vmem:[%s14178_s13 + $0xc] sm:$0xf] }
 0xaf1   :  { %v9745_v57 = vor.u32 %v10766_v47, %v9742_v0  ;;  %v10228_v15 = vld [vmem:[%s14178_s13 + $0x3d0] sm:$0xf] }
 0xaf2   :  { %v6160_v8 = vsel %vm2408_vm1, %v6153_v13, %v6158_v42  ;;  %7017 = vmatpush.bf16.msrb.mxu0 %v9733_v35  ;;  %v9905_v13 = vor.u32 %v10806_v12, %v9902_v6  ;;  %7110 = vmatpush.bf16.msrb.mxu3 %v10161_v50  ;;  %v9804_v42 = vld [vmem:[%s14178_s13 + $0x88] sm:$0xf]  ;;  %v10846_v35 = vld [vmem:[%s14178_s13 + $0x28c] sm:$0xf]  ;;  %v10891_v26 = vld [vmem:[%s14178_s13 + $0x3ec] sm:$0xf0] }
 0xaf3   :  { %9728 = vmatmul.msk.f32.vlgmr.msra.gmra.mxu0 %vm5771_vm10, %v6160_v8  ;;  %9729 = vmatmul.msk.f32.vlgmr.msrb.gmra.mxu1 %vm5771_vm10, %v6160_v8  ;;  %v9805_v44 = vor.u32 %v10786_v41, %v9804_v42  ;;  %v9809_v8 = vor.u32 %v10782_v27, %v9806_v53  ;;  %v10065_v45 = vor.u32 %v10846_v35, %v10062_v40  ;;  %v10030_v12 = vld [vmem:[%s14178_s13 + $0x268] sm:$0xf0]  ;;  %v9740_v6 = vld [vmem:[%s14178_s13 + $0x8] sm:$0xf]  ;;  %v9940_v27 = vld [vmem:[%s14178_s13 + $0x190] sm:$0xf] }
 0xaf4   :  { %7080 = vmatpush.bf16.msrb.mxu1 %v10221_v11  ;;  %7096 = vmatpush.bf16.msra.mxu2 %v9905_v13  ;;  %v10842_v11 = vld [vmem:[%s14178_s13 + $0x264] sm:$0xf0]  ;;  %v10033_v5 = vor.u32 %v10838_v20, %v10030_v12  ;;  %v9741_v7 = vor.u32 %v10770_v24, %v9740_v6  ;;  %v9998_v13 = vld [vmem:[%s14178_s13 + $0x228] sm:$0xf0]  ;;  %v10229_v52 = vor.u32 %v10891_v26, %v10228_v15  ;;  %v10819_v53 = vld [vmem:[%s14178_s13 + $0x1ac] sm:$0xf0] }
 0xaf5   :  { %v10001_v37 = vor.u32 %v10830_v60, %v9998_v13  ;;  %v10196_v40 = vld [vmem:[%s14178_s13 + $0x390] sm:$0xf]  ;;  %v10807_v24 = vld [vmem:[%s14178_s13 + $0x154] sm:$0xf] }
 0xaf6   :  { %7066 = vmatpush.bf16.msra.mxu0 %v9965_v43  ;;  %7111 = vmatpush.bf16.msrb.mxu3 %v10129_v56  ;;  %v10028_v43 = vld [vmem:[%s14178_s13 + $0x248] sm:$0xf]  ;;  %v10811_v33 = vld [vmem:[%s14178_s13 + $0x16c] sm:$0xf0] }
 0xaf7   :  { %v10029_v29 = vor.u32 %v10842_v11, %v10028_v43  ;;  %v10879_v43 = vld [vmem:[%s14178_s13 + $0x394] sm:$0xf]  ;;  %v10164_v12 = vld [vmem:[%s14178_s13 + $0x350] sm:$0xf]  ;;  %v9909_v47 = vor.u32 %v10811_v33, %v9908_v34 }
 0xaf8   :  { %7081 = vmatpush.bf16.msrb.mxu1 %v10189_v51  ;;  %7097 = vmatpush.bf16.msra.mxu2 %v9873_v63  ;;  %v10834_v51 = vld [vmem:[%s14178_s13 + $0x224] sm:$0xf0]  ;;  %v10198_v11 = vld [vmem:[%s14178_s13 + $0x3b0] sm:$0xf0]  ;;  %v10875_v6 = vld [vmem:[%s14178_s13 + $0x36c] sm:$0xf0] }
 0xaf9   :  { %v9876_v0 = vld [vmem:[%s14178_s13 + $0x110] sm:$0xf] }
 0xafa   :  { %7067 = vmatpush.bf16.msra.mxu0 %v9933_v48  ;;  %7112 = vmatpush.bf16.msrb.mxu3 %v10097_v18  ;;  %v9996_v48 = vld [vmem:[%s14178_s13 + $0x208] sm:$0xf]  ;;  %v10230_v18 = vld [vmem:[%s14178_s13 + $0x3f0] sm:$0xf0]  ;;  %v10803_v60 = vld [vmem:[%s14178_s13 + $0x12c] sm:$0xf0] }
 0xafb   :  { %v9997_v50 = vor.u32 %v10834_v51, %v9996_v48  ;;  %v10871_v48 = vld [vmem:[%s14178_s13 + $0x354] sm:$0xf]  ;;  %v10004_v34 = vld [vmem:[%s14178_s13 + $0x210] sm:$0xf] }
 0xafc   :  { %7082 = vmatpush.bf16.msrb.mxu1 %v10157_v25  ;;  %7098 = vmatpush.bf16.msra.mxu2 %v9841_v58  ;;  %v10887_v58 = vld [vmem:[%s14178_s13 + $0x3d4] sm:$0xf]  ;;  %v10835_v33 = vld [vmem:[%s14178_s13 + $0x22c] sm:$0xf0] }
 0xafd   :  { %v10233_v35 = vor.u32 %v10887_v58, %v10230_v18  ;;  %v10166_v51 = vld [vmem:[%s14178_s13 + $0x370] sm:$0xf0] }
 0xafe   :  { %7068 = vmatpush.bf16.msra.mxu0 %v9901_v17  ;;  %7113 = vmatpush.bf16.msrb.mxu3 %v10065_v45  ;;  %v10815_v45 = vld [vmem:[%s14178_s13 + $0x194] sm:$0xf] }
 0xaff   :  { %v9945_v20 = vor.u32 %v10815_v45, %v9942_v23  ;;  %v10839_v45 = vld [vmem:[%s14178_s13 + $0x254] sm:$0xf] }
 0xb00   :  { %7083 = vmatpush.bf16.msrb.mxu1 %v10125_v10  ;;  %7099 = vmatpush.bf16.msra.mxu2 %v9809_v8  ;;  %v10827_v10 = vld [vmem:[%s14178_s13 + $0x1ec] sm:$0xf0]  ;;  %v9977_v8 = vor.u32 %v10823_v61, %v9974_v36  ;;  %v10038_v23 = vld [vmem:[%s14178_s13 + $0x270] sm:$0xf0] }
 0xb01   :  { %v9973_v42 = vor.u32 %v10827_v10, %v9972_v28  ;;  %v10100_v28 = vld [vmem:[%s14178_s13 + $0x2d0] sm:$0xf]  ;;  %v10102_v10 = vld [vmem:[%s14178_s13 + $0x2f0] sm:$0xf0] }
 0xb02   :  { %7069 = vmatpush.bf16.msra.mxu0 %v9869_v14  ;;  %7114 = vmatpush.bf16.msrb.mxu3 %v10033_v5  ;;  %v9910_v5 = vld [vmem:[%s14178_s13 + $0x170] sm:$0xf0]  ;;  %v9812_v61 = vld [vmem:[%s14178_s13 + $0x90] sm:$0xf] }
 0xb03   :  { %v9913_v13 = vor.u32 %v10807_v24, %v9910_v5  ;;  %v10787_v36 = vld [vmem:[%s14178_s13 + $0xac] sm:$0xf0]  ;;  %v10831_v24 = vld [vmem:[%s14178_s13 + $0x214] sm:$0xf] }
 0xb04   :  { %7084 = vmatpush.bf16.msrb.mxu1 %v10093_v9  ;;  %7100 = vmatpush.bf16.msra.mxu2 %v9777_v39  ;;  %v10201_v39 = vor.u32 %v10879_v43, %v10198_v11  ;;  %v9748_v43 = vld [vmem:[%s14178_s13 + $0x10] sm:$0xf]  ;;  %v10006_v5 = vld [vmem:[%s14178_s13 + $0x230] sm:$0xf0] }
 0xb06   :  { %7070 = vmatpush.bf16.msra.mxu0 %v9837_v16  ;;  %7115 = vmatpush.bf16.msrb.mxu3 %v10001_v37  ;;  %v10867_v37 = vld [vmem:[%s14178_s13 + $0x32c] sm:$0xf0] }
 0xb08   :  { %7085 = vmatpush.bf16.msrb.mxu1 %v10061_v62  ;;  %7101 = vmatpush.bf16.msra.mxu2 %v9745_v57  ;;  %v10132_v57 = vld [vmem:[%s14178_s13 + $0x310] sm:$0xf] }
 0xb0a   :  { %7071 = vmatpush.bf16.msra.mxu0 %v9805_v44 }
 0xb0c   :  { %7086 = vmatpush.bf16.msrb.mxu1 %v10029_v29  ;;  %v10197_v29 = vor.u32 %v10883_v3, %v10196_v40  ;;  %v10775_v40 = vld [vmem:[%s14178_s13 + $0x54] sm:$0xf] }
 0xb0d   :  { %v9782_v3 = vld [vmem:[%s14178_s13 + $0x70] sm:$0xf0] }
 0xb0e   :  { %7072 = vmatpush.bf16.msra.mxu0 %v9773_v59  ;;  %v9941_v59 = vor.u32 %v10819_v53, %v9940_v27 }
 0xb10   :  { %7087 = vmatpush.bf16.msrb.mxu1 %v9997_v50  ;;  %v10169_v50 = vor.u32 %v10871_v48, %v10166_v51  ;;  %v9980_v48 = vld [vmem:[%s14178_s13 + $0x1d8] sm:$0xf] }
 0xb11   :  { %v10828_v51 = vld [vmem:[%s14178_s13 + $0x1f4] sm:$0xf0] }
 0xb12   :  { %7073 = vmatpush.bf16.msra.mxu0 %v9741_v7  ;;  %v10165_v7 = vor.u32 %v10875_v6, %v10164_v12  ;;  %v10767_v12 = vld [vmem:[%s14178_s13 + $0x14] sm:$0xf] }
 0xb13   :  { %v9750_v6 = vld [vmem:[%s14178_s13 + $0x30] sm:$0xf0] }
 0xb70   :  { %v6193_v30 = vpop.f32.mrf.mxu0  ;;  %v6213_v21 = vpop.f32.mrf.mxu1 }
 0xb71   :  { %v6216_v17 = vperm.slane %v6193_v30, 0  ;;  %v6217_v25 = vperm.slane %v6213_v21, 0  ;;  %v6222_v19 = vperm.slane %v6193_v30, 1  ;;  %v6223_v2 = vperm.slane %v6213_v21, 1  ;;  %v10799_v30 = vld [vmem:[%s14178_s13 + $0x114] sm:$0xf] }
 0xb72   :  { %v9878_v21 = vld [vmem:[%s14178_s13 + $0x130] sm:$0xf0] }
 0xb73   :  { %v6218_v46 = vmul.f32 %v6216_v17, %v13601_v32  ;;  %v6220_v22 = vmul.f32 %v6216_v17, %v13605_v31  ;;  %v6219_v63 = vmul.f32 %v6217_v25, %v13603_v1  ;;  %v6221_v56 = vmul.f32 %v6217_v25, %v13607_v4  ;;  %v10863_v17 = vld [vmem:[%s14178_s13 + $0x314] sm:$0xf] }
 0xb74   :  { %v10134_v25 = vld [vmem:[%s14178_s13 + $0x330] sm:$0xf0] }
 0xb75   :  { %v6224_v38 = vadd.f32 %v6222_v19, %v6218_v46  ;;  %v6226_v55 = vadd.f32 %v6222_v19, %v6220_v22  ;;  %v6225_v54 = vadd.f32 %v6223_v2, %v6219_v63  ;;  %v6227_v14 = vadd.f32 %v6223_v2, %v6221_v56  ;;  %v9844_v46 = vld [vmem:[%s14178_s13 + $0xd0] sm:$0xf] }
 0xb76   :  { %v9877_v19 = vor.u32 %v10803_v60, %v9876_v0  ;;  %v10133_v2 = vor.u32 %v10867_v37, %v10132_v57  ;;  %v10795_v22 = vld [vmem:[%s14178_s13 + $0xec] sm:$0xf0]  ;;  %v9881_v63 = vor.u32 %v10799_v30, %v9878_v21  ;;  %v10137_v56 = vor.u32 %v10863_v17, %v10134_v25  ;;  %v10824_v0 = vld [vmem:[%s14178_s13 + $0x1dc] sm:$0xf] }
 0xb77   :  { %vm6228_vm2 = vcmp.ge.f32.partialorder %v6224_v38, 0.0  ;;  %vm6230_vm3 = vcmp.ge.f32.partialorder %v6226_v55, 0.0  ;;  %v6232_v32 = vmul.f32 0.2, %v6224_v38  ;;  %v6234_v1 = vmul.f32 0.2, %v6226_v55 }
 0xb78   :  { %vm6229_vm4 = vcmp.ge.f32.partialorder %v6225_v54, 0.0  ;;  %vm6231_vm5 = vcmp.ge.f32.partialorder %v6227_v14, 0.0  ;;  %v6233_v31 = vmul.f32 0.2, %v6225_v54  ;;  %v6235_v4 = vmul.f32 0.2, %v6227_v14 }
 0xb79   :  { %v6236_v16 = vsel %vm6228_vm2, %v6224_v38, %v6232_v32  ;;  %v6238_v9 = vsel %vm6230_vm3, %v6226_v55, %v6234_v1  ;;  %v10859_v38 = vld [vmem:[%s14178_s13 + $0x2ec] sm:$0xf0]  ;;  %v10791_v55 = vld [vmem:[%s14178_s13 + $0xd4] sm:$0xf]  ;;  %v9845_v15 = vor.u32 %v10795_v22, %v9844_v46  ;;  %v10888_v57 = vld [vmem:[%s14178_s13 + $0x3dc] sm:$0xf]  ;;  %v9753_v30 = vor.u32 %v10767_v12, %v9750_v6 }
 0xb7a   :  { %v13792_v41 = vpack.c.bf16 %v6238_v9, %v6236_v16  ;;  %v6237_v49 = vsel %vm6229_vm4, %v6225_v54, %v6233_v31  ;;  %v6239_v44 = vsel %vm6231_vm5, %v6227_v14, %v6235_v4  ;;  %v9846_v54 = vld [vmem:[%s14178_s13 + $0xf0] sm:$0xf0]  ;;  %v10101_v26 = vor.u32 %v10859_v38, %v10100_v28  ;;  %v10068_v32 = vld [vmem:[%s14178_s13 + $0x290] sm:$0xf]  ;;  %v10238_v37 = vld [vmem:[%s14178_s13 + $0x3f8] sm:$0xf0] }
 0xb7b   :  { %v13796_v62 = vpack.c.bf16 %v6239_v44, %v6237_v49  ;;  %v10855_v14 = vld [vmem:[%s14178_s13 + $0x2d4] sm:$0xf]  ;;  %v9849_v58 = vor.u32 %v10791_v55, %v9846_v54  ;;  %v10851_v1 = vld [vmem:[%s14178_s13 + $0x2ac] sm:$0xf0]  ;;  %v10009_v21 = vor.u32 %v10831_v24, %v10006_v5  ;;  %v9981_v17 = vor.u32 %v10828_v51, %v9980_v48  ;;  %v10816_v28 = vld [vmem:[%s14178_s13 + $0x19c] sm:$0xf] }
 0xb7c   :  { %7018 = vmatmul.bf16.vlgmr.msrb.gmra.mxu0 %v13792_v41  ;;  %7046 = vmatmul.bf16.vlgmr.msrb.gmra.mxu2 %v13792_v41  ;;  %v10105_v18 = vor.u32 %v10855_v14, %v10102_v10  ;;  %v10783_v31 = vld [vmem:[%s14178_s13 + $0x94] sm:$0xf]  ;;  %v10069_v49 = vor.u32 %v10851_v1, %v10068_v32  ;;  %v9780_v44 = vld [vmem:[%s14178_s13 + $0x50] sm:$0xf]  ;;  %v10241_v22 = vor.u32 %v10888_v57, %v10238_v37  ;;  %v9950_v38 = vld [vmem:[%s14178_s13 + $0x1b8] sm:$0xf0] }
 0xb7d   :  { %7032 = vmatmul.bf16.vlgmr.msra.gmra.mxu1 %v13796_v62  ;;  %7060 = vmatmul.bf16.vlgmr.msra.gmra.mxu3 %v13796_v62  ;;  %v9814_v4 = vld [vmem:[%s14178_s13 + $0xb0] sm:$0xf0]  ;;  %v10880_v55 = vld [vmem:[%s14178_s13 + $0x39c] sm:$0xf]  ;;  %v9820_v48 = vld [vmem:[%s14178_s13 + $0x98] sm:$0xf] }
 0xb7e   :  { %7122 = vmatpush.bf16.msrb.mxu0 %v9973_v42  ;;  %7136 = vmatpush.bf16.msra.mxu1 %v10229_v52  ;;  %v10847_v16 = vld [vmem:[%s14178_s13 + $0x294] sm:$0xf]  ;;  %v9813_v42 = vor.u32 %v10787_v36, %v9812_v61  ;;  %v10779_v52 = vld [vmem:[%s14178_s13 + $0x6c] sm:$0xf0]  ;;  %v9817_v27 = vor.u32 %v10783_v31, %v9814_v4  ;;  %v10206_v54 = vld [vmem:[%s14178_s13 + $0x3b8] sm:$0xf0]  ;;  %v9953_v61 = vor.u32 %v10816_v28, %v9950_v38 }
 0xb7f   :  { %7150 = vmatpush.bf16.msrb.mxu2 %v9977_v8  ;;  %7164 = vmatpush.bf16.msra.mxu3 %v10233_v35  ;;  %v10070_v9 = vld [vmem:[%s14178_s13 + $0x2b0] sm:$0xf0]  ;;  %v10036_v8 = vld [vmem:[%s14178_s13 + $0x250] sm:$0xf]  ;;  %v9781_v11 = vor.u32 %v10779_v52, %v9780_v44  ;;  %v10209_v36 = vor.u32 %v10880_v55, %v10206_v54  ;;  %v10808_v32 = vld [vmem:[%s14178_s13 + $0x15c] sm:$0xf] }
 0xb80   :  { %v10073_v53 = vor.u32 %v10847_v16, %v10070_v9  ;;  %v10843_v35 = vld [vmem:[%s14178_s13 + $0x26c] sm:$0xf0]  ;;  %v9918_v1 = vld [vmem:[%s14178_s13 + $0x178] sm:$0xf0]  ;;  %v10788_v51 = vld [vmem:[%s14178_s13 + $0xb4] sm:$0xf0] }
 0xb81   :  { %v10872_v31 = vld [vmem:[%s14178_s13 + $0x35c] sm:$0xf]  ;;  %v9921_v44 = vor.u32 %v10808_v32, %v9918_v1 }
 0xb82   :  { %7123 = vmatpush.bf16.msrb.mxu0 %v9941_v59  ;;  %7137 = vmatpush.bf16.msra.mxu1 %v10197_v29  ;;  %v10037_v59 = vor.u32 %v10843_v35, %v10036_v8  ;;  %v10771_v29 = vld [vmem:[%s14178_s13 + $0x2c] sm:$0xf0]  ;;  %v10174_v4 = vld [vmem:[%s14178_s13 + $0x378] sm:$0xf0] }
 0xb83   :  { %7151 = vmatpush.bf16.msrb.mxu2 %v9945_v20  ;;  %7165 = vmatpush.bf16.msra.mxu3 %v10201_v39  ;;  %v9785_v20 = vor.u32 %v10775_v40, %v9782_v3  ;;  %v10041_v39 = vor.u32 %v10839_v45, %v10038_v23  ;;  %v9749_v60 = vor.u32 %v10771_v29, %v9748_v43  ;;  %v10800_v8 = vld [vmem:[%s14178_s13 + $0x11c] sm:$0xf]  ;;  %v9852_v43 = vld [vmem:[%s14178_s13 + $0xd8] sm:$0xf] }
 0xb84   :  { %v10177_v52 = vor.u32 %v10872_v31, %v10174_v4  ;;  %v9886_v35 = vld [vmem:[%s14178_s13 + $0x138] sm:$0xf0] }
 0xb85   :  { %v10864_v40 = vld [vmem:[%s14178_s13 + $0x31c] sm:$0xf] }
 0xb86   :  { %7124 = vmatpush.bf16.msrb.mxu0 %v9909_v47  ;;  %7138 = vmatpush.bf16.msra.mxu1 %v10165_v7  ;;  %v10236_v47 = vld [vmem:[%s14178_s13 + $0x3d8] sm:$0xf]  ;;  %v10142_v3 = vld [vmem:[%s14178_s13 + $0x338] sm:$0xf0] }
 0xb87   :  { %7152 = vmatpush.bf16.msrb.mxu2 %v9913_v13  ;;  %7166 = vmatpush.bf16.msra.mxu3 %v10169_v50  ;;  %v10892_v7 = vld [vmem:[%s14178_s13 + $0x3f4] sm:$0xf0]  ;;  %v10005_v13 = vor.u32 %v10835_v33, %v10004_v34  ;;  %v9982_v50 = vld [vmem:[%s14178_s13 + $0x1f8] sm:$0xf0]  ;;  %v10145_v29 = vor.u32 %v10864_v40, %v10142_v3 }
 0xb88   :  { %v10237_v25 = vor.u32 %v10892_v7, %v10236_v47  ;;  %v9985_v46 = vor.u32 %v10824_v0, %v9982_v50  ;;  %v10108_v34 = vld [vmem:[%s14178_s13 + $0x2d8] sm:$0xf]  ;;  %v10856_v12 = vld [vmem:[%s14178_s13 + $0x2dc] sm:$0xf] }
 0xb89   :  { %v10860_v33 = vld [vmem:[%s14178_s13 + $0x2f4] sm:$0xf0]  ;;  %v10110_v6 = vld [vmem:[%s14178_s13 + $0x2f8] sm:$0xf0] }
 0xb8a   :  { %7125 = vmatpush.bf16.msrb.mxu0 %v9877_v19  ;;  %7139 = vmatpush.bf16.msra.mxu1 %v10133_v2  ;;  %v9948_v19 = vld [vmem:[%s14178_s13 + $0x198] sm:$0xf]  ;;  %v10109_v5 = vor.u32 %v10860_v33, %v10108_v34  ;;  %v10113_v7 = vor.u32 %v10856_v12, %v10110_v6  ;;  %v9822_v50 = vld [vmem:[%s14178_s13 + $0xb8] sm:$0xf0] }
 0xb8b   :  { %7153 = vmatpush.bf16.msrb.mxu2 %v9881_v63  ;;  %7167 = vmatpush.bf16.msra.mxu3 %v10137_v56  ;;  %v10820_v2 = vld [vmem:[%s14178_s13 + $0x1b4] sm:$0xf0]  ;;  %v10848_v57 = vld [vmem:[%s14178_s13 + $0x29c] sm:$0xf] }
 0xb8c   :  { %7074 = vmatmul.bf16.vlgmr.msra.gmra.mxu0 %v13792_v41  ;;  %7102 = vmatmul.bf16.vlgmr.msra.gmra.mxu2 %v13792_v41  ;;  %v10204_v63 = vld [vmem:[%s14178_s13 + $0x398] sm:$0xf]  ;;  %v9949_v14 = vor.u32 %v10820_v2, %v9948_v19  ;;  %v10078_v37 = vld [vmem:[%s14178_s13 + $0x2b8] sm:$0xf0] }
 0xb8d   :  { %7088 = vmatmul.bf16.vlgmr.msrb.gmra.mxu1 %v13796_v62  ;;  %7116 = vmatmul.bf16.vlgmr.msrb.gmra.mxu3 %v13796_v62  ;;  %v10884_v56 = vld [vmem:[%s14178_s13 + $0x3b4] sm:$0xf0]  ;;  %v10081_v2 = vor.u32 %v10848_v57, %v10078_v37  ;;  %v10840_v28 = vld [vmem:[%s14178_s13 + $0x25c] sm:$0xf] }
 0xb8e   :  { %7126 = vmatpush.bf16.msrb.mxu0 %v9845_v15  ;;  %7140 = vmatpush.bf16.msra.mxu1 %v10101_v26  ;;  %v10205_v10 = vor.u32 %v10884_v56, %v10204_v63  ;;  %v9916_v15 = vld [vmem:[%s14178_s13 + $0x158] sm:$0xf]  ;;  %v10776_v63 = vld [vmem:[%s14178_s13 + $0x5c] sm:$0xf] }
 0xb8f   :  { %7154 = vmatpush.bf16.msrb.mxu2 %v9849_v58  ;;  %7168 = vmatpush.bf16.msra.mxu3 %v10105_v18  ;;  %v10812_v26 = vld [vmem:[%s14178_s13 + $0x174] sm:$0xf0]  ;;  %v9790_v56 = vld [vmem:[%s14178_s13 + $0x78] sm:$0xf0] }
 0xb90   :  { %v10172_v58 = vld [vmem:[%s14178_s13 + $0x358] sm:$0xf]  ;;  %v9917_v16 = vor.u32 %v10812_v26, %v9916_v15  ;;  %v10046_v38 = vld [vmem:[%s14178_s13 + $0x278] sm:$0xf0]  ;;  %v9793_v15 = vor.u32 %v10776_v63, %v9790_v56  ;;  %v10242_v63 = vld [vmem:[%s14181_s25 + $0x4] sm:$0xf] }
 0xb91   :  { %v10876_v18 = vld [vmem:[%s14178_s13 + $0x374] sm:$0xf0]  ;;  %v10049_v26 = vor.u32 %v10840_v28, %v10046_v38  ;;  %v10832_v32 = vld [vmem:[%s14178_s13 + $0x21c] sm:$0xf]  ;;  %v7242_v56 = vld [vmem:[%s14181_s25] sm:$0xf] }
 0xb92   :  { %7127 = vmatpush.bf16.msrb.mxu0 %v9813_v42  ;;  %7141 = vmatpush.bf16.msra.mxu1 %v10069_v49  ;;  %v10173_v9 = vor.u32 %v10876_v18, %v10172_v58  ;;  %v9884_v42 = vld [vmem:[%s14178_s13 + $0x118] sm:$0xf]  ;;  %v10768_v58 = vld [vmem:[%s14178_s13 + $0x1c] sm:$0xf] }
 0xb93   :  { %7155 = vmatpush.bf16.msrb.mxu2 %v9817_v27  ;;  %7169 = vmatpush.bf16.msra.mxu3 %v10073_v53  ;;  %v10804_v49 = vld [vmem:[%s14178_s13 + $0x134] sm:$0xf0]  ;;  %v9758_v18 = vld [vmem:[%s14178_s13 + $0x38] sm:$0xf0] }
 0xb94   :  { %v10140_v27 = vld [vmem:[%s14178_s13 + $0x318] sm:$0xf]  ;;  %v9885_v45 = vor.u32 %v10804_v49, %v9884_v42  ;;  %v10014_v1 = vld [vmem:[%s14178_s13 + $0x238] sm:$0xf0] }
 0xb95   :  { %v10868_v53 = vld [vmem:[%s14178_s13 + $0x334] sm:$0xf0] }
 0xb96   :  { %7128 = vmatpush.bf16.msrb.mxu0 %v9781_v11  ;;  %7142 = vmatpush.bf16.msra.mxu1 %v10037_v59  ;;  %v10141_v23 = vor.u32 %v10868_v53, %v10140_v27  ;;  %v10796_v11 = vld [vmem:[%s14178_s13 + $0xf4] sm:$0xf0]  ;;  %v9889_v59 = vor.u32 %v10800_v8, %v9886_v35 }
 0xb97   :  { %7156 = vmatpush.bf16.msrb.mxu2 %v9785_v20  ;;  %7170 = vmatpush.bf16.msra.mxu3 %v10041_v39  ;;  %v10792_v20 = vld [vmem:[%s14178_s13 + $0xdc] sm:$0xf]  ;;  %v9853_v24 = vor.u32 %v10796_v11, %v9852_v43  ;;  %v10076_v0 = vld [vmem:[%s14178_s13 + $0x298] sm:$0xf] }
 0xb98   :  { %v9854_v39 = vld [vmem:[%s14178_s13 + $0xf8] sm:$0xf0] }
 0xb99   :  { %v9857_v47 = vor.u32 %v10792_v20, %v9854_v39 }
 0xb9a   :  { %7129 = vmatpush.bf16.msrb.mxu0 %v9749_v60  ;;  %7143 = vmatpush.bf16.msra.mxu1 %v10005_v13  ;;  %v10852_v60 = vld [vmem:[%s14178_s13 + $0x2b4] sm:$0xf0]  ;;  %v10784_v13 = vld [vmem:[%s14178_s13 + $0x9c] sm:$0xf] }
 0xb9b   :  { %7157 = vmatpush.bf16.msrb.mxu2 %v9753_v30  ;;  %7171 = vmatpush.bf16.msra.mxu3 %v10009_v21  ;;  %v9821_v30 = vor.u32 %v10788_v51, %v9820_v48  ;;  %v10077_v21 = vor.u32 %v10852_v60, %v10076_v0  ;;  %v9825_v19 = vor.u32 %v10784_v13, %v9822_v50 }
 0xb9d   :  { %7130 = vmatmul.bf16.vlgmr.msrb.gmra.mxu0 %v13792_v41  ;;  %7144 = vmatmul.bf16.vlgmr.msra.gmra.mxu1 %v13796_v62 }
 0xb9e   :  { %7178 = vmatpush.bf16.msra.mxu0 %v9981_v17  ;;  %7192 = vmatpush.bf16.msrb.mxu1 %v10237_v25  ;;  %v9788_v17 = vld [vmem:[%s14178_s13 + $0x58] sm:$0xf] }
 0xb9f   :  { %7206 = vmatpush.bf16.msra.mxu2 %v9985_v46  ;;  %7220 = vmatpush.bf16.msrb.mxu3 %v10241_v22  ;;  %v10780_v25 = vld [vmem:[%s14178_s13 + $0x74] sm:$0xf0] }
 0xba0   :  { %7158 = vmatmul.bf16.vlgmr.msrb.gmra.mxu2 %v13792_v41  ;;  %7172 = vmatmul.bf16.vlgmr.msra.gmra.mxu3 %v13796_v62  ;;  %v10044_v46 = vld [vmem:[%s14178_s13 + $0x258] sm:$0xf]  ;;  %v9789_v55 = vor.u32 %v10780_v25, %v9788_v17 }
 0xba1   :  { %v10844_v22 = vld [vmem:[%s14178_s13 + $0x274] sm:$0xf0] }
 0xba2   :  { %7179 = vmatpush.bf16.msra.mxu0 %v9949_v14  ;;  %7193 = vmatpush.bf16.msrb.mxu1 %v10205_v10  ;;  %v10045_v54 = vor.u32 %v10844_v22, %v10044_v46  ;;  %v9756_v14 = vld [vmem:[%s14178_s13 + $0x18] sm:$0xf] }
 0xba3   :  { %7207 = vmatpush.bf16.msra.mxu2 %v9953_v61  ;;  %7221 = vmatpush.bf16.msrb.mxu3 %v10209_v36  ;;  %v10772_v10 = vld [vmem:[%s14178_s13 + $0x34] sm:$0xf0] }
 0xba4   :  { %v10012_v61 = vld [vmem:[%s14178_s13 + $0x218] sm:$0xf]  ;;  %v9757_v31 = vor.u32 %v10772_v10, %v9756_v14 }
 0xba5   :  { %v10836_v36 = vld [vmem:[%s14178_s13 + $0x234] sm:$0xf0] }
 0xba6   :  { %7180 = vmatpush.bf16.msra.mxu0 %v9917_v16  ;;  %7194 = vmatpush.bf16.msrb.mxu1 %v10173_v9  ;;  %v10013_v4 = vor.u32 %v10836_v36, %v10012_v61  ;;  %v9761_v16 = vor.u32 %v10768_v58, %v9758_v18  ;;  %v10017_v9 = vor.u32 %v10832_v32, %v10014_v1 }
 0xba7   :  { %7208 = vmatpush.bf16.msra.mxu2 %v9921_v44  ;;  %7222 = vmatpush.bf16.msrb.mxu3 %v10177_v52 }
 0xbaa   :  { %7181 = vmatpush.bf16.msra.mxu0 %v9885_v45  ;;  %7195 = vmatpush.bf16.msrb.mxu1 %v10141_v23 }
 0xbab   :  { %7209 = vmatpush.bf16.msra.mxu2 %v9889_v59  ;;  %7223 = vmatpush.bf16.msrb.mxu3 %v10145_v29 }
 0xbae   :  { %7182 = vmatpush.bf16.msra.mxu0 %v9853_v24  ;;  %7196 = vmatpush.bf16.msrb.mxu1 %v10109_v5 }
 0xbaf   :  { %7210 = vmatpush.bf16.msra.mxu2 %v9857_v47  ;;  %7224 = vmatpush.bf16.msrb.mxu3 %v10113_v7 }
 0xbb2   :  { %7183 = vmatpush.bf16.msra.mxu0 %v9821_v30  ;;  %7197 = vmatpush.bf16.msrb.mxu1 %v10077_v21 }
 0xbb3   :  { %7211 = vmatpush.bf16.msra.mxu2 %v9825_v19  ;;  %7225 = vmatpush.bf16.msrb.mxu3 %v10081_v2 }
 0xbb6   :  { %7184 = vmatpush.bf16.msra.mxu0 %v9789_v55  ;;  %7198 = vmatpush.bf16.msrb.mxu1 %v10045_v54 }
 0xbb7   :  { %7212 = vmatpush.bf16.msra.mxu2 %v9793_v15  ;;  %7226 = vmatpush.bf16.msrb.mxu3 %v10049_v26 }
 0xbba   :  { %7185 = vmatpush.bf16.msra.mxu0 %v9757_v31  ;;  %7199 = vmatpush.bf16.msrb.mxu1 %v10013_v4 }
 0xbbb   :  { %7213 = vmatpush.bf16.msra.mxu2 %v9761_v16  ;;  %7227 = vmatpush.bf16.msrb.mxu3 %v10017_v9  ;;  %v10247_v16 = vld [vmem:[%s14181_s25 + $0x8] sm:$0xf] }
 0xbbd   :  { %7186 = vmatmul.bf16.vlgmr.msra.gmra.mxu0 %v13792_v41  ;;  %7200 = vmatmul.bf16.vlgmr.msrb.gmra.mxu1 %v13796_v62 }
 0xbbe   :  { %7214 = vmatmul.bf16.vlgmr.msra.gmra.mxu2 %v13792_v41  ;;  %7228 = vmatmul.bf16.vlgmr.msrb.gmra.mxu3 %v13796_v62 }
 0xbf9   :  { %v7019_v42 = vpop.f32.mrf.mxu0 }
 0xbfa   :  { %v7033_v49 = vpop.f32.mrf.mxu1 }
 0xbfb   :  { %v7034_v35 = vadd.f32 %v7033_v49, %v7019_v42 }
 0xbff   :  { %v7047_v44 = vpop.f32.mrf.mxu2 }
 0xc00   :  { %v7061_v52 = vpop.f32.mrf.mxu3 }
 0xc01   :  { %v7021_v27 = vpop.f32.mrf.mxu0  ;;  %v7062_v8 = vadd.f32 %v7061_v52, %v7047_v44 }
 0xc02   :  { %v7035_v53 = vpop.f32.mrf.mxu1 }
 0xc03   :  { %v7234_v45 = vpack.c.bf16 %v7062_v8, %v7034_v35  ;;  %v7036_v23 = vadd.f32 %v7035_v53, %v7021_v27 }
 0xc05   :  { %v7286_v34 = vunpack.c.l.b16 %v7234_v45  ;;  %v7287_v41 = vunpack.c.h.b16 %v7234_v45 }
 0xc07   :  { %v7049_v40 = vpop.f32.mrf.mxu2 }
 0xc08   :  { %v7063_v3 = vpop.f32.mrf.mxu3 }
 0xc09   :  { %v7064_v43 = vadd.f32 %v7063_v3, %v7049_v40  ;;  %v7075_v11 = vpop.f32.mrf.mxu0 }
 0xc0a   :  { %v7089_v59 = vpop.f32.mrf.mxu1 }
 0xc0b   :  { %v7238_v29 = vpack.c.bf16 %v7064_v43, %v7036_v23  ;;  %v7090_v51 = vadd.f32 %v7089_v59, %v7075_v11 }
 0xc0d   :  { %v7288_v33 = vunpack.c.l.b16 %v7238_v29  ;;  %v7289_v62 = vunpack.c.h.b16 %v7238_v29 }
 0xc0f   :  { %v7290_v20 = vpack.c.b16 %v7288_v33, %v7286_v34  ;;  %v7291_v39 = vpack.c.b16 %v7289_v62, %v7287_v41  ;;  %v7103_v12 = vpop.f32.mrf.mxu2  ;;  %v10250_v62 = vld [vmem:[%s14181_s25 + $0xc] sm:$0xf] }
 0xc10   :  { %v7117_v6 = vpop.f32.mrf.mxu3 }
 0xc11   :  { %7304 = vmatpush.bf16.msrb.mxu2 %v7290_v20  ;;  %7317 = vmatpush.bf16.msra.mxu3 %v7291_v39  ;;  %v7077_v24 = vpop.f32.mrf.mxu0  ;;  %v7118_v48 = vadd.f32 %v7117_v6, %v7103_v12  ;;  %v11232_v20 = vld [vmem:[%s14182_s29 + $0x38] sm:$0xff]  }
 0xc12   :  { %v7091_v5 = vpop.f32.mrf.mxu1  ;;  %v11240_v39 = vld [vmem:[%s14182_s29 + $0x78] sm:$0xff]   ;;  %v11148_v12 = vunpack.c.h.bf16 %v11232_v20 }
 0xc13   :  { %v7235_v0 = vpack.c.bf16 %v7118_v48, %v7090_v51  ;;  %v7092_v60 = vadd.f32 %v7091_v5, %v7077_v24  ;;  %v11180_v6 = vunpack.c.h.bf16 %v11240_v39  ;;  %v11147_v24 = vunpack.c.l.bf16 %v11232_v20  ;;  %v11231_v48 = vld [vmem:[%s14182_s29 + $0x30] sm:$0xff]  }
 0xc14   :  { %10245 = vmatmul.msk.bf16.vlgmr.msrb.gmra.mxu2 %vm4561_vm14, %v7242_v56  ;;  %10246 = vmatmul.msk.bf16.vlgmr.msra.gmra.mxu3 %vm4561_vm14, %v7242_v56  ;;  %v11179_v5 = vunpack.c.l.bf16 %v11240_v39  ;;  %v11239_v51 = vld [vmem:[%s14182_s29 + $0x70] sm:$0xff]  }
 0xc15   :  { %v7247_v57 = vunpack.c.l.b16 %v7235_v0  ;;  %v7248_v37 = vunpack.c.h.b16 %v7235_v0  ;;  %v11176_v0 = vunpack.c.h.bf16 %v11239_v51 }
 0xc17   :  { %v7105_v47 = vpop.f32.mrf.mxu2 }
 0xc18   :  { %v7119_v7 = vpop.f32.mrf.mxu3 }
 0xc19   :  { %v7120_v13 = vadd.f32 %v7119_v7, %v7105_v47  ;;  %v11230_v47 = vld [vmem:[%s14182_s29 + $0x28] sm:$0xff]   ;;  %v11144_v7 = vunpack.c.h.bf16 %v11231_v48 }
 0xc1a   :  { %v7131_v17 = vpop.f32.mrf.mxu0  ;;  %v7145_v25 = vpop.f32.mrf.mxu1 }
 0xc1b   :  { %v7239_v50 = vpack.c.bf16 %v7120_v13, %v7092_v60  ;;  %v7146_v54 = vadd.f32 %v7145_v25, %v7131_v17  ;;  %v11143_v60 = vunpack.c.l.bf16 %v11231_v48  ;;  %v11175_v13 = vunpack.c.l.bf16 %v11239_v51 }
 0xc1c   :  { %v11139_v17 = vunpack.c.l.bf16 %v11230_v47 }
 0xc1d   :  { %v7249_v30 = vunpack.c.l.b16 %v7239_v50  ;;  %v7250_v21 = vunpack.c.h.b16 %v7239_v50  ;;  %v11238_v50 = vld [vmem:[%s14182_s29 + $0x68] sm:$0xff]  }
 0xc1e   :  { %v11171_v25 = vunpack.c.l.bf16 %v11238_v50 }
 0xc1f   :  { %v7251_v19 = vpack.c.b16 %v7249_v30, %v7247_v57  ;;  %v7252_v2 = vpack.c.b16 %v7250_v21, %v7248_v37  ;;  %v11140_v57 = vunpack.c.h.bf16 %v11230_v47  ;;  %v11172_v37 = vunpack.c.h.bf16 %v11238_v50  ;;  %v11229_v30 = vld [vmem:[%s14182_s29 + $0x20] sm:$0xff]  }
 0xc20   :  { %v11237_v21 = vld [vmem:[%s14182_s29 + $0x60] sm:$0xff]  }
 0xc21   :  { %7265 = vmatpush.bf16.msrb.mxu0 %v7251_v19  ;;  %7278 = vmatpush.bf16.msra.mxu1 %v7252_v2  ;;  %v11136_v19 = vunpack.c.h.bf16 %v11229_v30  ;;  %v11168_v2 = vunpack.c.h.bf16 %v11237_v21 }
 0xc22   :  { %v7133_v38 = vpop.f32.mrf.mxu0  ;;  %v7147_v55 = vpop.f32.mrf.mxu1 }
 0xc23   :  { %v7159_v46 = vpop.f32.mrf.mxu2  ;;  %v7173_v22 = vpop.f32.mrf.mxu3  ;;  %v7148_v26 = vadd.f32 %v7147_v55, %v7133_v38 }
 0xc24   :  { %10243 = vmatmul.msk.bf16.vlgmr.msrb.gmra.mxu0 %vm4561_vm14, %v10242_v63  ;;  %10244 = vmatmul.msk.bf16.vlgmr.msra.gmra.mxu1 %vm4561_vm14, %v10242_v63  ;;  %v7174_v28 = vadd.f32 %v7173_v22, %v7159_v46 }
 0xc26   :  { %v7236_v15 = vpack.c.bf16 %v7174_v28, %v7146_v54 }
 0xc28   :  { %v7327_v58 = vunpack.c.l.b16 %v7236_v15  ;;  %v7328_v18 = vunpack.c.h.b16 %v7236_v15 }
 0xc2b   :  { %v7161_v14 = vpop.f32.mrf.mxu2  ;;  %v7175_v10 = vpop.f32.mrf.mxu3 }
 0xc2c   :  { %v7176_v61 = vadd.f32 %v7175_v10, %v7161_v14 }
 0xc2e   :  { %v7240_v36 = vpack.c.bf16 %v7176_v61, %v7148_v26  ;;  %v11135_v61 = vunpack.c.l.bf16 %v11229_v30 }
 0xc30   :  { %v7329_v32 = vunpack.c.l.b16 %v7240_v36  ;;  %v7330_v1 = vunpack.c.h.b16 %v7240_v36  ;;  %v11167_v36 = vunpack.c.l.bf16 %v11237_v21 }
 0xc32   :  { %v7331_v31 = vpack.c.b16 %v7329_v32, %v7327_v58  ;;  %v7332_v4 = vpack.c.b16 %v7330_v1, %v7328_v18  ;;  %v11228_v58 = vld [vmem:[%s14182_s29 + $0x18] sm:$0xff]  }
 0xc33   :  { %v11236_v18 = vld [vmem:[%s14182_s29 + $0x58] sm:$0xff]   ;;  %v11132_v32 = vunpack.c.h.bf16 %v11228_v58 }
 0xc34   :  { %7345 = vmatpush.bf16.msra.mxu0 %v7331_v31  ;;  %7358 = vmatpush.bf16.msrb.mxu1 %v7332_v4  ;;  %v11164_v1 = vunpack.c.h.bf16 %v11236_v18  ;;  %v11227_v31 = vld [vmem:[%s14182_s29 + $0x10] sm:$0xff]  }
 0xc35   :  { %v11235_v4 = vld [vmem:[%s14182_s29 + $0x50] sm:$0xff]  }
 0xc37   :  { %10248 = vmatmul.msk.bf16.vlgmr.msra.gmra.mxu0 %vm4561_vm14, %v10247_v16  ;;  %10249 = vmatmul.msk.bf16.vlgmr.msrb.gmra.mxu1 %vm4561_vm14, %v10247_v16  ;;  %v11131_v16 = vunpack.c.l.bf16 %v11228_v58 }
 0xc38   :  { %7501 = vmatpush.msrb.mxu0 %v11148_v12  ;;  %7521 = vmatpush.msra.mxu1 %v11180_v6 }
 0xc3a   :  { %v7187_v9 = vpop.f32.mrf.mxu0  ;;  %v7201_v42 = vpop.f32.mrf.mxu1  ;;  %7502 = vmatpush.msrb.mxu0 %v11147_v24  ;;  %7522 = vmatpush.msra.mxu1 %v11179_v5 }
 0xc3b   :  { %v7202_v8 = vadd.f32 %v7201_v42, %v7187_v9  ;;  %v11163_v9 = vunpack.c.l.bf16 %v11236_v18  ;;  %v11128_v42 = vunpack.c.h.bf16 %v11227_v31 }
 0xc3c   :  { %7503 = vmatpush.msrb.mxu0 %v11144_v7  ;;  %7523 = vmatpush.msra.mxu1 %v11176_v0 }
 0xc3e   :  { %7504 = vmatpush.msrb.mxu0 %v11143_v60  ;;  %7524 = vmatpush.msra.mxu1 %v11175_v13 }
 0xc40   :  { %7505 = vmatpush.msrb.mxu0 %v11140_v57  ;;  %7525 = vmatpush.msra.mxu1 %v11172_v37 }
 0xc41   :  { %v7215_v49 = vpop.f32.mrf.mxu2  ;;  %v7229_v44 = vpop.f32.mrf.mxu3 }
 0xc42   :  { %v7230_v52 = vadd.f32 %v7229_v44, %v7215_v49  ;;  %v7189_v27 = vpop.f32.mrf.mxu0  ;;  %v7203_v53 = vpop.f32.mrf.mxu1  ;;  %7506 = vmatpush.msrb.mxu0 %v11139_v17  ;;  %7526 = vmatpush.msra.mxu1 %v11171_v25  ;;  %v11160_v49 = vunpack.c.h.bf16 %v11235_v4  ;;  %v11226_v44 = vld [vmem:[%s14182_s29 + $0x8] sm:$0xff]  }
 0xc43   :  { %v7204_v45 = vadd.f32 %v7203_v53, %v7189_v27  ;;  %v11127_v27 = vunpack.c.l.bf16 %v11227_v31  ;;  %v11159_v53 = vunpack.c.l.bf16 %v11235_v4 }
 0xc44   :  { %v7237_v3 = vpack.c.bf16 %v7230_v52, %v7202_v8  ;;  %7507 = vmatpush.msrb.mxu0 %v11136_v19  ;;  %7527 = vmatpush.msra.mxu1 %v11168_v2  ;;  %v11234_v52 = vld [vmem:[%s14182_s29 + $0x48] sm:$0xff]   ;;  %v11124_v8 = vunpack.c.h.bf16 %v11226_v44 }
 0xc46   :  { %v7370_v11 = vunpack.c.l.b16 %v7237_v3  ;;  %v7371_v59 = vunpack.c.h.b16 %v7237_v3  ;;  %7508 = vmatpush.msrb.mxu0 %v11135_v61  ;;  %7528 = vmatpush.msra.mxu1 %v11167_v36  ;;  %v11233_v3 = vld [vmem:[%s14182_s29 + $0x40] sm:$0xff]   ;;  %v11368_v61 = vmov 32.0  }
 0xc47   :  { %11301 = vrcp.f32 %v11368_v61 }
 0xc48   :  { %7509 = vmatpush.msrb.mxu0 %v11132_v32  ;;  %7529 = vmatpush.msra.mxu1 %v11164_v1 }
 0xc49   :  { %v7217_v35 = vpop.f32.mrf.mxu2  ;;  %v7231_v40 = vpop.f32.mrf.mxu3 }
 0xc4a   :  { %v7232_v23 = vadd.f32 %v7231_v40, %v7217_v35  ;;  %7510 = vmatpush.msrb.mxu0 %v11131_v16  ;;  %7530 = vmatpush.msra.mxu1 %v11163_v9  ;;  %v11156_v35 = vunpack.c.h.bf16 %v11234_v52  ;;  %v11118_v40 = vld [vmem:[%s14182_s29] sm:$0xff]  }
 0xc4c   :  { %v7241_v43 = vpack.c.bf16 %v7232_v23, %v7204_v45  ;;  %7511 = vmatpush.msrb.mxu0 %v11128_v42  ;;  %7531 = vmatpush.msra.mxu1 %v11160_v49  ;;  %v11123_v45 = vunpack.c.l.bf16 %v11226_v44  ;;  %v11155_v23 = vunpack.c.l.bf16 %v11234_v52 }
 0xc4d   :  { %v11302_v36 = vpop.eup %11301 }
 0xc4e   :  { %v7372_v29 = vunpack.c.l.b16 %v7241_v43  ;;  %v7373_v34 = vunpack.c.h.b16 %v7241_v43  ;;  %7512 = vmatpush.msrb.mxu0 %v11127_v27  ;;  %7532 = vmatpush.msra.mxu1 %v11159_v53  ;;  %v11120_v43 = vunpack.c.h.bf16 %v11118_v40  ;;  %v7542_v58 = vmul.f32 32.0, %v11302_v36  ;;  %v7586_v53 = vld [vmem:[%s14183_s3 + $0x38] sm:$0xff] }
 0xc50   :  { %v7374_v41 = vpack.c.b16 %v7372_v29, %v7370_v11  ;;  %v7375_v33 = vpack.c.b16 %v7373_v34, %v7371_v59  ;;  %7513 = vmatpush.msrb.mxu0 %v11124_v8  ;;  %7533 = vmatpush.msra.mxu1 %v11156_v35  ;;  %v11152_v11 = vunpack.c.h.bf16 %v11233_v3  ;;  %v11119_v59 = vunpack.c.l.bf16 %v11118_v40  ;;  %v7585_v8 = vld [vmem:[%s14183_s3 + $0x30] sm:$0xff]  ;;  %v7584_v35 = vld [vmem:[%s14183_s3 + $0x28] sm:$0xff] }
 0xc51   :  { %v11151_v29 = vunpack.c.l.bf16 %v11233_v3  ;;  %v7543_v18 = vsub.f32 1.0, %v7542_v58  ;;  %v7601_v40 = vunpack.c.l.bf16 %v7586_v53  ;;  %v7602_v3 = vunpack.c.h.bf16 %v7586_v53  ;;  %v10369_v53 = vld [vmem:[%s14184_s8 + $0xe0] sm:$0xf] }
 0xc52   :  { %7388 = vmatpush.bf16.msra.mxu2 %v7374_v41  ;;  %7401 = vmatpush.bf16.msrb.mxu3 %v7375_v33 }
 0xc53   :  { %7514 = vmatpush.msrb.mxu0 %v11123_v45  ;;  %7534 = vmatpush.msra.mxu1 %v11155_v23  ;;  %v7544_v32 = vmul.f32 %v11302_v36, %v7543_v18  ;;  %v7599_v45 = vunpack.c.l.bf16 %v7585_v8  ;;  %v7600_v23 = vunpack.c.h.bf16 %v7585_v8  ;;  %v10922_v8 = vld [vmem:[%s14184_s8 + $0xe4] sm:$0xf0] }
 0xc55   :  { %10251 = vmatmul.msk.bf16.vlgmr.msra.gmra.mxu2 %vm4561_vm14, %v10250_v62  ;;  %10252 = vmatmul.msk.bf16.vlgmr.msrb.gmra.mxu3 %vm4561_vm14, %v10250_v62  ;;  %v7545_v1 = vadd.f32 %v11302_v36, %v7544_v32  ;;  %vm7546_vm14 = vweird.f32 %v11302_v36  ;;  %v10901_v32 = vld [vmem:[%s14184_s8 + $0x44] sm:$0xf] }
 0xc56   :  { %7515 = vmatpush.msrb.mxu0 %v11120_v43  ;;  %7535 = vmatpush.msra.mxu1 %v11152_v11  ;;  %v7583_v43 = vld [vmem:[%s14183_s3 + $0x20] sm:$0xff]  ;;  %v7597_v11 = vunpack.c.l.bf16 %v7584_v35 }
 0xc57   :  { %v7547_v16 = vsel %vm7546_vm14, %v11302_v36, %v7545_v1  ;;  %7614 = vmatpush.msrb.mxu2 %v7601_v40  ;;  %7634 = vmatpush.msra.mxu3 %v7602_v3  ;;  %v10291_v1 = vld [vmem:[%s14184_s8 + $0x48] sm:$0xf0] }
 0xc58   :  { %7516 = vmatpush.msrb.mxu0 %v11119_v59  ;;  %7536 = vmatpush.msra.mxu1 %v11151_v29  ;;  %v7598_v59 = vunpack.c.h.bf16 %v7584_v35  ;;  %v7582_v29 = vld [vmem:[%s14183_s3 + $0x18] sm:$0xff]  ;;  %v10294_v35 = vor.u32 %v10901_v32, %v10291_v1  ;;  %v10329_v32 = vld [vmem:[%s14184_s8 + $0x90] sm:$0xf] }
 0xc59   :  { %7615 = vmatpush.msrb.mxu2 %v7599_v45  ;;  %7635 = vmatpush.msra.mxu3 %v7600_v23  ;;  %v10370_v45 = vor.u32 %v10922_v8, %v10369_v53  ;;  %v10297_v23 = vld [vmem:[%s14184_s8 + $0x50] sm:$0xf]  ;;  %v10912_v1 = vld [vmem:[%s14184_s8 + $0x94] sm:$0xf0]  ;;  %v10257_v53 = vld [vmem:[%s14184_s8] sm:$0xf] }
 0xc5a   :  { %v10894_v8 = vld [vmem:[%s14184_s8 + $0x4] sm:$0xf0] }
 0xc5b   :  { %7616 = vmatpush.msrb.mxu2 %v7597_v11  ;;  %7636 = vmatpush.msra.mxu3 %v7598_v59  ;;  %v10361_v11 = vld [vmem:[%s14184_s8 + $0xd0] sm:$0xf]  ;;  %v10920_v59 = vld [vmem:[%s14184_s8 + $0xd4] sm:$0xf0] }
 0xc97   :  { %v7306_v63 = vpop.f32.mrf.mxu2  ;;  %v7319_v56 = vpop.f32.mrf.mxu3 }
 0xc9f   :  { %v7308_v55 = vpop.f32.mrf.mxu2  ;;  %v7321_v54 = vpop.f32.mrf.mxu3 }
 0xca1   :  { %v7267_v46 = vpop.f32.mrf.mxu0  ;;  %v7280_v22 = vpop.f32.mrf.mxu1 }
 0xca2   :  { %v7307_v34 = vadd.f32 %v7306_v63, %v7267_v46  ;;  %v7320_v41 = vadd.f32 %v7319_v56, %v7280_v22 }
 0xca9   :  { %v7269_v28 = vpop.f32.mrf.mxu0  ;;  %v7282_v38 = vpop.f32.mrf.mxu1 }
 0xcb4   :  { %v7347_v14 = vpop.f32.mrf.mxu0  ;;  %v7360_v10 = vpop.f32.mrf.mxu1 }
 0xcb5   :  { %v7364_v33 = vadd.f32 %v7347_v14, %v7307_v34  ;;  %v7365_v62 = vadd.f32 %v7360_v10, %v7320_v41  ;;  %v10907_v34 = vld [vmem:[%s14184_s8 + $0x74] sm:$0xf]  ;;  %v10315_v41 = vld [vmem:[%s14184_s8 + $0x78] sm:$0xf0] }
 0xcbc   :  { %v7349_v15 = vpop.f32.mrf.mxu0  ;;  %v7362_v26 = vpop.f32.mrf.mxu1 }
 0xcd8   :  { %v7390_v20 = vpop.f32.mrf.mxu2  ;;  %v7403_v39 = vpop.f32.mrf.mxu3 }
 0xcd9   :  { %v13960_v12 = vadd.f32 %v7390_v20, %v7364_v33  ;;  %v13962_v6 = vadd.f32 %v7403_v39, %v7365_v62  ;;  %v7595_v33 = vunpack.c.l.bf16 %v7583_v43  ;;  %v7596_v62 = vunpack.c.h.bf16 %v7583_v43  ;;  %v10923_v39 = vld [vmem:[%s14184_s8 + $0xf4] sm:$0xf]  ;;  %v10904_v43 = vld [vmem:[%s14184_s8 + $0x54] sm:$0xf0] }
 0xcda   :  { %v10318_v20 = vor.u32 %v10907_v34, %v10315_v41  ;;  %v10298_v34 = vor.u32 %v10904_v43, %v10297_v23  ;;  %v10362_v41 = vor.u32 %v10920_v59, %v10361_v11  ;;  %v10909_v23 = vld [vmem:[%s14184_s8 + $0x84] sm:$0xf]  ;;  %v10323_v43 = vld [vmem:[%s14184_s8 + $0x88] sm:$0xf0]  ;;  %v10258_v11 = vor.u32 %v10894_v8, %v10257_v53  ;;  %v7968_v8 = vld [vmem:[%s11513_s20 + $0x90] sm:$0xff] }
 0xcdb   :  { %v7409_v24 = vrot.slane %v13960_v12, 4  ;;  %v7421_v5 = vmul.f32 %v13960_v12, %v13960_v12  ;;  %v7415_v48 = vrot.slane %v13962_v6, 4  ;;  %v7422_v51 = vmul.f32 %v13962_v6, %v13962_v6  ;;  %7617 = vmatpush.msrb.mxu2 %v7595_v33  ;;  %7637 = vmatpush.msra.mxu3 %v7596_v62  ;;  %v10289_v33 = vld [vmem:[%s14184_s8 + $0x40] sm:$0xf]  ;;  %v10902_v62 = vld [vmem:[%s14184_s8 + $0x44] sm:$0xf0] }
 0xcdc   :  { %7876 = vmatpush.bf16.msra.mxu0 %v10318_v20  ;;  %v10353_v20 = vld [vmem:[%s14184_s8 + $0xc0] sm:$0xf] }
 0xcdd   :  { %v7410_v47 = vadd.f32 %v7409_v24, %v13960_v12  ;;  %v7423_v7 = vrot.slane %v7421_v5, 4  ;;  %v7416_v0 = vadd.f32 %v7415_v48, %v13962_v6  ;;  %v7429_v60 = vrot.slane %v7422_v51, 4  ;;  %v10379_v24 = vld [vmem:[%s14184_s8 + $0xf8] sm:$0xf0]  ;;  %v7581_v48 = vld [vmem:[%s14183_s3 + $0x10] sm:$0xff] }
 0xcdf   :  { %v7411_v13 = vrot.slane %v7410_v47, 2  ;;  %v7424_v50 = vadd.f32 %v7423_v7, %v7421_v5  ;;  %v7417_v57 = vrot.slane %v7416_v0, 2  ;;  %v7430_v37 = vadd.f32 %v7429_v60, %v7422_v51  ;;  %v10905_v60 = vld [vmem:[%s14184_s8 + $0x64] sm:$0xf] }
 0xce0   :  { %v7392_v30 = vpop.f32.mrf.mxu2  ;;  %v7405_v21 = vpop.f32.mrf.mxu3  ;;  %v10382_v51 = vor.u32 %v10923_v39, %v10379_v24  ;;  %v7593_v7 = vunpack.c.l.bf16 %v7582_v29  ;;  %v10918_v39 = vld [vmem:[%s14184_s8 + $0xc4] sm:$0xf0] }
 0xce1   :  { %v7412_v17 = vadd.f32 %v7411_v13, %v7410_v47  ;;  %v7425_v25 = vrot.slane %v7424_v50, 2  ;;  %v7418_v19 = vadd.f32 %v7417_v57, %v7416_v0  ;;  %v7431_v2 = vrot.slane %v7430_v37, 2  ;;  %v10307_v13 = vld [vmem:[%s14184_s8 + $0x68] sm:$0xf0] }
 0xce2   :  { %v7594_v0 = vunpack.c.h.bf16 %v7582_v29  ;;  %v7580_v57 = vld [vmem:[%s14183_s3 + $0x8] sm:$0xff]  ;;  %7889 = vmatpush.bf16.msrb.mxu1 %v10382_v51  ;;  %v10310_v30 = vor.u32 %v10905_v60, %v10307_v13  ;;  %7618 = vmatpush.msrb.mxu2 %v7593_v7  ;;  %v7554_v29 = vld [vmem:[%s14185_s14] sm:$0x1]  ;;  %v10354_v51 = vor.u32 %v10918_v39, %v10353_v20 }
 0xce3   :  { %v7413_v46 = vrot.slane %v7412_v17, 1  ;;  %v7426_v22 = vadd.f32 %v7425_v25, %v7424_v50  ;;  %v7419_v63 = vrot.slane %v7418_v19, 1  ;;  %v7432_v56 = vadd.f32 %v7431_v2, %v7430_v37  ;;  %v10921_v50 = vld [vmem:[%s14184_s8 + $0xe4] sm:$0xf]  ;;  %v10371_v21 = vld [vmem:[%s14184_s8 + $0xe8] sm:$0xf0] }
 0xce4   :  { %v7579_v37 = vld [vmem:[%s14183_s3] sm:$0xff]  ;;  %v7591_v25 = vunpack.c.l.bf16 %v7581_v48  ;;  %v10313_v2 = vld [vmem:[%s14184_s8 + $0x70] sm:$0xf]  ;;  %7638 = vmatpush.msra.mxu3 %v7594_v0  ;;  %7877 = vmatpush.bf16.msra.mxu0 %v10310_v30  ;;  %v10916_v30 = vld [vmem:[%s14184_s8 + $0xb4] sm:$0xf0] }
 0xce5   :  { %v7427_v28 = vrot.slane %v7426_v22, 1  ;;  %v7433_v38 = vrot.slane %v7432_v56, 1  ;;  %v7414_v55 = vadd.f32 %v7413_v46, %v7412_v17  ;;  %v7420_v14 = vadd.f32 %v7419_v63, %v7418_v19  ;;  %v10908_v46 = vld [vmem:[%s14184_s8 + $0x74] sm:$0xf0] }
 0xce6   :  { %v7592_v19 = vunpack.c.h.bf16 %v7581_v48  ;;  %v10374_v63 = vor.u32 %v10921_v50, %v10371_v21  ;;  %7619 = vmatpush.msrb.mxu2 %v7591_v25  ;;  %v7587_v58 = vunpack.c.l.bf16 %v7579_v37  ;;  %v7588_v18 = vunpack.c.h.bf16 %v7579_v37  ;;  %v10281_v50 = vld [vmem:[%s14184_s8 + $0x30] sm:$0xf]  ;;  %v10899_v21 = vld [vmem:[%s14184_s8 + $0x34] sm:$0xf] }
 0xce7   :  { %v7428_v54 = vadd.f32 %v7427_v28, %v7426_v22  ;;  %v7434_v10 = vadd.f32 %v7433_v38, %v7432_v56  ;;  %v10377_v22 = vld [vmem:[%s14184_s8 + $0xf0] sm:$0xf]  ;;  %v10903_v56 = vld [vmem:[%s14184_s8 + $0x54] sm:$0xf]  ;;  %v10299_v28 = vld [vmem:[%s14184_s8 + $0x58] sm:$0xf0]  ;;  %v10290_v48 = vor.u32 %v10902_v62, %v10289_v33 }
 0xce8   :  { %v10919_v38 = vld [vmem:[%s14184_s8 + $0xd4] sm:$0xf]  ;;  %7890 = vmatpush.bf16.msrb.mxu1 %v10374_v63  ;;  %7639 = vmatpush.msra.mxu3 %v7592_v19  ;;  %v10345_v37 = vld [vmem:[%s14184_s8 + $0xb0] sm:$0xf] }
 0xce9   :  { %v7435_v15 = vsel %vm2408_vm1, %v7414_v55, %v7428_v54  ;;  %v7436_v26 = vsel %vm2408_vm1, %v7420_v14, %v7434_v10  ;;  %v7589_v54 = vunpack.c.l.bf16 %v7580_v57  ;;  %v7590_v14 = vunpack.c.h.bf16 %v7580_v57  ;;  %v10924_v10 = vld [vmem:[%s14184_s8 + $0xf4] sm:$0xf0] }
 0xcea   :  { %7517 = vmatmul.f32.vlgmr.msrb.gmra.mxu0 %v7435_v15  ;;  %7537 = vmatmul.f32.vlgmr.msra.gmra.mxu1 %v7436_v26  ;;  %v10363_v15 = vld [vmem:[%s14184_s8 + $0xd8] sm:$0xf0]  ;;  %v10302_v26 = vor.u32 %v10903_v56, %v10299_v28  ;;  %v10900_v57 = vld [vmem:[%s14184_s8 + $0x34] sm:$0xf0]  ;;  %v10346_v25 = vor.u32 %v10916_v30, %v10345_v37  ;;  %v10898_v56 = vld [vmem:[%s14184_s8 + $0x24] sm:$0xf0] }
 0xceb   :  { %v10366_v61 = vor.u32 %v10919_v38, %v10363_v15  ;;  %7620 = vmatpush.msrb.mxu2 %v7589_v54  ;;  %7640 = vmatpush.msra.mxu3 %v7590_v14  ;;  %v10337_v28 = vld [vmem:[%s14184_s8 + $0xa0] sm:$0xf]  ;;  %v10914_v38 = vld [vmem:[%s14184_s8 + $0xa4] sm:$0xf0]  ;;  %v10897_v14 = vld [vmem:[%s14184_s8 + $0x24] sm:$0xf] }
 0xcec   :  { %7878 = vmatpush.bf16.msra.mxu0 %v10302_v26  ;;  %v10338_v54 = vor.u32 %v10914_v38, %v10337_v28  ;;  %v10913_v15 = vld [vmem:[%s14184_s8 + $0xa4] sm:$0xf]  ;;  %v7963_v37 = vld [vmem:[%s11513_s20 + $0x68] sm:$0xff]  ;;  %v7957_v28 = vld [vmem:[%s11513_s20 + $0x38] sm:$0xff] }
 0xced   :  { %7891 = vmatpush.bf16.msrb.mxu1 %v10366_v61  ;;  %7621 = vmatpush.msrb.mxu2 %v7587_v58  ;;  %v10339_v61 = vld [vmem:[%s14184_s8 + $0xa8] sm:$0xf0]  ;;  %v10896_v58 = vld [vmem:[%s14184_s8 + $0x14] sm:$0xf0]  ;;  %v7962_v30 = vld [vmem:[%s11513_s20 + $0x60] sm:$0xff] }
 0xcee   :  { %7641 = vmatpush.msra.mxu3 %v7588_v18  ;;  %v10342_v18 = vor.u32 %v10913_v15, %v10339_v61  ;;  %v7973_v38 = vld [vmem:[%s11513_s20 + $0xb8] sm:$0xff]  ;;  %v7903_v15 = vld [vmem:[%s14187_s24 + $0x8] sm:$0xff] }
 0xcf0   :  { %7879 = vmatpush.bf16.msra.mxu0 %v10294_v35  ;;  %v10321_v35 = vld [vmem:[%s14184_s8 + $0x80] sm:$0xf] }
 0xd67   :  { %v7518_v31 = vpop.f32.mrf.mxu0  ;;  %v7538_v4 = vpop.f32.mrf.mxu1 }
 0xd68   :  { %v7539_v9 = vadd.f32 %v7538_v4, %v7518_v31  ;;  %v10314_v31 = vor.u32 %v10908_v46, %v10313_v2  ;;  %v10378_v4 = vor.u32 %v10924_v10, %v10377_v22  ;;  %v10915_v2 = vld [vmem:[%s14184_s8 + $0xb4] sm:$0xf]  ;;  %v10347_v46 = vld [vmem:[%s14184_s8 + $0xb8] sm:$0xf0]  ;;  %v10273_v22 = vld [vmem:[%s14184_s8 + $0x20] sm:$0xf] }
 0xd69   :  { %v10350_v63 = vor.u32 %v10915_v2, %v10347_v46  ;;  %v10275_v10 = vld [vmem:[%s14184_s8 + $0x28] sm:$0xf0]  ;;  %v7976_v2 = vld [vmem:[%s11513_s20 + $0xd0] sm:$0xff] }
 0xd6a   :  { %v13974_v42 = vmul.f32 %v7547_v16, %v7539_v9  ;;  %v10305_v16 = vld [vmem:[%s14184_s8 + $0x60] sm:$0xf]  ;;  %v10917_v9 = vld [vmem:[%s14184_s8 + $0xc4] sm:$0xf]  ;;  %7850 = vmatpush.bf16.msra.mxu2 %v10314_v31  ;;  %7863 = vmatpush.bf16.msrb.mxu3 %v10378_v4  ;;  %v10278_v26 = vor.u32 %v10897_v14, %v10275_v10  ;;  %v10895_v31 = vld [vmem:[%s14184_s8 + $0x14] sm:$0xf] }
 0xd6b   :  { %v7959_v46 = vld [vmem:[%s11513_s20 + $0x48] sm:$0xff]  ;;  %v7972_v14 = vld [vmem:[%s11513_s20 + $0xb0] sm:$0xff] }
 0xd6c   :  { %v7549_v49 = vmul.f32 %v13974_v42, %v13974_v42 }
 0xd6e   :  { %v7551_v44 = vrot.slane %v7549_v49, 7  ;;  %v10355_v49 = vld [vmem:[%s14184_s8 + $0xc8] sm:$0xf0]  ;;  %7864 = vmatpush.bf16.msrb.mxu3 %v10370_v45 }
 0xd6f   :  { %v10358_v40 = vor.u32 %v10917_v9, %v10355_v49  ;;  %v10911_v9 = vld [vmem:[%s14184_s8 + $0x94] sm:$0xf]  ;;  %v10331_v49 = vld [vmem:[%s14184_s8 + $0x98] sm:$0xf0]  ;;  %v10259_v45 = vld [vmem:[%s14184_s8 + $0x8] sm:$0xf0] }
 0xd70   :  { %v7553_v52 = vsub.f32 %v13974_v42, %v7551_v44 }
 0xd71   :  { %7892 = vmatpush.bf16.msrb.mxu1 %v10358_v40  ;;  %v10334_v40 = vor.u32 %v10911_v9, %v10331_v49  ;;  %v7902_v49 = vld [vmem:[%s14187_s24] sm:$0xff] }
 0xd72   :  { %v13979_v27 = vadd.f32 1e-05, %v7553_v52  ;;  %v10906_v52 = vld [vmem:[%s14184_s8 + $0x64] sm:$0xf0]  ;;  %7865 = vmatpush.bf16.msrb.mxu3 %v10362_v41 }
 0xd74   :  { %11303 = vrsqrt.f32 %v13979_v27  ;;  %vm7562_vm8 = vweird.f32 %v13979_v27 }
 0xd75   :  { %7893 = vmatpush.bf16.msrb.mxu1 %v10350_v63  ;;  %v7958_v63 = vld [vmem:[%s11513_s20 + $0x40] sm:$0xff] }
 0xd76   :  { %7866 = vmatpush.bf16.msrb.mxu3 %v10354_v51 }
 0xd79   :  { %7894 = vmatpush.bf16.msrb.mxu1 %v10342_v18 }
 0xd7a   :  { %v13991_v5 = vpop.eup %11303  ;;  %7867 = vmatpush.bf16.msrb.mxu3 %v10346_v25  ;;  %v7977_v25 = vld [vmem:[%s11513_s20 + $0xd8] sm:$0xff] }
 0xd7b   :  { %v7557_v47 = vmul.f32 %v13991_v5, %v13979_v27  ;;  %vm7563_vm7 = vweird.f32 %v13991_v5  ;;  %v10306_v27 = vor.u32 %v10906_v52, %v10305_v16  ;;  %v10267_v16 = vld [vmem:[%s14184_s8 + $0x18] sm:$0xf0] }
 0xd7c   :  { %vm7564_vm9 = vmor %vm7562_vm8, %vm7563_vm7  ;;  %v10270_v52 = vor.u32 %v10895_v31, %v10267_v16  ;;  %v7969_v16 = vld [vmem:[%s11513_s20 + $0x98] sm:$0xff] }
 0xd7d   :  { %v7558_v17 = vmul.f32 %v13991_v5, %v7557_v47  ;;  %7851 = vmatpush.bf16.msra.mxu2 %v10306_v27  ;;  %v7572_v47 = vld [vmem:[%s14186_s19] sm:$0x1]  ;;  %v10893_v27 = vld [vmem:[%s14184_s8 + $0x4] sm:$0xf]  ;;  %7895 = vmatpush.bf16.msrb.mxu1 %v10334_v40  ;;  %v7951_v40 = vld [vmem:[%s11513_s20 + $0x8] sm:$0xff] }
 0xd7e   :  { %7868 = vmatpush.bf16.msrb.mxu3 %v10338_v54 }
 0xd7f   :  { %v7559_v55 = vmul.f32 0.5, %v7558_v17  ;;  %v10283_v17 = vld [vmem:[%s14184_s8 + $0x38] sm:$0xf0] }
 0xd80   :  { %v10286_v19 = vor.u32 %v10899_v21, %v10283_v17  ;;  %v7978_v21 = vld [vmem:[%s11513_s20 + $0xe0] sm:$0xff]  ;;  %v7961_v17 = vld [vmem:[%s11513_s20 + $0x58] sm:$0xff] }
 0xd81   :  { %v7560_v36 = vsub.f32 1.5, %v7559_v55  ;;  %7852 = vmatpush.bf16.msra.mxu2 %v10298_v34  ;;  %v10274_v55 = vor.u32 %v10898_v56, %v10273_v22  ;;  %v10326_v34 = vor.u32 %v10909_v23, %v10323_v43  ;;  %v7975_v22 = vld [vmem:[%s11513_s20 + $0xc8] sm:$0xff]  ;;  %v7974_v56 = vld [vmem:[%s11513_s20 + $0xc0] sm:$0xff] }
 0xd82   :  { %7880 = vmatpush.bf16.msra.mxu0 %v10286_v19  ;;  %v7960_v19 = vld [vmem:[%s11513_s20 + $0x50] sm:$0xff]  ;;  %v7950_v23 = vld [vmem:[%s11513_s20] sm:$0xff]  ;;  %v7967_v43 = vld [vmem:[%s11513_s20 + $0x88] sm:$0xff] }
 0xd83   :  { %v7561_v44 = vmul.f32 %v13991_v5, %v7560_v36  ;;  %v10265_v36 = vld [vmem:[%s14184_s8 + $0x10] sm:$0xf]  ;;  %7896 = vmatpush.bf16.msrb.mxu1 %v10326_v34  ;;  %v11288_v34 = vld [vmem:[%s11523_s4] ss:$0 sm:$0xff] }
 0xd84   :  { %v10266_v4 = vor.u32 %v10896_v58, %v10265_v36  ;;  %v7971_v36 = vld [vmem:[%s11513_s20 + $0xa8] sm:$0xff]  ;;  %v7954_v58 = vld [vmem:[%s11513_s20 + $0x20] sm:$0xff] }
 0xd85   :  { %v7565_v3 = vsel %vm7564_vm9, %v13991_v5, %v7561_v44  ;;  %7853 = vmatpush.bf16.msra.mxu2 %v10290_v48  ;;  %v10330_v44 = vor.u32 %v10912_v1, %v10329_v32  ;;  %v7970_v32 = vld [vmem:[%s11513_s20 + $0xa0] sm:$0xff]  ;;  %v7953_v1 = vld [vmem:[%s11513_s20 + $0x18] sm:$0xff] }
 0xd86   :  { %7567 = vst [vmem:[#allocation1] sm:$0xff] %v7565_v3  ;;  %7881 = vmatpush.bf16.msra.mxu0 %v10278_v26  ;;  %v10910_v3 = vld [vmem:[%s14184_s8 + $0x84] sm:$0xf0] }
 0xd87   :  { %7869 = vmatpush.bf16.msrb.mxu3 %v10330_v44  ;;  %v10322_v59 = vor.u32 %v10910_v3, %v10321_v35  ;;  %v7955_v26 = vld [vmem:[%s11513_s20 + $0x28] sm:$0xff]  ;;  %v7952_v44 = vld [vmem:[%s11513_s20 + $0x10] sm:$0xff] }
 0xd8a   :  { %7882 = vmatpush.bf16.msra.mxu0 %v10270_v52 }
 0xd8b   :  { %7870 = vmatpush.bf16.msrb.mxu3 %v10322_v59 }
 0xd8d   :  { %v7569_v24 = vld [vmem:[#allocation1 + $0x1] ss:$9 sm:$0xff] }
 0xd8e   :  { %v7571_v5 = vmul.f32 %v7569_v24, %v7554_v29  ;;  %v10262_v29 = vor.u32 %v10893_v27, %v10259_v45 }
 0xd90   :  { %v7573_v7 = vmul.f32 %v7571_v5, %v13974_v42  ;;  %v10282_v42 = vor.u32 %v10900_v57, %v10281_v50  ;;  %7883 = vmatpush.bf16.msra.mxu0 %v10262_v29  ;;  %v7981_v50 = vld [vmem:[%s11513_s20 + $0xf8] sm:$0xff]  ;;  %v7980_v57 = vld [vmem:[%s11513_s20 + $0xf0] sm:$0xff] }
 0xd91   :  { %8006 = vmatpush.msra.mxu1 %v7981_v50 }
 0xd92   :  { %v7574_v0 = vsub.f32 %v7572_v47, %v7573_v7  ;;  %7854 = vmatpush.bf16.msra.mxu2 %v10282_v42  ;;  %v7979_v42 = vld [vmem:[%s11513_s20 + $0xe8] sm:$0xff] }
 0xd93   :  { %8007 = vmatpush.msra.mxu1 %v7980_v57 }
 0xd94   :  { %v7576_v60 = vperm.slane %v7574_v0, 0 }
 0xd95   :  { %8008 = vmatpush.msra.mxu1 %v7979_v42 }
 0xd96   :  { %v7578_v13 = vsel %vm2408_vm1, %v7571_v5, %v7576_v60  ;;  %7855 = vmatpush.bf16.msra.mxu2 %v10274_v55  ;;  %v7956_v55 = vld [vmem:[%s11513_s20 + $0x30] sm:$0xff] }
 0xd97   :  { %10253 = vmatmul.msk.f32.vlgmr.msrb.gmra.mxu2 %vm752_vm0, %v7578_v13  ;;  %10254 = vmatmul.msk.f32.vlgmr.msra.gmra.mxu3 %vm752_vm0, %v7578_v13  ;;  %vm8026_vm0 = vcmask 517120  }
 0xd98   :  { %8009 = vmatpush.msra.mxu1 %v7978_v21 }
 0xd9a   :  { %7856 = vmatpush.bf16.msra.mxu2 %v10266_v4  ;;  %8010 = vmatpush.msra.mxu1 %v7977_v25  ;;  %v7906_v4 = vld [vmem:[%s11518_s27] sm:$0x3]  ;;  %s8035_s27 = sshll.u32 %s11528_s6, 4  ;;  %s8036_s27 = int_to_ptr.hbm [resolvable:$true] %s8035_s27 }
 0xd9c   :  { %8011 = vmatpush.msra.mxu1 %v7976_v2 }
 0xd9e   :  { %7857 = vmatpush.bf16.msra.mxu2 %v10258_v11  ;;  %8012 = vmatpush.msra.mxu1 %v7975_v22  ;;  %v7966_v11 = vld [vmem:[%s11513_s20 + $0x80] sm:$0xff] }
 0xda0   :  { %8013 = vmatpush.msra.mxu1 %v7974_v56 }
 0xda2   :  { %8014 = vmatpush.msra.mxu1 %v7973_v38 }
 0xda4   :  { %8015 = vmatpush.msra.mxu1 %v7972_v14 }
 0xda6   :  { %8016 = vmatpush.msra.mxu1 %v7971_v36 }
 0xda8   :  { %8017 = vmatpush.msra.mxu1 %v7970_v32 }
 0xdaa   :  { %8018 = vmatpush.msra.mxu1 %v7969_v16 }
 0xdac   :  { %8019 = vmatpush.msra.mxu1 %v7968_v8 }
 0xdae   :  { %8020 = vmatpush.msra.mxu1 %v7967_v43 }
 0xdb0   :  { %8021 = vmatpush.msra.mxu1 %v7966_v11 }
 0xe1a   :  { %v7623_v41 = vpop.f32.mrf.mxu2  ;;  %v7643_v33 = vpop.f32.mrf.mxu3 }
 0xe1b   :  { %v7646_v62 = vperm.slane %v7623_v41, 0  ;;  %v7647_v20 = vperm.slane %v7643_v33, 0  ;;  %v7650_v24 = vperm.slane %v7623_v41, 1  ;;  %v7651_v48 = vperm.slane %v7643_v33, 1 }
 0xe1d   :  { %v7648_v39 = vmul.f32 %v7646_v62, %v13960_v12  ;;  %v7649_v5 = vmul.f32 %v7647_v20, %v13962_v6  ;;  %v7965_v12 = vld [vmem:[%s11513_s20 + $0x78] sm:$0xff]  ;;  %v7964_v6 = vld [vmem:[%s11513_s20 + $0x70] sm:$0xff]  ;;  %s11321_s20 = sshra.s32 %s8036_s27, 4  ;;  %s11322_s20 = int_to_ptr.hbm [resolvable:$true] %s11321_s20 }
 0xe1e   :  { %7986 = vmatpush.msrb.mxu0 %v7965_v12  ;;  %s11323_s15 = scalar_lea.hbm %s11322_s20, 2  ;;  %p11326_p1 = scmp.lt.s32.totalorder %s11322_s20, %s11528_s6 }
 0xe1f   :  { %v7652_v51 = vadd.f32 %v7650_v24, %v7648_v39  ;;  %v7653_v47 = vadd.f32 %v7651_v48, %v7649_v5  ;;  %p11324_p0 = scmp.ne.s32.totalorder %s11322_s20, %s11323_s15  ;;  %p11327_p2 = scmp.lt.s32.totalorder %s11325_s16, %s11323_s15 }
 0xe20   :  { %7987 = vmatpush.msrb.mxu0 %v7964_v6 }
 0xe21   :  { %11305 = vtanh.f32 %v7652_v51  ;;  %p11328_p3 = por %p11327_p2, %p11326_p1 }
 0xe22   :  { %11307 = vtanh.f32 %v7653_v47  ;;  %7988 = vmatpush.msrb.mxu0 %v7963_v37 }
 0xe23   :  { %p11329_p4 = pnand %p11328_p3, %p11324_p0 }
 0xe24   :  { %7989 = vmatpush.msrb.mxu0 %v7962_v30 }
 0xe26   :  { %7990 = vmatpush.msrb.mxu0 %v7961_v17 }
 0xe27   :  { %v11306_v7 = vpop.eup %11305 }
 0xe28   :  { %v11308_v0 = vpop.eup %11307  ;;  %v7656_v60 = vpack.c.bf16 %v11306_v7, %v11306_v7  ;;  %7991 = vmatpush.msrb.mxu0 %v7960_v19 }
 0xe29   :  { %v7657_v13 = vpack.c.bf16 %v11308_v0, %v11308_v0 }
 0xe2a   :  { %7858 = vmatmul.bf16.vlgmr.msra.gmra.mxu2 %v7656_v60  ;;  %7884 = vmatmul.bf16.vlgmr.msra.gmra.mxu0 %v7656_v60 }
 0xe2b   :  { %7871 = vmatmul.bf16.vlgmr.msrb.gmra.mxu3 %v7657_v13  ;;  %7897 = vmatmul.bf16.vlgmr.msrb.gmra.mxu1 %v7657_v13 }
 0xe2c   :  { %7992 = vmatpush.msrb.mxu0 %v7959_v46 }
 0xe2e   :  { %7993 = vmatpush.msrb.mxu0 %v7958_v63 }
 0xe30   :  { %7994 = vmatpush.msrb.mxu0 %v7957_v28 }
 0xe32   :  { %7995 = vmatpush.msrb.mxu0 %v7956_v55 }
 0xe34   :  { %7996 = vmatpush.msrb.mxu0 %v7955_v26 }
 0xe36   :  { %7997 = vmatpush.msrb.mxu0 %v7954_v58 }
 0xe38   :  { %7998 = vmatpush.msrb.mxu0 %v7953_v1 }
 0xe3a   :  { %7999 = vmatpush.msrb.mxu0 %v7952_v44 }
 0xe3c   :  { %8000 = vmatpush.msrb.mxu0 %v7951_v40 }
 0xe3e   :  { %8001 = vmatpush.msrb.mxu0 %v7950_v23 }
 0xea7   :  { %v7885_v54 = vpop.f32.mrf.mxu0 }
 0xea8   :  { %v7898_v10 = vpop.f32.mrf.mxu1 }
 0xea9   :  { %v7899_v61 = vadd.f32 %v7898_v10, %v7885_v54 }
 0xeab   :  { %v7905_v18 = vmul.f32 %v7903_v15, %v7899_v61 }
 0xead   :  { %7945 = vmatpush.msra.mxu3 %v7905_v18  ;;  %v7859_v31 = vpop.f32.mrf.mxu2 }
 0xeae   :  { %v7872_v9 = vpop.f32.mrf.mxu3  ;;  %10384 = vmatmul.msk.f32.vlgmr.msra.gmra.mxu3 %vm2556_vm6, %v7906_v4 }
 0xeaf   :  { %v7873_v52 = vadd.f32 %v7872_v9, %v7859_v31  ;;  %v7887_v53 = vpop.f32.mrf.mxu0 }
 0xeb0   :  { %v7900_v35 = vpop.f32.mrf.mxu1 }
 0xeb1   :  { %v7904_v3 = vmul.f32 %v7902_v49, %v7873_v52 }
 0xeb3   :  { %7925 = vmatpush.msrb.mxu2 %v7904_v3 }
 0xeb4   :  { %10383 = vmatmul.msk.f32.vlgmr.msrb.gmra.mxu2 %vm2556_vm6, %v7906_v4 }
 0xeb5   :  { %v7861_v27 = vpop.f32.mrf.mxu2 }
 0xeb6   :  { %v7874_v45 = vpop.f32.mrf.mxu3 }
 0xf31   :  { %v7947_v59 = vpop.f32.mrf.mxu3 }
 0xf32   :  { %8022 = vmatmul.f32.vlgmr.msra.gmra.mxu1 %v7947_v59 }
 0xf37   :  { %v7927_v29 = vpop.f32.mrf.mxu2 }
 0xf38   :  { %8002 = vmatmul.f32.vlgmr.msrb.gmra.mxu0 %v7927_v29 }
 0xfaf   :  { %v8023_v33 = vpop.f32.mrf.mxu1 }
 0xfb5   :  { %v8003_v41 = vpop.f32.mrf.mxu0 }
 0xfb6   :  { %v8004_v62 = vadd.f32 %v11288_v34, %v8003_v41 }
 0xfb8   :  { %v8024_v20 = vadd.f32 %v8023_v33, %v8004_v62 }
 0xfba   :  { %8027 = vst.msk [vmem:[#allocation2] sm:$0x3] %vm8026_vm0, %v8024_v20 }
 0xfbb   :  { %11332 = shalt.err (!%p11329_p4)
}
 0xfbc   :  { %8038 = dma.vmem_to_hbm [thread:$0]  %s8034_s12, 32, %s8036_s27, [#allocation3]  }
 0xfbd   :  { %11333 = dma.done.wait [#allocation3], 32  }
 0xfbe   :  { %11334 = vsyncadd [#allocation3], 4294967264 }
 0xfbf   :  { %8043 = vsyncpa [#allocation3], 1 }

</bundles_post_ra>
